<compile_context>
chip_gen: v6e
topology: v6e:2x2x1
jax: 0.10.0
libtpu: 0.0.40
codegen_flags: <defaults>
</compile_context>

<pallas_src>
import jax
import jax.numpy as jnp
import numpy as np
from jax import lax
from jax.experimental import pallas as pl
from jax.experimental.pallas import tpu as pltpu

NEG_SLOPE = 0.1


# ------------------------------ tap helpers -------------------------------- #
def _taps_1x1():
    return ((0, 0),)


def _taps_vert(k):
    pk = (k - 1) // 2
    return tuple((i - pk, 0) for i in range(k))


def _taps_horz(k):
    pk = (k - 1) // 2
    return tuple((0, i - pk) for i in range(k))


def _taps_3x3():
    return tuple((dh, dw) for dh in (-1, 0, 1) for dw in (-1, 0, 1))


# ----------------------------- parameter init ------------------------------ #
def init_conv(key, KH, KW, Cin, Cout, bias):
    kw_key, kb_key = jax.random.split(key)
    fan_in = KH * KW * Cin
    w = jax.random.normal(kw_key, (KH, KW, Cin, Cout), jnp.float32) / jnp.sqrt(
        float(fan_in))
    if bias:
        b = jax.random.normal(kb_key, (Cout,), jnp.float32) * 0.05
    else:
        b = jnp.zeros((Cout,), jnp.float32)
    return {"w": w, "b": b, "has_bias": bias}


def init_soame_params(key, nf, reduction=2):
    gw = nf // reduction
    gwh = gw // 2
    keys = iter(jax.random.split(key, 32))
    p = {}
    p["conv1_a"] = init_conv(next(keys), 1, 1, nf, gw, bias=False)
    p["conv1_b"] = init_conv(next(keys), 1, 1, nf, gw, bias=False)
    for name, k in (("gcn7", 7), ("gcn11", 11), ("gcn15", 15)):
        p[name] = {
            "l1": init_conv(next(keys), k, 1, gw, gwh, bias=True),
            "l2": init_conv(next(keys), 1, k, gwh, gwh, bias=True),
            "r1": init_conv(next(keys), 1, k, gw, gwh, bias=True),
            "r2": init_conv(next(keys), k, 1, gwh, gwh, bias=True),
            "k": k,
        }
    p["k1_1"] = init_conv(next(keys), 3, 3, gwh * 3, gw, bias=False)
    p["k1_2"] = init_conv(next(keys), 3, 3, gw, gw, bias=False)
    p["soa_k2"] = init_conv(next(keys), 1, 1, gw, gw, bias=True)
    p["soa_k3"] = init_conv(next(keys), 3, 3, gw, gw, bias=False)
    p["soa_k4"] = init_conv(next(keys), 3, 3, gw, gw, bias=False)
    p["conv3"] = init_conv(next(keys), 1, 1, gw * reduction, nf, bias=False)
    return p


# ------------------------- fused Pallas forward ----------------------------- #
def build_soame_forward(params, nf, N, H, W, reduction=2):
    gw = nf // reduction
    gwh = gw // 2
    HW = H * W
    assert HW % 128 == 0, "H*W must be a multiple of 128 for lane-dense blocks"
    PAD = 128                      # >= max tap offset |dh|*W + |dw| = 7*16 = 112

    # ---- flatten parameters into kernel layout (T, Cout, Cin) / (Cout, 1) --- #
    arrays = []
    idx = {}
    flops = 0

    def _add(name, arr):
        idx[name] = len(arrays) + 2          # slot 0 = x, slot 1 = masks
        arrays.append(arr)

    def _add_conv(name, cp):
        nonlocal flops
        w = cp["w"]
        KH, KW, Cin, Cout = w.shape
        w3 = jnp.transpose(w.reshape(KH * KW, Cin, Cout), (0, 2, 1))
        _add(name + ".w", w3)
        if cp["has_bias"]:
            _add(name + ".b", cp["b"].reshape(Cout, 1))
        flops += 2 * KH * KW * Cin * Cout * HW * N

    _add_conv("conv1_a", params["conv1_a"])
    _add_conv("conv1_b", params["conv1_b"])
    for g in ("gcn7", "gcn11", "gcn15"):
        for leg in ("l1", "l2", "r1", "r2"):
            _add_conv(g + "." + leg, params[g][leg])
    _add_conv("k1_1", params["k1_1"])
    _add_conv("k1_2", params["k1_2"])
    _add_conv("soa_k2", params["soa_k2"])
    _add_conv("soa_k3", params["soa_k3"])
    _add_conv("soa_k4", params["soa_k4"])
    _add_conv("conv3", params["conv3"])

    # ---- precomputed horizontal-wrap masks (only dw != 0 needs one) --------- #
    all_taps = set(_taps_3x3())
    for k in (7, 11, 15):
        all_taps.update(_taps_vert(k))
        all_taps.update(_taps_horz(k))
    dw_vals = sorted({dw for (_, dw) in all_taps if dw != 0})
    mrow = {dw: i for i, dw in enumerate(dw_vals)}
    wcoord = np.arange(HW, dtype=np.int64) % W
    masks_np = np.stack(
        [((wcoord + dw >= 0) & (wcoord + dw < W)).astype(np.float32)
         for dw in dw_vals], axis=0).reshape(len(dw_vals), 1, HW)
    masks = jnp.asarray(masks_np)

    num_inputs = 2 + len(arrays)
    t11 = _taps_1x1()
    t33 = _taps_3x3()
    gcn_defs = (("gcn7", 7), ("gcn11", 11), ("gcn15", 15))

    def kernel(*refs):
        o_ref = refs[num_inputs]
        x = refs[0][...]                       # (nf, HW)  one image, f32
        masks_ref = refs[1]

        def _lrelu(v):
            return jnp.where(v >= 0, v, NEG_SLOPE * v)

        class _Shifts:
            """Memoized shifted + masked copies of a (C, HW) activation."""

            def __init__(self, val):
                self.val = val
                self.padded = None
                self.memo = {}

            def get(self, dh, dw):
                if dh == 0 and dw == 0:
                    return self.val
                key = (dh, dw)
                if key in self.memo:
                    return self.memo[key]
                if self.padded is None:
                    c = self.val.shape[0]
                    z = jnp.zeros((c, PAD), jnp.float32)
                    self.padded = jnp.concatenate([z, self.val, z], axis=1)
                start = PAD + dh * W + dw      # static python int
                piece = self.padded[:, start:start + HW]
                if dw != 0:                    # vertical OOB handled by zero pad
                    piece = piece * masks_ref[mrow[dw]]      # (1, HW) lane mask
                self.memo[key] = piece
                return piece

        def conv(srcs, wname, taps, bname=None, act=None):
            # srcs: [(shift-cache, lo, hi)] channel slices of the conv's input.
            w_ref = refs[idx[wname]]
            acc = None
            for t, (dh, dw) in enumerate(taps):
                wt = w_ref[t]                                 # (Cout, Cin_total)
                for cache, lo, hi in srcs:
                    piece = cache.get(dh, dw)                 # (hi-lo, HW)
                    part = jnp.dot(wt[:, lo:hi], piece,
                                   preferred_element_type=jnp.float32)
                    acc = part if acc is None else acc + part
            if bname is not None:
                acc = acc + refs[idx[bname]][...]             # (Cout, 1) bcast
            if act == "lrelu":
                acc = _lrelu(acc)
            elif act == "sigmoid":
                acc = 1.0 / (1.0 + jnp.exp(-acc))
            return acc

        x_s = _Shifts(x)
        out_a = conv([(x_s, 0, nf)], "conv1_a.w", t11, act="lrelu")   # (gw, HW)
        out_b = conv([(x_s, 0, nf)], "conv1_b.w", t11, act="lrelu")   # (gw, HW)
        a_s = _Shifts(out_a)                    # shifts shared by all 3 GCNs
        b_s = _Shifts(out_b)

        # GCN stage 1: all vertical convs together, then all horizontal ones,
        # so the shared shifted copies of out_a are reused and die early.
        xl1, xr1 = {}, {}
        for name, k in gcn_defs:
            xl1[name] = conv([(a_s, 0, gw)], name + ".l1.w", _taps_vert(k),
                             bname=name + ".l1.b")
        for name, k in gcn_defs:
            xr1[name] = conv([(a_s, 0, gw)], name + ".r1.w", _taps_horz(k),
                             bname=name + ".r1.b")
        gouts = []
        for name, k in gcn_defs:
            xl = conv([(_Shifts(xl1[name]), 0, gwh)], name + ".l2.w",
                      _taps_horz(k), bname=name + ".l2.b")
            xr = conv([(_Shifts(xr1[name]), 0, gwh)], name + ".r2.w",
                      _taps_vert(k), bname=name + ".r2.b")
            gouts.append(_lrelu(xl + xr))                      # fused add+lrelu
        g7, g11, g15 = gouts

        # k1: conv over channel-concat(g7, g11, g15) == sum of convs on parts
        a1 = conv([(_Shifts(g7), 0, gwh),
                   (_Shifts(g11), gwh, 2 * gwh),
                   (_Shifts(g15), 2 * gwh, 3 * gwh)],
                  "k1_1.w", t33, act="lrelu")                  # (gw, HW)
        a2 = conv([(_Shifts(a1), 0, gw)], "k1_2.w", t33, act="lrelu")

        # SOA branch: sigmoid gate, gate-mul and the outer lrelu all fused
        gate = conv([(b_s, 0, gw)], "soa_k2.w", t11, bname="soa_k2.b",
                    act="sigmoid")
        k3 = conv([(b_s, 0, gw)], "soa_k3.w", t33)
        ob = conv([(_Shifts(k3 * gate), 0, gw)], "soa_k4.w", t33, act="lrelu")

        # conv3 over channel-concat(a2, ob), then residual add
        out = conv([(_Shifts(a2), 0, gw), (_Shifts(ob), gw, 2 * gw)],
                   "conv3.w", t11)
        out = out + x
        o_ref[...] = out.astype(o_ref.dtype)

    # ------------------------------- specs ---------------------------------- #
    def _const_map(nd):
        return lambda n: (0,) * nd

    in_specs = [pl.BlockSpec((nf, HW), lambda n: (0, n)),
                pl.BlockSpec(masks.shape, _const_map(masks.ndim))]
    for arr in arrays:
        in_specs.append(pl.BlockSpec(arr.shape, _const_map(arr.ndim)))
    out_specs = pl.BlockSpec((nf, HW), lambda n: (0, n))

    bytes_accessed = 4 * (2 * nf * N * HW + int(masks.size)
                          + sum(int(a.size) for a in arrays))
    cost = pl.CostEstimate(flops=int(flops),
                           transcendentals=int(N * gw * HW),
                           bytes_accessed=int(bytes_accessed))

    fwd = pl.pallas_call(
        kernel,
        out_shape=jax.ShapeDtypeStruct((nf, N * HW), jnp.float32),
        grid=(N,),
        in_specs=in_specs,
        out_specs=out_specs,
        compiler_params=pltpu.CompilerParams(
            dimension_semantics=("parallel",),
            vmem_limit_bytes=32 * 1024 * 1024,
            internal_scratch_in_bytes=2 * 1024 * 1024,
        ),
        cost_estimate=cost,
    )

    @jax.jit
    def run(x_nhwc):
        # NHWC -> (C, N*H*W): spatial on the lane axis, channels on sublanes.
        x_cm = jnp.transpose(x_nhwc, (3, 0, 1, 2)).reshape(nf, N * HW)
        out_cm = fwd(x_cm, masks, *arrays)
        return jnp.transpose(out_cm.reshape(nf, N, H, W), (1, 2, 3, 0))

    return run


# ----------------------------- pure-JAX reference --------------------------- #
def _ref_conv(x, w, b, pad):
    out = lax.conv_general_dilated(
        x, w, window_strides=(1, 1),
        padding=((pad[0], pad[0]), (pad[1], pad[1])),
        dimension_numbers=("NHWC", "HWIO", "NHWC"))
    return out + b


def _lrelu_ref(v):
    return jnp.where(v >= 0, v, NEG_SLOPE * v)


def soame_reference(x, p):
    residual = x
    out_a = _lrelu_ref(_ref_conv(x, p["conv1_a"]["w"], p["conv1_a"]["b"], (0, 0)))
    out_b = _lrelu_ref(_ref_conv(x, p["conv1_b"]["w"], p["conv1_b"]["b"], (0, 0)))

    def gcn(xx, gp):
        k = gp["k"]
        pk = (k - 1) // 2
        xl = _ref_conv(xx, gp["l1"]["w"], gp["l1"]["b"], (pk, 0))
        xl = _ref_conv(xl, gp["l2"]["w"], gp["l2"]["b"], (0, pk))
        xr = _ref_conv(xx, gp["r1"]["w"], gp["r1"]["b"], (0, pk))
        xr = _ref_conv(xr, gp["r2"]["w"], gp["r2"]["b"], (pk, 0))
        return _lrelu_ref(xl + xr)

    cat_a = jnp.concatenate(
        [gcn(out_a, p["gcn7"]), gcn(out_a, p["gcn11"]), gcn(out_a, p["gcn15"])],
        axis=-1)
    a = _lrelu_ref(_ref_conv(cat_a, p["k1_1"]["w"], p["k1_1"]["b"], (1, 1)))
    a = _lrelu_ref(_ref_conv(a, p["k1_2"]["w"], p["k1_2"]["b"], (1, 1)))
    y = jax.nn.sigmoid(_ref_conv(out_b, p["soa_k2"]["w"], p["soa_k2"]["b"],
                                 (0, 0)))
    ob = _ref_conv(out_b, p["soa_k3"]["w"], p["soa_k3"]["b"], (1, 1)) * y
    ob = _lrelu_ref(_ref_conv(ob, p["soa_k4"]["w"], p["soa_k4"]["b"], (1, 1)))
    out = _ref_conv(jnp.concatenate([a, ob], axis=-1), p["conv3"]["w"],
                    p["conv3"]["b"], (0, 0))
    return out + residual


# ---------------------------------- main ------------------------------------ #
if __name__ == "__main__":
    nf = 8                       # -> group_width = 4, group_width // 2 = 2
    N, H, W = 2, 16, 16
    key = jax.random.PRNGKey(0)
    kx, kp = jax.random.split(key)

    # PyTorch-equivalent input is NCHW (N, nf, H, W); kernel works layout-free
    # on a (C, N*H*W) view internally.
    x_nchw = jax.random.normal(kx, (N, nf, H, W), jnp.float32)
    x = jnp.transpose(x_nchw, (0, 2, 3, 1))   # NHWC

    params = init_soame_params(kp, nf)
    fwd = build_soame_forward(params, nf, N, H, W)

    out = jax.block_until_ready(fwd(x))
    assert out.shape == (N, H, W, nf)

    ref = soame_reference(x, params)
    np.testing.assert_allclose(np.asarray(out), np.asarray(ref),
                               rtol=2e-3, atol=2e-3)
    print("KERNEL_OK")
</pallas_src>

<mosaic_0001>
module attributes {stable_mosaic.version = 11 : i64} {
  func.func @kernel(%arg0: i32, %arg1: memref<8x256xf32, #tpu.memory_space<vmem>>, %arg2: memref<14x1x256xf32, #tpu.memory_space<vmem>>, %arg3: memref<1x4x8xf32, #tpu.memory_space<vmem>>, %arg4: memref<1x4x8xf32, #tpu.memory_space<vmem>>, %arg5: memref<7x2x4xf32, #tpu.memory_space<vmem>>, %arg6: memref<2x1xf32, #tpu.memory_space<vmem>>, %arg7: memref<7x2x2xf32, #tpu.memory_space<vmem>>, %arg8: memref<2x1xf32, #tpu.memory_space<vmem>>, %arg9: memref<7x2x4xf32, #tpu.memory_space<vmem>>, %arg10: memref<2x1xf32, #tpu.memory_space<vmem>>, %arg11: memref<7x2x2xf32, #tpu.memory_space<vmem>>, %arg12: memref<2x1xf32, #tpu.memory_space<vmem>>, %arg13: memref<11x2x4xf32, #tpu.memory_space<vmem>>, %arg14: memref<2x1xf32, #tpu.memory_space<vmem>>, %arg15: memref<11x2x2xf32, #tpu.memory_space<vmem>>, %arg16: memref<2x1xf32, #tpu.memory_space<vmem>>, %arg17: memref<11x2x4xf32, #tpu.memory_space<vmem>>, %arg18: memref<2x1xf32, #tpu.memory_space<vmem>>, %arg19: memref<11x2x2xf32, #tpu.memory_space<vmem>>, %arg20: memref<2x1xf32, #tpu.memory_space<vmem>>, %arg21: memref<15x2x4xf32, #tpu.memory_space<vmem>>, %arg22: memref<2x1xf32, #tpu.memory_space<vmem>>, %arg23: memref<15x2x2xf32, #tpu.memory_space<vmem>>, %arg24: memref<2x1xf32, #tpu.memory_space<vmem>>, %arg25: memref<15x2x4xf32, #tpu.memory_space<vmem>>, %arg26: memref<2x1xf32, #tpu.memory_space<vmem>>, %arg27: memref<15x2x2xf32, #tpu.memory_space<vmem>>, %arg28: memref<2x1xf32, #tpu.memory_space<vmem>>, %arg29: memref<9x4x6xf32, #tpu.memory_space<vmem>>, %arg30: memref<9x4x4xf32, #tpu.memory_space<vmem>>, %arg31: memref<1x4x4xf32, #tpu.memory_space<vmem>>, %arg32: memref<4x1xf32, #tpu.memory_space<vmem>>, %arg33: memref<9x4x4xf32, #tpu.memory_space<vmem>>, %arg34: memref<9x4x4xf32, #tpu.memory_space<vmem>>, %arg35: memref<1x8x8xf32, #tpu.memory_space<vmem>>, %arg36: memref<8x256xf32, #tpu.memory_space<vmem>>) attributes {dimension_semantics = [#tpu.dimension_semantics<parallel>], iteration_bounds = array<i64: 2>, scalar_prefetch = 0 : i64, scratch_operands = 0 : i64, tpu.core_type = #tpu.core_type<tc>, window_params = [{transform_indices = @transform_0, window_bounds = array<i64: 8, 256>}, {pipeline_mode = #tpu.pipeline_mode<synchronous>, transform_indices = @transform_1, window_bounds = array<i64: 14, 1, 256>}, {pipeline_mode = #tpu.pipeline_mode<synchronous>, transform_indices = @transform_2, window_bounds = array<i64: 1, 4, 8>}, {pipeline_mode = #tpu.pipeline_mode<synchronous>, transform_indices = @transform_3, window_bounds = array<i64: 1, 4, 8>}, {pipeline_mode = #tpu.pipeline_mode<synchronous>, transform_indices = @transform_4, window_bounds = array<i64: 7, 2, 4>}, {pipeline_mode = #tpu.pipeline_mode<synchronous>, transform_indices = @transform_5, window_bounds = array<i64: 2, 1>}, {pipeline_mode = #tpu.pipeline_mode<synchronous>, transform_indices = @transform_6, window_bounds = array<i64: 7, 2, 2>}, {pipeline_mode = #tpu.pipeline_mode<synchronous>, transform_indices = @transform_7, window_bounds = array<i64: 2, 1>}, {pipeline_mode = #tpu.pipeline_mode<synchronous>, transform_indices = @transform_8, window_bounds = array<i64: 7, 2, 4>}, {pipeline_mode = #tpu.pipeline_mode<synchronous>, transform_indices = @transform_9, window_bounds = array<i64: 2, 1>}, {pipeline_mode = #tpu.pipeline_mode<synchronous>, transform_indices = @transform_10, window_bounds = array<i64: 7, 2, 2>}, {pipeline_mode = #tpu.pipeline_mode<synchronous>, transform_indices = @transform_11, window_bounds = array<i64: 2, 1>}, {pipeline_mode = #tpu.pipeline_mode<synchronous>, transform_indices = @transform_12, window_bounds = array<i64: 11, 2, 4>}, {pipeline_mode = #tpu.pipeline_mode<synchronous>, transform_indices = @transform_13, window_bounds = array<i64: 2, 1>}, {pipeline_mode = #tpu.pipeline_mode<synchronous>, transform_indices = @transform_14, window_bounds = array<i64: 11, 2, 2>}, {pipeline_mode = #tpu.pipeline_mode<synchronous>, transform_indices = @transform_15, window_bounds = array<i64: 2, 1>}, {pipeline_mode = #tpu.pipeline_mode<synchronous>, transform_indices = @transform_16, window_bounds = array<i64: 11, 2, 4>}, {pipeline_mode = #tpu.pipeline_mode<synchronous>, transform_indices = @transform_17, window_bounds = array<i64: 2, 1>}, {pipeline_mode = #tpu.pipeline_mode<synchronous>, transform_indices = @transform_18, window_bounds = array<i64: 11, 2, 2>}, {pipeline_mode = #tpu.pipeline_mode<synchronous>, transform_indices = @transform_19, window_bounds = array<i64: 2, 1>}, {pipeline_mode = #tpu.pipeline_mode<synchronous>, transform_indices = @transform_20, window_bounds = array<i64: 15, 2, 4>}, {pipeline_mode = #tpu.pipeline_mode<synchronous>, transform_indices = @transform_21, window_bounds = array<i64: 2, 1>}, {pipeline_mode = #tpu.pipeline_mode<synchronous>, transform_indices = @transform_22, window_bounds = array<i64: 15, 2, 2>}, {pipeline_mode = #tpu.pipeline_mode<synchronous>, transform_indices = @transform_23, window_bounds = array<i64: 2, 1>}, {pipeline_mode = #tpu.pipeline_mode<synchronous>, transform_indices = @transform_24, window_bounds = array<i64: 15, 2, 4>}, {pipeline_mode = #tpu.pipeline_mode<synchronous>, transform_indices = @transform_25, window_bounds = array<i64: 2, 1>}, {pipeline_mode = #tpu.pipeline_mode<synchronous>, transform_indices = @transform_26, window_bounds = array<i64: 15, 2, 2>}, {pipeline_mode = #tpu.pipeline_mode<synchronous>, transform_indices = @transform_27, window_bounds = array<i64: 2, 1>}, {pipeline_mode = #tpu.pipeline_mode<synchronous>, transform_indices = @transform_28, window_bounds = array<i64: 9, 4, 6>}, {pipeline_mode = #tpu.pipeline_mode<synchronous>, transform_indices = @transform_29, window_bounds = array<i64: 9, 4, 4>}, {pipeline_mode = #tpu.pipeline_mode<synchronous>, transform_indices = @transform_30, window_bounds = array<i64: 1, 4, 4>}, {pipeline_mode = #tpu.pipeline_mode<synchronous>, transform_indices = @transform_31, window_bounds = array<i64: 4, 1>}, {pipeline_mode = #tpu.pipeline_mode<synchronous>, transform_indices = @transform_32, window_bounds = array<i64: 9, 4, 4>}, {pipeline_mode = #tpu.pipeline_mode<synchronous>, transform_indices = @transform_33, window_bounds = array<i64: 9, 4, 4>}, {pipeline_mode = #tpu.pipeline_mode<synchronous>, transform_indices = @transform_34, window_bounds = array<i64: 1, 8, 8>}, {transform_indices = @transform_35, window_bounds = array<i64: 8, 256>}]} {
    %c0 = arith.constant 0 : index
    %c0_0 = arith.constant 0 : index
    %0 = vector.load %arg1[%c0, %c0_0] : memref<8x256xf32, #tpu.memory_space<vmem>>, vector<8x256xf32>
    %c0_1 = arith.constant 0 : index
    %c0_2 = arith.constant 0 : index
    %c0_3 = arith.constant 0 : index
    %1 = vector.load %arg3[%c0_1, %c0_2, %c0_3] : memref<1x4x8xf32, #tpu.memory_space<vmem>>, vector<1x4x8xf32>
    %2 = vector.shape_cast %1 : vector<1x4x8xf32> to vector<4x8xf32>
    %cst = arith.constant dense<0.000000e+00> : vector<4x256xf32>
    %3 = tpu.matmul %2, %0, %cst {dimension_numbers = #tpu.dot_dimension_numbers<[1], [0], [0], [1], [0, 0, 1, 1], [], []>} : vector<4x8xf32>, vector<8x256xf32>, vector<4x256xf32> -> vector<4x256xf32>
    %cst_4 = arith.constant 0.000000e+00 : f32
    %4 = vector.broadcast %cst_4 : f32 to vector<4x256xf32>
    %5 = arith.cmpf oge, %3, %4 : vector<4x256xf32>
    %cst_5 = arith.constant 1.000000e-01 : f32
    %6 = vector.broadcast %cst_5 : f32 to vector<4x256xf32>
    %7 = arith.mulf %6, %3 : vector<4x256xf32>
    %8 = arith.select %5, %3, %7 : vector<4x256xi1>, vector<4x256xf32>
    %c0_6 = arith.constant 0 : index
    %c0_7 = arith.constant 0 : index
    %c0_8 = arith.constant 0 : index
    %9 = vector.load %arg4[%c0_6, %c0_7, %c0_8] : memref<1x4x8xf32, #tpu.memory_space<vmem>>, vector<1x4x8xf32>
    %10 = vector.shape_cast %9 : vector<1x4x8xf32> to vector<4x8xf32>
    %cst_9 = arith.constant dense<0.000000e+00> : vector<4x256xf32>
    %11 = tpu.matmul %10, %0, %cst_9 {dimension_numbers = #tpu.dot_dimension_numbers<[1], [0], [0], [1], [0, 0, 1, 1], [], []>} : vector<4x8xf32>, vector<8x256xf32>, vector<4x256xf32> -> vector<4x256xf32>
    %cst_10 = arith.constant 0.000000e+00 : f32
    %12 = vector.broadcast %cst_10 : f32 to vector<4x256xf32>
    %13 = arith.cmpf oge, %11, %12 : vector<4x256xf32>
    %cst_11 = arith.constant 1.000000e-01 : f32
    %14 = vector.broadcast %cst_11 : f32 to vector<4x256xf32>
    %15 = arith.mulf %14, %11 : vector<4x256xf32>
    %16 = arith.select %13, %11, %15 : vector<4x256xi1>, vector<4x256xf32>
    %c0_12 = arith.constant 0 : index
    %c0_13 = arith.constant 0 : index
    %c0_14 = arith.constant 0 : index
    %17 = vector.load %arg5[%c0_12, %c0_13, %c0_14] : memref<7x2x4xf32, #tpu.memory_space<vmem>>, vector<1x2x4xf32>
    %18 = vector.shape_cast %17 : vector<1x2x4xf32> to vector<2x4xf32>
    %cst_15 = arith.constant 0.000000e+00 : f32
    %19 = vector.broadcast %cst_15 : f32 to vector<4x128xf32>
    %20 = tpu.concatenate %19, %8, %19 in 1 : vector<4x128xf32>, vector<4x256xf32>, vector<4x128xf32> -> vector<4x512xf32>
    %21 = vector.extract_strided_slice %20 {offsets = [0, 80], sizes = [4, 256], strides = [1, 1]} : vector<4x512xf32> to vector<4x256xf32>
    %cst_16 = arith.constant dense<0.000000e+00> : vector<2x256xf32>
    %22 = tpu.matmul %18, %21, %cst_16 {dimension_numbers = #tpu.dot_dimension_numbers<[1], [0], [0], [1], [0, 0, 1, 1], [], []>} : vector<2x4xf32>, vector<4x256xf32>, vector<2x256xf32> -> vector<2x256xf32>
    %c1 = arith.constant 1 : index
    %c0_17 = arith.constant 0 : index
    %c0_18 = arith.constant 0 : index
    %23 = vector.load %arg5[%c1, %c0_17, %c0_18] : memref<7x2x4xf32, #tpu.memory_space<vmem>>, vector<1x2x4xf32>
    %24 = vector.shape_cast %23 : vector<1x2x4xf32> to vector<2x4xf32>
    %25 = vector.extract_strided_slice %20 {offsets = [0, 96], sizes = [4, 256], strides = [1, 1]} : vector<4x512xf32> to vector<4x256xf32>
    %cst_19 = arith.constant dense<0.000000e+00> : vector<2x256xf32>
    %26 = tpu.matmul %24, %25, %cst_19 {dimension_numbers = #tpu.dot_dimension_numbers<[1], [0], [0], [1], [0, 0, 1, 1], [], []>} : vector<2x4xf32>, vector<4x256xf32>, vector<2x256xf32> -> vector<2x256xf32>
    %27 = arith.addf %22, %26 : vector<2x256xf32>
    %c2 = arith.constant 2 : index
    %c0_20 = arith.constant 0 : index
    %c0_21 = arith.constant 0 : index
    %28 = vector.load %arg5[%c2, %c0_20, %c0_21] : memref<7x2x4xf32, #tpu.memory_space<vmem>>, vector<1x2x4xf32>
    %29 = vector.shape_cast %28 : vector<1x2x4xf32> to vector<2x4xf32>
    %30 = vector.extract_strided_slice %20 {offsets = [0, 112], sizes = [4, 256], strides = [1, 1]} : vector<4x512xf32> to vector<4x256xf32>
    %cst_22 = arith.constant dense<0.000000e+00> : vector<2x256xf32>
    %31 = tpu.matmul %29, %30, %cst_22 {dimension_numbers = #tpu.dot_dimension_numbers<[1], [0], [0], [1], [0, 0, 1, 1], [], []>} : vector<2x4xf32>, vector<4x256xf32>, vector<2x256xf32> -> vector<2x256xf32>
    %32 = arith.addf %27, %31 : vector<2x256xf32>
    %c3 = arith.constant 3 : index
    %c0_23 = arith.constant 0 : index
    %c0_24 = arith.constant 0 : index
    %33 = vector.load %arg5[%c3, %c0_23, %c0_24] : memref<7x2x4xf32, #tpu.memory_space<vmem>>, vector<1x2x4xf32>
    %34 = vector.shape_cast %33 : vector<1x2x4xf32> to vector<2x4xf32>
    %cst_25 = arith.constant dense<0.000000e+00> : vector<2x256xf32>
    %35 = tpu.matmul %34, %8, %cst_25 {dimension_numbers = #tpu.dot_dimension_numbers<[1], [0], [0], [1], [0, 0, 1, 1], [], []>} : vector<2x4xf32>, vector<4x256xf32>, vector<2x256xf32> -> vector<2x256xf32>
    %36 = arith.addf %32, %35 : vector<2x256xf32>
    %c4 = arith.constant 4 : index
    %c0_26 = arith.constant 0 : index
    %c0_27 = arith.constant 0 : index
    %37 = vector.load %arg5[%c4, %c0_26, %c0_27] : memref<7x2x4xf32, #tpu.memory_space<vmem>>, vector<1x2x4xf32>
    %38 = vector.shape_cast %37 : vector<1x2x4xf32> to vector<2x4xf32>
    %39 = vector.extract_strided_slice %20 {offsets = [0, 144], sizes = [4, 256], strides = [1, 1]} : vector<4x512xf32> to vector<4x256xf32>
    %cst_28 = arith.constant dense<0.000000e+00> : vector<2x256xf32>
    %40 = tpu.matmul %38, %39, %cst_28 {dimension_numbers = #tpu.dot_dimension_numbers<[1], [0], [0], [1], [0, 0, 1, 1], [], []>} : vector<2x4xf32>, vector<4x256xf32>, vector<2x256xf32> -> vector<2x256xf32>
    %41 = arith.addf %36, %40 : vector<2x256xf32>
    %c5 = arith.constant 5 : index
    %c0_29 = arith.constant 0 : index
    %c0_30 = arith.constant 0 : index
    %42 = vector.load %arg5[%c5, %c0_29, %c0_30] : memref<7x2x4xf32, #tpu.memory_space<vmem>>, vector<1x2x4xf32>
    %43 = vector.shape_cast %42 : vector<1x2x4xf32> to vector<2x4xf32>
    %44 = vector.extract_strided_slice %20 {offsets = [0, 160], sizes = [4, 256], strides = [1, 1]} : vector<4x512xf32> to vector<4x256xf32>
    %cst_31 = arith.constant dense<0.000000e+00> : vector<2x256xf32>
    %45 = tpu.matmul %43, %44, %cst_31 {dimension_numbers = #tpu.dot_dimension_numbers<[1], [0], [0], [1], [0, 0, 1, 1], [], []>} : vector<2x4xf32>, vector<4x256xf32>, vector<2x256xf32> -> vector<2x256xf32>
    %46 = arith.addf %41, %45 : vector<2x256xf32>
    %c6 = arith.constant 6 : index
    %c0_32 = arith.constant 0 : index
    %c0_33 = arith.constant 0 : index
    %47 = vector.load %arg5[%c6, %c0_32, %c0_33] : memref<7x2x4xf32, #tpu.memory_space<vmem>>, vector<1x2x4xf32>
    %48 = vector.shape_cast %47 : vector<1x2x4xf32> to vector<2x4xf32>
    %49 = vector.extract_strided_slice %20 {offsets = [0, 176], sizes = [4, 256], strides = [1, 1]} : vector<4x512xf32> to vector<4x256xf32>
    %cst_34 = arith.constant dense<0.000000e+00> : vector<2x256xf32>
    %50 = tpu.matmul %48, %49, %cst_34 {dimension_numbers = #tpu.dot_dimension_numbers<[1], [0], [0], [1], [0, 0, 1, 1], [], []>} : vector<2x4xf32>, vector<4x256xf32>, vector<2x256xf32> -> vector<2x256xf32>
    %51 = arith.addf %46, %50 : vector<2x256xf32>
    %c0_35 = arith.constant 0 : index
    %c0_36 = arith.constant 0 : index
    %52 = vector.load %arg6[%c0_35, %c0_36] : memref<2x1xf32, #tpu.memory_space<vmem>>, vector<2x1xf32>
    %53 = vector.broadcast %52 : vector<2x1xf32> to vector<2x256xf32>
    %54 = arith.addf %51, %53 : vector<2x256xf32>
    %c0_37 = arith.constant 0 : index
    %c0_38 = arith.constant 0 : index
    %c0_39 = arith.constant 0 : index
    %55 = vector.load %arg13[%c0_37, %c0_38, %c0_39] : memref<11x2x4xf32, #tpu.memory_space<vmem>>, vector<1x2x4xf32>
    %56 = vector.shape_cast %55 : vector<1x2x4xf32> to vector<2x4xf32>
    %57 = vector.extract_strided_slice %20 {offsets = [0, 48], sizes = [4, 256], strides = [1, 1]} : vector<4x512xf32> to vector<4x256xf32>
    %cst_40 = arith.constant dense<0.000000e+00> : vector<2x256xf32>
    %58 = tpu.matmul %56, %57, %cst_40 {dimension_numbers = #tpu.dot_dimension_numbers<[1], [0], [0], [1], [0, 0, 1, 1], [], []>} : vector<2x4xf32>, vector<4x256xf32>, vector<2x256xf32> -> vector<2x256xf32>
    %c1_41 = arith.constant 1 : index
    %c0_42 = arith.constant 0 : index
    %c0_43 = arith.constant 0 : index
    %59 = vector.load %arg13[%c1_41, %c0_42, %c0_43] : memref<11x2x4xf32, #tpu.memory_space<vmem>>, vector<1x2x4xf32>
    %60 = vector.shape_cast %59 : vector<1x2x4xf32> to vector<2x4xf32>
    %61 = vector.extract_strided_slice %20 {offsets = [0, 64], sizes = [4, 256], strides = [1, 1]} : vector<4x512xf32> to vector<4x256xf32>
    %cst_44 = arith.constant dense<0.000000e+00> : vector<2x256xf32>
    %62 = tpu.matmul %60, %61, %cst_44 {dimension_numbers = #tpu.dot_dimension_numbers<[1], [0], [0], [1], [0, 0, 1, 1], [], []>} : vector<2x4xf32>, vector<4x256xf32>, vector<2x256xf32> -> vector<2x256xf32>
    %63 = arith.addf %58, %62 : vector<2x256xf32>
    %c2_45 = arith.constant 2 : index
    %c0_46 = arith.constant 0 : index
    %c0_47 = arith.constant 0 : index
    %64 = vector.load %arg13[%c2_45, %c0_46, %c0_47] : memref<11x2x4xf32, #tpu.memory_space<vmem>>, vector<1x2x4xf32>
    %65 = vector.shape_cast %64 : vector<1x2x4xf32> to vector<2x4xf32>
    %cst_48 = arith.constant dense<0.000000e+00> : vector<2x256xf32>
    %66 = tpu.matmul %65, %21, %cst_48 {dimension_numbers = #tpu.dot_dimension_numbers<[1], [0], [0], [1], [0, 0, 1, 1], [], []>} : vector<2x4xf32>, vector<4x256xf32>, vector<2x256xf32> -> vector<2x256xf32>
    %67 = arith.addf %63, %66 : vector<2x256xf32>
    %c3_49 = arith.constant 3 : index
    %c0_50 = arith.constant 0 : index
    %c0_51 = arith.constant 0 : index
    %68 = vector.load %arg13[%c3_49, %c0_50, %c0_51] : memref<11x2x4xf32, #tpu.memory_space<vmem>>, vector<1x2x4xf32>
    %69 = vector.shape_cast %68 : vector<1x2x4xf32> to vector<2x4xf32>
    %cst_52 = arith.constant dense<0.000000e+00> : vector<2x256xf32>
    %70 = tpu.matmul %69, %25, %cst_52 {dimension_numbers = #tpu.dot_dimension_numbers<[1], [0], [0], [1], [0, 0, 1, 1], [], []>} : vector<2x4xf32>, vector<4x256xf32>, vector<2x256xf32> -> vector<2x256xf32>
    %71 = arith.addf %67, %70 : vector<2x256xf32>
    %c4_53 = arith.constant 4 : index
    %c0_54 = arith.constant 0 : index
    %c0_55 = arith.constant 0 : index
    %72 = vector.load %arg13[%c4_53, %c0_54, %c0_55] : memref<11x2x4xf32, #tpu.memory_space<vmem>>, vector<1x2x4xf32>
    %73 = vector.shape_cast %72 : vector<1x2x4xf32> to vector<2x4xf32>
    %cst_56 = arith.constant dense<0.000000e+00> : vector<2x256xf32>
    %74 = tpu.matmul %73, %30, %cst_56 {dimension_numbers = #tpu.dot_dimension_numbers<[1], [0], [0], [1], [0, 0, 1, 1], [], []>} : vector<2x4xf32>, vector<4x256xf32>, vector<2x256xf32> -> vector<2x256xf32>
    %75 = arith.addf %71, %74 : vector<2x256xf32>
    %c5_57 = arith.constant 5 : index
    %c0_58 = arith.constant 0 : index
    %c0_59 = arith.constant 0 : index
    %76 = vector.load %arg13[%c5_57, %c0_58, %c0_59] : memref<11x2x4xf32, #tpu.memory_space<vmem>>, vector<1x2x4xf32>
    %77 = vector.shape_cast %76 : vector<1x2x4xf32> to vector<2x4xf32>
    %cst_60 = arith.constant dense<0.000000e+00> : vector<2x256xf32>
    %78 = tpu.matmul %77, %8, %cst_60 {dimension_numbers = #tpu.dot_dimension_numbers<[1], [0], [0], [1], [0, 0, 1, 1], [], []>} : vector<2x4xf32>, vector<4x256xf32>, vector<2x256xf32> -> vector<2x256xf32>
    %79 = arith.addf %75, %78 : vector<2x256xf32>
    %c6_61 = arith.constant 6 : index
    %c0_62 = arith.constant 0 : index
    %c0_63 = arith.constant 0 : index
    %80 = vector.load %arg13[%c6_61, %c0_62, %c0_63] : memref<11x2x4xf32, #tpu.memory_space<vmem>>, vector<1x2x4xf32>
    %81 = vector.shape_cast %80 : vector<1x2x4xf32> to vector<2x4xf32>
    %cst_64 = arith.constant dense<0.000000e+00> : vector<2x256xf32>
    %82 = tpu.matmul %81, %39, %cst_64 {dimension_numbers = #tpu.dot_dimension_numbers<[1], [0], [0], [1], [0, 0, 1, 1], [], []>} : vector<2x4xf32>, vector<4x256xf32>, vector<2x256xf32> -> vector<2x256xf32>
    %83 = arith.addf %79, %82 : vector<2x256xf32>
    %c7 = arith.constant 7 : index
    %c0_65 = arith.constant 0 : index
    %c0_66 = arith.constant 0 : index
    %84 = vector.load %arg13[%c7, %c0_65, %c0_66] : memref<11x2x4xf32, #tpu.memory_space<vmem>>, vector<1x2x4xf32>
    %85 = vector.shape_cast %84 : vector<1x2x4xf32> to vector<2x4xf32>
    %cst_67 = arith.constant dense<0.000000e+00> : vector<2x256xf32>
    %86 = tpu.matmul %85, %44, %cst_67 {dimension_numbers = #tpu.dot_dimension_numbers<[1], [0], [0], [1], [0, 0, 1, 1], [], []>} : vector<2x4xf32>, vector<4x256xf32>, vector<2x256xf32> -> vector<2x256xf32>
    %87 = arith.addf %83, %86 : vector<2x256xf32>
    %c8 = arith.constant 8 : index
    %c0_68 = arith.constant 0 : index
    %c0_69 = arith.constant 0 : index
    %88 = vector.load %arg13[%c8, %c0_68, %c0_69] : memref<11x2x4xf32, #tpu.memory_space<vmem>>, vector<1x2x4xf32>
    %89 = vector.shape_cast %88 : vector<1x2x4xf32> to vector<2x4xf32>
    %cst_70 = arith.constant dense<0.000000e+00> : vector<2x256xf32>
    %90 = tpu.matmul %89, %49, %cst_70 {dimension_numbers = #tpu.dot_dimension_numbers<[1], [0], [0], [1], [0, 0, 1, 1], [], []>} : vector<2x4xf32>, vector<4x256xf32>, vector<2x256xf32> -> vector<2x256xf32>
    %91 = arith.addf %87, %90 : vector<2x256xf32>
    %c9 = arith.constant 9 : index
    %c0_71 = arith.constant 0 : index
    %c0_72 = arith.constant 0 : index
    %92 = vector.load %arg13[%c9, %c0_71, %c0_72] : memref<11x2x4xf32, #tpu.memory_space<vmem>>, vector<1x2x4xf32>
    %93 = vector.shape_cast %92 : vector<1x2x4xf32> to vector<2x4xf32>
    %94 = vector.extract_strided_slice %20 {offsets = [0, 192], sizes = [4, 256], strides = [1, 1]} : vector<4x512xf32> to vector<4x256xf32>
    %cst_73 = arith.constant dense<0.000000e+00> : vector<2x256xf32>
    %95 = tpu.matmul %93, %94, %cst_73 {dimension_numbers = #tpu.dot_dimension_numbers<[1], [0], [0], [1], [0, 0, 1, 1], [], []>} : vector<2x4xf32>, vector<4x256xf32>, vector<2x256xf32> -> vector<2x256xf32>
    %96 = arith.addf %91, %95 : vector<2x256xf32>
    %c10 = arith.constant 10 : index
    %c0_74 = arith.constant 0 : index
    %c0_75 = arith.constant 0 : index
    %97 = vector.load %arg13[%c10, %c0_74, %c0_75] : memref<11x2x4xf32, #tpu.memory_space<vmem>>, vector<1x2x4xf32>
    %98 = vector.shape_cast %97 : vector<1x2x4xf32> to vector<2x4xf32>
    %99 = vector.extract_strided_slice %20 {offsets = [0, 208], sizes = [4, 256], strides = [1, 1]} : vector<4x512xf32> to vector<4x256xf32>
    %cst_76 = arith.constant dense<0.000000e+00> : vector<2x256xf32>
    %100 = tpu.matmul %98, %99, %cst_76 {dimension_numbers = #tpu.dot_dimension_numbers<[1], [0], [0], [1], [0, 0, 1, 1], [], []>} : vector<2x4xf32>, vector<4x256xf32>, vector<2x256xf32> -> vector<2x256xf32>
    %101 = arith.addf %96, %100 : vector<2x256xf32>
    %c0_77 = arith.constant 0 : index
    %c0_78 = arith.constant 0 : index
    %102 = vector.load %arg14[%c0_77, %c0_78] : memref<2x1xf32, #tpu.memory_space<vmem>>, vector<2x1xf32>
    %103 = vector.broadcast %102 : vector<2x1xf32> to vector<2x256xf32>
    %104 = arith.addf %101, %103 : vector<2x256xf32>
    %c0_79 = arith.constant 0 : index
    %c0_80 = arith.constant 0 : index
    %c0_81 = arith.constant 0 : index
    %105 = vector.load %arg21[%c0_79, %c0_80, %c0_81] : memref<15x2x4xf32, #tpu.memory_space<vmem>>, vector<1x2x4xf32>
    %106 = vector.shape_cast %105 : vector<1x2x4xf32> to vector<2x4xf32>
    %107 = vector.extract_strided_slice %20 {offsets = [0, 16], sizes = [4, 256], strides = [1, 1]} : vector<4x512xf32> to vector<4x256xf32>
    %cst_82 = arith.constant dense<0.000000e+00> : vector<2x256xf32>
    %108 = tpu.matmul %106, %107, %cst_82 {dimension_numbers = #tpu.dot_dimension_numbers<[1], [0], [0], [1], [0, 0, 1, 1], [], []>} : vector<2x4xf32>, vector<4x256xf32>, vector<2x256xf32> -> vector<2x256xf32>
    %c1_83 = arith.constant 1 : index
    %c0_84 = arith.constant 0 : index
    %c0_85 = arith.constant 0 : index
    %109 = vector.load %arg21[%c1_83, %c0_84, %c0_85] : memref<15x2x4xf32, #tpu.memory_space<vmem>>, vector<1x2x4xf32>
    %110 = vector.shape_cast %109 : vector<1x2x4xf32> to vector<2x4xf32>
    %111 = vector.extract_strided_slice %20 {offsets = [0, 32], sizes = [4, 256], strides = [1, 1]} : vector<4x512xf32> to vector<4x256xf32>
    %cst_86 = arith.constant dense<0.000000e+00> : vector<2x256xf32>
    %112 = tpu.matmul %110, %111, %cst_86 {dimension_numbers = #tpu.dot_dimension_numbers<[1], [0], [0], [1], [0, 0, 1, 1], [], []>} : vector<2x4xf32>, vector<4x256xf32>, vector<2x256xf32> -> vector<2x256xf32>
    %113 = arith.addf %108, %112 : vector<2x256xf32>
    %c2_87 = arith.constant 2 : index
    %c0_88 = arith.constant 0 : index
    %c0_89 = arith.constant 0 : index
    %114 = vector.load %arg21[%c2_87, %c0_88, %c0_89] : memref<15x2x4xf32, #tpu.memory_space<vmem>>, vector<1x2x4xf32>
    %115 = vector.shape_cast %114 : vector<1x2x4xf32> to vector<2x4xf32>
    %cst_90 = arith.constant dense<0.000000e+00> : vector<2x256xf32>
    %116 = tpu.matmul %115, %57, %cst_90 {dimension_numbers = #tpu.dot_dimension_numbers<[1], [0], [0], [1], [0, 0, 1, 1], [], []>} : vector<2x4xf32>, vector<4x256xf32>, vector<2x256xf32> -> vector<2x256xf32>
    %117 = arith.addf %113, %116 : vector<2x256xf32>
    %c3_91 = arith.constant 3 : index
    %c0_92 = arith.constant 0 : index
    %c0_93 = arith.constant 0 : index
    %118 = vector.load %arg21[%c3_91, %c0_92, %c0_93] : memref<15x2x4xf32, #tpu.memory_space<vmem>>, vector<1x2x4xf32>
    %119 = vector.shape_cast %118 : vector<1x2x4xf32> to vector<2x4xf32>
    %cst_94 = arith.constant dense<0.000000e+00> : vector<2x256xf32>
    %120 = tpu.matmul %119, %61, %cst_94 {dimension_numbers = #tpu.dot_dimension_numbers<[1], [0], [0], [1], [0, 0, 1, 1], [], []>} : vector<2x4xf32>, vector<4x256xf32>, vector<2x256xf32> -> vector<2x256xf32>
    %121 = arith.addf %117, %120 : vector<2x256xf32>
    %c4_95 = arith.constant 4 : index
    %c0_96 = arith.constant 0 : index
    %c0_97 = arith.constant 0 : index
    %122 = vector.load %arg21[%c4_95, %c0_96, %c0_97] : memref<15x2x4xf32, #tpu.memory_space<vmem>>, vector<1x2x4xf32>
    %123 = vector.shape_cast %122 : vector<1x2x4xf32> to vector<2x4xf32>
    %cst_98 = arith.constant dense<0.000000e+00> : vector<2x256xf32>
    %124 = tpu.matmul %123, %21, %cst_98 {dimension_numbers = #tpu.dot_dimension_numbers<[1], [0], [0], [1], [0, 0, 1, 1], [], []>} : vector<2x4xf32>, vector<4x256xf32>, vector<2x256xf32> -> vector<2x256xf32>
    %125 = arith.addf %121, %124 : vector<2x256xf32>
    %c5_99 = arith.constant 5 : index
    %c0_100 = arith.constant 0 : index
    %c0_101 = arith.constant 0 : index
    %126 = vector.load %arg21[%c5_99, %c0_100, %c0_101] : memref<15x2x4xf32, #tpu.memory_space<vmem>>, vector<1x2x4xf32>
    %127 = vector.shape_cast %126 : vector<1x2x4xf32> to vector<2x4xf32>
    %cst_102 = arith.constant dense<0.000000e+00> : vector<2x256xf32>
    %128 = tpu.matmul %127, %25, %cst_102 {dimension_numbers = #tpu.dot_dimension_numbers<[1], [0], [0], [1], [0, 0, 1, 1], [], []>} : vector<2x4xf32>, vector<4x256xf32>, vector<2x256xf32> -> vector<2x256xf32>
    %129 = arith.addf %125, %128 : vector<2x256xf32>
    %c6_103 = arith.constant 6 : index
    %c0_104 = arith.constant 0 : index
    %c0_105 = arith.constant 0 : index
    %130 = vector.load %arg21[%c6_103, %c0_104, %c0_105] : memref<15x2x4xf32, #tpu.memory_space<vmem>>, vector<1x2x4xf32>
    %131 = vector.shape_cast %130 : vector<1x2x4xf32> to vector<2x4xf32>
    %cst_106 = arith.constant dense<0.000000e+00> : vector<2x256xf32>
    %132 = tpu.matmul %131, %30, %cst_106 {dimension_numbers = #tpu.dot_dimension_numbers<[1], [0], [0], [1], [0, 0, 1, 1], [], []>} : vector<2x4xf32>, vector<4x256xf32>, vector<2x256xf32> -> vector<2x256xf32>
    %133 = arith.addf %129, %132 : vector<2x256xf32>
    %c7_107 = arith.constant 7 : index
    %c0_108 = arith.constant 0 : index
    %c0_109 = arith.constant 0 : index
    %134 = vector.load %arg21[%c7_107, %c0_108, %c0_109] : memref<15x2x4xf32, #tpu.memory_space<vmem>>, vector<1x2x4xf32>
    %135 = vector.shape_cast %134 : vector<1x2x4xf32> to vector<2x4xf32>
    %cst_110 = arith.constant dense<0.000000e+00> : vector<2x256xf32>
    %136 = tpu.matmul %135, %8, %cst_110 {dimension_numbers = #tpu.dot_dimension_numbers<[1], [0], [0], [1], [0, 0, 1, 1], [], []>} : vector<2x4xf32>, vector<4x256xf32>, vector<2x256xf32> -> vector<2x256xf32>
    %137 = arith.addf %133, %136 : vector<2x256xf32>
    %c8_111 = arith.constant 8 : index
    %c0_112 = arith.constant 0 : index
    %c0_113 = arith.constant 0 : index
    %138 = vector.load %arg21[%c8_111, %c0_112, %c0_113] : memref<15x2x4xf32, #tpu.memory_space<vmem>>, vector<1x2x4xf32>
    %139 = vector.shape_cast %138 : vector<1x2x4xf32> to vector<2x4xf32>
    %cst_114 = arith.constant dense<0.000000e+00> : vector<2x256xf32>
    %140 = tpu.matmul %139, %39, %cst_114 {dimension_numbers = #tpu.dot_dimension_numbers<[1], [0], [0], [1], [0, 0, 1, 1], [], []>} : vector<2x4xf32>, vector<4x256xf32>, vector<2x256xf32> -> vector<2x256xf32>
    %141 = arith.addf %137, %140 : vector<2x256xf32>
    %c9_115 = arith.constant 9 : index
    %c0_116 = arith.constant 0 : index
    %c0_117 = arith.constant 0 : index
    %142 = vector.load %arg21[%c9_115, %c0_116, %c0_117] : memref<15x2x4xf32, #tpu.memory_space<vmem>>, vector<1x2x4xf32>
    %143 = vector.shape_cast %142 : vector<1x2x4xf32> to vector<2x4xf32>
    %cst_118 = arith.constant dense<0.000000e+00> : vector<2x256xf32>
    %144 = tpu.matmul %143, %44, %cst_118 {dimension_numbers = #tpu.dot_dimension_numbers<[1], [0], [0], [1], [0, 0, 1, 1], [], []>} : vector<2x4xf32>, vector<4x256xf32>, vector<2x256xf32> -> vector<2x256xf32>
    %145 = arith.addf %141, %144 : vector<2x256xf32>
    %c10_119 = arith.constant 10 : index
    %c0_120 = arith.constant 0 : index
    %c0_121 = arith.constant 0 : index
    %146 = vector.load %arg21[%c10_119, %c0_120, %c0_121] : memref<15x2x4xf32, #tpu.memory_space<vmem>>, vector<1x2x4xf32>
    %147 = vector.shape_cast %146 : vector<1x2x4xf32> to vector<2x4xf32>
    %cst_122 = arith.constant dense<0.000000e+00> : vector<2x256xf32>
    %148 = tpu.matmul %147, %49, %cst_122 {dimension_numbers = #tpu.dot_dimension_numbers<[1], [0], [0], [1], [0, 0, 1, 1], [], []>} : vector<2x4xf32>, vector<4x256xf32>, vector<2x256xf32> -> vector<2x256xf32>
    %149 = arith.addf %145, %148 : vector<2x256xf32>
    %c11 = arith.constant 11 : index
    %c0_123 = arith.constant 0 : index
    %c0_124 = arith.constant 0 : index
    %150 = vector.load %arg21[%c11, %c0_123, %c0_124] : memref<15x2x4xf32, #tpu.memory_space<vmem>>, vector<1x2x4xf32>
    %151 = vector.shape_cast %150 : vector<1x2x4xf32> to vector<2x4xf32>
    %cst_125 = arith.constant dense<0.000000e+00> : vector<2x256xf32>
    %152 = tpu.matmul %151, %94, %cst_125 {dimension_numbers = #tpu.dot_dimension_numbers<[1], [0], [0], [1], [0, 0, 1, 1], [], []>} : vector<2x4xf32>, vector<4x256xf32>, vector<2x256xf32> -> vector<2x256xf32>
    %153 = arith.addf %149, %152 : vector<2x256xf32>
    %c12 = arith.constant 12 : index
    %c0_126 = arith.constant 0 : index
    %c0_127 = arith.constant 0 : index
    %154 = vector.load %arg21[%c12, %c0_126, %c0_127] : memref<15x2x4xf32, #tpu.memory_space<vmem>>, vector<1x2x4xf32>
    %155 = vector.shape_cast %154 : vector<1x2x4xf32> to vector<2x4xf32>
    %cst_128 = arith.constant dense<0.000000e+00> : vector<2x256xf32>
    %156 = tpu.matmul %155, %99, %cst_128 {dimension_numbers = #tpu.dot_dimension_numbers<[1], [0], [0], [1], [0, 0, 1, 1], [], []>} : vector<2x4xf32>, vector<4x256xf32>, vector<2x256xf32> -> vector<2x256xf32>
    %157 = arith.addf %153, %156 : vector<2x256xf32>
    %c13 = arith.constant 13 : index
    %c0_129 = arith.constant 0 : index
    %c0_130 = arith.constant 0 : index
    %158 = vector.load %arg21[%c13, %c0_129, %c0_130] : memref<15x2x4xf32, #tpu.memory_space<vmem>>, vector<1x2x4xf32>
    %159 = vector.shape_cast %158 : vector<1x2x4xf32> to vector<2x4xf32>
    %160 = vector.extract_strided_slice %20 {offsets = [0, 224], sizes = [4, 256], strides = [1, 1]} : vector<4x512xf32> to vector<4x256xf32>
    %cst_131 = arith.constant dense<0.000000e+00> : vector<2x256xf32>
    %161 = tpu.matmul %159, %160, %cst_131 {dimension_numbers = #tpu.dot_dimension_numbers<[1], [0], [0], [1], [0, 0, 1, 1], [], []>} : vector<2x4xf32>, vector<4x256xf32>, vector<2x256xf32> -> vector<2x256xf32>
    %162 = arith.addf %157, %161 : vector<2x256xf32>
    %c14 = arith.constant 14 : index
    %c0_132 = arith.constant 0 : index
    %c0_133 = arith.constant 0 : index
    %163 = vector.load %arg21[%c14, %c0_132, %c0_133] : memref<15x2x4xf32, #tpu.memory_space<vmem>>, vector<1x2x4xf32>
    %164 = vector.shape_cast %163 : vector<1x2x4xf32> to vector<2x4xf32>
    %165 = vector.extract_strided_slice %20 {offsets = [0, 240], sizes = [4, 256], strides = [1, 1]} : vector<4x512xf32> to vector<4x256xf32>
    %cst_134 = arith.constant dense<0.000000e+00> : vector<2x256xf32>
    %166 = tpu.matmul %164, %165, %cst_134 {dimension_numbers = #tpu.dot_dimension_numbers<[1], [0], [0], [1], [0, 0, 1, 1], [], []>} : vector<2x4xf32>, vector<4x256xf32>, vector<2x256xf32> -> vector<2x256xf32>
    %167 = arith.addf %162, %166 : vector<2x256xf32>
    %c0_135 = arith.constant 0 : index
    %c0_136 = arith.constant 0 : index
    %168 = vector.load %arg22[%c0_135, %c0_136] : memref<2x1xf32, #tpu.memory_space<vmem>>, vector<2x1xf32>
    %169 = vector.broadcast %168 : vector<2x1xf32> to vector<2x256xf32>
    %170 = arith.addf %167, %169 : vector<2x256xf32>
    %c0_137 = arith.constant 0 : index
    %c0_138 = arith.constant 0 : index
    %c0_139 = arith.constant 0 : index
    %171 = vector.load %arg9[%c0_137, %c0_138, %c0_139] : memref<7x2x4xf32, #tpu.memory_space<vmem>>, vector<1x2x4xf32>
    %172 = vector.shape_cast %171 : vector<1x2x4xf32> to vector<2x4xf32>
    %173 = vector.extract_strided_slice %20 {offsets = [0, 125], sizes = [4, 256], strides = [1, 1]} : vector<4x512xf32> to vector<4x256xf32>
    %c4_140 = arith.constant 4 : index
    %c0_141 = arith.constant 0 : index
    %c0_142 = arith.constant 0 : index
    %174 = vector.load %arg2[%c4_140, %c0_141, %c0_142] : memref<14x1x256xf32, #tpu.memory_space<vmem>>, vector<1x1x256xf32>
    %175 = vector.shape_cast %174 : vector<1x1x256xf32> to vector<1x256xf32>
    %176 = vector.broadcast %175 : vector<1x256xf32> to vector<4x256xf32>
    %177 = arith.mulf %173, %176 : vector<4x256xf32>
    %cst_143 = arith.constant dense<0.000000e+00> : vector<2x256xf32>
    %178 = tpu.matmul %172, %177, %cst_143 {dimension_numbers = #tpu.dot_dimension_numbers<[1], [0], [0], [1], [0, 0, 1, 1], [], []>} : vector<2x4xf32>, vector<4x256xf32>, vector<2x256xf32> -> vector<2x256xf32>
    %c1_144 = arith.constant 1 : index
    %c0_145 = arith.constant 0 : index
    %c0_146 = arith.constant 0 : index
    %179 = vector.load %arg9[%c1_144, %c0_145, %c0_146] : memref<7x2x4xf32, #tpu.memory_space<vmem>>, vector<1x2x4xf32>
    %180 = vector.shape_cast %179 : vector<1x2x4xf32> to vector<2x4xf32>
    %181 = vector.extract_strided_slice %20 {offsets = [0, 126], sizes = [4, 256], strides = [1, 1]} : vector<4x512xf32> to vector<4x256xf32>
    %c5_147 = arith.constant 5 : index
    %c0_148 = arith.constant 0 : index
    %c0_149 = arith.constant 0 : index
    %182 = vector.load %arg2[%c5_147, %c0_148, %c0_149] : memref<14x1x256xf32, #tpu.memory_space<vmem>>, vector<1x1x256xf32>
    %183 = vector.shape_cast %182 : vector<1x1x256xf32> to vector<1x256xf32>
    %184 = vector.broadcast %183 : vector<1x256xf32> to vector<4x256xf32>
    %185 = arith.mulf %181, %184 : vector<4x256xf32>
    %cst_150 = arith.constant dense<0.000000e+00> : vector<2x256xf32>
    %186 = tpu.matmul %180, %185, %cst_150 {dimension_numbers = #tpu.dot_dimension_numbers<[1], [0], [0], [1], [0, 0, 1, 1], [], []>} : vector<2x4xf32>, vector<4x256xf32>, vector<2x256xf32> -> vector<2x256xf32>
    %187 = arith.addf %178, %186 : vector<2x256xf32>
    %c2_151 = arith.constant 2 : index
    %c0_152 = arith.constant 0 : index
    %c0_153 = arith.constant 0 : index
    %188 = vector.load %arg9[%c2_151, %c0_152, %c0_153] : memref<7x2x4xf32, #tpu.memory_space<vmem>>, vector<1x2x4xf32>
    %189 = vector.shape_cast %188 : vector<1x2x4xf32> to vector<2x4xf32>
    %190 = vector.extract_strided_slice %20 {offsets = [0, 127], sizes = [4, 256], strides = [1, 1]} : vector<4x512xf32> to vector<4x256xf32>
    %c6_154 = arith.constant 6 : index
    %c0_155 = arith.constant 0 : index
    %c0_156 = arith.constant 0 : index
    %191 = vector.load %arg2[%c6_154, %c0_155, %c0_156] : memref<14x1x256xf32, #tpu.memory_space<vmem>>, vector<1x1x256xf32>
    %192 = vector.shape_cast %191 : vector<1x1x256xf32> to vector<1x256xf32>
    %193 = vector.broadcast %192 : vector<1x256xf32> to vector<4x256xf32>
    %194 = arith.mulf %190, %193 : vector<4x256xf32>
    %cst_157 = arith.constant dense<0.000000e+00> : vector<2x256xf32>
    %195 = tpu.matmul %189, %194, %cst_157 {dimension_numbers = #tpu.dot_dimension_numbers<[1], [0], [0], [1], [0, 0, 1, 1], [], []>} : vector<2x4xf32>, vector<4x256xf32>, vector<2x256xf32> -> vector<2x256xf32>
    %196 = arith.addf %187, %195 : vector<2x256xf32>
    %c3_158 = arith.constant 3 : index
    %c0_159 = arith.constant 0 : index
    %c0_160 = arith.constant 0 : index
    %197 = vector.load %arg9[%c3_158, %c0_159, %c0_160] : memref<7x2x4xf32, #tpu.memory_space<vmem>>, vector<1x2x4xf32>
    %198 = vector.shape_cast %197 : vector<1x2x4xf32> to vector<2x4xf32>
    %cst_161 = arith.constant dense<0.000000e+00> : vector<2x256xf32>
    %199 = tpu.matmul %198, %8, %cst_161 {dimension_numbers = #tpu.dot_dimension_numbers<[1], [0], [0], [1], [0, 0, 1, 1], [], []>} : vector<2x4xf32>, vector<4x256xf32>, vector<2x256xf32> -> vector<2x256xf32>
    %200 = arith.addf %196, %199 : vector<2x256xf32>
    %c4_162 = arith.constant 4 : index
    %c0_163 = arith.constant 0 : index
    %c0_164 = arith.constant 0 : index
    %201 = vector.load %arg9[%c4_162, %c0_163, %c0_164] : memref<7x2x4xf32, #tpu.memory_space<vmem>>, vector<1x2x4xf32>
    %202 = vector.shape_cast %201 : vector<1x2x4xf32> to vector<2x4xf32>
    %203 = vector.extract_strided_slice %20 {offsets = [0, 129], sizes = [4, 256], strides = [1, 1]} : vector<4x512xf32> to vector<4x256xf32>
    %c7_165 = arith.constant 7 : index
    %c0_166 = arith.constant 0 : index
    %c0_167 = arith.constant 0 : index
    %204 = vector.load %arg2[%c7_165, %c0_166, %c0_167] : memref<14x1x256xf32, #tpu.memory_space<vmem>>, vector<1x1x256xf32>
    %205 = vector.shape_cast %204 : vector<1x1x256xf32> to vector<1x256xf32>
    %206 = vector.broadcast %205 : vector<1x256xf32> to vector<4x256xf32>
    %207 = arith.mulf %203, %206 : vector<4x256xf32>
    %cst_168 = arith.constant dense<0.000000e+00> : vector<2x256xf32>
    %208 = tpu.matmul %202, %207, %cst_168 {dimension_numbers = #tpu.dot_dimension_numbers<[1], [0], [0], [1], [0, 0, 1, 1], [], []>} : vector<2x4xf32>, vector<4x256xf32>, vector<2x256xf32> -> vector<2x256xf32>
    %209 = arith.addf %200, %208 : vector<2x256xf32>
    %c5_169 = arith.constant 5 : index
    %c0_170 = arith.constant 0 : index
    %c0_171 = arith.constant 0 : index
    %210 = vector.load %arg9[%c5_169, %c0_170, %c0_171] : memref<7x2x4xf32, #tpu.memory_space<vmem>>, vector<1x2x4xf32>
    %211 = vector.shape_cast %210 : vector<1x2x4xf32> to vector<2x4xf32>
    %212 = vector.extract_strided_slice %20 {offsets = [0, 130], sizes = [4, 256], strides = [1, 1]} : vector<4x512xf32> to vector<4x256xf32>
    %c8_172 = arith.constant 8 : index
    %c0_173 = arith.constant 0 : index
    %c0_174 = arith.constant 0 : index
    %213 = vector.load %arg2[%c8_172, %c0_173, %c0_174] : memref<14x1x256xf32, #tpu.memory_space<vmem>>, vector<1x1x256xf32>
    %214 = vector.shape_cast %213 : vector<1x1x256xf32> to vector<1x256xf32>
    %215 = vector.broadcast %214 : vector<1x256xf32> to vector<4x256xf32>
    %216 = arith.mulf %212, %215 : vector<4x256xf32>
    %cst_175 = arith.constant dense<0.000000e+00> : vector<2x256xf32>
    %217 = tpu.matmul %211, %216, %cst_175 {dimension_numbers = #tpu.dot_dimension_numbers<[1], [0], [0], [1], [0, 0, 1, 1], [], []>} : vector<2x4xf32>, vector<4x256xf32>, vector<2x256xf32> -> vector<2x256xf32>
    %218 = arith.addf %209, %217 : vector<2x256xf32>
    %c6_176 = arith.constant 6 : index
    %c0_177 = arith.constant 0 : index
    %c0_178 = arith.constant 0 : index
    %219 = vector.load %arg9[%c6_176, %c0_177, %c0_178] : memref<7x2x4xf32, #tpu.memory_space<vmem>>, vector<1x2x4xf32>
    %220 = vector.shape_cast %219 : vector<1x2x4xf32> to vector<2x4xf32>
    %221 = vector.extract_strided_slice %20 {offsets = [0, 131], sizes = [4, 256], strides = [1, 1]} : vector<4x512xf32> to vector<4x256xf32>
    %c9_179 = arith.constant 9 : index
    %c0_180 = arith.constant 0 : index
    %c0_181 = arith.constant 0 : index
    %222 = vector.load %arg2[%c9_179, %c0_180, %c0_181] : memref<14x1x256xf32, #tpu.memory_space<vmem>>, vector<1x1x256xf32>
    %223 = vector.shape_cast %222 : vector<1x1x256xf32> to vector<1x256xf32>
    %224 = vector.broadcast %223 : vector<1x256xf32> to vector<4x256xf32>
    %225 = arith.mulf %221, %224 : vector<4x256xf32>
    %cst_182 = arith.constant dense<0.000000e+00> : vector<2x256xf32>
    %226 = tpu.matmul %220, %225, %cst_182 {dimension_numbers = #tpu.dot_dimension_numbers<[1], [0], [0], [1], [0, 0, 1, 1], [], []>} : vector<2x4xf32>, vector<4x256xf32>, vector<2x256xf32> -> vector<2x256xf32>
    %227 = arith.addf %218, %226 : vector<2x256xf32>
    %c0_183 = arith.constant 0 : index
    %c0_184 = arith.constant 0 : index
    %228 = vector.load %arg10[%c0_183, %c0_184] : memref<2x1xf32, #tpu.memory_space<vmem>>, vector<2x1xf32>
    %229 = vector.broadcast %228 : vector<2x1xf32> to vector<2x256xf32>
    %230 = arith.addf %227, %229 : vector<2x256xf32>
    %c0_185 = arith.constant 0 : index
    %c0_186 = arith.constant 0 : index
    %c0_187 = arith.constant 0 : index
    %231 = vector.load %arg17[%c0_185, %c0_186, %c0_187] : memref<11x2x4xf32, #tpu.memory_space<vmem>>, vector<1x2x4xf32>
    %232 = vector.shape_cast %231 : vector<1x2x4xf32> to vector<2x4xf32>
    %233 = vector.extract_strided_slice %20 {offsets = [0, 123], sizes = [4, 256], strides = [1, 1]} : vector<4x512xf32> to vector<4x256xf32>
    %c2_188 = arith.constant 2 : index
    %c0_189 = arith.constant 0 : index
    %c0_190 = arith.constant 0 : index
    %234 = vector.load %arg2[%c2_188, %c0_189, %c0_190] : memref<14x1x256xf32, #tpu.memory_space<vmem>>, vector<1x1x256xf32>
    %235 = vector.shape_cast %234 : vector<1x1x256xf32> to vector<1x256xf32>
    %236 = vector.broadcast %235 : vector<1x256xf32> to vector<4x256xf32>
    %237 = arith.mulf %233, %236 : vector<4x256xf32>
    %cst_191 = arith.constant dense<0.000000e+00> : vector<2x256xf32>
    %238 = tpu.matmul %232, %237, %cst_191 {dimension_numbers = #tpu.dot_dimension_numbers<[1], [0], [0], [1], [0, 0, 1, 1], [], []>} : vector<2x4xf32>, vector<4x256xf32>, vector<2x256xf32> -> vector<2x256xf32>
    %c1_192 = arith.constant 1 : index
    %c0_193 = arith.constant 0 : index
    %c0_194 = arith.constant 0 : index
    %239 = vector.load %arg17[%c1_192, %c0_193, %c0_194] : memref<11x2x4xf32, #tpu.memory_space<vmem>>, vector<1x2x4xf32>
    %240 = vector.shape_cast %239 : vector<1x2x4xf32> to vector<2x4xf32>
    %241 = vector.extract_strided_slice %20 {offsets = [0, 124], sizes = [4, 256], strides = [1, 1]} : vector<4x512xf32> to vector<4x256xf32>
    %c3_195 = arith.constant 3 : index
    %c0_196 = arith.constant 0 : index
    %c0_197 = arith.constant 0 : index
    %242 = vector.load %arg2[%c3_195, %c0_196, %c0_197] : memref<14x1x256xf32, #tpu.memory_space<vmem>>, vector<1x1x256xf32>
    %243 = vector.shape_cast %242 : vector<1x1x256xf32> to vector<1x256xf32>
    %244 = vector.broadcast %243 : vector<1x256xf32> to vector<4x256xf32>
    %245 = arith.mulf %241, %244 : vector<4x256xf32>
    %cst_198 = arith.constant dense<0.000000e+00> : vector<2x256xf32>
    %246 = tpu.matmul %240, %245, %cst_198 {dimension_numbers = #tpu.dot_dimension_numbers<[1], [0], [0], [1], [0, 0, 1, 1], [], []>} : vector<2x4xf32>, vector<4x256xf32>, vector<2x256xf32> -> vector<2x256xf32>
    %247 = arith.addf %238, %246 : vector<2x256xf32>
    %c2_199 = arith.constant 2 : index
    %c0_200 = arith.constant 0 : index
    %c0_201 = arith.constant 0 : index
    %248 = vector.load %arg17[%c2_199, %c0_200, %c0_201] : memref<11x2x4xf32, #tpu.memory_space<vmem>>, vector<1x2x4xf32>
    %249 = vector.shape_cast %248 : vector<1x2x4xf32> to vector<2x4xf32>
    %cst_202 = arith.constant dense<0.000000e+00> : vector<2x256xf32>
    %250 = tpu.matmul %249, %177, %cst_202 {dimension_numbers = #tpu.dot_dimension_numbers<[1], [0], [0], [1], [0, 0, 1, 1], [], []>} : vector<2x4xf32>, vector<4x256xf32>, vector<2x256xf32> -> vector<2x256xf32>
    %251 = arith.addf %247, %250 : vector<2x256xf32>
    %c3_203 = arith.constant 3 : index
    %c0_204 = arith.constant 0 : index
    %c0_205 = arith.constant 0 : index
    %252 = vector.load %arg17[%c3_203, %c0_204, %c0_205] : memref<11x2x4xf32, #tpu.memory_space<vmem>>, vector<1x2x4xf32>
    %253 = vector.shape_cast %252 : vector<1x2x4xf32> to vector<2x4xf32>
    %cst_206 = arith.constant dense<0.000000e+00> : vector<2x256xf32>
    %254 = tpu.matmul %253, %185, %cst_206 {dimension_numbers = #tpu.dot_dimension_numbers<[1], [0], [0], [1], [0, 0, 1, 1], [], []>} : vector<2x4xf32>, vector<4x256xf32>, vector<2x256xf32> -> vector<2x256xf32>
    %255 = arith.addf %251, %254 : vector<2x256xf32>
    %c4_207 = arith.constant 4 : index
    %c0_208 = arith.constant 0 : index
    %c0_209 = arith.constant 0 : index
    %256 = vector.load %arg17[%c4_207, %c0_208, %c0_209] : memref<11x2x4xf32, #tpu.memory_space<vmem>>, vector<1x2x4xf32>
    %257 = vector.shape_cast %256 : vector<1x2x4xf32> to vector<2x4xf32>
    %cst_210 = arith.constant dense<0.000000e+00> : vector<2x256xf32>
    %258 = tpu.matmul %257, %194, %cst_210 {dimension_numbers = #tpu.dot_dimension_numbers<[1], [0], [0], [1], [0, 0, 1, 1], [], []>} : vector<2x4xf32>, vector<4x256xf32>, vector<2x256xf32> -> vector<2x256xf32>
    %259 = arith.addf %255, %258 : vector<2x256xf32>
    %c5_211 = arith.constant 5 : index
    %c0_212 = arith.constant 0 : index
    %c0_213 = arith.constant 0 : index
    %260 = vector.load %arg17[%c5_211, %c0_212, %c0_213] : memref<11x2x4xf32, #tpu.memory_space<vmem>>, vector<1x2x4xf32>
    %261 = vector.shape_cast %260 : vector<1x2x4xf32> to vector<2x4xf32>
    %cst_214 = arith.constant dense<0.000000e+00> : vector<2x256xf32>
    %262 = tpu.matmul %261, %8, %cst_214 {dimension_numbers = #tpu.dot_dimension_numbers<[1], [0], [0], [1], [0, 0, 1, 1], [], []>} : vector<2x4xf32>, vector<4x256xf32>, vector<2x256xf32> -> vector<2x256xf32>
    %263 = arith.addf %259, %262 : vector<2x256xf32>
    %c6_215 = arith.constant 6 : index
    %c0_216 = arith.constant 0 : index
    %c0_217 = arith.constant 0 : index
    %264 = vector.load %arg17[%c6_215, %c0_216, %c0_217] : memref<11x2x4xf32, #tpu.memory_space<vmem>>, vector<1x2x4xf32>
    %265 = vector.shape_cast %264 : vector<1x2x4xf32> to vector<2x4xf32>
    %cst_218 = arith.constant dense<0.000000e+00> : vector<2x256xf32>
    %266 = tpu.matmul %265, %207, %cst_218 {dimension_numbers = #tpu.dot_dimension_numbers<[1], [0], [0], [1], [0, 0, 1, 1], [], []>} : vector<2x4xf32>, vector<4x256xf32>, vector<2x256xf32> -> vector<2x256xf32>
    %267 = arith.addf %263, %266 : vector<2x256xf32>
    %c7_219 = arith.constant 7 : index
    %c0_220 = arith.constant 0 : index
    %c0_221 = arith.constant 0 : index
    %268 = vector.load %arg17[%c7_219, %c0_220, %c0_221] : memref<11x2x4xf32, #tpu.memory_space<vmem>>, vector<1x2x4xf32>
    %269 = vector.shape_cast %268 : vector<1x2x4xf32> to vector<2x4xf32>
    %cst_222 = arith.constant dense<0.000000e+00> : vector<2x256xf32>
    %270 = tpu.matmul %269, %216, %cst_222 {dimension_numbers = #tpu.dot_dimension_numbers<[1], [0], [0], [1], [0, 0, 1, 1], [], []>} : vector<2x4xf32>, vector<4x256xf32>, vector<2x256xf32> -> vector<2x256xf32>
    %271 = arith.addf %267, %270 : vector<2x256xf32>
    %c8_223 = arith.constant 8 : index
    %c0_224 = arith.constant 0 : index
    %c0_225 = arith.constant 0 : index
    %272 = vector.load %arg17[%c8_223, %c0_224, %c0_225] : memref<11x2x4xf32, #tpu.memory_space<vmem>>, vector<1x2x4xf32>
    %273 = vector.shape_cast %272 : vector<1x2x4xf32> to vector<2x4xf32>
    %cst_226 = arith.constant dense<0.000000e+00> : vector<2x256xf32>
    %274 = tpu.matmul %273, %225, %cst_226 {dimension_numbers = #tpu.dot_dimension_numbers<[1], [0], [0], [1], [0, 0, 1, 1], [], []>} : vector<2x4xf32>, vector<4x256xf32>, vector<2x256xf32> -> vector<2x256xf32>
    %275 = arith.addf %271, %274 : vector<2x256xf32>
    %c9_227 = arith.constant 9 : index
    %c0_228 = arith.constant 0 : index
    %c0_229 = arith.constant 0 : index
    %276 = vector.load %arg17[%c9_227, %c0_228, %c0_229] : memref<11x2x4xf32, #tpu.memory_space<vmem>>, vector<1x2x4xf32>
    %277 = vector.shape_cast %276 : vector<1x2x4xf32> to vector<2x4xf32>
    %278 = vector.extract_strided_slice %20 {offsets = [0, 132], sizes = [4, 256], strides = [1, 1]} : vector<4x512xf32> to vector<4x256xf32>
    %c10_230 = arith.constant 10 : index
    %c0_231 = arith.constant 0 : index
    %c0_232 = arith.constant 0 : index
    %279 = vector.load %arg2[%c10_230, %c0_231, %c0_232] : memref<14x1x256xf32, #tpu.memory_space<vmem>>, vector<1x1x256xf32>
    %280 = vector.shape_cast %279 : vector<1x1x256xf32> to vector<1x256xf32>
    %281 = vector.broadcast %280 : vector<1x256xf32> to vector<4x256xf32>
    %282 = arith.mulf %278, %281 : vector<4x256xf32>
    %cst_233 = arith.constant dense<0.000000e+00> : vector<2x256xf32>
    %283 = tpu.matmul %277, %282, %cst_233 {dimension_numbers = #tpu.dot_dimension_numbers<[1], [0], [0], [1], [0, 0, 1, 1], [], []>} : vector<2x4xf32>, vector<4x256xf32>, vector<2x256xf32> -> vector<2x256xf32>
    %284 = arith.addf %275, %283 : vector<2x256xf32>
    %c10_234 = arith.constant 10 : index
    %c0_235 = arith.constant 0 : index
    %c0_236 = arith.constant 0 : index
    %285 = vector.load %arg17[%c10_234, %c0_235, %c0_236] : memref<11x2x4xf32, #tpu.memory_space<vmem>>, vector<1x2x4xf32>
    %286 = vector.shape_cast %285 : vector<1x2x4xf32> to vector<2x4xf32>
    %287 = vector.extract_strided_slice %20 {offsets = [0, 133], sizes = [4, 256], strides = [1, 1]} : vector<4x512xf32> to vector<4x256xf32>
    %c11_237 = arith.constant 11 : index
    %c0_238 = arith.constant 0 : index
    %c0_239 = arith.constant 0 : index
    %288 = vector.load %arg2[%c11_237, %c0_238, %c0_239] : memref<14x1x256xf32, #tpu.memory_space<vmem>>, vector<1x1x256xf32>
    %289 = vector.shape_cast %288 : vector<1x1x256xf32> to vector<1x256xf32>
    %290 = vector.broadcast %289 : vector<1x256xf32> to vector<4x256xf32>
    %291 = arith.mulf %287, %290 : vector<4x256xf32>
    %cst_240 = arith.constant dense<0.000000e+00> : vector<2x256xf32>
    %292 = tpu.matmul %286, %291, %cst_240 {dimension_numbers = #tpu.dot_dimension_numbers<[1], [0], [0], [1], [0, 0, 1, 1], [], []>} : vector<2x4xf32>, vector<4x256xf32>, vector<2x256xf32> -> vector<2x256xf32>
    %293 = arith.addf %284, %292 : vector<2x256xf32>
    %c0_241 = arith.constant 0 : index
    %c0_242 = arith.constant 0 : index
    %294 = vector.load %arg18[%c0_241, %c0_242] : memref<2x1xf32, #tpu.memory_space<vmem>>, vector<2x1xf32>
    %295 = vector.broadcast %294 : vector<2x1xf32> to vector<2x256xf32>
    %296 = arith.addf %293, %295 : vector<2x256xf32>
    %c0_243 = arith.constant 0 : index
    %c0_244 = arith.constant 0 : index
    %c0_245 = arith.constant 0 : index
    %297 = vector.load %arg25[%c0_243, %c0_244, %c0_245] : memref<15x2x4xf32, #tpu.memory_space<vmem>>, vector<1x2x4xf32>
    %298 = vector.shape_cast %297 : vector<1x2x4xf32> to vector<2x4xf32>
    %299 = vector.extract_strided_slice %20 {offsets = [0, 121], sizes = [4, 256], strides = [1, 1]} : vector<4x512xf32> to vector<4x256xf32>
    %c0_246 = arith.constant 0 : index
    %c0_247 = arith.constant 0 : index
    %c0_248 = arith.constant 0 : index
    %300 = vector.load %arg2[%c0_246, %c0_247, %c0_248] : memref<14x1x256xf32, #tpu.memory_space<vmem>>, vector<1x1x256xf32>
    %301 = vector.shape_cast %300 : vector<1x1x256xf32> to vector<1x256xf32>
    %302 = vector.broadcast %301 : vector<1x256xf32> to vector<4x256xf32>
    %303 = arith.mulf %299, %302 : vector<4x256xf32>
    %cst_249 = arith.constant dense<0.000000e+00> : vector<2x256xf32>
    %304 = tpu.matmul %298, %303, %cst_249 {dimension_numbers = #tpu.dot_dimension_numbers<[1], [0], [0], [1], [0, 0, 1, 1], [], []>} : vector<2x4xf32>, vector<4x256xf32>, vector<2x256xf32> -> vector<2x256xf32>
    %c1_250 = arith.constant 1 : index
    %c0_251 = arith.constant 0 : index
    %c0_252 = arith.constant 0 : index
    %305 = vector.load %arg25[%c1_250, %c0_251, %c0_252] : memref<15x2x4xf32, #tpu.memory_space<vmem>>, vector<1x2x4xf32>
    %306 = vector.shape_cast %305 : vector<1x2x4xf32> to vector<2x4xf32>
    %307 = vector.extract_strided_slice %20 {offsets = [0, 122], sizes = [4, 256], strides = [1, 1]} : vector<4x512xf32> to vector<4x256xf32>
    %c1_253 = arith.constant 1 : index
    %c0_254 = arith.constant 0 : index
    %c0_255 = arith.constant 0 : index
    %308 = vector.load %arg2[%c1_253, %c0_254, %c0_255] : memref<14x1x256xf32, #tpu.memory_space<vmem>>, vector<1x1x256xf32>
    %309 = vector.shape_cast %308 : vector<1x1x256xf32> to vector<1x256xf32>
    %310 = vector.broadcast %309 : vector<1x256xf32> to vector<4x256xf32>
    %311 = arith.mulf %307, %310 : vector<4x256xf32>
    %cst_256 = arith.constant dense<0.000000e+00> : vector<2x256xf32>
    %312 = tpu.matmul %306, %311, %cst_256 {dimension_numbers = #tpu.dot_dimension_numbers<[1], [0], [0], [1], [0, 0, 1, 1], [], []>} : vector<2x4xf32>, vector<4x256xf32>, vector<2x256xf32> -> vector<2x256xf32>
    %313 = arith.addf %304, %312 : vector<2x256xf32>
    %c2_257 = arith.constant 2 : index
    %c0_258 = arith.constant 0 : index
    %c0_259 = arith.constant 0 : index
    %314 = vector.load %arg25[%c2_257, %c0_258, %c0_259] : memref<15x2x4xf32, #tpu.memory_space<vmem>>, vector<1x2x4xf32>
    %315 = vector.shape_cast %314 : vector<1x2x4xf32> to vector<2x4xf32>
    %cst_260 = arith.constant dense<0.000000e+00> : vector<2x256xf32>
    %316 = tpu.matmul %315, %237, %cst_260 {dimension_numbers = #tpu.dot_dimension_numbers<[1], [0], [0], [1], [0, 0, 1, 1], [], []>} : vector<2x4xf32>, vector<4x256xf32>, vector<2x256xf32> -> vector<2x256xf32>
    %317 = arith.addf %313, %316 : vector<2x256xf32>
    %c3_261 = arith.constant 3 : index
    %c0_262 = arith.constant 0 : index
    %c0_263 = arith.constant 0 : index
    %318 = vector.load %arg25[%c3_261, %c0_262, %c0_263] : memref<15x2x4xf32, #tpu.memory_space<vmem>>, vector<1x2x4xf32>
    %319 = vector.shape_cast %318 : vector<1x2x4xf32> to vector<2x4xf32>
    %cst_264 = arith.constant dense<0.000000e+00> : vector<2x256xf32>
    %320 = tpu.matmul %319, %245, %cst_264 {dimension_numbers = #tpu.dot_dimension_numbers<[1], [0], [0], [1], [0, 0, 1, 1], [], []>} : vector<2x4xf32>, vector<4x256xf32>, vector<2x256xf32> -> vector<2x256xf32>
    %321 = arith.addf %317, %320 : vector<2x256xf32>
    %c4_265 = arith.constant 4 : index
    %c0_266 = arith.constant 0 : index
    %c0_267 = arith.constant 0 : index
    %322 = vector.load %arg25[%c4_265, %c0_266, %c0_267] : memref<15x2x4xf32, #tpu.memory_space<vmem>>, vector<1x2x4xf32>
    %323 = vector.shape_cast %322 : vector<1x2x4xf32> to vector<2x4xf32>
    %cst_268 = arith.constant dense<0.000000e+00> : vector<2x256xf32>
    %324 = tpu.matmul %323, %177, %cst_268 {dimension_numbers = #tpu.dot_dimension_numbers<[1], [0], [0], [1], [0, 0, 1, 1], [], []>} : vector<2x4xf32>, vector<4x256xf32>, vector<2x256xf32> -> vector<2x256xf32>
    %325 = arith.addf %321, %324 : vector<2x256xf32>
    %c5_269 = arith.constant 5 : index
    %c0_270 = arith.constant 0 : index
    %c0_271 = arith.constant 0 : index
    %326 = vector.load %arg25[%c5_269, %c0_270, %c0_271] : memref<15x2x4xf32, #tpu.memory_space<vmem>>, vector<1x2x4xf32>
    %327 = vector.shape_cast %326 : vector<1x2x4xf32> to vector<2x4xf32>
    %cst_272 = arith.constant dense<0.000000e+00> : vector<2x256xf32>
    %328 = tpu.matmul %327, %185, %cst_272 {dimension_numbers = #tpu.dot_dimension_numbers<[1], [0], [0], [1], [0, 0, 1, 1], [], []>} : vector<2x4xf32>, vector<4x256xf32>, vector<2x256xf32> -> vector<2x256xf32>
    %329 = arith.addf %325, %328 : vector<2x256xf32>
    %c6_273 = arith.constant 6 : index
    %c0_274 = arith.constant 0 : index
    %c0_275 = arith.constant 0 : index
    %330 = vector.load %arg25[%c6_273, %c0_274, %c0_275] : memref<15x2x4xf32, #tpu.memory_space<vmem>>, vector<1x2x4xf32>
    %331 = vector.shape_cast %330 : vector<1x2x4xf32> to vector<2x4xf32>
    %cst_276 = arith.constant dense<0.000000e+00> : vector<2x256xf32>
    %332 = tpu.matmul %331, %194, %cst_276 {dimension_numbers = #tpu.dot_dimension_numbers<[1], [0], [0], [1], [0, 0, 1, 1], [], []>} : vector<2x4xf32>, vector<4x256xf32>, vector<2x256xf32> -> vector<2x256xf32>
    %333 = arith.addf %329, %332 : vector<2x256xf32>
    %c7_277 = arith.constant 7 : index
    %c0_278 = arith.constant 0 : index
    %c0_279 = arith.constant 0 : index
    %334 = vector.load %arg25[%c7_277, %c0_278, %c0_279] : memref<15x2x4xf32, #tpu.memory_space<vmem>>, vector<1x2x4xf32>
    %335 = vector.shape_cast %334 : vector<1x2x4xf32> to vector<2x4xf32>
    %cst_280 = arith.constant dense<0.000000e+00> : vector<2x256xf32>
    %336 = tpu.matmul %335, %8, %cst_280 {dimension_numbers = #tpu.dot_dimension_numbers<[1], [0], [0], [1], [0, 0, 1, 1], [], []>} : vector<2x4xf32>, vector<4x256xf32>, vector<2x256xf32> -> vector<2x256xf32>
    %337 = arith.addf %333, %336 : vector<2x256xf32>
    %c8_281 = arith.constant 8 : index
    %c0_282 = arith.constant 0 : index
    %c0_283 = arith.constant 0 : index
    %338 = vector.load %arg25[%c8_281, %c0_282, %c0_283] : memref<15x2x4xf32, #tpu.memory_space<vmem>>, vector<1x2x4xf32>
    %339 = vector.shape_cast %338 : vector<1x2x4xf32> to vector<2x4xf32>
    %cst_284 = arith.constant dense<0.000000e+00> : vector<2x256xf32>
    %340 = tpu.matmul %339, %207, %cst_284 {dimension_numbers = #tpu.dot_dimension_numbers<[1], [0], [0], [1], [0, 0, 1, 1], [], []>} : vector<2x4xf32>, vector<4x256xf32>, vector<2x256xf32> -> vector<2x256xf32>
    %341 = arith.addf %337, %340 : vector<2x256xf32>
    %c9_285 = arith.constant 9 : index
    %c0_286 = arith.constant 0 : index
    %c0_287 = arith.constant 0 : index
    %342 = vector.load %arg25[%c9_285, %c0_286, %c0_287] : memref<15x2x4xf32, #tpu.memory_space<vmem>>, vector<1x2x4xf32>
    %343 = vector.shape_cast %342 : vector<1x2x4xf32> to vector<2x4xf32>
    %cst_288 = arith.constant dense<0.000000e+00> : vector<2x256xf32>
    %344 = tpu.matmul %343, %216, %cst_288 {dimension_numbers = #tpu.dot_dimension_numbers<[1], [0], [0], [1], [0, 0, 1, 1], [], []>} : vector<2x4xf32>, vector<4x256xf32>, vector<2x256xf32> -> vector<2x256xf32>
    %345 = arith.addf %341, %344 : vector<2x256xf32>
    %c10_289 = arith.constant 10 : index
    %c0_290 = arith.constant 0 : index
    %c0_291 = arith.constant 0 : index
    %346 = vector.load %arg25[%c10_289, %c0_290, %c0_291] : memref<15x2x4xf32, #tpu.memory_space<vmem>>, vector<1x2x4xf32>
    %347 = vector.shape_cast %346 : vector<1x2x4xf32> to vector<2x4xf32>
    %cst_292 = arith.constant dense<0.000000e+00> : vector<2x256xf32>
    %348 = tpu.matmul %347, %225, %cst_292 {dimension_numbers = #tpu.dot_dimension_numbers<[1], [0], [0], [1], [0, 0, 1, 1], [], []>} : vector<2x4xf32>, vector<4x256xf32>, vector<2x256xf32> -> vector<2x256xf32>
    %349 = arith.addf %345, %348 : vector<2x256xf32>
    %c11_293 = arith.constant 11 : index
    %c0_294 = arith.constant 0 : index
    %c0_295 = arith.constant 0 : index
    %350 = vector.load %arg25[%c11_293, %c0_294, %c0_295] : memref<15x2x4xf32, #tpu.memory_space<vmem>>, vector<1x2x4xf32>
    %351 = vector.shape_cast %350 : vector<1x2x4xf32> to vector<2x4xf32>
    %cst_296 = arith.constant dense<0.000000e+00> : vector<2x256xf32>
    %352 = tpu.matmul %351, %282, %cst_296 {dimension_numbers = #tpu.dot_dimension_numbers<[1], [0], [0], [1], [0, 0, 1, 1], [], []>} : vector<2x4xf32>, vector<4x256xf32>, vector<2x256xf32> -> vector<2x256xf32>
    %353 = arith.addf %349, %352 : vector<2x256xf32>
    %c12_297 = arith.constant 12 : index
    %c0_298 = arith.constant 0 : index
    %c0_299 = arith.constant 0 : index
    %354 = vector.load %arg25[%c12_297, %c0_298, %c0_299] : memref<15x2x4xf32, #tpu.memory_space<vmem>>, vector<1x2x4xf32>
    %355 = vector.shape_cast %354 : vector<1x2x4xf32> to vector<2x4xf32>
    %cst_300 = arith.constant dense<0.000000e+00> : vector<2x256xf32>
    %356 = tpu.matmul %355, %291, %cst_300 {dimension_numbers = #tpu.dot_dimension_numbers<[1], [0], [0], [1], [0, 0, 1, 1], [], []>} : vector<2x4xf32>, vector<4x256xf32>, vector<2x256xf32> -> vector<2x256xf32>
    %357 = arith.addf %353, %356 : vector<2x256xf32>
    %c13_301 = arith.constant 13 : index
    %c0_302 = arith.constant 0 : index
    %c0_303 = arith.constant 0 : index
    %358 = vector.load %arg25[%c13_301, %c0_302, %c0_303] : memref<15x2x4xf32, #tpu.memory_space<vmem>>, vector<1x2x4xf32>
    %359 = vector.shape_cast %358 : vector<1x2x4xf32> to vector<2x4xf32>
    %360 = vector.extract_strided_slice %20 {offsets = [0, 134], sizes = [4, 256], strides = [1, 1]} : vector<4x512xf32> to vector<4x256xf32>
    %c12_304 = arith.constant 12 : index
    %c0_305 = arith.constant 0 : index
    %c0_306 = arith.constant 0 : index
    %361 = vector.load %arg2[%c12_304, %c0_305, %c0_306] : memref<14x1x256xf32, #tpu.memory_space<vmem>>, vector<1x1x256xf32>
    %362 = vector.shape_cast %361 : vector<1x1x256xf32> to vector<1x256xf32>
    %363 = vector.broadcast %362 : vector<1x256xf32> to vector<4x256xf32>
    %364 = arith.mulf %360, %363 : vector<4x256xf32>
    %cst_307 = arith.constant dense<0.000000e+00> : vector<2x256xf32>
    %365 = tpu.matmul %359, %364, %cst_307 {dimension_numbers = #tpu.dot_dimension_numbers<[1], [0], [0], [1], [0, 0, 1, 1], [], []>} : vector<2x4xf32>, vector<4x256xf32>, vector<2x256xf32> -> vector<2x256xf32>
    %366 = arith.addf %357, %365 : vector<2x256xf32>
    %c14_308 = arith.constant 14 : index
    %c0_309 = arith.constant 0 : index
    %c0_310 = arith.constant 0 : index
    %367 = vector.load %arg25[%c14_308, %c0_309, %c0_310] : memref<15x2x4xf32, #tpu.memory_space<vmem>>, vector<1x2x4xf32>
    %368 = vector.shape_cast %367 : vector<1x2x4xf32> to vector<2x4xf32>
    %369 = vector.extract_strided_slice %20 {offsets = [0, 135], sizes = [4, 256], strides = [1, 1]} : vector<4x512xf32> to vector<4x256xf32>
    %c13_311 = arith.constant 13 : index
    %c0_312 = arith.constant 0 : index
    %c0_313 = arith.constant 0 : index
    %370 = vector.load %arg2[%c13_311, %c0_312, %c0_313] : memref<14x1x256xf32, #tpu.memory_space<vmem>>, vector<1x1x256xf32>
    %371 = vector.shape_cast %370 : vector<1x1x256xf32> to vector<1x256xf32>
    %372 = vector.broadcast %371 : vector<1x256xf32> to vector<4x256xf32>
    %373 = arith.mulf %369, %372 : vector<4x256xf32>
    %cst_314 = arith.constant dense<0.000000e+00> : vector<2x256xf32>
    %374 = tpu.matmul %368, %373, %cst_314 {dimension_numbers = #tpu.dot_dimension_numbers<[1], [0], [0], [1], [0, 0, 1, 1], [], []>} : vector<2x4xf32>, vector<4x256xf32>, vector<2x256xf32> -> vector<2x256xf32>
    %375 = arith.addf %366, %374 : vector<2x256xf32>
    %c0_315 = arith.constant 0 : index
    %c0_316 = arith.constant 0 : index
    %376 = vector.load %arg26[%c0_315, %c0_316] : memref<2x1xf32, #tpu.memory_space<vmem>>, vector<2x1xf32>
    %377 = vector.broadcast %376 : vector<2x1xf32> to vector<2x256xf32>
    %378 = arith.addf %375, %377 : vector<2x256xf32>
    %c0_317 = arith.constant 0 : index
    %c0_318 = arith.constant 0 : index
    %c0_319 = arith.constant 0 : index
    %379 = vector.load %arg7[%c0_317, %c0_318, %c0_319] : memref<7x2x2xf32, #tpu.memory_space<vmem>>, vector<1x2x2xf32>
    %380 = vector.shape_cast %379 : vector<1x2x2xf32> to vector<2x2xf32>
    %cst_320 = arith.constant 0.000000e+00 : f32
    %381 = vector.broadcast %cst_320 : f32 to vector<2x128xf32>
    %382 = tpu.concatenate %381, %54, %381 in 1 : vector<2x128xf32>, vector<2x256xf32>, vector<2x128xf32> -> vector<2x512xf32>
    %383 = vector.extract_strided_slice %382 {offsets = [0, 125], sizes = [2, 256], strides = [1, 1]} : vector<2x512xf32> to vector<2x256xf32>
    %c4_321 = arith.constant 4 : index
    %c0_322 = arith.constant 0 : index
    %c0_323 = arith.constant 0 : index
    %384 = vector.load %arg2[%c4_321, %c0_322, %c0_323] : memref<14x1x256xf32, #tpu.memory_space<vmem>>, vector<1x1x256xf32>
    %385 = vector.shape_cast %384 : vector<1x1x256xf32> to vector<1x256xf32>
    %386 = vector.broadcast %385 : vector<1x256xf32> to vector<2x256xf32>
    %387 = arith.mulf %383, %386 : vector<2x256xf32>
    %cst_324 = arith.constant dense<0.000000e+00> : vector<2x256xf32>
    %388 = tpu.matmul %380, %387, %cst_324 {dimension_numbers = #tpu.dot_dimension_numbers<[1], [0], [0], [1], [0, 0, 1, 1], [], []>} : vector<2x2xf32>, vector<2x256xf32>, vector<2x256xf32> -> vector<2x256xf32>
    %c1_325 = arith.constant 1 : index
    %c0_326 = arith.constant 0 : index
    %c0_327 = arith.constant 0 : index
    %389 = vector.load %arg7[%c1_325, %c0_326, %c0_327] : memref<7x2x2xf32, #tpu.memory_space<vmem>>, vector<1x2x2xf32>
    %390 = vector.shape_cast %389 : vector<1x2x2xf32> to vector<2x2xf32>
    %391 = vector.extract_strided_slice %382 {offsets = [0, 126], sizes = [2, 256], strides = [1, 1]} : vector<2x512xf32> to vector<2x256xf32>
    %c5_328 = arith.constant 5 : index
    %c0_329 = arith.constant 0 : index
    %c0_330 = arith.constant 0 : index
    %392 = vector.load %arg2[%c5_328, %c0_329, %c0_330] : memref<14x1x256xf32, #tpu.memory_space<vmem>>, vector<1x1x256xf32>
    %393 = vector.shape_cast %392 : vector<1x1x256xf32> to vector<1x256xf32>
    %394 = vector.broadcast %393 : vector<1x256xf32> to vector<2x256xf32>
    %395 = arith.mulf %391, %394 : vector<2x256xf32>
    %cst_331 = arith.constant dense<0.000000e+00> : vector<2x256xf32>
    %396 = tpu.matmul %390, %395, %cst_331 {dimension_numbers = #tpu.dot_dimension_numbers<[1], [0], [0], [1], [0, 0, 1, 1], [], []>} : vector<2x2xf32>, vector<2x256xf32>, vector<2x256xf32> -> vector<2x256xf32>
    %397 = arith.addf %388, %396 : vector<2x256xf32>
    %c2_332 = arith.constant 2 : index
    %c0_333 = arith.constant 0 : index
    %c0_334 = arith.constant 0 : index
    %398 = vector.load %arg7[%c2_332, %c0_333, %c0_334] : memref<7x2x2xf32, #tpu.memory_space<vmem>>, vector<1x2x2xf32>
    %399 = vector.shape_cast %398 : vector<1x2x2xf32> to vector<2x2xf32>
    %400 = vector.extract_strided_slice %382 {offsets = [0, 127], sizes = [2, 256], strides = [1, 1]} : vector<2x512xf32> to vector<2x256xf32>
    %c6_335 = arith.constant 6 : index
    %c0_336 = arith.constant 0 : index
    %c0_337 = arith.constant 0 : index
    %401 = vector.load %arg2[%c6_335, %c0_336, %c0_337] : memref<14x1x256xf32, #tpu.memory_space<vmem>>, vector<1x1x256xf32>
    %402 = vector.shape_cast %401 : vector<1x1x256xf32> to vector<1x256xf32>
    %403 = vector.broadcast %402 : vector<1x256xf32> to vector<2x256xf32>
    %404 = arith.mulf %400, %403 : vector<2x256xf32>
    %cst_338 = arith.constant dense<0.000000e+00> : vector<2x256xf32>
    %405 = tpu.matmul %399, %404, %cst_338 {dimension_numbers = #tpu.dot_dimension_numbers<[1], [0], [0], [1], [0, 0, 1, 1], [], []>} : vector<2x2xf32>, vector<2x256xf32>, vector<2x256xf32> -> vector<2x256xf32>
    %406 = arith.addf %397, %405 : vector<2x256xf32>
    %c3_339 = arith.constant 3 : index
    %c0_340 = arith.constant 0 : index
    %c0_341 = arith.constant 0 : index
    %407 = vector.load %arg7[%c3_339, %c0_340, %c0_341] : memref<7x2x2xf32, #tpu.memory_space<vmem>>, vector<1x2x2xf32>
    %408 = vector.shape_cast %407 : vector<1x2x2xf32> to vector<2x2xf32>
    %cst_342 = arith.constant dense<0.000000e+00> : vector<2x256xf32>
    %409 = tpu.matmul %408, %54, %cst_342 {dimension_numbers = #tpu.dot_dimension_numbers<[1], [0], [0], [1], [0, 0, 1, 1], [], []>} : vector<2x2xf32>, vector<2x256xf32>, vector<2x256xf32> -> vector<2x256xf32>
    %410 = arith.addf %406, %409 : vector<2x256xf32>
    %c4_343 = arith.constant 4 : index
    %c0_344 = arith.constant 0 : index
    %c0_345 = arith.constant 0 : index
    %411 = vector.load %arg7[%c4_343, %c0_344, %c0_345] : memref<7x2x2xf32, #tpu.memory_space<vmem>>, vector<1x2x2xf32>
    %412 = vector.shape_cast %411 : vector<1x2x2xf32> to vector<2x2xf32>
    %413 = vector.extract_strided_slice %382 {offsets = [0, 129], sizes = [2, 256], strides = [1, 1]} : vector<2x512xf32> to vector<2x256xf32>
    %c7_346 = arith.constant 7 : index
    %c0_347 = arith.constant 0 : index
    %c0_348 = arith.constant 0 : index
    %414 = vector.load %arg2[%c7_346, %c0_347, %c0_348] : memref<14x1x256xf32, #tpu.memory_space<vmem>>, vector<1x1x256xf32>
    %415 = vector.shape_cast %414 : vector<1x1x256xf32> to vector<1x256xf32>
    %416 = vector.broadcast %415 : vector<1x256xf32> to vector<2x256xf32>
    %417 = arith.mulf %413, %416 : vector<2x256xf32>
    %cst_349 = arith.constant dense<0.000000e+00> : vector<2x256xf32>
    %418 = tpu.matmul %412, %417, %cst_349 {dimension_numbers = #tpu.dot_dimension_numbers<[1], [0], [0], [1], [0, 0, 1, 1], [], []>} : vector<2x2xf32>, vector<2x256xf32>, vector<2x256xf32> -> vector<2x256xf32>
    %419 = arith.addf %410, %418 : vector<2x256xf32>
    %c5_350 = arith.constant 5 : index
    %c0_351 = arith.constant 0 : index
    %c0_352 = arith.constant 0 : index
    %420 = vector.load %arg7[%c5_350, %c0_351, %c0_352] : memref<7x2x2xf32, #tpu.memory_space<vmem>>, vector<1x2x2xf32>
    %421 = vector.shape_cast %420 : vector<1x2x2xf32> to vector<2x2xf32>
    %422 = vector.extract_strided_slice %382 {offsets = [0, 130], sizes = [2, 256], strides = [1, 1]} : vector<2x512xf32> to vector<2x256xf32>
    %c8_353 = arith.constant 8 : index
    %c0_354 = arith.constant 0 : index
    %c0_355 = arith.constant 0 : index
    %423 = vector.load %arg2[%c8_353, %c0_354, %c0_355] : memref<14x1x256xf32, #tpu.memory_space<vmem>>, vector<1x1x256xf32>
    %424 = vector.shape_cast %423 : vector<1x1x256xf32> to vector<1x256xf32>
    %425 = vector.broadcast %424 : vector<1x256xf32> to vector<2x256xf32>
    %426 = arith.mulf %422, %425 : vector<2x256xf32>
    %cst_356 = arith.constant dense<0.000000e+00> : vector<2x256xf32>
    %427 = tpu.matmul %421, %426, %cst_356 {dimension_numbers = #tpu.dot_dimension_numbers<[1], [0], [0], [1], [0, 0, 1, 1], [], []>} : vector<2x2xf32>, vector<2x256xf32>, vector<2x256xf32> -> vector<2x256xf32>
    %428 = arith.addf %419, %427 : vector<2x256xf32>
    %c6_357 = arith.constant 6 : index
    %c0_358 = arith.constant 0 : index
    %c0_359 = arith.constant 0 : index
    %429 = vector.load %arg7[%c6_357, %c0_358, %c0_359] : memref<7x2x2xf32, #tpu.memory_space<vmem>>, vector<1x2x2xf32>
    %430 = vector.shape_cast %429 : vector<1x2x2xf32> to vector<2x2xf32>
    %431 = vector.extract_strided_slice %382 {offsets = [0, 131], sizes = [2, 256], strides = [1, 1]} : vector<2x512xf32> to vector<2x256xf32>
    %c9_360 = arith.constant 9 : index
    %c0_361 = arith.constant 0 : index
    %c0_362 = arith.constant 0 : index
    %432 = vector.load %arg2[%c9_360, %c0_361, %c0_362] : memref<14x1x256xf32, #tpu.memory_space<vmem>>, vector<1x1x256xf32>
    %433 = vector.shape_cast %432 : vector<1x1x256xf32> to vector<1x256xf32>
    %434 = vector.broadcast %433 : vector<1x256xf32> to vector<2x256xf32>
    %435 = arith.mulf %431, %434 : vector<2x256xf32>
    %cst_363 = arith.constant dense<0.000000e+00> : vector<2x256xf32>
    %436 = tpu.matmul %430, %435, %cst_363 {dimension_numbers = #tpu.dot_dimension_numbers<[1], [0], [0], [1], [0, 0, 1, 1], [], []>} : vector<2x2xf32>, vector<2x256xf32>, vector<2x256xf32> -> vector<2x256xf32>
    %437 = arith.addf %428, %436 : vector<2x256xf32>
    %c0_364 = arith.constant 0 : index
    %c0_365 = arith.constant 0 : index
    %438 = vector.load %arg8[%c0_364, %c0_365] : memref<2x1xf32, #tpu.memory_space<vmem>>, vector<2x1xf32>
    %439 = vector.broadcast %438 : vector<2x1xf32> to vector<2x256xf32>
    %440 = arith.addf %437, %439 : vector<2x256xf32>
    %c0_366 = arith.constant 0 : index
    %c0_367 = arith.constant 0 : index
    %c0_368 = arith.constant 0 : index
    %441 = vector.load %arg11[%c0_366, %c0_367, %c0_368] : memref<7x2x2xf32, #tpu.memory_space<vmem>>, vector<1x2x2xf32>
    %442 = vector.shape_cast %441 : vector<1x2x2xf32> to vector<2x2xf32>
    %cst_369 = arith.constant 0.000000e+00 : f32
    %443 = vector.broadcast %cst_369 : f32 to vector<2x128xf32>
    %444 = tpu.concatenate %443, %230, %443 in 1 : vector<2x128xf32>, vector<2x256xf32>, vector<2x128xf32> -> vector<2x512xf32>
    %445 = vector.extract_strided_slice %444 {offsets = [0, 80], sizes = [2, 256], strides = [1, 1]} : vector<2x512xf32> to vector<2x256xf32>
    %cst_370 = arith.constant dense<0.000000e+00> : vector<2x256xf32>
    %446 = tpu.matmul %442, %445, %cst_370 {dimension_numbers = #tpu.dot_dimension_numbers<[1], [0], [0], [1], [0, 0, 1, 1], [], []>} : vector<2x2xf32>, vector<2x256xf32>, vector<2x256xf32> -> vector<2x256xf32>
    %c1_371 = arith.constant 1 : index
    %c0_372 = arith.constant 0 : index
    %c0_373 = arith.constant 0 : index
    %447 = vector.load %arg11[%c1_371, %c0_372, %c0_373] : memref<7x2x2xf32, #tpu.memory_space<vmem>>, vector<1x2x2xf32>
    %448 = vector.shape_cast %447 : vector<1x2x2xf32> to vector<2x2xf32>
    %449 = vector.extract_strided_slice %444 {offsets = [0, 96], sizes = [2, 256], strides = [1, 1]} : vector<2x512xf32> to vector<2x256xf32>
    %cst_374 = arith.constant dense<0.000000e+00> : vector<2x256xf32>
    %450 = tpu.matmul %448, %449, %cst_374 {dimension_numbers = #tpu.dot_dimension_numbers<[1], [0], [0], [1], [0, 0, 1, 1], [], []>} : vector<2x2xf32>, vector<2x256xf32>, vector<2x256xf32> -> vector<2x256xf32>
    %451 = arith.addf %446, %450 : vector<2x256xf32>
    %c2_375 = arith.constant 2 : index
    %c0_376 = arith.constant 0 : index
    %c0_377 = arith.constant 0 : index
    %452 = vector.load %arg11[%c2_375, %c0_376, %c0_377] : memref<7x2x2xf32, #tpu.memory_space<vmem>>, vector<1x2x2xf32>
    %453 = vector.shape_cast %452 : vector<1x2x2xf32> to vector<2x2xf32>
    %454 = vector.extract_strided_slice %444 {offsets = [0, 112], sizes = [2, 256], strides = [1, 1]} : vector<2x512xf32> to vector<2x256xf32>
    %cst_378 = arith.constant dense<0.000000e+00> : vector<2x256xf32>
    %455 = tpu.matmul %453, %454, %cst_378 {dimension_numbers = #tpu.dot_dimension_numbers<[1], [0], [0], [1], [0, 0, 1, 1], [], []>} : vector<2x2xf32>, vector<2x256xf32>, vector<2x256xf32> -> vector<2x256xf32>
    %456 = arith.addf %451, %455 : vector<2x256xf32>
    %c3_379 = arith.constant 3 : index
    %c0_380 = arith.constant 0 : index
    %c0_381 = arith.constant 0 : index
    %457 = vector.load %arg11[%c3_379, %c0_380, %c0_381] : memref<7x2x2xf32, #tpu.memory_space<vmem>>, vector<1x2x2xf32>
    %458 = vector.shape_cast %457 : vector<1x2x2xf32> to vector<2x2xf32>
    %cst_382 = arith.constant dense<0.000000e+00> : vector<2x256xf32>
    %459 = tpu.matmul %458, %230, %cst_382 {dimension_numbers = #tpu.dot_dimension_numbers<[1], [0], [0], [1], [0, 0, 1, 1], [], []>} : vector<2x2xf32>, vector<2x256xf32>, vector<2x256xf32> -> vector<2x256xf32>
    %460 = arith.addf %456, %459 : vector<2x256xf32>
    %c4_383 = arith.constant 4 : index
    %c0_384 = arith.constant 0 : index
    %c0_385 = arith.constant 0 : index
    %461 = vector.load %arg11[%c4_383, %c0_384, %c0_385] : memref<7x2x2xf32, #tpu.memory_space<vmem>>, vector<1x2x2xf32>
    %462 = vector.shape_cast %461 : vector<1x2x2xf32> to vector<2x2xf32>
    %463 = vector.extract_strided_slice %444 {offsets = [0, 144], sizes = [2, 256], strides = [1, 1]} : vector<2x512xf32> to vector<2x256xf32>
    %cst_386 = arith.constant dense<0.000000e+00> : vector<2x256xf32>
    %464 = tpu.matmul %462, %463, %cst_386 {dimension_numbers = #tpu.dot_dimension_numbers<[1], [0], [0], [1], [0, 0, 1, 1], [], []>} : vector<2x2xf32>, vector<2x256xf32>, vector<2x256xf32> -> vector<2x256xf32>
    %465 = arith.addf %460, %464 : vector<2x256xf32>
    %c5_387 = arith.constant 5 : index
    %c0_388 = arith.constant 0 : index
    %c0_389 = arith.constant 0 : index
    %466 = vector.load %arg11[%c5_387, %c0_388, %c0_389] : memref<7x2x2xf32, #tpu.memory_space<vmem>>, vector<1x2x2xf32>
    %467 = vector.shape_cast %466 : vector<1x2x2xf32> to vector<2x2xf32>
    %468 = vector.extract_strided_slice %444 {offsets = [0, 160], sizes = [2, 256], strides = [1, 1]} : vector<2x512xf32> to vector<2x256xf32>
    %cst_390 = arith.constant dense<0.000000e+00> : vector<2x256xf32>
    %469 = tpu.matmul %467, %468, %cst_390 {dimension_numbers = #tpu.dot_dimension_numbers<[1], [0], [0], [1], [0, 0, 1, 1], [], []>} : vector<2x2xf32>, vector<2x256xf32>, vector<2x256xf32> -> vector<2x256xf32>
    %470 = arith.addf %465, %469 : vector<2x256xf32>
    %c6_391 = arith.constant 6 : index
    %c0_392 = arith.constant 0 : index
    %c0_393 = arith.constant 0 : index
    %471 = vector.load %arg11[%c6_391, %c0_392, %c0_393] : memref<7x2x2xf32, #tpu.memory_space<vmem>>, vector<1x2x2xf32>
    %472 = vector.shape_cast %471 : vector<1x2x2xf32> to vector<2x2xf32>
    %473 = vector.extract_strided_slice %444 {offsets = [0, 176], sizes = [2, 256], strides = [1, 1]} : vector<2x512xf32> to vector<2x256xf32>
    %cst_394 = arith.constant dense<0.000000e+00> : vector<2x256xf32>
    %474 = tpu.matmul %472, %473, %cst_394 {dimension_numbers = #tpu.dot_dimension_numbers<[1], [0], [0], [1], [0, 0, 1, 1], [], []>} : vector<2x2xf32>, vector<2x256xf32>, vector<2x256xf32> -> vector<2x256xf32>
    %475 = arith.addf %470, %474 : vector<2x256xf32>
    %c0_395 = arith.constant 0 : index
    %c0_396 = arith.constant 0 : index
    %476 = vector.load %arg12[%c0_395, %c0_396] : memref<2x1xf32, #tpu.memory_space<vmem>>, vector<2x1xf32>
    %477 = vector.broadcast %476 : vector<2x1xf32> to vector<2x256xf32>
    %478 = arith.addf %475, %477 : vector<2x256xf32>
    %479 = arith.addf %440, %478 : vector<2x256xf32>
    %cst_397 = arith.constant 0.000000e+00 : f32
    %480 = vector.broadcast %cst_397 : f32 to vector<2x256xf32>
    %481 = arith.cmpf oge, %479, %480 : vector<2x256xf32>
    %cst_398 = arith.constant 1.000000e-01 : f32
    %482 = vector.broadcast %cst_398 : f32 to vector<2x256xf32>
    %483 = arith.mulf %482, %479 : vector<2x256xf32>
    %484 = arith.select %481, %479, %483 : vector<2x256xi1>, vector<2x256xf32>
    %c0_399 = arith.constant 0 : index
    %c0_400 = arith.constant 0 : index
    %c0_401 = arith.constant 0 : index
    %485 = vector.load %arg15[%c0_399, %c0_400, %c0_401] : memref<11x2x2xf32, #tpu.memory_space<vmem>>, vector<1x2x2xf32>
    %486 = vector.shape_cast %485 : vector<1x2x2xf32> to vector<2x2xf32>
    %cst_402 = arith.constant 0.000000e+00 : f32
    %487 = vector.broadcast %cst_402 : f32 to vector<2x128xf32>
    %488 = tpu.concatenate %487, %104, %487 in 1 : vector<2x128xf32>, vector<2x256xf32>, vector<2x128xf32> -> vector<2x512xf32>
    %489 = vector.extract_strided_slice %488 {offsets = [0, 123], sizes = [2, 256], strides = [1, 1]} : vector<2x512xf32> to vector<2x256xf32>
    %c2_403 = arith.constant 2 : index
    %c0_404 = arith.constant 0 : index
    %c0_405 = arith.constant 0 : index
    %490 = vector.load %arg2[%c2_403, %c0_404, %c0_405] : memref<14x1x256xf32, #tpu.memory_space<vmem>>, vector<1x1x256xf32>
    %491 = vector.shape_cast %490 : vector<1x1x256xf32> to vector<1x256xf32>
    %492 = vector.broadcast %491 : vector<1x256xf32> to vector<2x256xf32>
    %493 = arith.mulf %489, %492 : vector<2x256xf32>
    %cst_406 = arith.constant dense<0.000000e+00> : vector<2x256xf32>
    %494 = tpu.matmul %486, %493, %cst_406 {dimension_numbers = #tpu.dot_dimension_numbers<[1], [0], [0], [1], [0, 0, 1, 1], [], []>} : vector<2x2xf32>, vector<2x256xf32>, vector<2x256xf32> -> vector<2x256xf32>
    %c1_407 = arith.constant 1 : index
    %c0_408 = arith.constant 0 : index
    %c0_409 = arith.constant 0 : index
    %495 = vector.load %arg15[%c1_407, %c0_408, %c0_409] : memref<11x2x2xf32, #tpu.memory_space<vmem>>, vector<1x2x2xf32>
    %496 = vector.shape_cast %495 : vector<1x2x2xf32> to vector<2x2xf32>
    %497 = vector.extract_strided_slice %488 {offsets = [0, 124], sizes = [2, 256], strides = [1, 1]} : vector<2x512xf32> to vector<2x256xf32>
    %c3_410 = arith.constant 3 : index
    %c0_411 = arith.constant 0 : index
    %c0_412 = arith.constant 0 : index
    %498 = vector.load %arg2[%c3_410, %c0_411, %c0_412] : memref<14x1x256xf32, #tpu.memory_space<vmem>>, vector<1x1x256xf32>
    %499 = vector.shape_cast %498 : vector<1x1x256xf32> to vector<1x256xf32>
    %500 = vector.broadcast %499 : vector<1x256xf32> to vector<2x256xf32>
    %501 = arith.mulf %497, %500 : vector<2x256xf32>
    %cst_413 = arith.constant dense<0.000000e+00> : vector<2x256xf32>
    %502 = tpu.matmul %496, %501, %cst_413 {dimension_numbers = #tpu.dot_dimension_numbers<[1], [0], [0], [1], [0, 0, 1, 1], [], []>} : vector<2x2xf32>, vector<2x256xf32>, vector<2x256xf32> -> vector<2x256xf32>
    %503 = arith.addf %494, %502 : vector<2x256xf32>
    %c2_414 = arith.constant 2 : index
    %c0_415 = arith.constant 0 : index
    %c0_416 = arith.constant 0 : index
    %504 = vector.load %arg15[%c2_414, %c0_415, %c0_416] : memref<11x2x2xf32, #tpu.memory_space<vmem>>, vector<1x2x2xf32>
    %505 = vector.shape_cast %504 : vector<1x2x2xf32> to vector<2x2xf32>
    %506 = vector.extract_strided_slice %488 {offsets = [0, 125], sizes = [2, 256], strides = [1, 1]} : vector<2x512xf32> to vector<2x256xf32>
    %c4_417 = arith.constant 4 : index
    %c0_418 = arith.constant 0 : index
    %c0_419 = arith.constant 0 : index
    %507 = vector.load %arg2[%c4_417, %c0_418, %c0_419] : memref<14x1x256xf32, #tpu.memory_space<vmem>>, vector<1x1x256xf32>
    %508 = vector.shape_cast %507 : vector<1x1x256xf32> to vector<1x256xf32>
    %509 = vector.broadcast %508 : vector<1x256xf32> to vector<2x256xf32>
    %510 = arith.mulf %506, %509 : vector<2x256xf32>
    %cst_420 = arith.constant dense<0.000000e+00> : vector<2x256xf32>
    %511 = tpu.matmul %505, %510, %cst_420 {dimension_numbers = #tpu.dot_dimension_numbers<[1], [0], [0], [1], [0, 0, 1, 1], [], []>} : vector<2x2xf32>, vector<2x256xf32>, vector<2x256xf32> -> vector<2x256xf32>
    %512 = arith.addf %503, %511 : vector<2x256xf32>
    %c3_421 = arith.constant 3 : index
    %c0_422 = arith.constant 0 : index
    %c0_423 = arith.constant 0 : index
    %513 = vector.load %arg15[%c3_421, %c0_422, %c0_423] : memref<11x2x2xf32, #tpu.memory_space<vmem>>, vector<1x2x2xf32>
    %514 = vector.shape_cast %513 : vector<1x2x2xf32> to vector<2x2xf32>
    %515 = vector.extract_strided_slice %488 {offsets = [0, 126], sizes = [2, 256], strides = [1, 1]} : vector<2x512xf32> to vector<2x256xf32>
    %c5_424 = arith.constant 5 : index
    %c0_425 = arith.constant 0 : index
    %c0_426 = arith.constant 0 : index
    %516 = vector.load %arg2[%c5_424, %c0_425, %c0_426] : memref<14x1x256xf32, #tpu.memory_space<vmem>>, vector<1x1x256xf32>
    %517 = vector.shape_cast %516 : vector<1x1x256xf32> to vector<1x256xf32>
    %518 = vector.broadcast %517 : vector<1x256xf32> to vector<2x256xf32>
    %519 = arith.mulf %515, %518 : vector<2x256xf32>
    %cst_427 = arith.constant dense<0.000000e+00> : vector<2x256xf32>
    %520 = tpu.matmul %514, %519, %cst_427 {dimension_numbers = #tpu.dot_dimension_numbers<[1], [0], [0], [1], [0, 0, 1, 1], [], []>} : vector<2x2xf32>, vector<2x256xf32>, vector<2x256xf32> -> vector<2x256xf32>
    %521 = arith.addf %512, %520 : vector<2x256xf32>
    %c4_428 = arith.constant 4 : index
    %c0_429 = arith.constant 0 : index
    %c0_430 = arith.constant 0 : index
    %522 = vector.load %arg15[%c4_428, %c0_429, %c0_430] : memref<11x2x2xf32, #tpu.memory_space<vmem>>, vector<1x2x2xf32>
    %523 = vector.shape_cast %522 : vector<1x2x2xf32> to vector<2x2xf32>
    %524 = vector.extract_strided_slice %488 {offsets = [0, 127], sizes = [2, 256], strides = [1, 1]} : vector<2x512xf32> to vector<2x256xf32>
    %c6_431 = arith.constant 6 : index
    %c0_432 = arith.constant 0 : index
    %c0_433 = arith.constant 0 : index
    %525 = vector.load %arg2[%c6_431, %c0_432, %c0_433] : memref<14x1x256xf32, #tpu.memory_space<vmem>>, vector<1x1x256xf32>
    %526 = vector.shape_cast %525 : vector<1x1x256xf32> to vector<1x256xf32>
    %527 = vector.broadcast %526 : vector<1x256xf32> to vector<2x256xf32>
    %528 = arith.mulf %524, %527 : vector<2x256xf32>
    %cst_434 = arith.constant dense<0.000000e+00> : vector<2x256xf32>
    %529 = tpu.matmul %523, %528, %cst_434 {dimension_numbers = #tpu.dot_dimension_numbers<[1], [0], [0], [1], [0, 0, 1, 1], [], []>} : vector<2x2xf32>, vector<2x256xf32>, vector<2x256xf32> -> vector<2x256xf32>
    %530 = arith.addf %521, %529 : vector<2x256xf32>
    %c5_435 = arith.constant 5 : index
    %c0_436 = arith.constant 0 : index
    %c0_437 = arith.constant 0 : index
    %531 = vector.load %arg15[%c5_435, %c0_436, %c0_437] : memref<11x2x2xf32, #tpu.memory_space<vmem>>, vector<1x2x2xf32>
    %532 = vector.shape_cast %531 : vector<1x2x2xf32> to vector<2x2xf32>
    %cst_438 = arith.constant dense<0.000000e+00> : vector<2x256xf32>
    %533 = tpu.matmul %532, %104, %cst_438 {dimension_numbers = #tpu.dot_dimension_numbers<[1], [0], [0], [1], [0, 0, 1, 1], [], []>} : vector<2x2xf32>, vector<2x256xf32>, vector<2x256xf32> -> vector<2x256xf32>
    %534 = arith.addf %530, %533 : vector<2x256xf32>
    %c6_439 = arith.constant 6 : index
    %c0_440 = arith.constant 0 : index
    %c0_441 = arith.constant 0 : index
    %535 = vector.load %arg15[%c6_439, %c0_440, %c0_441] : memref<11x2x2xf32, #tpu.memory_space<vmem>>, vector<1x2x2xf32>
    %536 = vector.shape_cast %535 : vector<1x2x2xf32> to vector<2x2xf32>
    %537 = vector.extract_strided_slice %488 {offsets = [0, 129], sizes = [2, 256], strides = [1, 1]} : vector<2x512xf32> to vector<2x256xf32>
    %c7_442 = arith.constant 7 : index
    %c0_443 = arith.constant 0 : index
    %c0_444 = arith.constant 0 : index
    %538 = vector.load %arg2[%c7_442, %c0_443, %c0_444] : memref<14x1x256xf32, #tpu.memory_space<vmem>>, vector<1x1x256xf32>
    %539 = vector.shape_cast %538 : vector<1x1x256xf32> to vector<1x256xf32>
    %540 = vector.broadcast %539 : vector<1x256xf32> to vector<2x256xf32>
    %541 = arith.mulf %537, %540 : vector<2x256xf32>
    %cst_445 = arith.constant dense<0.000000e+00> : vector<2x256xf32>
    %542 = tpu.matmul %536, %541, %cst_445 {dimension_numbers = #tpu.dot_dimension_numbers<[1], [0], [0], [1], [0, 0, 1, 1], [], []>} : vector<2x2xf32>, vector<2x256xf32>, vector<2x256xf32> -> vector<2x256xf32>
    %543 = arith.addf %534, %542 : vector<2x256xf32>
    %c7_446 = arith.constant 7 : index
    %c0_447 = arith.constant 0 : index
    %c0_448 = arith.constant 0 : index
    %544 = vector.load %arg15[%c7_446, %c0_447, %c0_448] : memref<11x2x2xf32, #tpu.memory_space<vmem>>, vector<1x2x2xf32>
    %545 = vector.shape_cast %544 : vector<1x2x2xf32> to vector<2x2xf32>
    %546 = vector.extract_strided_slice %488 {offsets = [0, 130], sizes = [2, 256], strides = [1, 1]} : vector<2x512xf32> to vector<2x256xf32>
    %c8_449 = arith.constant 8 : index
    %c0_450 = arith.constant 0 : index
    %c0_451 = arith.constant 0 : index
    %547 = vector.load %arg2[%c8_449, %c0_450, %c0_451] : memref<14x1x256xf32, #tpu.memory_space<vmem>>, vector<1x1x256xf32>
    %548 = vector.shape_cast %547 : vector<1x1x256xf32> to vector<1x256xf32>
    %549 = vector.broadcast %548 : vector<1x256xf32> to vector<2x256xf32>
    %550 = arith.mulf %546, %549 : vector<2x256xf32>
    %cst_452 = arith.constant dense<0.000000e+00> : vector<2x256xf32>
    %551 = tpu.matmul %545, %550, %cst_452 {dimension_numbers = #tpu.dot_dimension_numbers<[1], [0], [0], [1], [0, 0, 1, 1], [], []>} : vector<2x2xf32>, vector<2x256xf32>, vector<2x256xf32> -> vector<2x256xf32>
    %552 = arith.addf %543, %551 : vector<2x256xf32>
    %c8_453 = arith.constant 8 : index
    %c0_454 = arith.constant 0 : index
    %c0_455 = arith.constant 0 : index
    %553 = vector.load %arg15[%c8_453, %c0_454, %c0_455] : memref<11x2x2xf32, #tpu.memory_space<vmem>>, vector<1x2x2xf32>
    %554 = vector.shape_cast %553 : vector<1x2x2xf32> to vector<2x2xf32>
    %555 = vector.extract_strided_slice %488 {offsets = [0, 131], sizes = [2, 256], strides = [1, 1]} : vector<2x512xf32> to vector<2x256xf32>
    %c9_456 = arith.constant 9 : index
    %c0_457 = arith.constant 0 : index
    %c0_458 = arith.constant 0 : index
    %556 = vector.load %arg2[%c9_456, %c0_457, %c0_458] : memref<14x1x256xf32, #tpu.memory_space<vmem>>, vector<1x1x256xf32>
    %557 = vector.shape_cast %556 : vector<1x1x256xf32> to vector<1x256xf32>
    %558 = vector.broadcast %557 : vector<1x256xf32> to vector<2x256xf32>
    %559 = arith.mulf %555, %558 : vector<2x256xf32>
    %cst_459 = arith.constant dense<0.000000e+00> : vector<2x256xf32>
    %560 = tpu.matmul %554, %559, %cst_459 {dimension_numbers = #tpu.dot_dimension_numbers<[1], [0], [0], [1], [0, 0, 1, 1], [], []>} : vector<2x2xf32>, vector<2x256xf32>, vector<2x256xf32> -> vector<2x256xf32>
    %561 = arith.addf %552, %560 : vector<2x256xf32>
    %c9_460 = arith.constant 9 : index
    %c0_461 = arith.constant 0 : index
    %c0_462 = arith.constant 0 : index
    %562 = vector.load %arg15[%c9_460, %c0_461, %c0_462] : memref<11x2x2xf32, #tpu.memory_space<vmem>>, vector<1x2x2xf32>
    %563 = vector.shape_cast %562 : vector<1x2x2xf32> to vector<2x2xf32>
    %564 = vector.extract_strided_slice %488 {offsets = [0, 132], sizes = [2, 256], strides = [1, 1]} : vector<2x512xf32> to vector<2x256xf32>
    %c10_463 = arith.constant 10 : index
    %c0_464 = arith.constant 0 : index
    %c0_465 = arith.constant 0 : index
    %565 = vector.load %arg2[%c10_463, %c0_464, %c0_465] : memref<14x1x256xf32, #tpu.memory_space<vmem>>, vector<1x1x256xf32>
    %566 = vector.shape_cast %565 : vector<1x1x256xf32> to vector<1x256xf32>
    %567 = vector.broadcast %566 : vector<1x256xf32> to vector<2x256xf32>
    %568 = arith.mulf %564, %567 : vector<2x256xf32>
    %cst_466 = arith.constant dense<0.000000e+00> : vector<2x256xf32>
    %569 = tpu.matmul %563, %568, %cst_466 {dimension_numbers = #tpu.dot_dimension_numbers<[1], [0], [0], [1], [0, 0, 1, 1], [], []>} : vector<2x2xf32>, vector<2x256xf32>, vector<2x256xf32> -> vector<2x256xf32>
    %570 = arith.addf %561, %569 : vector<2x256xf32>
    %c10_467 = arith.constant 10 : index
    %c0_468 = arith.constant 0 : index
    %c0_469 = arith.constant 0 : index
    %571 = vector.load %arg15[%c10_467, %c0_468, %c0_469] : memref<11x2x2xf32, #tpu.memory_space<vmem>>, vector<1x2x2xf32>
    %572 = vector.shape_cast %571 : vector<1x2x2xf32> to vector<2x2xf32>
    %573 = vector.extract_strided_slice %488 {offsets = [0, 133], sizes = [2, 256], strides = [1, 1]} : vector<2x512xf32> to vector<2x256xf32>
    %c11_470 = arith.constant 11 : index
    %c0_471 = arith.constant 0 : index
    %c0_472 = arith.constant 0 : index
    %574 = vector.load %arg2[%c11_470, %c0_471, %c0_472] : memref<14x1x256xf32, #tpu.memory_space<vmem>>, vector<1x1x256xf32>
    %575 = vector.shape_cast %574 : vector<1x1x256xf32> to vector<1x256xf32>
    %576 = vector.broadcast %575 : vector<1x256xf32> to vector<2x256xf32>
    %577 = arith.mulf %573, %576 : vector<2x256xf32>
    %cst_473 = arith.constant dense<0.000000e+00> : vector<2x256xf32>
    %578 = tpu.matmul %572, %577, %cst_473 {dimension_numbers = #tpu.dot_dimension_numbers<[1], [0], [0], [1], [0, 0, 1, 1], [], []>} : vector<2x2xf32>, vector<2x256xf32>, vector<2x256xf32> -> vector<2x256xf32>
    %579 = arith.addf %570, %578 : vector<2x256xf32>
    %c0_474 = arith.constant 0 : index
    %c0_475 = arith.constant 0 : index
    %580 = vector.load %arg16[%c0_474, %c0_475] : memref<2x1xf32, #tpu.memory_space<vmem>>, vector<2x1xf32>
    %581 = vector.broadcast %580 : vector<2x1xf32> to vector<2x256xf32>
    %582 = arith.addf %579, %581 : vector<2x256xf32>
    %c0_476 = arith.constant 0 : index
    %c0_477 = arith.constant 0 : index
    %c0_478 = arith.constant 0 : index
    %583 = vector.load %arg19[%c0_476, %c0_477, %c0_478] : memref<11x2x2xf32, #tpu.memory_space<vmem>>, vector<1x2x2xf32>
    %584 = vector.shape_cast %583 : vector<1x2x2xf32> to vector<2x2xf32>
    %cst_479 = arith.constant 0.000000e+00 : f32
    %585 = vector.broadcast %cst_479 : f32 to vector<2x128xf32>
    %586 = tpu.concatenate %585, %296, %585 in 1 : vector<2x128xf32>, vector<2x256xf32>, vector<2x128xf32> -> vector<2x512xf32>
    %587 = vector.extract_strided_slice %586 {offsets = [0, 48], sizes = [2, 256], strides = [1, 1]} : vector<2x512xf32> to vector<2x256xf32>
    %cst_480 = arith.constant dense<0.000000e+00> : vector<2x256xf32>
    %588 = tpu.matmul %584, %587, %cst_480 {dimension_numbers = #tpu.dot_dimension_numbers<[1], [0], [0], [1], [0, 0, 1, 1], [], []>} : vector<2x2xf32>, vector<2x256xf32>, vector<2x256xf32> -> vector<2x256xf32>
    %c1_481 = arith.constant 1 : index
    %c0_482 = arith.constant 0 : index
    %c0_483 = arith.constant 0 : index
    %589 = vector.load %arg19[%c1_481, %c0_482, %c0_483] : memref<11x2x2xf32, #tpu.memory_space<vmem>>, vector<1x2x2xf32>
    %590 = vector.shape_cast %589 : vector<1x2x2xf32> to vector<2x2xf32>
    %591 = vector.extract_strided_slice %586 {offsets = [0, 64], sizes = [2, 256], strides = [1, 1]} : vector<2x512xf32> to vector<2x256xf32>
    %cst_484 = arith.constant dense<0.000000e+00> : vector<2x256xf32>
    %592 = tpu.matmul %590, %591, %cst_484 {dimension_numbers = #tpu.dot_dimension_numbers<[1], [0], [0], [1], [0, 0, 1, 1], [], []>} : vector<2x2xf32>, vector<2x256xf32>, vector<2x256xf32> -> vector<2x256xf32>
    %593 = arith.addf %588, %592 : vector<2x256xf32>
    %c2_485 = arith.constant 2 : index
    %c0_486 = arith.constant 0 : index
    %c0_487 = arith.constant 0 : index
    %594 = vector.load %arg19[%c2_485, %c0_486, %c0_487] : memref<11x2x2xf32, #tpu.memory_space<vmem>>, vector<1x2x2xf32>
    %595 = vector.shape_cast %594 : vector<1x2x2xf32> to vector<2x2xf32>
    %596 = vector.extract_strided_slice %586 {offsets = [0, 80], sizes = [2, 256], strides = [1, 1]} : vector<2x512xf32> to vector<2x256xf32>
    %cst_488 = arith.constant dense<0.000000e+00> : vector<2x256xf32>
    %597 = tpu.matmul %595, %596, %cst_488 {dimension_numbers = #tpu.dot_dimension_numbers<[1], [0], [0], [1], [0, 0, 1, 1], [], []>} : vector<2x2xf32>, vector<2x256xf32>, vector<2x256xf32> -> vector<2x256xf32>
    %598 = arith.addf %593, %597 : vector<2x256xf32>
    %c3_489 = arith.constant 3 : index
    %c0_490 = arith.constant 0 : index
    %c0_491 = arith.constant 0 : index
    %599 = vector.load %arg19[%c3_489, %c0_490, %c0_491] : memref<11x2x2xf32, #tpu.memory_space<vmem>>, vector<1x2x2xf32>
    %600 = vector.shape_cast %599 : vector<1x2x2xf32> to vector<2x2xf32>
    %601 = vector.extract_strided_slice %586 {offsets = [0, 96], sizes = [2, 256], strides = [1, 1]} : vector<2x512xf32> to vector<2x256xf32>
    %cst_492 = arith.constant dense<0.000000e+00> : vector<2x256xf32>
    %602 = tpu.matmul %600, %601, %cst_492 {dimension_numbers = #tpu.dot_dimension_numbers<[1], [0], [0], [1], [0, 0, 1, 1], [], []>} : vector<2x2xf32>, vector<2x256xf32>, vector<2x256xf32> -> vector<2x256xf32>
    %603 = arith.addf %598, %602 : vector<2x256xf32>
    %c4_493 = arith.constant 4 : index
    %c0_494 = arith.constant 0 : index
    %c0_495 = arith.constant 0 : index
    %604 = vector.load %arg19[%c4_493, %c0_494, %c0_495] : memref<11x2x2xf32, #tpu.memory_space<vmem>>, vector<1x2x2xf32>
    %605 = vector.shape_cast %604 : vector<1x2x2xf32> to vector<2x2xf32>
    %606 = vector.extract_strided_slice %586 {offsets = [0, 112], sizes = [2, 256], strides = [1, 1]} : vector<2x512xf32> to vector<2x256xf32>
    %cst_496 = arith.constant dense<0.000000e+00> : vector<2x256xf32>
    %607 = tpu.matmul %605, %606, %cst_496 {dimension_numbers = #tpu.dot_dimension_numbers<[1], [0], [0], [1], [0, 0, 1, 1], [], []>} : vector<2x2xf32>, vector<2x256xf32>, vector<2x256xf32> -> vector<2x256xf32>
    %608 = arith.addf %603, %607 : vector<2x256xf32>
    %c5_497 = arith.constant 5 : index
    %c0_498 = arith.constant 0 : index
    %c0_499 = arith.constant 0 : index
    %609 = vector.load %arg19[%c5_497, %c0_498, %c0_499] : memref<11x2x2xf32, #tpu.memory_space<vmem>>, vector<1x2x2xf32>
    %610 = vector.shape_cast %609 : vector<1x2x2xf32> to vector<2x2xf32>
    %cst_500 = arith.constant dense<0.000000e+00> : vector<2x256xf32>
    %611 = tpu.matmul %610, %296, %cst_500 {dimension_numbers = #tpu.dot_dimension_numbers<[1], [0], [0], [1], [0, 0, 1, 1], [], []>} : vector<2x2xf32>, vector<2x256xf32>, vector<2x256xf32> -> vector<2x256xf32>
    %612 = arith.addf %608, %611 : vector<2x256xf32>
    %c6_501 = arith.constant 6 : index
    %c0_502 = arith.constant 0 : index
    %c0_503 = arith.constant 0 : index
    %613 = vector.load %arg19[%c6_501, %c0_502, %c0_503] : memref<11x2x2xf32, #tpu.memory_space<vmem>>, vector<1x2x2xf32>
    %614 = vector.shape_cast %613 : vector<1x2x2xf32> to vector<2x2xf32>
    %615 = vector.extract_strided_slice %586 {offsets = [0, 144], sizes = [2, 256], strides = [1, 1]} : vector<2x512xf32> to vector<2x256xf32>
    %cst_504 = arith.constant dense<0.000000e+00> : vector<2x256xf32>
    %616 = tpu.matmul %614, %615, %cst_504 {dimension_numbers = #tpu.dot_dimension_numbers<[1], [0], [0], [1], [0, 0, 1, 1], [], []>} : vector<2x2xf32>, vector<2x256xf32>, vector<2x256xf32> -> vector<2x256xf32>
    %617 = arith.addf %612, %616 : vector<2x256xf32>
    %c7_505 = arith.constant 7 : index
    %c0_506 = arith.constant 0 : index
    %c0_507 = arith.constant 0 : index
    %618 = vector.load %arg19[%c7_505, %c0_506, %c0_507] : memref<11x2x2xf32, #tpu.memory_space<vmem>>, vector<1x2x2xf32>
    %619 = vector.shape_cast %618 : vector<1x2x2xf32> to vector<2x2xf32>
    %620 = vector.extract_strided_slice %586 {offsets = [0, 160], sizes = [2, 256], strides = [1, 1]} : vector<2x512xf32> to vector<2x256xf32>
    %cst_508 = arith.constant dense<0.000000e+00> : vector<2x256xf32>
    %621 = tpu.matmul %619, %620, %cst_508 {dimension_numbers = #tpu.dot_dimension_numbers<[1], [0], [0], [1], [0, 0, 1, 1], [], []>} : vector<2x2xf32>, vector<2x256xf32>, vector<2x256xf32> -> vector<2x256xf32>
    %622 = arith.addf %617, %621 : vector<2x256xf32>
    %c8_509 = arith.constant 8 : index
    %c0_510 = arith.constant 0 : index
    %c0_511 = arith.constant 0 : index
    %623 = vector.load %arg19[%c8_509, %c0_510, %c0_511] : memref<11x2x2xf32, #tpu.memory_space<vmem>>, vector<1x2x2xf32>
    %624 = vector.shape_cast %623 : vector<1x2x2xf32> to vector<2x2xf32>
    %625 = vector.extract_strided_slice %586 {offsets = [0, 176], sizes = [2, 256], strides = [1, 1]} : vector<2x512xf32> to vector<2x256xf32>
    %cst_512 = arith.constant dense<0.000000e+00> : vector<2x256xf32>
    %626 = tpu.matmul %624, %625, %cst_512 {dimension_numbers = #tpu.dot_dimension_numbers<[1], [0], [0], [1], [0, 0, 1, 1], [], []>} : vector<2x2xf32>, vector<2x256xf32>, vector<2x256xf32> -> vector<2x256xf32>
    %627 = arith.addf %622, %626 : vector<2x256xf32>
    %c9_513 = arith.constant 9 : index
    %c0_514 = arith.constant 0 : index
    %c0_515 = arith.constant 0 : index
    %628 = vector.load %arg19[%c9_513, %c0_514, %c0_515] : memref<11x2x2xf32, #tpu.memory_space<vmem>>, vector<1x2x2xf32>
    %629 = vector.shape_cast %628 : vector<1x2x2xf32> to vector<2x2xf32>
    %630 = vector.extract_strided_slice %586 {offsets = [0, 192], sizes = [2, 256], strides = [1, 1]} : vector<2x512xf32> to vector<2x256xf32>
    %cst_516 = arith.constant dense<0.000000e+00> : vector<2x256xf32>
    %631 = tpu.matmul %629, %630, %cst_516 {dimension_numbers = #tpu.dot_dimension_numbers<[1], [0], [0], [1], [0, 0, 1, 1], [], []>} : vector<2x2xf32>, vector<2x256xf32>, vector<2x256xf32> -> vector<2x256xf32>
    %632 = arith.addf %627, %631 : vector<2x256xf32>
    %c10_517 = arith.constant 10 : index
    %c0_518 = arith.constant 0 : index
    %c0_519 = arith.constant 0 : index
    %633 = vector.load %arg19[%c10_517, %c0_518, %c0_519] : memref<11x2x2xf32, #tpu.memory_space<vmem>>, vector<1x2x2xf32>
    %634 = vector.shape_cast %633 : vector<1x2x2xf32> to vector<2x2xf32>
    %635 = vector.extract_strided_slice %586 {offsets = [0, 208], sizes = [2, 256], strides = [1, 1]} : vector<2x512xf32> to vector<2x256xf32>
    %cst_520 = arith.constant dense<0.000000e+00> : vector<2x256xf32>
    %636 = tpu.matmul %634, %635, %cst_520 {dimension_numbers = #tpu.dot_dimension_numbers<[1], [0], [0], [1], [0, 0, 1, 1], [], []>} : vector<2x2xf32>, vector<2x256xf32>, vector<2x256xf32> -> vector<2x256xf32>
    %637 = arith.addf %632, %636 : vector<2x256xf32>
    %c0_521 = arith.constant 0 : index
    %c0_522 = arith.constant 0 : index
    %638 = vector.load %arg20[%c0_521, %c0_522] : memref<2x1xf32, #tpu.memory_space<vmem>>, vector<2x1xf32>
    %639 = vector.broadcast %638 : vector<2x1xf32> to vector<2x256xf32>
    %640 = arith.addf %637, %639 : vector<2x256xf32>
    %641 = arith.addf %582, %640 : vector<2x256xf32>
    %cst_523 = arith.constant 0.000000e+00 : f32
    %642 = vector.broadcast %cst_523 : f32 to vector<2x256xf32>
    %643 = arith.cmpf oge, %641, %642 : vector<2x256xf32>
    %cst_524 = arith.constant 1.000000e-01 : f32
    %644 = vector.broadcast %cst_524 : f32 to vector<2x256xf32>
    %645 = arith.mulf %644, %641 : vector<2x256xf32>
    %646 = arith.select %643, %641, %645 : vector<2x256xi1>, vector<2x256xf32>
    %c0_525 = arith.constant 0 : index
    %c0_526 = arith.constant 0 : index
    %c0_527 = arith.constant 0 : index
    %647 = vector.load %arg23[%c0_525, %c0_526, %c0_527] : memref<15x2x2xf32, #tpu.memory_space<vmem>>, vector<1x2x2xf32>
    %648 = vector.shape_cast %647 : vector<1x2x2xf32> to vector<2x2xf32>
    %cst_528 = arith.constant 0.000000e+00 : f32
    %649 = vector.broadcast %cst_528 : f32 to vector<2x128xf32>
    %650 = tpu.concatenate %649, %170, %649 in 1 : vector<2x128xf32>, vector<2x256xf32>, vector<2x128xf32> -> vector<2x512xf32>
    %651 = vector.extract_strided_slice %650 {offsets = [0, 121], sizes = [2, 256], strides = [1, 1]} : vector<2x512xf32> to vector<2x256xf32>
    %c0_529 = arith.constant 0 : index
    %c0_530 = arith.constant 0 : index
    %c0_531 = arith.constant 0 : index
    %652 = vector.load %arg2[%c0_529, %c0_530, %c0_531] : memref<14x1x256xf32, #tpu.memory_space<vmem>>, vector<1x1x256xf32>
    %653 = vector.shape_cast %652 : vector<1x1x256xf32> to vector<1x256xf32>
    %654 = vector.broadcast %653 : vector<1x256xf32> to vector<2x256xf32>
    %655 = arith.mulf %651, %654 : vector<2x256xf32>
    %cst_532 = arith.constant dense<0.000000e+00> : vector<2x256xf32>
    %656 = tpu.matmul %648, %655, %cst_532 {dimension_numbers = #tpu.dot_dimension_numbers<[1], [0], [0], [1], [0, 0, 1, 1], [], []>} : vector<2x2xf32>, vector<2x256xf32>, vector<2x256xf32> -> vector<2x256xf32>
    %c1_533 = arith.constant 1 : index
    %c0_534 = arith.constant 0 : index
    %c0_535 = arith.constant 0 : index
    %657 = vector.load %arg23[%c1_533, %c0_534, %c0_535] : memref<15x2x2xf32, #tpu.memory_space<vmem>>, vector<1x2x2xf32>
    %658 = vector.shape_cast %657 : vector<1x2x2xf32> to vector<2x2xf32>
    %659 = vector.extract_strided_slice %650 {offsets = [0, 122], sizes = [2, 256], strides = [1, 1]} : vector<2x512xf32> to vector<2x256xf32>
    %c1_536 = arith.constant 1 : index
    %c0_537 = arith.constant 0 : index
    %c0_538 = arith.constant 0 : index
    %660 = vector.load %arg2[%c1_536, %c0_537, %c0_538] : memref<14x1x256xf32, #tpu.memory_space<vmem>>, vector<1x1x256xf32>
    %661 = vector.shape_cast %660 : vector<1x1x256xf32> to vector<1x256xf32>
    %662 = vector.broadcast %661 : vector<1x256xf32> to vector<2x256xf32>
    %663 = arith.mulf %659, %662 : vector<2x256xf32>
    %cst_539 = arith.constant dense<0.000000e+00> : vector<2x256xf32>
    %664 = tpu.matmul %658, %663, %cst_539 {dimension_numbers = #tpu.dot_dimension_numbers<[1], [0], [0], [1], [0, 0, 1, 1], [], []>} : vector<2x2xf32>, vector<2x256xf32>, vector<2x256xf32> -> vector<2x256xf32>
    %665 = arith.addf %656, %664 : vector<2x256xf32>
    %c2_540 = arith.constant 2 : index
    %c0_541 = arith.constant 0 : index
    %c0_542 = arith.constant 0 : index
    %666 = vector.load %arg23[%c2_540, %c0_541, %c0_542] : memref<15x2x2xf32, #tpu.memory_space<vmem>>, vector<1x2x2xf32>
    %667 = vector.shape_cast %666 : vector<1x2x2xf32> to vector<2x2xf32>
    %668 = vector.extract_strided_slice %650 {offsets = [0, 123], sizes = [2, 256], strides = [1, 1]} : vector<2x512xf32> to vector<2x256xf32>
    %c2_543 = arith.constant 2 : index
    %c0_544 = arith.constant 0 : index
    %c0_545 = arith.constant 0 : index
    %669 = vector.load %arg2[%c2_543, %c0_544, %c0_545] : memref<14x1x256xf32, #tpu.memory_space<vmem>>, vector<1x1x256xf32>
    %670 = vector.shape_cast %669 : vector<1x1x256xf32> to vector<1x256xf32>
    %671 = vector.broadcast %670 : vector<1x256xf32> to vector<2x256xf32>
    %672 = arith.mulf %668, %671 : vector<2x256xf32>
    %cst_546 = arith.constant dense<0.000000e+00> : vector<2x256xf32>
    %673 = tpu.matmul %667, %672, %cst_546 {dimension_numbers = #tpu.dot_dimension_numbers<[1], [0], [0], [1], [0, 0, 1, 1], [], []>} : vector<2x2xf32>, vector<2x256xf32>, vector<2x256xf32> -> vector<2x256xf32>
    %674 = arith.addf %665, %673 : vector<2x256xf32>
    %c3_547 = arith.constant 3 : index
    %c0_548 = arith.constant 0 : index
    %c0_549 = arith.constant 0 : index
    %675 = vector.load %arg23[%c3_547, %c0_548, %c0_549] : memref<15x2x2xf32, #tpu.memory_space<vmem>>, vector<1x2x2xf32>
    %676 = vector.shape_cast %675 : vector<1x2x2xf32> to vector<2x2xf32>
    %677 = vector.extract_strided_slice %650 {offsets = [0, 124], sizes = [2, 256], strides = [1, 1]} : vector<2x512xf32> to vector<2x256xf32>
    %c3_550 = arith.constant 3 : index
    %c0_551 = arith.constant 0 : index
    %c0_552 = arith.constant 0 : index
    %678 = vector.load %arg2[%c3_550, %c0_551, %c0_552] : memref<14x1x256xf32, #tpu.memory_space<vmem>>, vector<1x1x256xf32>
    %679 = vector.shape_cast %678 : vector<1x1x256xf32> to vector<1x256xf32>
    %680 = vector.broadcast %679 : vector<1x256xf32> to vector<2x256xf32>
    %681 = arith.mulf %677, %680 : vector<2x256xf32>
    %cst_553 = arith.constant dense<0.000000e+00> : vector<2x256xf32>
    %682 = tpu.matmul %676, %681, %cst_553 {dimension_numbers = #tpu.dot_dimension_numbers<[1], [0], [0], [1], [0, 0, 1, 1], [], []>} : vector<2x2xf32>, vector<2x256xf32>, vector<2x256xf32> -> vector<2x256xf32>
    %683 = arith.addf %674, %682 : vector<2x256xf32>
    %c4_554 = arith.constant 4 : index
    %c0_555 = arith.constant 0 : index
    %c0_556 = arith.constant 0 : index
    %684 = vector.load %arg23[%c4_554, %c0_555, %c0_556] : memref<15x2x2xf32, #tpu.memory_space<vmem>>, vector<1x2x2xf32>
    %685 = vector.shape_cast %684 : vector<1x2x2xf32> to vector<2x2xf32>
    %686 = vector.extract_strided_slice %650 {offsets = [0, 125], sizes = [2, 256], strides = [1, 1]} : vector<2x512xf32> to vector<2x256xf32>
    %c4_557 = arith.constant 4 : index
    %c0_558 = arith.constant 0 : index
    %c0_559 = arith.constant 0 : index
    %687 = vector.load %arg2[%c4_557, %c0_558, %c0_559] : memref<14x1x256xf32, #tpu.memory_space<vmem>>, vector<1x1x256xf32>
    %688 = vector.shape_cast %687 : vector<1x1x256xf32> to vector<1x256xf32>
    %689 = vector.broadcast %688 : vector<1x256xf32> to vector<2x256xf32>
    %690 = arith.mulf %686, %689 : vector<2x256xf32>
    %cst_560 = arith.constant dense<0.000000e+00> : vector<2x256xf32>
    %691 = tpu.matmul %685, %690, %cst_560 {dimension_numbers = #tpu.dot_dimension_numbers<[1], [0], [0], [1], [0, 0, 1, 1], [], []>} : vector<2x2xf32>, vector<2x256xf32>, vector<2x256xf32> -> vector<2x256xf32>
    %692 = arith.addf %683, %691 : vector<2x256xf32>
    %c5_561 = arith.constant 5 : index
    %c0_562 = arith.constant 0 : index
    %c0_563 = arith.constant 0 : index
    %693 = vector.load %arg23[%c5_561, %c0_562, %c0_563] : memref<15x2x2xf32, #tpu.memory_space<vmem>>, vector<1x2x2xf32>
    %694 = vector.shape_cast %693 : vector<1x2x2xf32> to vector<2x2xf32>
    %695 = vector.extract_strided_slice %650 {offsets = [0, 126], sizes = [2, 256], strides = [1, 1]} : vector<2x512xf32> to vector<2x256xf32>
    %c5_564 = arith.constant 5 : index
    %c0_565 = arith.constant 0 : index
    %c0_566 = arith.constant 0 : index
    %696 = vector.load %arg2[%c5_564, %c0_565, %c0_566] : memref<14x1x256xf32, #tpu.memory_space<vmem>>, vector<1x1x256xf32>
    %697 = vector.shape_cast %696 : vector<1x1x256xf32> to vector<1x256xf32>
    %698 = vector.broadcast %697 : vector<1x256xf32> to vector<2x256xf32>
    %699 = arith.mulf %695, %698 : vector<2x256xf32>
    %cst_567 = arith.constant dense<0.000000e+00> : vector<2x256xf32>
    %700 = tpu.matmul %694, %699, %cst_567 {dimension_numbers = #tpu.dot_dimension_numbers<[1], [0], [0], [1], [0, 0, 1, 1], [], []>} : vector<2x2xf32>, vector<2x256xf32>, vector<2x256xf32> -> vector<2x256xf32>
    %701 = arith.addf %692, %700 : vector<2x256xf32>
    %c6_568 = arith.constant 6 : index
    %c0_569 = arith.constant 0 : index
    %c0_570 = arith.constant 0 : index
    %702 = vector.load %arg23[%c6_568, %c0_569, %c0_570] : memref<15x2x2xf32, #tpu.memory_space<vmem>>, vector<1x2x2xf32>
    %703 = vector.shape_cast %702 : vector<1x2x2xf32> to vector<2x2xf32>
    %704 = vector.extract_strided_slice %650 {offsets = [0, 127], sizes = [2, 256], strides = [1, 1]} : vector<2x512xf32> to vector<2x256xf32>
    %c6_571 = arith.constant 6 : index
    %c0_572 = arith.constant 0 : index
    %c0_573 = arith.constant 0 : index
    %705 = vector.load %arg2[%c6_571, %c0_572, %c0_573] : memref<14x1x256xf32, #tpu.memory_space<vmem>>, vector<1x1x256xf32>
    %706 = vector.shape_cast %705 : vector<1x1x256xf32> to vector<1x256xf32>
    %707 = vector.broadcast %706 : vector<1x256xf32> to vector<2x256xf32>
    %708 = arith.mulf %704, %707 : vector<2x256xf32>
    %cst_574 = arith.constant dense<0.000000e+00> : vector<2x256xf32>
    %709 = tpu.matmul %703, %708, %cst_574 {dimension_numbers = #tpu.dot_dimension_numbers<[1], [0], [0], [1], [0, 0, 1, 1], [], []>} : vector<2x2xf32>, vector<2x256xf32>, vector<2x256xf32> -> vector<2x256xf32>
    %710 = arith.addf %701, %709 : vector<2x256xf32>
    %c7_575 = arith.constant 7 : index
    %c0_576 = arith.constant 0 : index
    %c0_577 = arith.constant 0 : index
    %711 = vector.load %arg23[%c7_575, %c0_576, %c0_577] : memref<15x2x2xf32, #tpu.memory_space<vmem>>, vector<1x2x2xf32>
    %712 = vector.shape_cast %711 : vector<1x2x2xf32> to vector<2x2xf32>
    %cst_578 = arith.constant dense<0.000000e+00> : vector<2x256xf32>
    %713 = tpu.matmul %712, %170, %cst_578 {dimension_numbers = #tpu.dot_dimension_numbers<[1], [0], [0], [1], [0, 0, 1, 1], [], []>} : vector<2x2xf32>, vector<2x256xf32>, vector<2x256xf32> -> vector<2x256xf32>
    %714 = arith.addf %710, %713 : vector<2x256xf32>
    %c8_579 = arith.constant 8 : index
    %c0_580 = arith.constant 0 : index
    %c0_581 = arith.constant 0 : index
    %715 = vector.load %arg23[%c8_579, %c0_580, %c0_581] : memref<15x2x2xf32, #tpu.memory_space<vmem>>, vector<1x2x2xf32>
    %716 = vector.shape_cast %715 : vector<1x2x2xf32> to vector<2x2xf32>
    %717 = vector.extract_strided_slice %650 {offsets = [0, 129], sizes = [2, 256], strides = [1, 1]} : vector<2x512xf32> to vector<2x256xf32>
    %c7_582 = arith.constant 7 : index
    %c0_583 = arith.constant 0 : index
    %c0_584 = arith.constant 0 : index
    %718 = vector.load %arg2[%c7_582, %c0_583, %c0_584] : memref<14x1x256xf32, #tpu.memory_space<vmem>>, vector<1x1x256xf32>
    %719 = vector.shape_cast %718 : vector<1x1x256xf32> to vector<1x256xf32>
    %720 = vector.broadcast %719 : vector<1x256xf32> to vector<2x256xf32>
    %721 = arith.mulf %717, %720 : vector<2x256xf32>
    %cst_585 = arith.constant dense<0.000000e+00> : vector<2x256xf32>
    %722 = tpu.matmul %716, %721, %cst_585 {dimension_numbers = #tpu.dot_dimension_numbers<[1], [0], [0], [1], [0, 0, 1, 1], [], []>} : vector<2x2xf32>, vector<2x256xf32>, vector<2x256xf32> -> vector<2x256xf32>
    %723 = arith.addf %714, %722 : vector<2x256xf32>
    %c9_586 = arith.constant 9 : index
    %c0_587 = arith.constant 0 : index
    %c0_588 = arith.constant 0 : index
    %724 = vector.load %arg23[%c9_586, %c0_587, %c0_588] : memref<15x2x2xf32, #tpu.memory_space<vmem>>, vector<1x2x2xf32>
    %725 = vector.shape_cast %724 : vector<1x2x2xf32> to vector<2x2xf32>
    %726 = vector.extract_strided_slice %650 {offsets = [0, 130], sizes = [2, 256], strides = [1, 1]} : vector<2x512xf32> to vector<2x256xf32>
    %c8_589 = arith.constant 8 : index
    %c0_590 = arith.constant 0 : index
    %c0_591 = arith.constant 0 : index
    %727 = vector.load %arg2[%c8_589, %c0_590, %c0_591] : memref<14x1x256xf32, #tpu.memory_space<vmem>>, vector<1x1x256xf32>
    %728 = vector.shape_cast %727 : vector<1x1x256xf32> to vector<1x256xf32>
    %729 = vector.broadcast %728 : vector<1x256xf32> to vector<2x256xf32>
    %730 = arith.mulf %726, %729 : vector<2x256xf32>
    %cst_592 = arith.constant dense<0.000000e+00> : vector<2x256xf32>
    %731 = tpu.matmul %725, %730, %cst_592 {dimension_numbers = #tpu.dot_dimension_numbers<[1], [0], [0], [1], [0, 0, 1, 1], [], []>} : vector<2x2xf32>, vector<2x256xf32>, vector<2x256xf32> -> vector<2x256xf32>
    %732 = arith.addf %723, %731 : vector<2x256xf32>
    %c10_593 = arith.constant 10 : index
    %c0_594 = arith.constant 0 : index
    %c0_595 = arith.constant 0 : index
    %733 = vector.load %arg23[%c10_593, %c0_594, %c0_595] : memref<15x2x2xf32, #tpu.memory_space<vmem>>, vector<1x2x2xf32>
    %734 = vector.shape_cast %733 : vector<1x2x2xf32> to vector<2x2xf32>
    %735 = vector.extract_strided_slice %650 {offsets = [0, 131], sizes = [2, 256], strides = [1, 1]} : vector<2x512xf32> to vector<2x256xf32>
    %c9_596 = arith.constant 9 : index
    %c0_597 = arith.constant 0 : index
    %c0_598 = arith.constant 0 : index
    %736 = vector.load %arg2[%c9_596, %c0_597, %c0_598] : memref<14x1x256xf32, #tpu.memory_space<vmem>>, vector<1x1x256xf32>
    %737 = vector.shape_cast %736 : vector<1x1x256xf32> to vector<1x256xf32>
    %738 = vector.broadcast %737 : vector<1x256xf32> to vector<2x256xf32>
    %739 = arith.mulf %735, %738 : vector<2x256xf32>
    %cst_599 = arith.constant dense<0.000000e+00> : vector<2x256xf32>
    %740 = tpu.matmul %734, %739, %cst_599 {dimension_numbers = #tpu.dot_dimension_numbers<[1], [0], [0], [1], [0, 0, 1, 1], [], []>} : vector<2x2xf32>, vector<2x256xf32>, vector<2x256xf32> -> vector<2x256xf32>
    %741 = arith.addf %732, %740 : vector<2x256xf32>
    %c11_600 = arith.constant 11 : index
    %c0_601 = arith.constant 0 : index
    %c0_602 = arith.constant 0 : index
    %742 = vector.load %arg23[%c11_600, %c0_601, %c0_602] : memref<15x2x2xf32, #tpu.memory_space<vmem>>, vector<1x2x2xf32>
    %743 = vector.shape_cast %742 : vector<1x2x2xf32> to vector<2x2xf32>
    %744 = vector.extract_strided_slice %650 {offsets = [0, 132], sizes = [2, 256], strides = [1, 1]} : vector<2x512xf32> to vector<2x256xf32>
    %c10_603 = arith.constant 10 : index
    %c0_604 = arith.constant 0 : index
    %c0_605 = arith.constant 0 : index
    %745 = vector.load %arg2[%c10_603, %c0_604, %c0_605] : memref<14x1x256xf32, #tpu.memory_space<vmem>>, vector<1x1x256xf32>
    %746 = vector.shape_cast %745 : vector<1x1x256xf32> to vector<1x256xf32>
    %747 = vector.broadcast %746 : vector<1x256xf32> to vector<2x256xf32>
    %748 = arith.mulf %744, %747 : vector<2x256xf32>
    %cst_606 = arith.constant dense<0.000000e+00> : vector<2x256xf32>
    %749 = tpu.matmul %743, %748, %cst_606 {dimension_numbers = #tpu.dot_dimension_numbers<[1], [0], [0], [1], [0, 0, 1, 1], [], []>} : vector<2x2xf32>, vector<2x256xf32>, vector<2x256xf32> -> vector<2x256xf32>
    %750 = arith.addf %741, %749 : vector<2x256xf32>
    %c12_607 = arith.constant 12 : index
    %c0_608 = arith.constant 0 : index
    %c0_609 = arith.constant 0 : index
    %751 = vector.load %arg23[%c12_607, %c0_608, %c0_609] : memref<15x2x2xf32, #tpu.memory_space<vmem>>, vector<1x2x2xf32>
    %752 = vector.shape_cast %751 : vector<1x2x2xf32> to vector<2x2xf32>
    %753 = vector.extract_strided_slice %650 {offsets = [0, 133], sizes = [2, 256], strides = [1, 1]} : vector<2x512xf32> to vector<2x256xf32>
    %c11_610 = arith.constant 11 : index
    %c0_611 = arith.constant 0 : index
    %c0_612 = arith.constant 0 : index
    %754 = vector.load %arg2[%c11_610, %c0_611, %c0_612] : memref<14x1x256xf32, #tpu.memory_space<vmem>>, vector<1x1x256xf32>
    %755 = vector.shape_cast %754 : vector<1x1x256xf32> to vector<1x256xf32>
    %756 = vector.broadcast %755 : vector<1x256xf32> to vector<2x256xf32>
    %757 = arith.mulf %753, %756 : vector<2x256xf32>
    %cst_613 = arith.constant dense<0.000000e+00> : vector<2x256xf32>
    %758 = tpu.matmul %752, %757, %cst_613 {dimension_numbers = #tpu.dot_dimension_numbers<[1], [0], [0], [1], [0, 0, 1, 1], [], []>} : vector<2x2xf32>, vector<2x256xf32>, vector<2x256xf32> -> vector<2x256xf32>
    %759 = arith.addf %750, %758 : vector<2x256xf32>
    %c13_614 = arith.constant 13 : index
    %c0_615 = arith.constant 0 : index
    %c0_616 = arith.constant 0 : index
    %760 = vector.load %arg23[%c13_614, %c0_615, %c0_616] : memref<15x2x2xf32, #tpu.memory_space<vmem>>, vector<1x2x2xf32>
    %761 = vector.shape_cast %760 : vector<1x2x2xf32> to vector<2x2xf32>
    %762 = vector.extract_strided_slice %650 {offsets = [0, 134], sizes = [2, 256], strides = [1, 1]} : vector<2x512xf32> to vector<2x256xf32>
    %c12_617 = arith.constant 12 : index
    %c0_618 = arith.constant 0 : index
    %c0_619 = arith.constant 0 : index
    %763 = vector.load %arg2[%c12_617, %c0_618, %c0_619] : memref<14x1x256xf32, #tpu.memory_space<vmem>>, vector<1x1x256xf32>
    %764 = vector.shape_cast %763 : vector<1x1x256xf32> to vector<1x256xf32>
    %765 = vector.broadcast %764 : vector<1x256xf32> to vector<2x256xf32>
    %766 = arith.mulf %762, %765 : vector<2x256xf32>
    %cst_620 = arith.constant dense<0.000000e+00> : vector<2x256xf32>
    %767 = tpu.matmul %761, %766, %cst_620 {dimension_numbers = #tpu.dot_dimension_numbers<[1], [0], [0], [1], [0, 0, 1, 1], [], []>} : vector<2x2xf32>, vector<2x256xf32>, vector<2x256xf32> -> vector<2x256xf32>
    %768 = arith.addf %759, %767 : vector<2x256xf32>
    %c14_621 = arith.constant 14 : index
    %c0_622 = arith.constant 0 : index
    %c0_623 = arith.constant 0 : index
    %769 = vector.load %arg23[%c14_621, %c0_622, %c0_623] : memref<15x2x2xf32, #tpu.memory_space<vmem>>, vector<1x2x2xf32>
    %770 = vector.shape_cast %769 : vector<1x2x2xf32> to vector<2x2xf32>
    %771 = vector.extract_strided_slice %650 {offsets = [0, 135], sizes = [2, 256], strides = [1, 1]} : vector<2x512xf32> to vector<2x256xf32>
    %c13_624 = arith.constant 13 : index
    %c0_625 = arith.constant 0 : index
    %c0_626 = arith.constant 0 : index
    %772 = vector.load %arg2[%c13_624, %c0_625, %c0_626] : memref<14x1x256xf32, #tpu.memory_space<vmem>>, vector<1x1x256xf32>
    %773 = vector.shape_cast %772 : vector<1x1x256xf32> to vector<1x256xf32>
    %774 = vector.broadcast %773 : vector<1x256xf32> to vector<2x256xf32>
    %775 = arith.mulf %771, %774 : vector<2x256xf32>
    %cst_627 = arith.constant dense<0.000000e+00> : vector<2x256xf32>
    %776 = tpu.matmul %770, %775, %cst_627 {dimension_numbers = #tpu.dot_dimension_numbers<[1], [0], [0], [1], [0, 0, 1, 1], [], []>} : vector<2x2xf32>, vector<2x256xf32>, vector<2x256xf32> -> vector<2x256xf32>
    %777 = arith.addf %768, %776 : vector<2x256xf32>
    %c0_628 = arith.constant 0 : index
    %c0_629 = arith.constant 0 : index
    %778 = vector.load %arg24[%c0_628, %c0_629] : memref<2x1xf32, #tpu.memory_space<vmem>>, vector<2x1xf32>
    %779 = vector.broadcast %778 : vector<2x1xf32> to vector<2x256xf32>
    %780 = arith.addf %777, %779 : vector<2x256xf32>
    %c0_630 = arith.constant 0 : index
    %c0_631 = arith.constant 0 : index
    %c0_632 = arith.constant 0 : index
    %781 = vector.load %arg27[%c0_630, %c0_631, %c0_632] : memref<15x2x2xf32, #tpu.memory_space<vmem>>, vector<1x2x2xf32>
    %782 = vector.shape_cast %781 : vector<1x2x2xf32> to vector<2x2xf32>
    %cst_633 = arith.constant 0.000000e+00 : f32
    %783 = vector.broadcast %cst_633 : f32 to vector<2x128xf32>
    %784 = tpu.concatenate %783, %378, %783 in 1 : vector<2x128xf32>, vector<2x256xf32>, vector<2x128xf32> -> vector<2x512xf32>
    %785 = vector.extract_strided_slice %784 {offsets = [0, 16], sizes = [2, 256], strides = [1, 1]} : vector<2x512xf32> to vector<2x256xf32>
    %cst_634 = arith.constant dense<0.000000e+00> : vector<2x256xf32>
    %786 = tpu.matmul %782, %785, %cst_634 {dimension_numbers = #tpu.dot_dimension_numbers<[1], [0], [0], [1], [0, 0, 1, 1], [], []>} : vector<2x2xf32>, vector<2x256xf32>, vector<2x256xf32> -> vector<2x256xf32>
    %c1_635 = arith.constant 1 : index
    %c0_636 = arith.constant 0 : index
    %c0_637 = arith.constant 0 : index
    %787 = vector.load %arg27[%c1_635, %c0_636, %c0_637] : memref<15x2x2xf32, #tpu.memory_space<vmem>>, vector<1x2x2xf32>
    %788 = vector.shape_cast %787 : vector<1x2x2xf32> to vector<2x2xf32>
    %789 = vector.extract_strided_slice %784 {offsets = [0, 32], sizes = [2, 256], strides = [1, 1]} : vector<2x512xf32> to vector<2x256xf32>
    %cst_638 = arith.constant dense<0.000000e+00> : vector<2x256xf32>
    %790 = tpu.matmul %788, %789, %cst_638 {dimension_numbers = #tpu.dot_dimension_numbers<[1], [0], [0], [1], [0, 0, 1, 1], [], []>} : vector<2x2xf32>, vector<2x256xf32>, vector<2x256xf32> -> vector<2x256xf32>
    %791 = arith.addf %786, %790 : vector<2x256xf32>
    %c2_639 = arith.constant 2 : index
    %c0_640 = arith.constant 0 : index
    %c0_641 = arith.constant 0 : index
    %792 = vector.load %arg27[%c2_639, %c0_640, %c0_641] : memref<15x2x2xf32, #tpu.memory_space<vmem>>, vector<1x2x2xf32>
    %793 = vector.shape_cast %792 : vector<1x2x2xf32> to vector<2x2xf32>
    %794 = vector.extract_strided_slice %784 {offsets = [0, 48], sizes = [2, 256], strides = [1, 1]} : vector<2x512xf32> to vector<2x256xf32>
    %cst_642 = arith.constant dense<0.000000e+00> : vector<2x256xf32>
    %795 = tpu.matmul %793, %794, %cst_642 {dimension_numbers = #tpu.dot_dimension_numbers<[1], [0], [0], [1], [0, 0, 1, 1], [], []>} : vector<2x2xf32>, vector<2x256xf32>, vector<2x256xf32> -> vector<2x256xf32>
    %796 = arith.addf %791, %795 : vector<2x256xf32>
    %c3_643 = arith.constant 3 : index
    %c0_644 = arith.constant 0 : index
    %c0_645 = arith.constant 0 : index
    %797 = vector.load %arg27[%c3_643, %c0_644, %c0_645] : memref<15x2x2xf32, #tpu.memory_space<vmem>>, vector<1x2x2xf32>
    %798 = vector.shape_cast %797 : vector<1x2x2xf32> to vector<2x2xf32>
    %799 = vector.extract_strided_slice %784 {offsets = [0, 64], sizes = [2, 256], strides = [1, 1]} : vector<2x512xf32> to vector<2x256xf32>
    %cst_646 = arith.constant dense<0.000000e+00> : vector<2x256xf32>
    %800 = tpu.matmul %798, %799, %cst_646 {dimension_numbers = #tpu.dot_dimension_numbers<[1], [0], [0], [1], [0, 0, 1, 1], [], []>} : vector<2x2xf32>, vector<2x256xf32>, vector<2x256xf32> -> vector<2x256xf32>
    %801 = arith.addf %796, %800 : vector<2x256xf32>
    %c4_647 = arith.constant 4 : index
    %c0_648 = arith.constant 0 : index
    %c0_649 = arith.constant 0 : index
    %802 = vector.load %arg27[%c4_647, %c0_648, %c0_649] : memref<15x2x2xf32, #tpu.memory_space<vmem>>, vector<1x2x2xf32>
    %803 = vector.shape_cast %802 : vector<1x2x2xf32> to vector<2x2xf32>
    %804 = vector.extract_strided_slice %784 {offsets = [0, 80], sizes = [2, 256], strides = [1, 1]} : vector<2x512xf32> to vector<2x256xf32>
    %cst_650 = arith.constant dense<0.000000e+00> : vector<2x256xf32>
    %805 = tpu.matmul %803, %804, %cst_650 {dimension_numbers = #tpu.dot_dimension_numbers<[1], [0], [0], [1], [0, 0, 1, 1], [], []>} : vector<2x2xf32>, vector<2x256xf32>, vector<2x256xf32> -> vector<2x256xf32>
    %806 = arith.addf %801, %805 : vector<2x256xf32>
    %c5_651 = arith.constant 5 : index
    %c0_652 = arith.constant 0 : index
    %c0_653 = arith.constant 0 : index
    %807 = vector.load %arg27[%c5_651, %c0_652, %c0_653] : memref<15x2x2xf32, #tpu.memory_space<vmem>>, vector<1x2x2xf32>
    %808 = vector.shape_cast %807 : vector<1x2x2xf32> to vector<2x2xf32>
    %809 = vector.extract_strided_slice %784 {offsets = [0, 96], sizes = [2, 256], strides = [1, 1]} : vector<2x512xf32> to vector<2x256xf32>
    %cst_654 = arith.constant dense<0.000000e+00> : vector<2x256xf32>
    %810 = tpu.matmul %808, %809, %cst_654 {dimension_numbers = #tpu.dot_dimension_numbers<[1], [0], [0], [1], [0, 0, 1, 1], [], []>} : vector<2x2xf32>, vector<2x256xf32>, vector<2x256xf32> -> vector<2x256xf32>
    %811 = arith.addf %806, %810 : vector<2x256xf32>
    %c6_655 = arith.constant 6 : index
    %c0_656 = arith.constant 0 : index
    %c0_657 = arith.constant 0 : index
    %812 = vector.load %arg27[%c6_655, %c0_656, %c0_657] : memref<15x2x2xf32, #tpu.memory_space<vmem>>, vector<1x2x2xf32>
    %813 = vector.shape_cast %812 : vector<1x2x2xf32> to vector<2x2xf32>
    %814 = vector.extract_strided_slice %784 {offsets = [0, 112], sizes = [2, 256], strides = [1, 1]} : vector<2x512xf32> to vector<2x256xf32>
    %cst_658 = arith.constant dense<0.000000e+00> : vector<2x256xf32>
    %815 = tpu.matmul %813, %814, %cst_658 {dimension_numbers = #tpu.dot_dimension_numbers<[1], [0], [0], [1], [0, 0, 1, 1], [], []>} : vector<2x2xf32>, vector<2x256xf32>, vector<2x256xf32> -> vector<2x256xf32>
    %816 = arith.addf %811, %815 : vector<2x256xf32>
    %c7_659 = arith.constant 7 : index
    %c0_660 = arith.constant 0 : index
    %c0_661 = arith.constant 0 : index
    %817 = vector.load %arg27[%c7_659, %c0_660, %c0_661] : memref<15x2x2xf32, #tpu.memory_space<vmem>>, vector<1x2x2xf32>
    %818 = vector.shape_cast %817 : vector<1x2x2xf32> to vector<2x2xf32>
    %cst_662 = arith.constant dense<0.000000e+00> : vector<2x256xf32>
    %819 = tpu.matmul %818, %378, %cst_662 {dimension_numbers = #tpu.dot_dimension_numbers<[1], [0], [0], [1], [0, 0, 1, 1], [], []>} : vector<2x2xf32>, vector<2x256xf32>, vector<2x256xf32> -> vector<2x256xf32>
    %820 = arith.addf %816, %819 : vector<2x256xf32>
    %c8_663 = arith.constant 8 : index
    %c0_664 = arith.constant 0 : index
    %c0_665 = arith.constant 0 : index
    %821 = vector.load %arg27[%c8_663, %c0_664, %c0_665] : memref<15x2x2xf32, #tpu.memory_space<vmem>>, vector<1x2x2xf32>
    %822 = vector.shape_cast %821 : vector<1x2x2xf32> to vector<2x2xf32>
    %823 = vector.extract_strided_slice %784 {offsets = [0, 144], sizes = [2, 256], strides = [1, 1]} : vector<2x512xf32> to vector<2x256xf32>
    %cst_666 = arith.constant dense<0.000000e+00> : vector<2x256xf32>
    %824 = tpu.matmul %822, %823, %cst_666 {dimension_numbers = #tpu.dot_dimension_numbers<[1], [0], [0], [1], [0, 0, 1, 1], [], []>} : vector<2x2xf32>, vector<2x256xf32>, vector<2x256xf32> -> vector<2x256xf32>
    %825 = arith.addf %820, %824 : vector<2x256xf32>
    %c9_667 = arith.constant 9 : index
    %c0_668 = arith.constant 0 : index
    %c0_669 = arith.constant 0 : index
    %826 = vector.load %arg27[%c9_667, %c0_668, %c0_669] : memref<15x2x2xf32, #tpu.memory_space<vmem>>, vector<1x2x2xf32>
    %827 = vector.shape_cast %826 : vector<1x2x2xf32> to vector<2x2xf32>
    %828 = vector.extract_strided_slice %784 {offsets = [0, 160], sizes = [2, 256], strides = [1, 1]} : vector<2x512xf32> to vector<2x256xf32>
    %cst_670 = arith.constant dense<0.000000e+00> : vector<2x256xf32>
    %829 = tpu.matmul %827, %828, %cst_670 {dimension_numbers = #tpu.dot_dimension_numbers<[1], [0], [0], [1], [0, 0, 1, 1], [], []>} : vector<2x2xf32>, vector<2x256xf32>, vector<2x256xf32> -> vector<2x256xf32>
    %830 = arith.addf %825, %829 : vector<2x256xf32>
    %c10_671 = arith.constant 10 : index
    %c0_672 = arith.constant 0 : index
    %c0_673 = arith.constant 0 : index
    %831 = vector.load %arg27[%c10_671, %c0_672, %c0_673] : memref<15x2x2xf32, #tpu.memory_space<vmem>>, vector<1x2x2xf32>
    %832 = vector.shape_cast %831 : vector<1x2x2xf32> to vector<2x2xf32>
    %833 = vector.extract_strided_slice %784 {offsets = [0, 176], sizes = [2, 256], strides = [1, 1]} : vector<2x512xf32> to vector<2x256xf32>
    %cst_674 = arith.constant dense<0.000000e+00> : vector<2x256xf32>
    %834 = tpu.matmul %832, %833, %cst_674 {dimension_numbers = #tpu.dot_dimension_numbers<[1], [0], [0], [1], [0, 0, 1, 1], [], []>} : vector<2x2xf32>, vector<2x256xf32>, vector<2x256xf32> -> vector<2x256xf32>
    %835 = arith.addf %830, %834 : vector<2x256xf32>
    %c11_675 = arith.constant 11 : index
    %c0_676 = arith.constant 0 : index
    %c0_677 = arith.constant 0 : index
    %836 = vector.load %arg27[%c11_675, %c0_676, %c0_677] : memref<15x2x2xf32, #tpu.memory_space<vmem>>, vector<1x2x2xf32>
    %837 = vector.shape_cast %836 : vector<1x2x2xf32> to vector<2x2xf32>
    %838 = vector.extract_strided_slice %784 {offsets = [0, 192], sizes = [2, 256], strides = [1, 1]} : vector<2x512xf32> to vector<2x256xf32>
    %cst_678 = arith.constant dense<0.000000e+00> : vector<2x256xf32>
    %839 = tpu.matmul %837, %838, %cst_678 {dimension_numbers = #tpu.dot_dimension_numbers<[1], [0], [0], [1], [0, 0, 1, 1], [], []>} : vector<2x2xf32>, vector<2x256xf32>, vector<2x256xf32> -> vector<2x256xf32>
    %840 = arith.addf %835, %839 : vector<2x256xf32>
    %c12_679 = arith.constant 12 : index
    %c0_680 = arith.constant 0 : index
    %c0_681 = arith.constant 0 : index
    %841 = vector.load %arg27[%c12_679, %c0_680, %c0_681] : memref<15x2x2xf32, #tpu.memory_space<vmem>>, vector<1x2x2xf32>
    %842 = vector.shape_cast %841 : vector<1x2x2xf32> to vector<2x2xf32>
    %843 = vector.extract_strided_slice %784 {offsets = [0, 208], sizes = [2, 256], strides = [1, 1]} : vector<2x512xf32> to vector<2x256xf32>
    %cst_682 = arith.constant dense<0.000000e+00> : vector<2x256xf32>
    %844 = tpu.matmul %842, %843, %cst_682 {dimension_numbers = #tpu.dot_dimension_numbers<[1], [0], [0], [1], [0, 0, 1, 1], [], []>} : vector<2x2xf32>, vector<2x256xf32>, vector<2x256xf32> -> vector<2x256xf32>
    %845 = arith.addf %840, %844 : vector<2x256xf32>
    %c13_683 = arith.constant 13 : index
    %c0_684 = arith.constant 0 : index
    %c0_685 = arith.constant 0 : index
    %846 = vector.load %arg27[%c13_683, %c0_684, %c0_685] : memref<15x2x2xf32, #tpu.memory_space<vmem>>, vector<1x2x2xf32>
    %847 = vector.shape_cast %846 : vector<1x2x2xf32> to vector<2x2xf32>
    %848 = vector.extract_strided_slice %784 {offsets = [0, 224], sizes = [2, 256], strides = [1, 1]} : vector<2x512xf32> to vector<2x256xf32>
    %cst_686 = arith.constant dense<0.000000e+00> : vector<2x256xf32>
    %849 = tpu.matmul %847, %848, %cst_686 {dimension_numbers = #tpu.dot_dimension_numbers<[1], [0], [0], [1], [0, 0, 1, 1], [], []>} : vector<2x2xf32>, vector<2x256xf32>, vector<2x256xf32> -> vector<2x256xf32>
    %850 = arith.addf %845, %849 : vector<2x256xf32>
    %c14_687 = arith.constant 14 : index
    %c0_688 = arith.constant 0 : index
    %c0_689 = arith.constant 0 : index
    %851 = vector.load %arg27[%c14_687, %c0_688, %c0_689] : memref<15x2x2xf32, #tpu.memory_space<vmem>>, vector<1x2x2xf32>
    %852 = vector.shape_cast %851 : vector<1x2x2xf32> to vector<2x2xf32>
    %853 = vector.extract_strided_slice %784 {offsets = [0, 240], sizes = [2, 256], strides = [1, 1]} : vector<2x512xf32> to vector<2x256xf32>
    %cst_690 = arith.constant dense<0.000000e+00> : vector<2x256xf32>
    %854 = tpu.matmul %852, %853, %cst_690 {dimension_numbers = #tpu.dot_dimension_numbers<[1], [0], [0], [1], [0, 0, 1, 1], [], []>} : vector<2x2xf32>, vector<2x256xf32>, vector<2x256xf32> -> vector<2x256xf32>
    %855 = arith.addf %850, %854 : vector<2x256xf32>
    %c0_691 = arith.constant 0 : index
    %c0_692 = arith.constant 0 : index
    %856 = vector.load %arg28[%c0_691, %c0_692] : memref<2x1xf32, #tpu.memory_space<vmem>>, vector<2x1xf32>
    %857 = vector.broadcast %856 : vector<2x1xf32> to vector<2x256xf32>
    %858 = arith.addf %855, %857 : vector<2x256xf32>
    %859 = arith.addf %780, %858 : vector<2x256xf32>
    %cst_693 = arith.constant 0.000000e+00 : f32
    %860 = vector.broadcast %cst_693 : f32 to vector<2x256xf32>
    %861 = arith.cmpf oge, %859, %860 : vector<2x256xf32>
    %cst_694 = arith.constant 1.000000e-01 : f32
    %862 = vector.broadcast %cst_694 : f32 to vector<2x256xf32>
    %863 = arith.mulf %862, %859 : vector<2x256xf32>
    %864 = arith.select %861, %859, %863 : vector<2x256xi1>, vector<2x256xf32>
    %c0_695 = arith.constant 0 : index
    %c0_696 = arith.constant 0 : index
    %c0_697 = arith.constant 0 : index
    %865 = vector.load %arg29[%c0_695, %c0_696, %c0_697] : memref<9x4x6xf32, #tpu.memory_space<vmem>>, vector<1x4x6xf32>
    %866 = vector.shape_cast %865 : vector<1x4x6xf32> to vector<4x6xf32>
    %cst_698 = arith.constant 0.000000e+00 : f32
    %867 = vector.broadcast %cst_698 : f32 to vector<2x128xf32>
    %868 = tpu.concatenate %867, %484, %867 in 1 : vector<2x128xf32>, vector<2x256xf32>, vector<2x128xf32> -> vector<2x512xf32>
    %869 = vector.extract_strided_slice %868 {offsets = [0, 111], sizes = [2, 256], strides = [1, 1]} : vector<2x512xf32> to vector<2x256xf32>
    %c6_699 = arith.constant 6 : index
    %c0_700 = arith.constant 0 : index
    %c0_701 = arith.constant 0 : index
    %870 = vector.load %arg2[%c6_699, %c0_700, %c0_701] : memref<14x1x256xf32, #tpu.memory_space<vmem>>, vector<1x1x256xf32>
    %871 = vector.shape_cast %870 : vector<1x1x256xf32> to vector<1x256xf32>
    %872 = vector.broadcast %871 : vector<1x256xf32> to vector<2x256xf32>
    %873 = arith.mulf %869, %872 : vector<2x256xf32>
    %874 = vector.extract_strided_slice %866 {offsets = [0, 0], sizes = [4, 2], strides = [1, 1]} : vector<4x6xf32> to vector<4x2xf32>
    %cst_702 = arith.constant dense<0.000000e+00> : vector<4x256xf32>
    %875 = tpu.matmul %874, %873, %cst_702 {dimension_numbers = #tpu.dot_dimension_numbers<[1], [0], [0], [1], [0, 0, 1, 1], [], []>} : vector<4x2xf32>, vector<2x256xf32>, vector<4x256xf32> -> vector<4x256xf32>
    %cst_703 = arith.constant 0.000000e+00 : f32
    %876 = vector.broadcast %cst_703 : f32 to vector<2x128xf32>
    %877 = tpu.concatenate %876, %646, %876 in 1 : vector<2x128xf32>, vector<2x256xf32>, vector<2x128xf32> -> vector<2x512xf32>
    %878 = vector.extract_strided_slice %877 {offsets = [0, 111], sizes = [2, 256], strides = [1, 1]} : vector<2x512xf32> to vector<2x256xf32>
    %c6_704 = arith.constant 6 : index
    %c0_705 = arith.constant 0 : index
    %c0_706 = arith.constant 0 : index
    %879 = vector.load %arg2[%c6_704, %c0_705, %c0_706] : memref<14x1x256xf32, #tpu.memory_space<vmem>>, vector<1x1x256xf32>
    %880 = vector.shape_cast %879 : vector<1x1x256xf32> to vector<1x256xf32>
    %881 = vector.broadcast %880 : vector<1x256xf32> to vector<2x256xf32>
    %882 = arith.mulf %878, %881 : vector<2x256xf32>
    %883 = vector.extract_strided_slice %866 {offsets = [0, 2], sizes = [4, 2], strides = [1, 1]} : vector<4x6xf32> to vector<4x2xf32>
    %cst_707 = arith.constant dense<0.000000e+00> : vector<4x256xf32>
    %884 = tpu.matmul %883, %882, %cst_707 {dimension_numbers = #tpu.dot_dimension_numbers<[1], [0], [0], [1], [0, 0, 1, 1], [], []>} : vector<4x2xf32>, vector<2x256xf32>, vector<4x256xf32> -> vector<4x256xf32>
    %885 = arith.addf %875, %884 : vector<4x256xf32>
    %cst_708 = arith.constant 0.000000e+00 : f32
    %886 = vector.broadcast %cst_708 : f32 to vector<2x128xf32>
    %887 = tpu.concatenate %886, %864, %886 in 1 : vector<2x128xf32>, vector<2x256xf32>, vector<2x128xf32> -> vector<2x512xf32>
    %888 = vector.extract_strided_slice %887 {offsets = [0, 111], sizes = [2, 256], strides = [1, 1]} : vector<2x512xf32> to vector<2x256xf32>
    %c6_709 = arith.constant 6 : index
    %c0_710 = arith.constant 0 : index
    %c0_711 = arith.constant 0 : index
    %889 = vector.load %arg2[%c6_709, %c0_710, %c0_711] : memref<14x1x256xf32, #tpu.memory_space<vmem>>, vector<1x1x256xf32>
    %890 = vector.shape_cast %889 : vector<1x1x256xf32> to vector<1x256xf32>
    %891 = vector.broadcast %890 : vector<1x256xf32> to vector<2x256xf32>
    %892 = arith.mulf %888, %891 : vector<2x256xf32>
    %893 = vector.extract_strided_slice %866 {offsets = [0, 4], sizes = [4, 2], strides = [1, 1]} : vector<4x6xf32> to vector<4x2xf32>
    %cst_712 = arith.constant dense<0.000000e+00> : vector<4x256xf32>
    %894 = tpu.matmul %893, %892, %cst_712 {dimension_numbers = #tpu.dot_dimension_numbers<[1], [0], [0], [1], [0, 0, 1, 1], [], []>} : vector<4x2xf32>, vector<2x256xf32>, vector<4x256xf32> -> vector<4x256xf32>
    %895 = arith.addf %885, %894 : vector<4x256xf32>
    %c1_713 = arith.constant 1 : index
    %c0_714 = arith.constant 0 : index
    %c0_715 = arith.constant 0 : index
    %896 = vector.load %arg29[%c1_713, %c0_714, %c0_715] : memref<9x4x6xf32, #tpu.memory_space<vmem>>, vector<1x4x6xf32>
    %897 = vector.shape_cast %896 : vector<1x4x6xf32> to vector<4x6xf32>
    %898 = vector.extract_strided_slice %868 {offsets = [0, 112], sizes = [2, 256], strides = [1, 1]} : vector<2x512xf32> to vector<2x256xf32>
    %899 = vector.extract_strided_slice %897 {offsets = [0, 0], sizes = [4, 2], strides = [1, 1]} : vector<4x6xf32> to vector<4x2xf32>
    %cst_716 = arith.constant dense<0.000000e+00> : vector<4x256xf32>
    %900 = tpu.matmul %899, %898, %cst_716 {dimension_numbers = #tpu.dot_dimension_numbers<[1], [0], [0], [1], [0, 0, 1, 1], [], []>} : vector<4x2xf32>, vector<2x256xf32>, vector<4x256xf32> -> vector<4x256xf32>
    %901 = arith.addf %895, %900 : vector<4x256xf32>
    %902 = vector.extract_strided_slice %877 {offsets = [0, 112], sizes = [2, 256], strides = [1, 1]} : vector<2x512xf32> to vector<2x256xf32>
    %903 = vector.extract_strided_slice %897 {offsets = [0, 2], sizes = [4, 2], strides = [1, 1]} : vector<4x6xf32> to vector<4x2xf32>
    %cst_717 = arith.constant dense<0.000000e+00> : vector<4x256xf32>
    %904 = tpu.matmul %903, %902, %cst_717 {dimension_numbers = #tpu.dot_dimension_numbers<[1], [0], [0], [1], [0, 0, 1, 1], [], []>} : vector<4x2xf32>, vector<2x256xf32>, vector<4x256xf32> -> vector<4x256xf32>
    %905 = arith.addf %901, %904 : vector<4x256xf32>
    %906 = vector.extract_strided_slice %887 {offsets = [0, 112], sizes = [2, 256], strides = [1, 1]} : vector<2x512xf32> to vector<2x256xf32>
    %907 = vector.extract_strided_slice %897 {offsets = [0, 4], sizes = [4, 2], strides = [1, 1]} : vector<4x6xf32> to vector<4x2xf32>
    %cst_718 = arith.constant dense<0.000000e+00> : vector<4x256xf32>
    %908 = tpu.matmul %907, %906, %cst_718 {dimension_numbers = #tpu.dot_dimension_numbers<[1], [0], [0], [1], [0, 0, 1, 1], [], []>} : vector<4x2xf32>, vector<2x256xf32>, vector<4x256xf32> -> vector<4x256xf32>
    %909 = arith.addf %905, %908 : vector<4x256xf32>
    %c2_719 = arith.constant 2 : index
    %c0_720 = arith.constant 0 : index
    %c0_721 = arith.constant 0 : index
    %910 = vector.load %arg29[%c2_719, %c0_720, %c0_721] : memref<9x4x6xf32, #tpu.memory_space<vmem>>, vector<1x4x6xf32>
    %911 = vector.shape_cast %910 : vector<1x4x6xf32> to vector<4x6xf32>
    %912 = vector.extract_strided_slice %868 {offsets = [0, 113], sizes = [2, 256], strides = [1, 1]} : vector<2x512xf32> to vector<2x256xf32>
    %c7_722 = arith.constant 7 : index
    %c0_723 = arith.constant 0 : index
    %c0_724 = arith.constant 0 : index
    %913 = vector.load %arg2[%c7_722, %c0_723, %c0_724] : memref<14x1x256xf32, #tpu.memory_space<vmem>>, vector<1x1x256xf32>
    %914 = vector.shape_cast %913 : vector<1x1x256xf32> to vector<1x256xf32>
    %915 = vector.broadcast %914 : vector<1x256xf32> to vector<2x256xf32>
    %916 = arith.mulf %912, %915 : vector<2x256xf32>
    %917 = vector.extract_strided_slice %911 {offsets = [0, 0], sizes = [4, 2], strides = [1, 1]} : vector<4x6xf32> to vector<4x2xf32>
    %cst_725 = arith.constant dense<0.000000e+00> : vector<4x256xf32>
    %918 = tpu.matmul %917, %916, %cst_725 {dimension_numbers = #tpu.dot_dimension_numbers<[1], [0], [0], [1], [0, 0, 1, 1], [], []>} : vector<4x2xf32>, vector<2x256xf32>, vector<4x256xf32> -> vector<4x256xf32>
    %919 = arith.addf %909, %918 : vector<4x256xf32>
    %920 = vector.extract_strided_slice %877 {offsets = [0, 113], sizes = [2, 256], strides = [1, 1]} : vector<2x512xf32> to vector<2x256xf32>
    %c7_726 = arith.constant 7 : index
    %c0_727 = arith.constant 0 : index
    %c0_728 = arith.constant 0 : index
    %921 = vector.load %arg2[%c7_726, %c0_727, %c0_728] : memref<14x1x256xf32, #tpu.memory_space<vmem>>, vector<1x1x256xf32>
    %922 = vector.shape_cast %921 : vector<1x1x256xf32> to vector<1x256xf32>
    %923 = vector.broadcast %922 : vector<1x256xf32> to vector<2x256xf32>
    %924 = arith.mulf %920, %923 : vector<2x256xf32>
    %925 = vector.extract_strided_slice %911 {offsets = [0, 2], sizes = [4, 2], strides = [1, 1]} : vector<4x6xf32> to vector<4x2xf32>
    %cst_729 = arith.constant dense<0.000000e+00> : vector<4x256xf32>
    %926 = tpu.matmul %925, %924, %cst_729 {dimension_numbers = #tpu.dot_dimension_numbers<[1], [0], [0], [1], [0, 0, 1, 1], [], []>} : vector<4x2xf32>, vector<2x256xf32>, vector<4x256xf32> -> vector<4x256xf32>
    %927 = arith.addf %919, %926 : vector<4x256xf32>
    %928 = vector.extract_strided_slice %887 {offsets = [0, 113], sizes = [2, 256], strides = [1, 1]} : vector<2x512xf32> to vector<2x256xf32>
    %c7_730 = arith.constant 7 : index
    %c0_731 = arith.constant 0 : index
    %c0_732 = arith.constant 0 : index
    %929 = vector.load %arg2[%c7_730, %c0_731, %c0_732] : memref<14x1x256xf32, #tpu.memory_space<vmem>>, vector<1x1x256xf32>
    %930 = vector.shape_cast %929 : vector<1x1x256xf32> to vector<1x256xf32>
    %931 = vector.broadcast %930 : vector<1x256xf32> to vector<2x256xf32>
    %932 = arith.mulf %928, %931 : vector<2x256xf32>
    %933 = vector.extract_strided_slice %911 {offsets = [0, 4], sizes = [4, 2], strides = [1, 1]} : vector<4x6xf32> to vector<4x2xf32>
    %cst_733 = arith.constant dense<0.000000e+00> : vector<4x256xf32>
    %934 = tpu.matmul %933, %932, %cst_733 {dimension_numbers = #tpu.dot_dimension_numbers<[1], [0], [0], [1], [0, 0, 1, 1], [], []>} : vector<4x2xf32>, vector<2x256xf32>, vector<4x256xf32> -> vector<4x256xf32>
    %935 = arith.addf %927, %934 : vector<4x256xf32>
    %c3_734 = arith.constant 3 : index
    %c0_735 = arith.constant 0 : index
    %c0_736 = arith.constant 0 : index
    %936 = vector.load %arg29[%c3_734, %c0_735, %c0_736] : memref<9x4x6xf32, #tpu.memory_space<vmem>>, vector<1x4x6xf32>
    %937 = vector.shape_cast %936 : vector<1x4x6xf32> to vector<4x6xf32>
    %938 = vector.extract_strided_slice %868 {offsets = [0, 127], sizes = [2, 256], strides = [1, 1]} : vector<2x512xf32> to vector<2x256xf32>
    %c6_737 = arith.constant 6 : index
    %c0_738 = arith.constant 0 : index
    %c0_739 = arith.constant 0 : index
    %939 = vector.load %arg2[%c6_737, %c0_738, %c0_739] : memref<14x1x256xf32, #tpu.memory_space<vmem>>, vector<1x1x256xf32>
    %940 = vector.shape_cast %939 : vector<1x1x256xf32> to vector<1x256xf32>
    %941 = vector.broadcast %940 : vector<1x256xf32> to vector<2x256xf32>
    %942 = arith.mulf %938, %941 : vector<2x256xf32>
    %943 = vector.extract_strided_slice %937 {offsets = [0, 0], sizes = [4, 2], strides = [1, 1]} : vector<4x6xf32> to vector<4x2xf32>
    %cst_740 = arith.constant dense<0.000000e+00> : vector<4x256xf32>
    %944 = tpu.matmul %943, %942, %cst_740 {dimension_numbers = #tpu.dot_dimension_numbers<[1], [0], [0], [1], [0, 0, 1, 1], [], []>} : vector<4x2xf32>, vector<2x256xf32>, vector<4x256xf32> -> vector<4x256xf32>
    %945 = arith.addf %935, %944 : vector<4x256xf32>
    %946 = vector.extract_strided_slice %877 {offsets = [0, 127], sizes = [2, 256], strides = [1, 1]} : vector<2x512xf32> to vector<2x256xf32>
    %c6_741 = arith.constant 6 : index
    %c0_742 = arith.constant 0 : index
    %c0_743 = arith.constant 0 : index
    %947 = vector.load %arg2[%c6_741, %c0_742, %c0_743] : memref<14x1x256xf32, #tpu.memory_space<vmem>>, vector<1x1x256xf32>
    %948 = vector.shape_cast %947 : vector<1x1x256xf32> to vector<1x256xf32>
    %949 = vector.broadcast %948 : vector<1x256xf32> to vector<2x256xf32>
    %950 = arith.mulf %946, %949 : vector<2x256xf32>
    %951 = vector.extract_strided_slice %937 {offsets = [0, 2], sizes = [4, 2], strides = [1, 1]} : vector<4x6xf32> to vector<4x2xf32>
    %cst_744 = arith.constant dense<0.000000e+00> : vector<4x256xf32>
    %952 = tpu.matmul %951, %950, %cst_744 {dimension_numbers = #tpu.dot_dimension_numbers<[1], [0], [0], [1], [0, 0, 1, 1], [], []>} : vector<4x2xf32>, vector<2x256xf32>, vector<4x256xf32> -> vector<4x256xf32>
    %953 = arith.addf %945, %952 : vector<4x256xf32>
    %954 = vector.extract_strided_slice %887 {offsets = [0, 127], sizes = [2, 256], strides = [1, 1]} : vector<2x512xf32> to vector<2x256xf32>
    %c6_745 = arith.constant 6 : index
    %c0_746 = arith.constant 0 : index
    %c0_747 = arith.constant 0 : index
    %955 = vector.load %arg2[%c6_745, %c0_746, %c0_747] : memref<14x1x256xf32, #tpu.memory_space<vmem>>, vector<1x1x256xf32>
    %956 = vector.shape_cast %955 : vector<1x1x256xf32> to vector<1x256xf32>
    %957 = vector.broadcast %956 : vector<1x256xf32> to vector<2x256xf32>
    %958 = arith.mulf %954, %957 : vector<2x256xf32>
    %959 = vector.extract_strided_slice %937 {offsets = [0, 4], sizes = [4, 2], strides = [1, 1]} : vector<4x6xf32> to vector<4x2xf32>
    %cst_748 = arith.constant dense<0.000000e+00> : vector<4x256xf32>
    %960 = tpu.matmul %959, %958, %cst_748 {dimension_numbers = #tpu.dot_dimension_numbers<[1], [0], [0], [1], [0, 0, 1, 1], [], []>} : vector<4x2xf32>, vector<2x256xf32>, vector<4x256xf32> -> vector<4x256xf32>
    %961 = arith.addf %953, %960 : vector<4x256xf32>
    %c4_749 = arith.constant 4 : index
    %c0_750 = arith.constant 0 : index
    %c0_751 = arith.constant 0 : index
    %962 = vector.load %arg29[%c4_749, %c0_750, %c0_751] : memref<9x4x6xf32, #tpu.memory_space<vmem>>, vector<1x4x6xf32>
    %963 = vector.shape_cast %962 : vector<1x4x6xf32> to vector<4x6xf32>
    %964 = vector.extract_strided_slice %963 {offsets = [0, 0], sizes = [4, 2], strides = [1, 1]} : vector<4x6xf32> to vector<4x2xf32>
    %cst_752 = arith.constant dense<0.000000e+00> : vector<4x256xf32>
    %965 = tpu.matmul %964, %484, %cst_752 {dimension_numbers = #tpu.dot_dimension_numbers<[1], [0], [0], [1], [0, 0, 1, 1], [], []>} : vector<4x2xf32>, vector<2x256xf32>, vector<4x256xf32> -> vector<4x256xf32>
    %966 = arith.addf %961, %965 : vector<4x256xf32>
    %967 = vector.extract_strided_slice %963 {offsets = [0, 2], sizes = [4, 2], strides = [1, 1]} : vector<4x6xf32> to vector<4x2xf32>
    %cst_753 = arith.constant dense<0.000000e+00> : vector<4x256xf32>
    %968 = tpu.matmul %967, %646, %cst_753 {dimension_numbers = #tpu.dot_dimension_numbers<[1], [0], [0], [1], [0, 0, 1, 1], [], []>} : vector<4x2xf32>, vector<2x256xf32>, vector<4x256xf32> -> vector<4x256xf32>
    %969 = arith.addf %966, %968 : vector<4x256xf32>
    %970 = vector.extract_strided_slice %963 {offsets = [0, 4], sizes = [4, 2], strides = [1, 1]} : vector<4x6xf32> to vector<4x2xf32>
    %cst_754 = arith.constant dense<0.000000e+00> : vector<4x256xf32>
    %971 = tpu.matmul %970, %864, %cst_754 {dimension_numbers = #tpu.dot_dimension_numbers<[1], [0], [0], [1], [0, 0, 1, 1], [], []>} : vector<4x2xf32>, vector<2x256xf32>, vector<4x256xf32> -> vector<4x256xf32>
    %972 = arith.addf %969, %971 : vector<4x256xf32>
    %c5_755 = arith.constant 5 : index
    %c0_756 = arith.constant 0 : index
    %c0_757 = arith.constant 0 : index
    %973 = vector.load %arg29[%c5_755, %c0_756, %c0_757] : memref<9x4x6xf32, #tpu.memory_space<vmem>>, vector<1x4x6xf32>
    %974 = vector.shape_cast %973 : vector<1x4x6xf32> to vector<4x6xf32>
    %975 = vector.extract_strided_slice %868 {offsets = [0, 129], sizes = [2, 256], strides = [1, 1]} : vector<2x512xf32> to vector<2x256xf32>
    %c7_758 = arith.constant 7 : index
    %c0_759 = arith.constant 0 : index
    %c0_760 = arith.constant 0 : index
    %976 = vector.load %arg2[%c7_758, %c0_759, %c0_760] : memref<14x1x256xf32, #tpu.memory_space<vmem>>, vector<1x1x256xf32>
    %977 = vector.shape_cast %976 : vector<1x1x256xf32> to vector<1x256xf32>
    %978 = vector.broadcast %977 : vector<1x256xf32> to vector<2x256xf32>
    %979 = arith.mulf %975, %978 : vector<2x256xf32>
    %980 = vector.extract_strided_slice %974 {offsets = [0, 0], sizes = [4, 2], strides = [1, 1]} : vector<4x6xf32> to vector<4x2xf32>
    %cst_761 = arith.constant dense<0.000000e+00> : vector<4x256xf32>
    %981 = tpu.matmul %980, %979, %cst_761 {dimension_numbers = #tpu.dot_dimension_numbers<[1], [0], [0], [1], [0, 0, 1, 1], [], []>} : vector<4x2xf32>, vector<2x256xf32>, vector<4x256xf32> -> vector<4x256xf32>
    %982 = arith.addf %972, %981 : vector<4x256xf32>
    %983 = vector.extract_strided_slice %877 {offsets = [0, 129], sizes = [2, 256], strides = [1, 1]} : vector<2x512xf32> to vector<2x256xf32>
    %c7_762 = arith.constant 7 : index
    %c0_763 = arith.constant 0 : index
    %c0_764 = arith.constant 0 : index
    %984 = vector.load %arg2[%c7_762, %c0_763, %c0_764] : memref<14x1x256xf32, #tpu.memory_space<vmem>>, vector<1x1x256xf32>
    %985 = vector.shape_cast %984 : vector<1x1x256xf32> to vector<1x256xf32>
    %986 = vector.broadcast %985 : vector<1x256xf32> to vector<2x256xf32>
    %987 = arith.mulf %983, %986 : vector<2x256xf32>
    %988 = vector.extract_strided_slice %974 {offsets = [0, 2], sizes = [4, 2], strides = [1, 1]} : vector<4x6xf32> to vector<4x2xf32>
    %cst_765 = arith.constant dense<0.000000e+00> : vector<4x256xf32>
    %989 = tpu.matmul %988, %987, %cst_765 {dimension_numbers = #tpu.dot_dimension_numbers<[1], [0], [0], [1], [0, 0, 1, 1], [], []>} : vector<4x2xf32>, vector<2x256xf32>, vector<4x256xf32> -> vector<4x256xf32>
    %990 = arith.addf %982, %989 : vector<4x256xf32>
    %991 = vector.extract_strided_slice %887 {offsets = [0, 129], sizes = [2, 256], strides = [1, 1]} : vector<2x512xf32> to vector<2x256xf32>
    %c7_766 = arith.constant 7 : index
    %c0_767 = arith.constant 0 : index
    %c0_768 = arith.constant 0 : index
    %992 = vector.load %arg2[%c7_766, %c0_767, %c0_768] : memref<14x1x256xf32, #tpu.memory_space<vmem>>, vector<1x1x256xf32>
    %993 = vector.shape_cast %992 : vector<1x1x256xf32> to vector<1x256xf32>
    %994 = vector.broadcast %993 : vector<1x256xf32> to vector<2x256xf32>
    %995 = arith.mulf %991, %994 : vector<2x256xf32>
    %996 = vector.extract_strided_slice %974 {offsets = [0, 4], sizes = [4, 2], strides = [1, 1]} : vector<4x6xf32> to vector<4x2xf32>
    %cst_769 = arith.constant dense<0.000000e+00> : vector<4x256xf32>
    %997 = tpu.matmul %996, %995, %cst_769 {dimension_numbers = #tpu.dot_dimension_numbers<[1], [0], [0], [1], [0, 0, 1, 1], [], []>} : vector<4x2xf32>, vector<2x256xf32>, vector<4x256xf32> -> vector<4x256xf32>
    %998 = arith.addf %990, %997 : vector<4x256xf32>
    %c6_770 = arith.constant 6 : index
    %c0_771 = arith.constant 0 : index
    %c0_772 = arith.constant 0 : index
    %999 = vector.load %arg29[%c6_770, %c0_771, %c0_772] : memref<9x4x6xf32, #tpu.memory_space<vmem>>, vector<1x4x6xf32>
    %1000 = vector.shape_cast %999 : vector<1x4x6xf32> to vector<4x6xf32>
    %1001 = vector.extract_strided_slice %868 {offsets = [0, 143], sizes = [2, 256], strides = [1, 1]} : vector<2x512xf32> to vector<2x256xf32>
    %c6_773 = arith.constant 6 : index
    %c0_774 = arith.constant 0 : index
    %c0_775 = arith.constant 0 : index
    %1002 = vector.load %arg2[%c6_773, %c0_774, %c0_775] : memref<14x1x256xf32, #tpu.memory_space<vmem>>, vector<1x1x256xf32>
    %1003 = vector.shape_cast %1002 : vector<1x1x256xf32> to vector<1x256xf32>
    %1004 = vector.broadcast %1003 : vector<1x256xf32> to vector<2x256xf32>
    %1005 = arith.mulf %1001, %1004 : vector<2x256xf32>
    %1006 = vector.extract_strided_slice %1000 {offsets = [0, 0], sizes = [4, 2], strides = [1, 1]} : vector<4x6xf32> to vector<4x2xf32>
    %cst_776 = arith.constant dense<0.000000e+00> : vector<4x256xf32>
    %1007 = tpu.matmul %1006, %1005, %cst_776 {dimension_numbers = #tpu.dot_dimension_numbers<[1], [0], [0], [1], [0, 0, 1, 1], [], []>} : vector<4x2xf32>, vector<2x256xf32>, vector<4x256xf32> -> vector<4x256xf32>
    %1008 = arith.addf %998, %1007 : vector<4x256xf32>
    %1009 = vector.extract_strided_slice %877 {offsets = [0, 143], sizes = [2, 256], strides = [1, 1]} : vector<2x512xf32> to vector<2x256xf32>
    %c6_777 = arith.constant 6 : index
    %c0_778 = arith.constant 0 : index
    %c0_779 = arith.constant 0 : index
    %1010 = vector.load %arg2[%c6_777, %c0_778, %c0_779] : memref<14x1x256xf32, #tpu.memory_space<vmem>>, vector<1x1x256xf32>
    %1011 = vector.shape_cast %1010 : vector<1x1x256xf32> to vector<1x256xf32>
    %1012 = vector.broadcast %1011 : vector<1x256xf32> to vector<2x256xf32>
    %1013 = arith.mulf %1009, %1012 : vector<2x256xf32>
    %1014 = vector.extract_strided_slice %1000 {offsets = [0, 2], sizes = [4, 2], strides = [1, 1]} : vector<4x6xf32> to vector<4x2xf32>
    %cst_780 = arith.constant dense<0.000000e+00> : vector<4x256xf32>
    %1015 = tpu.matmul %1014, %1013, %cst_780 {dimension_numbers = #tpu.dot_dimension_numbers<[1], [0], [0], [1], [0, 0, 1, 1], [], []>} : vector<4x2xf32>, vector<2x256xf32>, vector<4x256xf32> -> vector<4x256xf32>
    %1016 = arith.addf %1008, %1015 : vector<4x256xf32>
    %1017 = vector.extract_strided_slice %887 {offsets = [0, 143], sizes = [2, 256], strides = [1, 1]} : vector<2x512xf32> to vector<2x256xf32>
    %c6_781 = arith.constant 6 : index
    %c0_782 = arith.constant 0 : index
    %c0_783 = arith.constant 0 : index
    %1018 = vector.load %arg2[%c6_781, %c0_782, %c0_783] : memref<14x1x256xf32, #tpu.memory_space<vmem>>, vector<1x1x256xf32>
    %1019 = vector.shape_cast %1018 : vector<1x1x256xf32> to vector<1x256xf32>
    %1020 = vector.broadcast %1019 : vector<1x256xf32> to vector<2x256xf32>
    %1021 = arith.mulf %1017, %1020 : vector<2x256xf32>
    %1022 = vector.extract_strided_slice %1000 {offsets = [0, 4], sizes = [4, 2], strides = [1, 1]} : vector<4x6xf32> to vector<4x2xf32>
    %cst_784 = arith.constant dense<0.000000e+00> : vector<4x256xf32>
    %1023 = tpu.matmul %1022, %1021, %cst_784 {dimension_numbers = #tpu.dot_dimension_numbers<[1], [0], [0], [1], [0, 0, 1, 1], [], []>} : vector<4x2xf32>, vector<2x256xf32>, vector<4x256xf32> -> vector<4x256xf32>
    %1024 = arith.addf %1016, %1023 : vector<4x256xf32>
    %c7_785 = arith.constant 7 : index
    %c0_786 = arith.constant 0 : index
    %c0_787 = arith.constant 0 : index
    %1025 = vector.load %arg29[%c7_785, %c0_786, %c0_787] : memref<9x4x6xf32, #tpu.memory_space<vmem>>, vector<1x4x6xf32>
    %1026 = vector.shape_cast %1025 : vector<1x4x6xf32> to vector<4x6xf32>
    %1027 = vector.extract_strided_slice %868 {offsets = [0, 144], sizes = [2, 256], strides = [1, 1]} : vector<2x512xf32> to vector<2x256xf32>
    %1028 = vector.extract_strided_slice %1026 {offsets = [0, 0], sizes = [4, 2], strides = [1, 1]} : vector<4x6xf32> to vector<4x2xf32>
    %cst_788 = arith.constant dense<0.000000e+00> : vector<4x256xf32>
    %1029 = tpu.matmul %1028, %1027, %cst_788 {dimension_numbers = #tpu.dot_dimension_numbers<[1], [0], [0], [1], [0, 0, 1, 1], [], []>} : vector<4x2xf32>, vector<2x256xf32>, vector<4x256xf32> -> vector<4x256xf32>
    %1030 = arith.addf %1024, %1029 : vector<4x256xf32>
    %1031 = vector.extract_strided_slice %877 {offsets = [0, 144], sizes = [2, 256], strides = [1, 1]} : vector<2x512xf32> to vector<2x256xf32>
    %1032 = vector.extract_strided_slice %1026 {offsets = [0, 2], sizes = [4, 2], strides = [1, 1]} : vector<4x6xf32> to vector<4x2xf32>
    %cst_789 = arith.constant dense<0.000000e+00> : vector<4x256xf32>
    %1033 = tpu.matmul %1032, %1031, %cst_789 {dimension_numbers = #tpu.dot_dimension_numbers<[1], [0], [0], [1], [0, 0, 1, 1], [], []>} : vector<4x2xf32>, vector<2x256xf32>, vector<4x256xf32> -> vector<4x256xf32>
    %1034 = arith.addf %1030, %1033 : vector<4x256xf32>
    %1035 = vector.extract_strided_slice %887 {offsets = [0, 144], sizes = [2, 256], strides = [1, 1]} : vector<2x512xf32> to vector<2x256xf32>
    %1036 = vector.extract_strided_slice %1026 {offsets = [0, 4], sizes = [4, 2], strides = [1, 1]} : vector<4x6xf32> to vector<4x2xf32>
    %cst_790 = arith.constant dense<0.000000e+00> : vector<4x256xf32>
    %1037 = tpu.matmul %1036, %1035, %cst_790 {dimension_numbers = #tpu.dot_dimension_numbers<[1], [0], [0], [1], [0, 0, 1, 1], [], []>} : vector<4x2xf32>, vector<2x256xf32>, vector<4x256xf32> -> vector<4x256xf32>
    %1038 = arith.addf %1034, %1037 : vector<4x256xf32>
    %c8_791 = arith.constant 8 : index
    %c0_792 = arith.constant 0 : index
    %c0_793 = arith.constant 0 : index
    %1039 = vector.load %arg29[%c8_791, %c0_792, %c0_793] : memref<9x4x6xf32, #tpu.memory_space<vmem>>, vector<1x4x6xf32>
    %1040 = vector.shape_cast %1039 : vector<1x4x6xf32> to vector<4x6xf32>
    %1041 = vector.extract_strided_slice %868 {offsets = [0, 145], sizes = [2, 256], strides = [1, 1]} : vector<2x512xf32> to vector<2x256xf32>
    %c7_794 = arith.constant 7 : index
    %c0_795 = arith.constant 0 : index
    %c0_796 = arith.constant 0 : index
    %1042 = vector.load %arg2[%c7_794, %c0_795, %c0_796] : memref<14x1x256xf32, #tpu.memory_space<vmem>>, vector<1x1x256xf32>
    %1043 = vector.shape_cast %1042 : vector<1x1x256xf32> to vector<1x256xf32>
    %1044 = vector.broadcast %1043 : vector<1x256xf32> to vector<2x256xf32>
    %1045 = arith.mulf %1041, %1044 : vector<2x256xf32>
    %1046 = vector.extract_strided_slice %1040 {offsets = [0, 0], sizes = [4, 2], strides = [1, 1]} : vector<4x6xf32> to vector<4x2xf32>
    %cst_797 = arith.constant dense<0.000000e+00> : vector<4x256xf32>
    %1047 = tpu.matmul %1046, %1045, %cst_797 {dimension_numbers = #tpu.dot_dimension_numbers<[1], [0], [0], [1], [0, 0, 1, 1], [], []>} : vector<4x2xf32>, vector<2x256xf32>, vector<4x256xf32> -> vector<4x256xf32>
    %1048 = arith.addf %1038, %1047 : vector<4x256xf32>
    %1049 = vector.extract_strided_slice %877 {offsets = [0, 145], sizes = [2, 256], strides = [1, 1]} : vector<2x512xf32> to vector<2x256xf32>
    %c7_798 = arith.constant 7 : index
    %c0_799 = arith.constant 0 : index
    %c0_800 = arith.constant 0 : index
    %1050 = vector.load %arg2[%c7_798, %c0_799, %c0_800] : memref<14x1x256xf32, #tpu.memory_space<vmem>>, vector<1x1x256xf32>
    %1051 = vector.shape_cast %1050 : vector<1x1x256xf32> to vector<1x256xf32>
    %1052 = vector.broadcast %1051 : vector<1x256xf32> to vector<2x256xf32>
    %1053 = arith.mulf %1049, %1052 : vector<2x256xf32>
    %1054 = vector.extract_strided_slice %1040 {offsets = [0, 2], sizes = [4, 2], strides = [1, 1]} : vector<4x6xf32> to vector<4x2xf32>
    %cst_801 = arith.constant dense<0.000000e+00> : vector<4x256xf32>
    %1055 = tpu.matmul %1054, %1053, %cst_801 {dimension_numbers = #tpu.dot_dimension_numbers<[1], [0], [0], [1], [0, 0, 1, 1], [], []>} : vector<4x2xf32>, vector<2x256xf32>, vector<4x256xf32> -> vector<4x256xf32>
    %1056 = arith.addf %1048, %1055 : vector<4x256xf32>
    %1057 = vector.extract_strided_slice %887 {offsets = [0, 145], sizes = [2, 256], strides = [1, 1]} : vector<2x512xf32> to vector<2x256xf32>
    %c7_802 = arith.constant 7 : index
    %c0_803 = arith.constant 0 : index
    %c0_804 = arith.constant 0 : index
    %1058 = vector.load %arg2[%c7_802, %c0_803, %c0_804] : memref<14x1x256xf32, #tpu.memory_space<vmem>>, vector<1x1x256xf32>
    %1059 = vector.shape_cast %1058 : vector<1x1x256xf32> to vector<1x256xf32>
    %1060 = vector.broadcast %1059 : vector<1x256xf32> to vector<2x256xf32>
    %1061 = arith.mulf %1057, %1060 : vector<2x256xf32>
    %1062 = vector.extract_strided_slice %1040 {offsets = [0, 4], sizes = [4, 2], strides = [1, 1]} : vector<4x6xf32> to vector<4x2xf32>
    %cst_805 = arith.constant dense<0.000000e+00> : vector<4x256xf32>
    %1063 = tpu.matmul %1062, %1061, %cst_805 {dimension_numbers = #tpu.dot_dimension_numbers<[1], [0], [0], [1], [0, 0, 1, 1], [], []>} : vector<4x2xf32>, vector<2x256xf32>, vector<4x256xf32> -> vector<4x256xf32>
    %1064 = arith.addf %1056, %1063 : vector<4x256xf32>
    %cst_806 = arith.constant 0.000000e+00 : f32
    %1065 = vector.broadcast %cst_806 : f32 to vector<4x256xf32>
    %1066 = arith.cmpf oge, %1064, %1065 : vector<4x256xf32>
    %cst_807 = arith.constant 1.000000e-01 : f32
    %1067 = vector.broadcast %cst_807 : f32 to vector<4x256xf32>
    %1068 = arith.mulf %1067, %1064 : vector<4x256xf32>
    %1069 = arith.select %1066, %1064, %1068 : vector<4x256xi1>, vector<4x256xf32>
    %c0_808 = arith.constant 0 : index
    %c0_809 = arith.constant 0 : index
    %c0_810 = arith.constant 0 : index
    %1070 = vector.load %arg30[%c0_808, %c0_809, %c0_810] : memref<9x4x4xf32, #tpu.memory_space<vmem>>, vector<1x4x4xf32>
    %1071 = vector.shape_cast %1070 : vector<1x4x4xf32> to vector<4x4xf32>
    %cst_811 = arith.constant 0.000000e+00 : f32
    %1072 = vector.broadcast %cst_811 : f32 to vector<4x128xf32>
    %1073 = tpu.concatenate %1072, %1069, %1072 in 1 : vector<4x128xf32>, vector<4x256xf32>, vector<4x128xf32> -> vector<4x512xf32>
    %1074 = vector.extract_strided_slice %1073 {offsets = [0, 111], sizes = [4, 256], strides = [1, 1]} : vector<4x512xf32> to vector<4x256xf32>
    %c6_812 = arith.constant 6 : index
    %c0_813 = arith.constant 0 : index
    %c0_814 = arith.constant 0 : index
    %1075 = vector.load %arg2[%c6_812, %c0_813, %c0_814] : memref<14x1x256xf32, #tpu.memory_space<vmem>>, vector<1x1x256xf32>
    %1076 = vector.shape_cast %1075 : vector<1x1x256xf32> to vector<1x256xf32>
    %1077 = vector.broadcast %1076 : vector<1x256xf32> to vector<4x256xf32>
    %1078 = arith.mulf %1074, %1077 : vector<4x256xf32>
    %cst_815 = arith.constant dense<0.000000e+00> : vector<4x256xf32>
    %1079 = tpu.matmul %1071, %1078, %cst_815 {dimension_numbers = #tpu.dot_dimension_numbers<[1], [0], [0], [1], [0, 0, 1, 1], [], []>} : vector<4x4xf32>, vector<4x256xf32>, vector<4x256xf32> -> vector<4x256xf32>
    %c1_816 = arith.constant 1 : index
    %c0_817 = arith.constant 0 : index
    %c0_818 = arith.constant 0 : index
    %1080 = vector.load %arg30[%c1_816, %c0_817, %c0_818] : memref<9x4x4xf32, #tpu.memory_space<vmem>>, vector<1x4x4xf32>
    %1081 = vector.shape_cast %1080 : vector<1x4x4xf32> to vector<4x4xf32>
    %1082 = vector.extract_strided_slice %1073 {offsets = [0, 112], sizes = [4, 256], strides = [1, 1]} : vector<4x512xf32> to vector<4x256xf32>
    %cst_819 = arith.constant dense<0.000000e+00> : vector<4x256xf32>
    %1083 = tpu.matmul %1081, %1082, %cst_819 {dimension_numbers = #tpu.dot_dimension_numbers<[1], [0], [0], [1], [0, 0, 1, 1], [], []>} : vector<4x4xf32>, vector<4x256xf32>, vector<4x256xf32> -> vector<4x256xf32>
    %1084 = arith.addf %1079, %1083 : vector<4x256xf32>
    %c2_820 = arith.constant 2 : index
    %c0_821 = arith.constant 0 : index
    %c0_822 = arith.constant 0 : index
    %1085 = vector.load %arg30[%c2_820, %c0_821, %c0_822] : memref<9x4x4xf32, #tpu.memory_space<vmem>>, vector<1x4x4xf32>
    %1086 = vector.shape_cast %1085 : vector<1x4x4xf32> to vector<4x4xf32>
    %1087 = vector.extract_strided_slice %1073 {offsets = [0, 113], sizes = [4, 256], strides = [1, 1]} : vector<4x512xf32> to vector<4x256xf32>
    %c7_823 = arith.constant 7 : index
    %c0_824 = arith.constant 0 : index
    %c0_825 = arith.constant 0 : index
    %1088 = vector.load %arg2[%c7_823, %c0_824, %c0_825] : memref<14x1x256xf32, #tpu.memory_space<vmem>>, vector<1x1x256xf32>
    %1089 = vector.shape_cast %1088 : vector<1x1x256xf32> to vector<1x256xf32>
    %1090 = vector.broadcast %1089 : vector<1x256xf32> to vector<4x256xf32>
    %1091 = arith.mulf %1087, %1090 : vector<4x256xf32>
    %cst_826 = arith.constant dense<0.000000e+00> : vector<4x256xf32>
    %1092 = tpu.matmul %1086, %1091, %cst_826 {dimension_numbers = #tpu.dot_dimension_numbers<[1], [0], [0], [1], [0, 0, 1, 1], [], []>} : vector<4x4xf32>, vector<4x256xf32>, vector<4x256xf32> -> vector<4x256xf32>
    %1093 = arith.addf %1084, %1092 : vector<4x256xf32>
    %c3_827 = arith.constant 3 : index
    %c0_828 = arith.constant 0 : index
    %c0_829 = arith.constant 0 : index
    %1094 = vector.load %arg30[%c3_827, %c0_828, %c0_829] : memref<9x4x4xf32, #tpu.memory_space<vmem>>, vector<1x4x4xf32>
    %1095 = vector.shape_cast %1094 : vector<1x4x4xf32> to vector<4x4xf32>
    %1096 = vector.extract_strided_slice %1073 {offsets = [0, 127], sizes = [4, 256], strides = [1, 1]} : vector<4x512xf32> to vector<4x256xf32>
    %c6_830 = arith.constant 6 : index
    %c0_831 = arith.constant 0 : index
    %c0_832 = arith.constant 0 : index
    %1097 = vector.load %arg2[%c6_830, %c0_831, %c0_832] : memref<14x1x256xf32, #tpu.memory_space<vmem>>, vector<1x1x256xf32>
    %1098 = vector.shape_cast %1097 : vector<1x1x256xf32> to vector<1x256xf32>
    %1099 = vector.broadcast %1098 : vector<1x256xf32> to vector<4x256xf32>
    %1100 = arith.mulf %1096, %1099 : vector<4x256xf32>
    %cst_833 = arith.constant dense<0.000000e+00> : vector<4x256xf32>
    %1101 = tpu.matmul %1095, %1100, %cst_833 {dimension_numbers = #tpu.dot_dimension_numbers<[1], [0], [0], [1], [0, 0, 1, 1], [], []>} : vector<4x4xf32>, vector<4x256xf32>, vector<4x256xf32> -> vector<4x256xf32>
    %1102 = arith.addf %1093, %1101 : vector<4x256xf32>
    %c4_834 = arith.constant 4 : index
    %c0_835 = arith.constant 0 : index
    %c0_836 = arith.constant 0 : index
    %1103 = vector.load %arg30[%c4_834, %c0_835, %c0_836] : memref<9x4x4xf32, #tpu.memory_space<vmem>>, vector<1x4x4xf32>
    %1104 = vector.shape_cast %1103 : vector<1x4x4xf32> to vector<4x4xf32>
    %cst_837 = arith.constant dense<0.000000e+00> : vector<4x256xf32>
    %1105 = tpu.matmul %1104, %1069, %cst_837 {dimension_numbers = #tpu.dot_dimension_numbers<[1], [0], [0], [1], [0, 0, 1, 1], [], []>} : vector<4x4xf32>, vector<4x256xf32>, vector<4x256xf32> -> vector<4x256xf32>
    %1106 = arith.addf %1102, %1105 : vector<4x256xf32>
    %c5_838 = arith.constant 5 : index
    %c0_839 = arith.constant 0 : index
    %c0_840 = arith.constant 0 : index
    %1107 = vector.load %arg30[%c5_838, %c0_839, %c0_840] : memref<9x4x4xf32, #tpu.memory_space<vmem>>, vector<1x4x4xf32>
    %1108 = vector.shape_cast %1107 : vector<1x4x4xf32> to vector<4x4xf32>
    %1109 = vector.extract_strided_slice %1073 {offsets = [0, 129], sizes = [4, 256], strides = [1, 1]} : vector<4x512xf32> to vector<4x256xf32>
    %c7_841 = arith.constant 7 : index
    %c0_842 = arith.constant 0 : index
    %c0_843 = arith.constant 0 : index
    %1110 = vector.load %arg2[%c7_841, %c0_842, %c0_843] : memref<14x1x256xf32, #tpu.memory_space<vmem>>, vector<1x1x256xf32>
    %1111 = vector.shape_cast %1110 : vector<1x1x256xf32> to vector<1x256xf32>
    %1112 = vector.broadcast %1111 : vector<1x256xf32> to vector<4x256xf32>
    %1113 = arith.mulf %1109, %1112 : vector<4x256xf32>
    %cst_844 = arith.constant dense<0.000000e+00> : vector<4x256xf32>
    %1114 = tpu.matmul %1108, %1113, %cst_844 {dimension_numbers = #tpu.dot_dimension_numbers<[1], [0], [0], [1], [0, 0, 1, 1], [], []>} : vector<4x4xf32>, vector<4x256xf32>, vector<4x256xf32> -> vector<4x256xf32>
    %1115 = arith.addf %1106, %1114 : vector<4x256xf32>
    %c6_845 = arith.constant 6 : index
    %c0_846 = arith.constant 0 : index
    %c0_847 = arith.constant 0 : index
    %1116 = vector.load %arg30[%c6_845, %c0_846, %c0_847] : memref<9x4x4xf32, #tpu.memory_space<vmem>>, vector<1x4x4xf32>
    %1117 = vector.shape_cast %1116 : vector<1x4x4xf32> to vector<4x4xf32>
    %1118 = vector.extract_strided_slice %1073 {offsets = [0, 143], sizes = [4, 256], strides = [1, 1]} : vector<4x512xf32> to vector<4x256xf32>
    %c6_848 = arith.constant 6 : index
    %c0_849 = arith.constant 0 : index
    %c0_850 = arith.constant 0 : index
    %1119 = vector.load %arg2[%c6_848, %c0_849, %c0_850] : memref<14x1x256xf32, #tpu.memory_space<vmem>>, vector<1x1x256xf32>
    %1120 = vector.shape_cast %1119 : vector<1x1x256xf32> to vector<1x256xf32>
    %1121 = vector.broadcast %1120 : vector<1x256xf32> to vector<4x256xf32>
    %1122 = arith.mulf %1118, %1121 : vector<4x256xf32>
    %cst_851 = arith.constant dense<0.000000e+00> : vector<4x256xf32>
    %1123 = tpu.matmul %1117, %1122, %cst_851 {dimension_numbers = #tpu.dot_dimension_numbers<[1], [0], [0], [1], [0, 0, 1, 1], [], []>} : vector<4x4xf32>, vector<4x256xf32>, vector<4x256xf32> -> vector<4x256xf32>
    %1124 = arith.addf %1115, %1123 : vector<4x256xf32>
    %c7_852 = arith.constant 7 : index
    %c0_853 = arith.constant 0 : index
    %c0_854 = arith.constant 0 : index
    %1125 = vector.load %arg30[%c7_852, %c0_853, %c0_854] : memref<9x4x4xf32, #tpu.memory_space<vmem>>, vector<1x4x4xf32>
    %1126 = vector.shape_cast %1125 : vector<1x4x4xf32> to vector<4x4xf32>
    %1127 = vector.extract_strided_slice %1073 {offsets = [0, 144], sizes = [4, 256], strides = [1, 1]} : vector<4x512xf32> to vector<4x256xf32>
    %cst_855 = arith.constant dense<0.000000e+00> : vector<4x256xf32>
    %1128 = tpu.matmul %1126, %1127, %cst_855 {dimension_numbers = #tpu.dot_dimension_numbers<[1], [0], [0], [1], [0, 0, 1, 1], [], []>} : vector<4x4xf32>, vector<4x256xf32>, vector<4x256xf32> -> vector<4x256xf32>
    %1129 = arith.addf %1124, %1128 : vector<4x256xf32>
    %c8_856 = arith.constant 8 : index
    %c0_857 = arith.constant 0 : index
    %c0_858 = arith.constant 0 : index
    %1130 = vector.load %arg30[%c8_856, %c0_857, %c0_858] : memref<9x4x4xf32, #tpu.memory_space<vmem>>, vector<1x4x4xf32>
    %1131 = vector.shape_cast %1130 : vector<1x4x4xf32> to vector<4x4xf32>
    %1132 = vector.extract_strided_slice %1073 {offsets = [0, 145], sizes = [4, 256], strides = [1, 1]} : vector<4x512xf32> to vector<4x256xf32>
    %c7_859 = arith.constant 7 : index
    %c0_860 = arith.constant 0 : index
    %c0_861 = arith.constant 0 : index
    %1133 = vector.load %arg2[%c7_859, %c0_860, %c0_861] : memref<14x1x256xf32, #tpu.memory_space<vmem>>, vector<1x1x256xf32>
    %1134 = vector.shape_cast %1133 : vector<1x1x256xf32> to vector<1x256xf32>
    %1135 = vector.broadcast %1134 : vector<1x256xf32> to vector<4x256xf32>
    %1136 = arith.mulf %1132, %1135 : vector<4x256xf32>
    %cst_862 = arith.constant dense<0.000000e+00> : vector<4x256xf32>
    %1137 = tpu.matmul %1131, %1136, %cst_862 {dimension_numbers = #tpu.dot_dimension_numbers<[1], [0], [0], [1], [0, 0, 1, 1], [], []>} : vector<4x4xf32>, vector<4x256xf32>, vector<4x256xf32> -> vector<4x256xf32>
    %1138 = arith.addf %1129, %1137 : vector<4x256xf32>
    %cst_863 = arith.constant 0.000000e+00 : f32
    %1139 = vector.broadcast %cst_863 : f32 to vector<4x256xf32>
    %1140 = arith.cmpf oge, %1138, %1139 : vector<4x256xf32>
    %cst_864 = arith.constant 1.000000e-01 : f32
    %1141 = vector.broadcast %cst_864 : f32 to vector<4x256xf32>
    %1142 = arith.mulf %1141, %1138 : vector<4x256xf32>
    %1143 = arith.select %1140, %1138, %1142 : vector<4x256xi1>, vector<4x256xf32>
    %c0_865 = arith.constant 0 : index
    %c0_866 = arith.constant 0 : index
    %c0_867 = arith.constant 0 : index
    %1144 = vector.load %arg31[%c0_865, %c0_866, %c0_867] : memref<1x4x4xf32, #tpu.memory_space<vmem>>, vector<1x4x4xf32>
    %1145 = vector.shape_cast %1144 : vector<1x4x4xf32> to vector<4x4xf32>
    %cst_868 = arith.constant dense<0.000000e+00> : vector<4x256xf32>
    %1146 = tpu.matmul %1145, %16, %cst_868 {dimension_numbers = #tpu.dot_dimension_numbers<[1], [0], [0], [1], [0, 0, 1, 1], [], []>} : vector<4x4xf32>, vector<4x256xf32>, vector<4x256xf32> -> vector<4x256xf32>
    %c0_869 = arith.constant 0 : index
    %c0_870 = arith.constant 0 : index
    %1147 = vector.load %arg32[%c0_869, %c0_870] : memref<4x1xf32, #tpu.memory_space<vmem>>, vector<4x1xf32>
    %1148 = vector.broadcast %1147 : vector<4x1xf32> to vector<4x256xf32>
    %1149 = arith.addf %1146, %1148 : vector<4x256xf32>
    %cst_871 = arith.constant 0.000000e+00 : f32
    %1150 = vector.broadcast %cst_871 : f32 to vector<4x256xf32>
    %1151 = arith.subf %1150, %1149 : vector<4x256xf32>
    %1152 = math.exp %1151 : vector<4x256xf32>
    %cst_872 = arith.constant 1.000000e+00 : f32
    %1153 = vector.broadcast %cst_872 : f32 to vector<4x256xf32>
    %1154 = arith.addf %1153, %1152 : vector<4x256xf32>
    %cst_873 = arith.constant 1.000000e+00 : f32
    %1155 = vector.broadcast %cst_873 : f32 to vector<4x256xf32>
    %1156 = arith.divf %1155, %1154 : vector<4x256xf32>
    %c0_874 = arith.constant 0 : index
    %c0_875 = arith.constant 0 : index
    %c0_876 = arith.constant 0 : index
    %1157 = vector.load %arg33[%c0_874, %c0_875, %c0_876] : memref<9x4x4xf32, #tpu.memory_space<vmem>>, vector<1x4x4xf32>
    %1158 = vector.shape_cast %1157 : vector<1x4x4xf32> to vector<4x4xf32>
    %cst_877 = arith.constant 0.000000e+00 : f32
    %1159 = vector.broadcast %cst_877 : f32 to vector<4x128xf32>
    %1160 = tpu.concatenate %1159, %16, %1159 in 1 : vector<4x128xf32>, vector<4x256xf32>, vector<4x128xf32> -> vector<4x512xf32>
    %1161 = vector.extract_strided_slice %1160 {offsets = [0, 111], sizes = [4, 256], strides = [1, 1]} : vector<4x512xf32> to vector<4x256xf32>
    %c6_878 = arith.constant 6 : index
    %c0_879 = arith.constant 0 : index
    %c0_880 = arith.constant 0 : index
    %1162 = vector.load %arg2[%c6_878, %c0_879, %c0_880] : memref<14x1x256xf32, #tpu.memory_space<vmem>>, vector<1x1x256xf32>
    %1163 = vector.shape_cast %1162 : vector<1x1x256xf32> to vector<1x256xf32>
    %1164 = vector.broadcast %1163 : vector<1x256xf32> to vector<4x256xf32>
    %1165 = arith.mulf %1161, %1164 : vector<4x256xf32>
    %cst_881 = arith.constant dense<0.000000e+00> : vector<4x256xf32>
    %1166 = tpu.matmul %1158, %1165, %cst_881 {dimension_numbers = #tpu.dot_dimension_numbers<[1], [0], [0], [1], [0, 0, 1, 1], [], []>} : vector<4x4xf32>, vector<4x256xf32>, vector<4x256xf32> -> vector<4x256xf32>
    %c1_882 = arith.constant 1 : index
    %c0_883 = arith.constant 0 : index
    %c0_884 = arith.constant 0 : index
    %1167 = vector.load %arg33[%c1_882, %c0_883, %c0_884] : memref<9x4x4xf32, #tpu.memory_space<vmem>>, vector<1x4x4xf32>
    %1168 = vector.shape_cast %1167 : vector<1x4x4xf32> to vector<4x4xf32>
    %1169 = vector.extract_strided_slice %1160 {offsets = [0, 112], sizes = [4, 256], strides = [1, 1]} : vector<4x512xf32> to vector<4x256xf32>
    %cst_885 = arith.constant dense<0.000000e+00> : vector<4x256xf32>
    %1170 = tpu.matmul %1168, %1169, %cst_885 {dimension_numbers = #tpu.dot_dimension_numbers<[1], [0], [0], [1], [0, 0, 1, 1], [], []>} : vector<4x4xf32>, vector<4x256xf32>, vector<4x256xf32> -> vector<4x256xf32>
    %1171 = arith.addf %1166, %1170 : vector<4x256xf32>
    %c2_886 = arith.constant 2 : index
    %c0_887 = arith.constant 0 : index
    %c0_888 = arith.constant 0 : index
    %1172 = vector.load %arg33[%c2_886, %c0_887, %c0_888] : memref<9x4x4xf32, #tpu.memory_space<vmem>>, vector<1x4x4xf32>
    %1173 = vector.shape_cast %1172 : vector<1x4x4xf32> to vector<4x4xf32>
    %1174 = vector.extract_strided_slice %1160 {offsets = [0, 113], sizes = [4, 256], strides = [1, 1]} : vector<4x512xf32> to vector<4x256xf32>
    %c7_889 = arith.constant 7 : index
    %c0_890 = arith.constant 0 : index
    %c0_891 = arith.constant 0 : index
    %1175 = vector.load %arg2[%c7_889, %c0_890, %c0_891] : memref<14x1x256xf32, #tpu.memory_space<vmem>>, vector<1x1x256xf32>
    %1176 = vector.shape_cast %1175 : vector<1x1x256xf32> to vector<1x256xf32>
    %1177 = vector.broadcast %1176 : vector<1x256xf32> to vector<4x256xf32>
    %1178 = arith.mulf %1174, %1177 : vector<4x256xf32>
    %cst_892 = arith.constant dense<0.000000e+00> : vector<4x256xf32>
    %1179 = tpu.matmul %1173, %1178, %cst_892 {dimension_numbers = #tpu.dot_dimension_numbers<[1], [0], [0], [1], [0, 0, 1, 1], [], []>} : vector<4x4xf32>, vector<4x256xf32>, vector<4x256xf32> -> vector<4x256xf32>
    %1180 = arith.addf %1171, %1179 : vector<4x256xf32>
    %c3_893 = arith.constant 3 : index
    %c0_894 = arith.constant 0 : index
    %c0_895 = arith.constant 0 : index
    %1181 = vector.load %arg33[%c3_893, %c0_894, %c0_895] : memref<9x4x4xf32, #tpu.memory_space<vmem>>, vector<1x4x4xf32>
    %1182 = vector.shape_cast %1181 : vector<1x4x4xf32> to vector<4x4xf32>
    %1183 = vector.extract_strided_slice %1160 {offsets = [0, 127], sizes = [4, 256], strides = [1, 1]} : vector<4x512xf32> to vector<4x256xf32>
    %c6_896 = arith.constant 6 : index
    %c0_897 = arith.constant 0 : index
    %c0_898 = arith.constant 0 : index
    %1184 = vector.load %arg2[%c6_896, %c0_897, %c0_898] : memref<14x1x256xf32, #tpu.memory_space<vmem>>, vector<1x1x256xf32>
    %1185 = vector.shape_cast %1184 : vector<1x1x256xf32> to vector<1x256xf32>
    %1186 = vector.broadcast %1185 : vector<1x256xf32> to vector<4x256xf32>
    %1187 = arith.mulf %1183, %1186 : vector<4x256xf32>
    %cst_899 = arith.constant dense<0.000000e+00> : vector<4x256xf32>
    %1188 = tpu.matmul %1182, %1187, %cst_899 {dimension_numbers = #tpu.dot_dimension_numbers<[1], [0], [0], [1], [0, 0, 1, 1], [], []>} : vector<4x4xf32>, vector<4x256xf32>, vector<4x256xf32> -> vector<4x256xf32>
    %1189 = arith.addf %1180, %1188 : vector<4x256xf32>
    %c4_900 = arith.constant 4 : index
    %c0_901 = arith.constant 0 : index
    %c0_902 = arith.constant 0 : index
    %1190 = vector.load %arg33[%c4_900, %c0_901, %c0_902] : memref<9x4x4xf32, #tpu.memory_space<vmem>>, vector<1x4x4xf32>
    %1191 = vector.shape_cast %1190 : vector<1x4x4xf32> to vector<4x4xf32>
    %cst_903 = arith.constant dense<0.000000e+00> : vector<4x256xf32>
    %1192 = tpu.matmul %1191, %16, %cst_903 {dimension_numbers = #tpu.dot_dimension_numbers<[1], [0], [0], [1], [0, 0, 1, 1], [], []>} : vector<4x4xf32>, vector<4x256xf32>, vector<4x256xf32> -> vector<4x256xf32>
    %1193 = arith.addf %1189, %1192 : vector<4x256xf32>
    %c5_904 = arith.constant 5 : index
    %c0_905 = arith.constant 0 : index
    %c0_906 = arith.constant 0 : index
    %1194 = vector.load %arg33[%c5_904, %c0_905, %c0_906] : memref<9x4x4xf32, #tpu.memory_space<vmem>>, vector<1x4x4xf32>
    %1195 = vector.shape_cast %1194 : vector<1x4x4xf32> to vector<4x4xf32>
    %1196 = vector.extract_strided_slice %1160 {offsets = [0, 129], sizes = [4, 256], strides = [1, 1]} : vector<4x512xf32> to vector<4x256xf32>
    %c7_907 = arith.constant 7 : index
    %c0_908 = arith.constant 0 : index
    %c0_909 = arith.constant 0 : index
    %1197 = vector.load %arg2[%c7_907, %c0_908, %c0_909] : memref<14x1x256xf32, #tpu.memory_space<vmem>>, vector<1x1x256xf32>
    %1198 = vector.shape_cast %1197 : vector<1x1x256xf32> to vector<1x256xf32>
    %1199 = vector.broadcast %1198 : vector<1x256xf32> to vector<4x256xf32>
    %1200 = arith.mulf %1196, %1199 : vector<4x256xf32>
    %cst_910 = arith.constant dense<0.000000e+00> : vector<4x256xf32>
    %1201 = tpu.matmul %1195, %1200, %cst_910 {dimension_numbers = #tpu.dot_dimension_numbers<[1], [0], [0], [1], [0, 0, 1, 1], [], []>} : vector<4x4xf32>, vector<4x256xf32>, vector<4x256xf32> -> vector<4x256xf32>
    %1202 = arith.addf %1193, %1201 : vector<4x256xf32>
    %c6_911 = arith.constant 6 : index
    %c0_912 = arith.constant 0 : index
    %c0_913 = arith.constant 0 : index
    %1203 = vector.load %arg33[%c6_911, %c0_912, %c0_913] : memref<9x4x4xf32, #tpu.memory_space<vmem>>, vector<1x4x4xf32>
    %1204 = vector.shape_cast %1203 : vector<1x4x4xf32> to vector<4x4xf32>
    %1205 = vector.extract_strided_slice %1160 {offsets = [0, 143], sizes = [4, 256], strides = [1, 1]} : vector<4x512xf32> to vector<4x256xf32>
    %c6_914 = arith.constant 6 : index
    %c0_915 = arith.constant 0 : index
    %c0_916 = arith.constant 0 : index
    %1206 = vector.load %arg2[%c6_914, %c0_915, %c0_916] : memref<14x1x256xf32, #tpu.memory_space<vmem>>, vector<1x1x256xf32>
    %1207 = vector.shape_cast %1206 : vector<1x1x256xf32> to vector<1x256xf32>
    %1208 = vector.broadcast %1207 : vector<1x256xf32> to vector<4x256xf32>
    %1209 = arith.mulf %1205, %1208 : vector<4x256xf32>
    %cst_917 = arith.constant dense<0.000000e+00> : vector<4x256xf32>
    %1210 = tpu.matmul %1204, %1209, %cst_917 {dimension_numbers = #tpu.dot_dimension_numbers<[1], [0], [0], [1], [0, 0, 1, 1], [], []>} : vector<4x4xf32>, vector<4x256xf32>, vector<4x256xf32> -> vector<4x256xf32>
    %1211 = arith.addf %1202, %1210 : vector<4x256xf32>
    %c7_918 = arith.constant 7 : index
    %c0_919 = arith.constant 0 : index
    %c0_920 = arith.constant 0 : index
    %1212 = vector.load %arg33[%c7_918, %c0_919, %c0_920] : memref<9x4x4xf32, #tpu.memory_space<vmem>>, vector<1x4x4xf32>
    %1213 = vector.shape_cast %1212 : vector<1x4x4xf32> to vector<4x4xf32>
    %1214 = vector.extract_strided_slice %1160 {offsets = [0, 144], sizes = [4, 256], strides = [1, 1]} : vector<4x512xf32> to vector<4x256xf32>
    %cst_921 = arith.constant dense<0.000000e+00> : vector<4x256xf32>
    %1215 = tpu.matmul %1213, %1214, %cst_921 {dimension_numbers = #tpu.dot_dimension_numbers<[1], [0], [0], [1], [0, 0, 1, 1], [], []>} : vector<4x4xf32>, vector<4x256xf32>, vector<4x256xf32> -> vector<4x256xf32>
    %1216 = arith.addf %1211, %1215 : vector<4x256xf32>
    %c8_922 = arith.constant 8 : index
    %c0_923 = arith.constant 0 : index
    %c0_924 = arith.constant 0 : index
    %1217 = vector.load %arg33[%c8_922, %c0_923, %c0_924] : memref<9x4x4xf32, #tpu.memory_space<vmem>>, vector<1x4x4xf32>
    %1218 = vector.shape_cast %1217 : vector<1x4x4xf32> to vector<4x4xf32>
    %1219 = vector.extract_strided_slice %1160 {offsets = [0, 145], sizes = [4, 256], strides = [1, 1]} : vector<4x512xf32> to vector<4x256xf32>
    %c7_925 = arith.constant 7 : index
    %c0_926 = arith.constant 0 : index
    %c0_927 = arith.constant 0 : index
    %1220 = vector.load %arg2[%c7_925, %c0_926, %c0_927] : memref<14x1x256xf32, #tpu.memory_space<vmem>>, vector<1x1x256xf32>
    %1221 = vector.shape_cast %1220 : vector<1x1x256xf32> to vector<1x256xf32>
    %1222 = vector.broadcast %1221 : vector<1x256xf32> to vector<4x256xf32>
    %1223 = arith.mulf %1219, %1222 : vector<4x256xf32>
    %cst_928 = arith.constant dense<0.000000e+00> : vector<4x256xf32>
    %1224 = tpu.matmul %1218, %1223, %cst_928 {dimension_numbers = #tpu.dot_dimension_numbers<[1], [0], [0], [1], [0, 0, 1, 1], [], []>} : vector<4x4xf32>, vector<4x256xf32>, vector<4x256xf32> -> vector<4x256xf32>
    %1225 = arith.addf %1216, %1224 : vector<4x256xf32>
    %1226 = arith.mulf %1225, %1156 : vector<4x256xf32>
    %c0_929 = arith.constant 0 : index
    %c0_930 = arith.constant 0 : index
    %c0_931 = arith.constant 0 : index
    %1227 = vector.load %arg34[%c0_929, %c0_930, %c0_931] : memref<9x4x4xf32, #tpu.memory_space<vmem>>, vector<1x4x4xf32>
    %1228 = vector.shape_cast %1227 : vector<1x4x4xf32> to vector<4x4xf32>
    %cst_932 = arith.constant 0.000000e+00 : f32
    %1229 = vector.broadcast %cst_932 : f32 to vector<4x128xf32>
    %1230 = tpu.concatenate %1229, %1226, %1229 in 1 : vector<4x128xf32>, vector<4x256xf32>, vector<4x128xf32> -> vector<4x512xf32>
    %1231 = vector.extract_strided_slice %1230 {offsets = [0, 111], sizes = [4, 256], strides = [1, 1]} : vector<4x512xf32> to vector<4x256xf32>
    %c6_933 = arith.constant 6 : index
    %c0_934 = arith.constant 0 : index
    %c0_935 = arith.constant 0 : index
    %1232 = vector.load %arg2[%c6_933, %c0_934, %c0_935] : memref<14x1x256xf32, #tpu.memory_space<vmem>>, vector<1x1x256xf32>
    %1233 = vector.shape_cast %1232 : vector<1x1x256xf32> to vector<1x256xf32>
    %1234 = vector.broadcast %1233 : vector<1x256xf32> to vector<4x256xf32>
    %1235 = arith.mulf %1231, %1234 : vector<4x256xf32>
    %cst_936 = arith.constant dense<0.000000e+00> : vector<4x256xf32>
    %1236 = tpu.matmul %1228, %1235, %cst_936 {dimension_numbers = #tpu.dot_dimension_numbers<[1], [0], [0], [1], [0, 0, 1, 1], [], []>} : vector<4x4xf32>, vector<4x256xf32>, vector<4x256xf32> -> vector<4x256xf32>
    %c1_937 = arith.constant 1 : index
    %c0_938 = arith.constant 0 : index
    %c0_939 = arith.constant 0 : index
    %1237 = vector.load %arg34[%c1_937, %c0_938, %c0_939] : memref<9x4x4xf32, #tpu.memory_space<vmem>>, vector<1x4x4xf32>
    %1238 = vector.shape_cast %1237 : vector<1x4x4xf32> to vector<4x4xf32>
    %1239 = vector.extract_strided_slice %1230 {offsets = [0, 112], sizes = [4, 256], strides = [1, 1]} : vector<4x512xf32> to vector<4x256xf32>
    %cst_940 = arith.constant dense<0.000000e+00> : vector<4x256xf32>
    %1240 = tpu.matmul %1238, %1239, %cst_940 {dimension_numbers = #tpu.dot_dimension_numbers<[1], [0], [0], [1], [0, 0, 1, 1], [], []>} : vector<4x4xf32>, vector<4x256xf32>, vector<4x256xf32> -> vector<4x256xf32>
    %1241 = arith.addf %1236, %1240 : vector<4x256xf32>
    %c2_941 = arith.constant 2 : index
    %c0_942 = arith.constant 0 : index
    %c0_943 = arith.constant 0 : index
    %1242 = vector.load %arg34[%c2_941, %c0_942, %c0_943] : memref<9x4x4xf32, #tpu.memory_space<vmem>>, vector<1x4x4xf32>
    %1243 = vector.shape_cast %1242 : vector<1x4x4xf32> to vector<4x4xf32>
    %1244 = vector.extract_strided_slice %1230 {offsets = [0, 113], sizes = [4, 256], strides = [1, 1]} : vector<4x512xf32> to vector<4x256xf32>
    %c7_944 = arith.constant 7 : index
    %c0_945 = arith.constant 0 : index
    %c0_946 = arith.constant 0 : index
    %1245 = vector.load %arg2[%c7_944, %c0_945, %c0_946] : memref<14x1x256xf32, #tpu.memory_space<vmem>>, vector<1x1x256xf32>
    %1246 = vector.shape_cast %1245 : vector<1x1x256xf32> to vector<1x256xf32>
    %1247 = vector.broadcast %1246 : vector<1x256xf32> to vector<4x256xf32>
    %1248 = arith.mulf %1244, %1247 : vector<4x256xf32>
    %cst_947 = arith.constant dense<0.000000e+00> : vector<4x256xf32>
    %1249 = tpu.matmul %1243, %1248, %cst_947 {dimension_numbers = #tpu.dot_dimension_numbers<[1], [0], [0], [1], [0, 0, 1, 1], [], []>} : vector<4x4xf32>, vector<4x256xf32>, vector<4x256xf32> -> vector<4x256xf32>
    %1250 = arith.addf %1241, %1249 : vector<4x256xf32>
    %c3_948 = arith.constant 3 : index
    %c0_949 = arith.constant 0 : index
    %c0_950 = arith.constant 0 : index
    %1251 = vector.load %arg34[%c3_948, %c0_949, %c0_950] : memref<9x4x4xf32, #tpu.memory_space<vmem>>, vector<1x4x4xf32>
    %1252 = vector.shape_cast %1251 : vector<1x4x4xf32> to vector<4x4xf32>
    %1253 = vector.extract_strided_slice %1230 {offsets = [0, 127], sizes = [4, 256], strides = [1, 1]} : vector<4x512xf32> to vector<4x256xf32>
    %c6_951 = arith.constant 6 : index
    %c0_952 = arith.constant 0 : index
    %c0_953 = arith.constant 0 : index
    %1254 = vector.load %arg2[%c6_951, %c0_952, %c0_953] : memref<14x1x256xf32, #tpu.memory_space<vmem>>, vector<1x1x256xf32>
    %1255 = vector.shape_cast %1254 : vector<1x1x256xf32> to vector<1x256xf32>
    %1256 = vector.broadcast %1255 : vector<1x256xf32> to vector<4x256xf32>
    %1257 = arith.mulf %1253, %1256 : vector<4x256xf32>
    %cst_954 = arith.constant dense<0.000000e+00> : vector<4x256xf32>
    %1258 = tpu.matmul %1252, %1257, %cst_954 {dimension_numbers = #tpu.dot_dimension_numbers<[1], [0], [0], [1], [0, 0, 1, 1], [], []>} : vector<4x4xf32>, vector<4x256xf32>, vector<4x256xf32> -> vector<4x256xf32>
    %1259 = arith.addf %1250, %1258 : vector<4x256xf32>
    %c4_955 = arith.constant 4 : index
    %c0_956 = arith.constant 0 : index
    %c0_957 = arith.constant 0 : index
    %1260 = vector.load %arg34[%c4_955, %c0_956, %c0_957] : memref<9x4x4xf32, #tpu.memory_space<vmem>>, vector<1x4x4xf32>
    %1261 = vector.shape_cast %1260 : vector<1x4x4xf32> to vector<4x4xf32>
    %cst_958 = arith.constant dense<0.000000e+00> : vector<4x256xf32>
    %1262 = tpu.matmul %1261, %1226, %cst_958 {dimension_numbers = #tpu.dot_dimension_numbers<[1], [0], [0], [1], [0, 0, 1, 1], [], []>} : vector<4x4xf32>, vector<4x256xf32>, vector<4x256xf32> -> vector<4x256xf32>
    %1263 = arith.addf %1259, %1262 : vector<4x256xf32>
    %c5_959 = arith.constant 5 : index
    %c0_960 = arith.constant 0 : index
    %c0_961 = arith.constant 0 : index
    %1264 = vector.load %arg34[%c5_959, %c0_960, %c0_961] : memref<9x4x4xf32, #tpu.memory_space<vmem>>, vector<1x4x4xf32>
    %1265 = vector.shape_cast %1264 : vector<1x4x4xf32> to vector<4x4xf32>
    %1266 = vector.extract_strided_slice %1230 {offsets = [0, 129], sizes = [4, 256], strides = [1, 1]} : vector<4x512xf32> to vector<4x256xf32>
    %c7_962 = arith.constant 7 : index
    %c0_963 = arith.constant 0 : index
    %c0_964 = arith.constant 0 : index
    %1267 = vector.load %arg2[%c7_962, %c0_963, %c0_964] : memref<14x1x256xf32, #tpu.memory_space<vmem>>, vector<1x1x256xf32>
    %1268 = vector.shape_cast %1267 : vector<1x1x256xf32> to vector<1x256xf32>
    %1269 = vector.broadcast %1268 : vector<1x256xf32> to vector<4x256xf32>
    %1270 = arith.mulf %1266, %1269 : vector<4x256xf32>
    %cst_965 = arith.constant dense<0.000000e+00> : vector<4x256xf32>
    %1271 = tpu.matmul %1265, %1270, %cst_965 {dimension_numbers = #tpu.dot_dimension_numbers<[1], [0], [0], [1], [0, 0, 1, 1], [], []>} : vector<4x4xf32>, vector<4x256xf32>, vector<4x256xf32> -> vector<4x256xf32>
    %1272 = arith.addf %1263, %1271 : vector<4x256xf32>
    %c6_966 = arith.constant 6 : index
    %c0_967 = arith.constant 0 : index
    %c0_968 = arith.constant 0 : index
    %1273 = vector.load %arg34[%c6_966, %c0_967, %c0_968] : memref<9x4x4xf32, #tpu.memory_space<vmem>>, vector<1x4x4xf32>
    %1274 = vector.shape_cast %1273 : vector<1x4x4xf32> to vector<4x4xf32>
    %1275 = vector.extract_strided_slice %1230 {offsets = [0, 143], sizes = [4, 256], strides = [1, 1]} : vector<4x512xf32> to vector<4x256xf32>
    %c6_969 = arith.constant 6 : index
    %c0_970 = arith.constant 0 : index
    %c0_971 = arith.constant 0 : index
    %1276 = vector.load %arg2[%c6_969, %c0_970, %c0_971] : memref<14x1x256xf32, #tpu.memory_space<vmem>>, vector<1x1x256xf32>
    %1277 = vector.shape_cast %1276 : vector<1x1x256xf32> to vector<1x256xf32>
    %1278 = vector.broadcast %1277 : vector<1x256xf32> to vector<4x256xf32>
    %1279 = arith.mulf %1275, %1278 : vector<4x256xf32>
    %cst_972 = arith.constant dense<0.000000e+00> : vector<4x256xf32>
    %1280 = tpu.matmul %1274, %1279, %cst_972 {dimension_numbers = #tpu.dot_dimension_numbers<[1], [0], [0], [1], [0, 0, 1, 1], [], []>} : vector<4x4xf32>, vector<4x256xf32>, vector<4x256xf32> -> vector<4x256xf32>
    %1281 = arith.addf %1272, %1280 : vector<4x256xf32>
    %c7_973 = arith.constant 7 : index
    %c0_974 = arith.constant 0 : index
    %c0_975 = arith.constant 0 : index
    %1282 = vector.load %arg34[%c7_973, %c0_974, %c0_975] : memref<9x4x4xf32, #tpu.memory_space<vmem>>, vector<1x4x4xf32>
    %1283 = vector.shape_cast %1282 : vector<1x4x4xf32> to vector<4x4xf32>
    %1284 = vector.extract_strided_slice %1230 {offsets = [0, 144], sizes = [4, 256], strides = [1, 1]} : vector<4x512xf32> to vector<4x256xf32>
    %cst_976 = arith.constant dense<0.000000e+00> : vector<4x256xf32>
    %1285 = tpu.matmul %1283, %1284, %cst_976 {dimension_numbers = #tpu.dot_dimension_numbers<[1], [0], [0], [1], [0, 0, 1, 1], [], []>} : vector<4x4xf32>, vector<4x256xf32>, vector<4x256xf32> -> vector<4x256xf32>
    %1286 = arith.addf %1281, %1285 : vector<4x256xf32>
    %c8_977 = arith.constant 8 : index
    %c0_978 = arith.constant 0 : index
    %c0_979 = arith.constant 0 : index
    %1287 = vector.load %arg34[%c8_977, %c0_978, %c0_979] : memref<9x4x4xf32, #tpu.memory_space<vmem>>, vector<1x4x4xf32>
    %1288 = vector.shape_cast %1287 : vector<1x4x4xf32> to vector<4x4xf32>
    %1289 = vector.extract_strided_slice %1230 {offsets = [0, 145], sizes = [4, 256], strides = [1, 1]} : vector<4x512xf32> to vector<4x256xf32>
    %c7_980 = arith.constant 7 : index
    %c0_981 = arith.constant 0 : index
    %c0_982 = arith.constant 0 : index
    %1290 = vector.load %arg2[%c7_980, %c0_981, %c0_982] : memref<14x1x256xf32, #tpu.memory_space<vmem>>, vector<1x1x256xf32>
    %1291 = vector.shape_cast %1290 : vector<1x1x256xf32> to vector<1x256xf32>
    %1292 = vector.broadcast %1291 : vector<1x256xf32> to vector<4x256xf32>
    %1293 = arith.mulf %1289, %1292 : vector<4x256xf32>
    %cst_983 = arith.constant dense<0.000000e+00> : vector<4x256xf32>
    %1294 = tpu.matmul %1288, %1293, %cst_983 {dimension_numbers = #tpu.dot_dimension_numbers<[1], [0], [0], [1], [0, 0, 1, 1], [], []>} : vector<4x4xf32>, vector<4x256xf32>, vector<4x256xf32> -> vector<4x256xf32>
    %1295 = arith.addf %1286, %1294 : vector<4x256xf32>
    %cst_984 = arith.constant 0.000000e+00 : f32
    %1296 = vector.broadcast %cst_984 : f32 to vector<4x256xf32>
    %1297 = arith.cmpf oge, %1295, %1296 : vector<4x256xf32>
    %cst_985 = arith.constant 1.000000e-01 : f32
    %1298 = vector.broadcast %cst_985 : f32 to vector<4x256xf32>
    %1299 = arith.mulf %1298, %1295 : vector<4x256xf32>
    %1300 = arith.select %1297, %1295, %1299 : vector<4x256xi1>, vector<4x256xf32>
    %c0_986 = arith.constant 0 : index
    %c0_987 = arith.constant 0 : index
    %c0_988 = arith.constant 0 : index
    %1301 = vector.load %arg35[%c0_986, %c0_987, %c0_988] : memref<1x8x8xf32, #tpu.memory_space<vmem>>, vector<1x8x8xf32>
    %1302 = vector.shape_cast %1301 : vector<1x8x8xf32> to vector<8x8xf32>
    %1303 = vector.extract_strided_slice %1302 {offsets = [0, 0], sizes = [8, 4], strides = [1, 1]} : vector<8x8xf32> to vector<8x4xf32>
    %cst_989 = arith.constant dense<0.000000e+00> : vector<8x256xf32>
    %1304 = tpu.matmul %1303, %1143, %cst_989 {dimension_numbers = #tpu.dot_dimension_numbers<[1], [0], [0], [1], [0, 0, 1, 1], [], []>} : vector<8x4xf32>, vector<4x256xf32>, vector<8x256xf32> -> vector<8x256xf32>
    %1305 = vector.extract_strided_slice %1302 {offsets = [0, 4], sizes = [8, 4], strides = [1, 1]} : vector<8x8xf32> to vector<8x4xf32>
    %cst_990 = arith.constant dense<0.000000e+00> : vector<8x256xf32>
    %1306 = tpu.matmul %1305, %1300, %cst_990 {dimension_numbers = #tpu.dot_dimension_numbers<[1], [0], [0], [1], [0, 0, 1, 1], [], []>} : vector<8x4xf32>, vector<4x256xf32>, vector<8x256xf32> -> vector<8x256xf32>
    %1307 = arith.addf %1304, %1306 : vector<8x256xf32>
    %1308 = arith.addf %1307, %0 : vector<8x256xf32>
    %c0_991 = arith.constant 0 : index
    %c0_992 = arith.constant 0 : index
    %1309 = vector.load %arg36[%c0_991, %c0_992] : memref<8x256xf32, #tpu.memory_space<vmem>>, vector<8x256xf32>
    tpu.vector_store %arg36[%c0_991, %c0_992], %1308 {strides = array<i32>} : memref<8x256xf32, #tpu.memory_space<vmem>>, vector<8x256xf32>,
    return
  }
  func.func @transform_0(%arg0: i32) -> (i32, i32) {
    %c0_i32 = arith.constant 0 : i32
    %c0_i32_0 = arith.constant 0 : i32
    return %c0_i32, %arg0 : i32, i32
  }
  func.func @transform_1(%arg0: i32) -> (i32, i32, i32) {
    %c0_i32 = arith.constant 0 : i32
    %c0_i32_0 = arith.constant 0 : i32
    %c0_i32_1 = arith.constant 0 : i32
    %c0_i32_2 = arith.constant 0 : i32
    return %c0_i32, %c0_i32_0, %c0_i32_1 : i32, i32, i32
  }
  func.func @transform_2(%arg0: i32) -> (i32, i32, i32) {
    %c0_i32 = arith.constant 0 : i32
    %c0_i32_0 = arith.constant 0 : i32
    %c0_i32_1 = arith.constant 0 : i32
    %c0_i32_2 = arith.constant 0 : i32
    return %c0_i32, %c0_i32_0, %c0_i32_1 : i32, i32, i32
  }
  func.func @transform_3(%arg0: i32) -> (i32, i32, i32) {
    %c0_i32 = arith.constant 0 : i32
    %c0_i32_0 = arith.constant 0 : i32
    %c0_i32_1 = arith.constant 0 : i32
    %c0_i32_2 = arith.constant 0 : i32
    return %c0_i32, %c0_i32_0, %c0_i32_1 : i32, i32, i32
  }
  func.func @transform_4(%arg0: i32) -> (i32, i32, i32) {
    %c0_i32 = arith.constant 0 : i32
    %c0_i32_0 = arith.constant 0 : i32
    %c0_i32_1 = arith.constant 0 : i32
    %c0_i32_2 = arith.constant 0 : i32
    return %c0_i32, %c0_i32_0, %c0_i32_1 : i32, i32, i32
  }
  func.func @transform_5(%arg0: i32) -> (i32, i32) {
    %c0_i32 = arith.constant 0 : i32
    %c0_i32_0 = arith.constant 0 : i32
    %c0_i32_1 = arith.constant 0 : i32
    return %c0_i32, %c0_i32_0 : i32, i32
  }
  func.func @transform_6(%arg0: i32) -> (i32, i32, i32) {
    %c0_i32 = arith.constant 0 : i32
    %c0_i32_0 = arith.constant 0 : i32
    %c0_i32_1 = arith.constant 0 : i32
    %c0_i32_2 = arith.constant 0 : i32
    return %c0_i32, %c0_i32_0, %c0_i32_1 : i32, i32, i32
  }
  func.func @transform_7(%arg0: i32) -> (i32, i32) {
    %c0_i32 = arith.constant 0 : i32
    %c0_i32_0 = arith.constant 0 : i32
    %c0_i32_1 = arith.constant 0 : i32
    return %c0_i32, %c0_i32_0 : i32, i32
  }
  func.func @transform_8(%arg0: i32) -> (i32, i32, i32) {
    %c0_i32 = arith.constant 0 : i32
    %c0_i32_0 = arith.constant 0 : i32
    %c0_i32_1 = arith.constant 0 : i32
    %c0_i32_2 = arith.constant 0 : i32
    return %c0_i32, %c0_i32_0, %c0_i32_1 : i32, i32, i32
  }
  func.func @transform_9(%arg0: i32) -> (i32, i32) {
    %c0_i32 = arith.constant 0 : i32
    %c0_i32_0 = arith.constant 0 : i32
    %c0_i32_1 = arith.constant 0 : i32
    return %c0_i32, %c0_i32_0 : i32, i32
  }
  func.func @transform_10(%arg0: i32) -> (i32, i32, i32) {
    %c0_i32 = arith.constant 0 : i32
    %c0_i32_0 = arith.constant 0 : i32
    %c0_i32_1 = arith.constant 0 : i32
    %c0_i32_2 = arith.constant 0 : i32
    return %c0_i32, %c0_i32_0, %c0_i32_1 : i32, i32, i32
  }
  func.func @transform_11(%arg0: i32) -> (i32, i32) {
    %c0_i32 = arith.constant 0 : i32
    %c0_i32_0 = arith.constant 0 : i32
    %c0_i32_1 = arith.constant 0 : i32
    return %c0_i32, %c0_i32_0 : i32, i32
  }
  func.func @transform_12(%arg0: i32) -> (i32, i32, i32) {
    %c0_i32 = arith.constant 0 : i32
    %c0_i32_0 = arith.constant 0 : i32
    %c0_i32_1 = arith.constant 0 : i32
    %c0_i32_2 = arith.constant 0 : i32
    return %c0_i32, %c0_i32_0, %c0_i32_1 : i32, i32, i32
  }
  func.func @transform_13(%arg0: i32) -> (i32, i32) {
    %c0_i32 = arith.constant 0 : i32
    %c0_i32_0 = arith.constant 0 : i32
    %c0_i32_1 = arith.constant 0 : i32
    return %c0_i32, %c0_i32_0 : i32, i32
  }
  func.func @transform_14(%arg0: i32) -> (i32, i32, i32) {
    %c0_i32 = arith.constant 0 : i32
    %c0_i32_0 = arith.constant 0 : i32
    %c0_i32_1 = arith.constant 0 : i32
    %c0_i32_2 = arith.constant 0 : i32
    return %c0_i32, %c0_i32_0, %c0_i32_1 : i32, i32, i32
  }
  func.func @transform_15(%arg0: i32) -> (i32, i32) {
    %c0_i32 = arith.constant 0 : i32
    %c0_i32_0 = arith.constant 0 : i32
    %c0_i32_1 = arith.constant 0 : i32
    return %c0_i32, %c0_i32_0 : i32, i32
  }
  func.func @transform_16(%arg0: i32) -> (i32, i32, i32) {
    %c0_i32 = arith.constant 0 : i32
    %c0_i32_0 = arith.constant 0 : i32
    %c0_i32_1 = arith.constant 0 : i32
    %c0_i32_2 = arith.constant 0 : i32
    return %c0_i32, %c0_i32_0, %c0_i32_1 : i32, i32, i32
  }
  func.func @transform_17(%arg0: i32) -> (i32, i32) {
    %c0_i32 = arith.constant 0 : i32
    %c0_i32_0 = arith.constant 0 : i32
    %c0_i32_1 = arith.constant 0 : i32
    return %c0_i32, %c0_i32_0 : i32, i32
  }
  func.func @transform_18(%arg0: i32) -> (i32, i32, i32) {
    %c0_i32 = arith.constant 0 : i32
    %c0_i32_0 = arith.constant 0 : i32
    %c0_i32_1 = arith.constant 0 : i32
    %c0_i32_2 = arith.constant 0 : i32
    return %c0_i32, %c0_i32_0, %c0_i32_1 : i32, i32, i32
  }
  func.func @transform_19(%arg0: i32) -> (i32, i32) {
    %c0_i32 = arith.constant 0 : i32
    %c0_i32_0 = arith.constant 0 : i32
    %c0_i32_1 = arith.constant 0 : i32
    return %c0_i32, %c0_i32_0 : i32, i32
  }
  func.func @transform_20(%arg0: i32) -> (i32, i32, i32) {
    %c0_i32 = arith.constant 0 : i32
    %c0_i32_0 = arith.constant 0 : i32
    %c0_i32_1 = arith.constant 0 : i32
    %c0_i32_2 = arith.constant 0 : i32
    return %c0_i32, %c0_i32_0, %c0_i32_1 : i32, i32, i32
  }
  func.func @transform_21(%arg0: i32) -> (i32, i32) {
    %c0_i32 = arith.constant 0 : i32
    %c0_i32_0 = arith.constant 0 : i32
    %c0_i32_1 = arith.constant 0 : i32
    return %c0_i32, %c0_i32_0 : i32, i32
  }
  func.func @transform_22(%arg0: i32) -> (i32, i32, i32) {
    %c0_i32 = arith.constant 0 : i32
    %c0_i32_0 = arith.constant 0 : i32
    %c0_i32_1 = arith.constant 0 : i32
    %c0_i32_2 = arith.constant 0 : i32
    return %c0_i32, %c0_i32_0, %c0_i32_1 : i32, i32, i32
  }
  func.func @transform_23(%arg0: i32) -> (i32, i32) {
    %c0_i32 = arith.constant 0 : i32
    %c0_i32_0 = arith.constant 0 : i32
    %c0_i32_1 = arith.constant 0 : i32
    return %c0_i32, %c0_i32_0 : i32, i32
  }
  func.func @transform_24(%arg0: i32) -> (i32, i32, i32) {
    %c0_i32 = arith.constant 0 : i32
    %c0_i32_0 = arith.constant 0 : i32
    %c0_i32_1 = arith.constant 0 : i32
    %c0_i32_2 = arith.constant 0 : i32
    return %c0_i32, %c0_i32_0, %c0_i32_1 : i32, i32, i32
  }
  func.func @transform_25(%arg0: i32) -> (i32, i32) {
    %c0_i32 = arith.constant 0 : i32
    %c0_i32_0 = arith.constant 0 : i32
    %c0_i32_1 = arith.constant 0 : i32
    return %c0_i32, %c0_i32_0 : i32, i32
  }
  func.func @transform_26(%arg0: i32) -> (i32, i32, i32) {
    %c0_i32 = arith.constant 0 : i32
    %c0_i32_0 = arith.constant 0 : i32
    %c0_i32_1 = arith.constant 0 : i32
    %c0_i32_2 = arith.constant 0 : i32
    return %c0_i32, %c0_i32_0, %c0_i32_1 : i32, i32, i32
  }
  func.func @transform_27(%arg0: i32) -> (i32, i32) {
    %c0_i32 = arith.constant 0 : i32
    %c0_i32_0 = arith.constant 0 : i32
    %c0_i32_1 = arith.constant 0 : i32
    return %c0_i32, %c0_i32_0 : i32, i32
  }
  func.func @transform_28(%arg0: i32) -> (i32, i32, i32) {
    %c0_i32 = arith.constant 0 : i32
    %c0_i32_0 = arith.constant 0 : i32
    %c0_i32_1 = arith.constant 0 : i32
    %c0_i32_2 = arith.constant 0 : i32
    return %c0_i32, %c0_i32_0, %c0_i32_1 : i32, i32, i32
  }
  func.func @transform_29(%arg0: i32) -> (i32, i32, i32) {
    %c0_i32 = arith.constant 0 : i32
    %c0_i32_0 = arith.constant 0 : i32
    %c0_i32_1 = arith.constant 0 : i32
    %c0_i32_2 = arith.constant 0 : i32
    return %c0_i32, %c0_i32_0, %c0_i32_1 : i32, i32, i32
  }
  func.func @transform_30(%arg0: i32) -> (i32, i32, i32) {
    %c0_i32 = arith.constant 0 : i32
    %c0_i32_0 = arith.constant 0 : i32
    %c0_i32_1 = arith.constant 0 : i32
    %c0_i32_2 = arith.constant 0 : i32
    return %c0_i32, %c0_i32_0, %c0_i32_1 : i32, i32, i32
  }
  func.func @transform_31(%arg0: i32) -> (i32, i32) {
    %c0_i32 = arith.constant 0 : i32
    %c0_i32_0 = arith.constant 0 : i32
    %c0_i32_1 = arith.constant 0 : i32
    return %c0_i32, %c0_i32_0 : i32, i32
  }
  func.func @transform_32(%arg0: i32) -> (i32, i32, i32) {
    %c0_i32 = arith.constant 0 : i32
    %c0_i32_0 = arith.constant 0 : i32
    %c0_i32_1 = arith.constant 0 : i32
    %c0_i32_2 = arith.constant 0 : i32
    return %c0_i32, %c0_i32_0, %c0_i32_1 : i32, i32, i32
  }
  func.func @transform_33(%arg0: i32) -> (i32, i32, i32) {
    %c0_i32 = arith.constant 0 : i32
    %c0_i32_0 = arith.constant 0 : i32
    %c0_i32_1 = arith.constant 0 : i32
    %c0_i32_2 = arith.constant 0 : i32
    return %c0_i32, %c0_i32_0, %c0_i32_1 : i32, i32, i32
  }
  func.func @transform_34(%arg0: i32) -> (i32, i32, i32) {
    %c0_i32 = arith.constant 0 : i32
    %c0_i32_0 = arith.constant 0 : i32
    %c0_i32_1 = arith.constant 0 : i32
    %c0_i32_2 = arith.constant 0 : i32
    return %c0_i32, %c0_i32_0, %c0_i32_1 : i32, i32, i32
  }
  func.func @transform_35(%arg0: i32) -> (i32, i32) {
    %c0_i32 = arith.constant 0 : i32
    %c0_i32_0 = arith.constant 0 : i32
    return %c0_i32, %arg0 : i32, i32
  }
}

</mosaic_0001>

<bundles_post_ra>
// kernel: run.1
= control target key start
LH: loop header
LB: loop body
LE: loop exit
PB: predicated region body
PF: predicated region fallthrough
CT: control target
= control target key end

     0   :  { %s19030_s6 = smov 1   ;;  %s19031_s10 = smov 2   ;;  %s22459_s0 = inlined_call_operand.smem [shape: u32[36], index: -1, kind: input, shape index: {}] }
   0x1   :  { %s19100_s5 = sld [smem:[%s22459_s0]]   ;;  %s19032_s14 = smov 3  }
   0x2   :  { %s19105_s9 = sld [smem:[%s22459_s0 + %s19030_s6]]   ;;  %s19033_s18 = smov 4  }
   0x3   :  { %s19110_s13 = sld [smem:[%s22459_s0 + %s19031_s10]]   ;;  %s19034_s22 = smov 5  }
   0x4   :  { %s19115_s17 = sld [smem:[%s22459_s0 + %s19032_s14]]   ;;  %s19035_s26 = smov 6  }
   0x5   :  { %s19120_s21 = sld [smem:[%s22459_s0 + %s19033_s18]]   ;;  %s19036_s30 = smov 7  }
   0x6   :  { %s19125_s25 = sld [smem:[%s22459_s0 + %s19034_s22]]   ;;  %s19037_s4 = smov 8  }
   0x7   :  { %22636 = sst [smem:[#allocation2_spill]] %s19100_s5  ;;  %s19038_s10 = smov 9  }
   0x8   :  { %22637 = sst [smem:[#allocation3_spill]] %s19105_s9  ;;  %s19039_s15 = smov 10  }
   0x9   :  { %s19130_s29 = sld [smem:[%s22459_s0 + %s19035_s26]]   ;;  %s19040_s20 = smov 11  }
   0xa   :  { %s19135_s3 = sld [smem:[%s22459_s0 + %s19036_s30]]   ;;  %s19041_s26 = smov 12  }
   0xb   :  { %s19140_s8 = sld [smem:[%s22459_s0 + %s19037_s4]]   ;;  %s19042_s1 = smov 13  }
   0xc   :  { %s19145_s14 = sld [smem:[%s22459_s0 + %s19038_s10]]   ;;  %s19043_s7 = smov 14  }
   0xd   :  { %s19150_s19 = sld [smem:[%s22459_s0 + %s19039_s15]]   ;;  %s19044_s15 = smov 15  }
   0xe   :  { %s19155_s24 = sld [smem:[%s22459_s0 + %s19040_s20]]   ;;  %s19045_s22 = smov 16  }
   0xf   :  { %22638 = sst [smem:[#allocation4_spill]] %s19130_s29  ;;  %s19046_s28 = smov 17  }
  0x10   :  { %22639 = sst [smem:[#allocation5_spill]] %s19135_s3 }
  0x11   :  { %22640 = sst [smem:[#allocation6_spill]] %s19140_s8 }
  0x12   :  { %s19160_s30 = sld [smem:[%s22459_s0 + %s19041_s26]]  }
  0x13   :  { %22641 = sst [smem:[#allocation7_spill]] %s19150_s19 }
  0x14   :  { %22642 = sst [smem:[#allocation8_spill]] %s19155_s24 }
  0x15   :  { %s19165_s6 = sld [smem:[%s22459_s0 + %s19042_s1]]  }
  0x16   :  { %s19170_s12 = sld [smem:[%s22459_s0 + %s19043_s7]]   ;;  %s19047_s7 = smov 18  }
  0x17   :  { %s19175_s20 = sld [smem:[%s22459_s0 + %s19044_s15]]   ;;  %s19048_s15 = smov 19  }
  0x18   :  { %s19180_s27 = sld [smem:[%s22459_s0 + %s19045_s22]]   ;;  %s19049_s22 = smov 20  }
  0x19   :  { %s19185_s4 = sld [smem:[%s22459_s0 + %s19046_s28]]   ;;  %s19050_s28 = smov 21  }
  0x1a   :  { %s19190_s24 = sld [smem:[%s22459_s0 + %s19047_s7]]   ;;  %s19051_s7 = smov 22  }
  0x1b   :  { %22643 = sst [smem:[#allocation9_spill]] %s19165_s6 }
  0x1c   :  { %22644 = sst [smem:[#allocation10_spill]] %s19170_s12 }
  0x1d   :  { %22645 = sst [smem:[#allocation11_spill]] %s19175_s20 }
  0x1e   :  { %s19195_s3 = sld [smem:[%s22459_s0 + %s19048_s15]]   ;;  %s19052_s15 = smov 23  }
  0x1f   :  { %22646 = sst [smem:[#allocation12_spill]] %s19185_s4 }
  0x20   :  { %22647 = sst [smem:[#allocation13_spill]] %s19190_s24 }
  0x21   :  { %s19200_s12 = sld [smem:[%s22459_s0 + %s19049_s22]]   ;;  %s19053_s22 = smov 24  }
  0x22   :  { %s19205_s20 = sld [smem:[%s22459_s0 + %s19050_s28]]   ;;  %s19054_s28 = smov 25  }
  0x23   :  { %s19210_s24 = sld [smem:[%s22459_s0 + %s19051_s7]]   ;;  %s19055_s7 = smov 26  }
  0x24   :  { %22648 = sst [smem:[#allocation14_spill]] %s19195_s3 }
  0x25   :  { %s19215_s3 = sld [smem:[%s22459_s0 + %s19052_s15]]   ;;  %s19056_s15 = smov 27  }
  0x26   :  { %s19220_s19 = sld [smem:[%s22459_s0 + %s19053_s22]]   ;;  %s19057_s22 = smov 28  }
  0x27   :  { %s19225_s29 = sld [smem:[%s22459_s0 + %s19054_s28]]   ;;  %s19058_s28 = smov 29  }
  0x29   :  { %22649 = sst [smem:[#allocation15_spill]] %s19210_s24 }
  0x2a   :  { %s19230_s24 = sld [smem:[%s22459_s0 + %s19055_s7]]   ;;  %s19059_s7 = smov 30  }
  0x2b   :  { %22650 = sst [smem:[#allocation16_spill]] %s19215_s3 }
  0x2c   :  { %22651 = sst [smem:[#allocation17_spill]] %s19220_s19 }
  0x2d   :  { %22652 = sst [smem:[#allocation18_spill]] %s19225_s29 }
  0x2e   :  { %s19235_s3 = sld [smem:[%s22459_s0 + %s19056_s15]]   ;;  %s19060_s15 = smov 31  }
  0x2f   :  { %s19240_s19 = sld [smem:[%s22459_s0 + %s19057_s22]]   ;;  %s19061_s22 = smov 32  }
  0x30   :  { %22653 = sst [smem:[#allocation19_spill]] %s19230_s24 }
  0x31   :  { %s19245_s29 = sld [smem:[%s22459_s0 + %s19058_s28]]   ;;  %s19062_s28 = smov 33  }
  0x32   :  { %s19250_s24 = sld [smem:[%s22459_s0 + %s19059_s7]]   ;;  %s19063_s7 = smov 34  }
  0x34   :  { %22654 = sst [smem:[#allocation20_spill]] %s19235_s3 }
  0x35   :  { %22655 = sst [smem:[#allocation21_spill]] %s19240_s19 }
  0x36   :  { %s19255_s3 = sld [smem:[%s22459_s0 + %s19060_s15]]   ;;  %s19064_s15 = smov 35  }
  0x37   :  { %22656 = sst [smem:[#allocation22_spill]] %s19245_s29 }
  0x38   :  { %22657 = sst [smem:[#allocation23_spill]] %s19250_s24 }
  0x39   :  { %s19260_s19 = sld [smem:[%s22459_s0 + %s19061_s22]]   ;;  %s19277_s22 = smov 0  }
  0x3a   :  { %s19265_s29 = sld [smem:[%s22459_s0 + %s19062_s28]]  }
  0x3b   :  { %s19270_s24 = sld [smem:[%s22459_s0 + %s19063_s7]]  }
  0x3c   :  { %22658 = sst [smem:[#allocation24_spill]] %s19255_s3 }
  0x3d   :  { %s19275_s3 = sld [smem:[%s22459_s0 + %s19064_s15]]  }
  0x3e LB: > { %s22659_s9 = sld [smem:[#allocation3_spill]]  ;;  %s18189_s23 = sadd.s32 4294967295, %s19028_s22   ;;  %s19028_s22 = sphi %s19277_s22, %s81_s22  }
  0x3f   : > { %s22660_s8 = sld [smem:[#allocation6_spill]]  ;;  %p18193_p0 = scmp.ge.s32.totalorder %s19028_s22, 1 }
  0x40   : > { %p974_p1 = scmp.lt.s32.totalorder %s19028_s22, 3 }
  0x42   : > { %p975_p2 = pnand %p18193_p0, %p974_p1 }
  0x44   : > { %978 = sbr.rel (%p975_p2) target bundleno = 2604 (0xa2c), region = 160 }
  0x49   : > { %s18194_s26 = sshll.u32 %s18189_s23, 1  ;;  %v3947_v0 = vlaneseq  ;;  %s22661_s5 = sld [smem:[#allocation2_spill]]  ;;  %v22502_v1 = vmov 0.0   ;;  %v18331_v3 = vld [vmem:[%s22659_s9 + $0xa] sm:$0x3]  ;;  %vm1077_vm0 = vcmask 64512  }
  0x4a   : > { %p1063_p3 = scmp.lt.s32.totalorder %s18194_s26, 3  ;;  %1145 = vmatprep.mubr.f32.mxu0 %v22502_v1  ;;  %s22474_s0 = smov 16   ;;  %1226 = vmatprep.mubr.f32.mxu1 %v22502_v1  ;;  %v18329_v6 = vld [vmem:[%s22659_s9 + $0x8] sm:$0x3]  ;;  %v1076_v11 = vld [vmem:[%s19110_s13] sm:$0xf] }
  0x4b   : > { %1423 = vrot.lane.b32.xlu0 %v22502_v1, %s22474_s0  ;;  %s22484_s28 = smov 32   ;;  %v3948_v2 = vshrl.u32 %v3947_v0, 7  ;;  %s22480_s7 = smov 48   ;;  %v1158_v13 = vld [vmem:[%s19115_s17] sm:$0xf]  ;;  %vm3984_vm3 = vcmask 1031168  }
  0x4c   : > { %1245 = vrot.lane.b32.xlu1 %v22502_v1, %s22484_s28  ;;  %s22954_s26 = smov (!%p1063_p3, %s18194_s26), 3  ;;  %s22472_s10 = smov 126   ;;  %v18339_v15 = vld [vmem:[%s22659_s9 + $0xc] sm:$0x3]  ;;  %v18348_v18 = vld [vmem:[%s22659_s9 + $0xe] sm:$0x3] }
  0x4d   : > { %v19294_v4 = vsub.s32 1, %v3948_v2  ;;  %v19296_v5 = vsub.s32 0, %v3948_v2  ;;  %s22469_s1 = sshll.u32 %s22954_s26, 3  ;;  %s22470_s11 = smov 125   ;;  %v18353_v24 = vld [vmem:[%s22659_s9 + $0x10] sm:$0x3] }
  0x4e   : > { %s22486_s15 = smov 112   ;;  %s22494_s16 = smov 127   ;;  %v18358_v31 = vld [vmem:[%s22659_s9 + $0x12] sm:$0x3]  ;;  %v18364_v35 = vld [vmem:[%s22659_s9 + $0x6] sm:$0x3] }
  0x4f   : > { %s19303_s2 = scalar_lea.vmem %s22661_s5, %s22469_s1  ;;  %v3979_v7 = vrot.slane %v18331_v3, %v19294_v4  ;;  %v3975_v8 = vrot.slane %v18331_v3, %v19296_v5  ;;  %v3954_v12 = vrot.slane %v18329_v6, %v19294_v4  ;;  %v3950_v14 = vrot.slane %v18329_v6, %v19296_v5  ;;  %s22482_s18 = smov 96   ;;  %v18362_v40 = vld [vmem:[%s22659_s9 + $0x4] sm:$0x3]  ;;  %v18400_v44 = vld [vmem:[%s22659_s9 + $0x14] sm:$0x3] }
  0x50   : > { %1334 = vrot.lane.b32.xlu1 %v22502_v1, %s22480_s7  ;;  %v1075_v9 = vld [vmem:[%s19303_s2 + $0x8] sm:$0xff]  ;;  %v1074_v10 = vld [vmem:[%s19303_s2] sm:$0xff]  ;;  %v19325_v16 = vrot.slane %v18339_v15, %v19294_v4  ;;  %v19330_v17 = vrot.slane %v18339_v15, %v19296_v5  ;;  %v19340_v19 = vrot.slane %v18348_v18, %v19294_v4  ;;  %s22478_s23 = smov 80   ;;  %v19345_v20 = vrot.slane %v18348_v18, %v19296_v5  ;;  %s22492_s1 = smov 1   ;;  %v18405_v48 = vld [vmem:[%s22659_s9 + $0x16] sm:$0x3] }
  0x51   : > { %1111 = vmatprep.subr.mxu0 %v1075_v9  ;;  %3982 = vrot.lane.b32.xlu0 %v3979_v7, %s22472_s10  ;;  %v4490_v26 = vrot.slane %v18353_v24, %v19296_v5  ;;  %v4605_v33 = vrot.slane %v18358_v31, %v19296_v5  ;;  %v4494_v34 = vrot.slane %v18353_v24, %v19294_v4  ;;  %v19441_v61 = vld [vmem:[%s22659_s9 + $0x2] sm:$0x3]  ;;  %vm4189_vm4 = vcmask 1039360   ;;  %s22712_s6 = sld [smem:[#allocation9_spill]]  ;;  %s22751_s5 = smov 32  }
  0x52   : > { %1112 = vmatpush1.msra.mxu0 %v1074_v10  ;;  %1192 = vmatprep.subr.mxu1 %v1075_v9  ;;  %22662 = vst [vmem:[#allocation25_spill] sm:$0xff] %v19325_v16  ;;  %22663 = vst [vmem:[#allocation26_spill] sm:$0xff] %v19330_v17  ;;  %v4752_v37 = vrot.slane %v18364_v35, %v19296_v5  ;;  %v4609_v38 = vrot.slane %v18358_v31, %v19294_v4  ;;  %vm1251_vm5 = vcmask 261120   ;;  %vm22608_vm6 = vcmask 1043456   ;;  %s22713_s4 = sld [smem:[#allocation12_spill]] }
  0x53   : > { %18198 = vmatmul.mubr.msk.f32.vlgmr.msra.gmra.mxu0 %vm1077_vm0, %v1076_v11  ;;  %1193 = vmatpush1.msra.mxu1 %v1074_v10  ;;  %22664 = vst [vmem:[#allocation27_spill] sm:$0xff] %v19340_v19  ;;  %22665 = vst [vmem:[#allocation28_spill] sm:$0xff] %v19345_v20  ;;  %v4727_v41 = vrot.slane %v18362_v40, %v19296_v5  ;;  %v4756_v42 = vrot.slane %v18364_v35, %v19294_v4  ;;  %vm22514_vm7 = vcmask 130048   ;;  %vm1254_vm8 = vcmask 31744  }
  0x54   : > { %3980 = vrot.lane.b32.xlu1 %v3975_v8, %s22472_s10  ;;  %1327 = vmatprep.mubr.f32.mxu0 %v22502_v1  ;;  %s22476_s10 = smov 64   ;;  %v5502_v46 = vrot.slane %v18400_v44, %v19296_v5  ;;  %v4731_v47 = vrot.slane %v18362_v40, %v19294_v4  ;;  %v5617_v50 = vrot.slane %v18405_v48, %v19296_v5  ;;  %vm1340_vm9 = vcmask 392192   ;;  %v18207_v40 = vld [vmem:[%s19120_s21 + $0x4] sm:$0x3] }
  0x55   : > { %3957 = vrot.lane.b32.xlu0 %v3954_v12, %s22470_s11  ;;  %18199 = vmatmul.mubr.msk.f32.vlgmr.msra.gmra.mxu1 %vm1077_vm0, %v1158_v13  ;;  %v5506_v51 = vrot.slane %v18400_v44, %v19294_v4  ;;  %v5621_v54 = vrot.slane %v18405_v48, %v19294_v4  ;;  %v5767_v62 = vrot.slane %v19441_v61, %v19294_v4  ;;  %vm22501_vm10 = vcmask 916480   ;;  %v18211_v48 = vld [vmem:[%s19120_s21 + $0x6] sm:$0x3] }
  0x56   : > { %1414 = vmatprep.mubr.f32.mxu1 %v22502_v1  ;;  %vm22499_vm11 = vcmask 654336   ;;  %vm22500_vm12 = vcmask 785408   ;;  %vm22496_vm13 = vcmask 523264   ;;  %vm3959_vm14 = vcmask 1022976  }
  0x57   : > { %vm4001_vm15 = vcmask 15360   ;;  %vm4761_vm0 = vcmask 1014784  }
  0x58   : > { %3955 = vrot.lane.b32.xlu1 %v3950_v14, %s22470_s11  ;;  %s22497_s11 = smov 2  }
  0x59   : > { %1600 = vrot.lane.b32.xlu0 %v22502_v1, %s22486_s15 }
  0x5c   : > { %4187 = vrot.lane.b32.xlu1 %v19325_v16, %s22494_s16 }
  0x5d   : > { %4185 = vrot.lane.b32.xlu0 %v19330_v17, %s22494_s16 }
  0x60   : > { %1691 = vrot.lane.b32.xlu1 %v22502_v1, %s22482_s18 }
  0x61   : > { %1782 = vrot.lane.b32.xlu0 %v22502_v1, %s22478_s23 }
  0x64   : > { %4382 = vrot.lane.b32.xlu1 %v19340_v19, %s22492_s1 }
  0x65   : > { %4380 = vrot.lane.b32.xlu0 %v19345_v20, %s22492_s1 }
  0xbd   : > { %v19389_v32 = vpop.permute.xlu0 %1423 }
  0xbe   : > { %v19376_v29 = vpop.permute.xlu1 %1245  ;;  %22668 = vst [vmem:[#allocation31_spill] sm:$0xff] %v19389_v32 }
  0xbf   : > { %22666 = vst [vmem:[#allocation29_spill] sm:$0xff] %v19376_v29 }
  0xc2   : > { %v19386_v30 = vpop.permute.xlu1 %1334 }
  0xc3   : > { %22667 = vst [vmem:[#allocation30_spill] sm:$0xff] %v19386_v30  ;;  %v19402_v39 = vpop.permute.xlu0 %3982 }
  0xc6   : > { %v3981_v36 = vpop.permute.xlu1 %3980 }
  0xc7   : > { %v19412_v45 = vpop.permute.xlu0 %3957  ;;  %v3989_v53 = vmul.f32 0.0, %v3981_v36  ;;  %v19448_v63 = vsel %vm3984_vm3, %v3981_v36, %v19402_v39 }
  0xca   : > { %v19409_v43 = vpop.permute.xlu1 %3955 }
  0xcb   : > { %v19425_v52 = vpop.permute.xlu0 %1600  ;;  %v3964_v57 = vmul.f32 0.0, %v19409_v43 }
  0xcc   : > { %22670 = vst [vmem:[#allocation33_spill] sm:$0xff] %v19425_v52 }
  0xce   : > { %v19419_v49 = vpop.permute.xlu1 %4187 }
  0xcf   : > { %22669 = vst [vmem:[#allocation32_spill] sm:$0xff] %v19419_v49  ;;  %v4186_v56 = vpop.permute.xlu0 %4185 }
  0xd0   : > { %v4194_v58 = vmul.f32 0.0, %v4186_v56  ;;  %v19455_v2 = vsel %vm4189_vm4, %v4186_v56, %v19419_v49 }
  0xd1   : > { %22672 = vst [vmem:[#allocation35_spill] sm:$0xff] %v19455_v2 }
  0xd2   : > { %v19430_v55 = vpop.permute.xlu1 %1691 }
  0xd3   : > { %22671 = vst [vmem:[#allocation34_spill] sm:$0xff] %v19430_v55  ;;  %v19461_v6 = vpop.permute.xlu0 %1782 }
  0xd4   : > { %22673 = vst [vmem:[#allocation36_spill] sm:$0xff] %v19461_v6 }
  0xd6   : > { %v19435_v59 = vpop.permute.xlu1 %4382 }
  0xd7   : > { %v4390_v60 = vmul.f32 0.0, %v19435_v59  ;;  %v19463_v7 = vpop.permute.xlu0 %4380 }
  0xd8   : > { %22674 = vst [vmem:[#allocation37_spill] sm:$0xff] %v19463_v7 }
 0x113   : > { %v1147_v21 = vpop.f32.mrf.mxu0 }
 0x114   : > { %vm1152_vm1 = vcmp.ge.f32.partialorder %v1147_v21, 0.0  ;;  %v1154_v22 = vmul.f32 0.1, %v1147_v21 }
 0x115   : > { %v1149_v25 = vpop.f32.mrf.mxu0 }
 0x116   : > { %v19351_v23 = vsel %vm1152_vm1, %v1147_v21, %v1154_v22  ;;  %v1155_v27 = vmul.f32 0.1, %v1149_v25  ;;  %vm1153_vm2 = vcmp.ge.f32.partialorder %v1149_v25, 0.0  ;;  %vm4206_vm1 = vcmask 7168  }
 0x117   : > { %1336 = vrot.lane.b32.xlu1 %v19351_v23, %s22480_s7  ;;  %1247 = vrot.lane.b32.xlu0 %v19351_v23, %s22484_s28  ;;  %v3990_v0 = vmul.f32 %v19448_v63, %v19351_v23  ;;  %v4195_v3 = vmul.f32 %v19455_v2, %v19351_v23 }
 0x118   : > { %v19370_v28 = vsel %vm1153_vm2, %v1149_v25, %v1155_v27  ;;  %vm4091_vm2 = vcmask 23552  }
 0x119   : > { %v3966_v25 = vmul.f32 %v19412_v45, %v19370_v28 }
 0x11b   : > { %1596 = vrot.lane.b32.xlu1 %v19351_v23, %s22486_s15  ;;  %1425 = vrot.lane.b32.xlu0 %v19351_v23, %s22474_s0 }
 0x11f   : > { %1778 = vrot.lane.b32.xlu1 %v19351_v23, %s22478_s23  ;;  %1687 = vrot.lane.b32.xlu0 %v19351_v23, %s22482_s18 }
 0x123   : > { %4495 = vrot.lane.b32.xlu1 %v4490_v26, %s22497_s11  ;;  %1880 = vrot.lane.b32.xlu0 %v19351_v23, %s22476_s10  ;;  %v18200_v26 = vld [vmem:[%s19120_s21 + $0x2] sm:$0x3] }
 0x127   : > { %1427 = vrot.lane.b32.xlu1 %v19370_v28, %s22474_s0  ;;  %1249 = vrot.lane.b32.xlu0 %v19370_v28, %s22484_s28  ;;  %s22490_s0 = smov 3   ;;  %s22534_s28 = smov 122  }
 0x12b   : > { %1598 = vrot.lane.b32.xlu1 %v19370_v28, %s22486_s15  ;;  %1338 = vrot.lane.b32.xlu0 %v19370_v28, %s22480_s7  ;;  %s22602_s7 = smov 4   ;;  %s22676_s15 = smov 126  }
 0x12f   : > { %1780 = vrot.lane.b32.xlu1 %v19370_v28, %s22478_s23  ;;  %1878 = vrot.lane.b32.xlu0 %v22502_v1, %s22476_s10  ;;  %s22488_s23 = smov 123  }
 0x133   : > { %1882 = vrot.lane.b32.xlu1 %v19370_v28, %s22476_s10  ;;  %1689 = vrot.lane.b32.xlu0 %v19370_v28, %s22482_s18  ;;  %s22600_s10 = smov 124   ;;  %s22604_s18 = smov 5  }
 0x137   : > { %4610 = vrot.lane.b32.xlu1 %v4605_v33, %s22490_s0  ;;  %4497 = vrot.lane.b32.xlu0 %v4494_v34, %s22497_s11 }
 0x13b   : > { %4757 = vrot.lane.b32.xlu1 %v4752_v37, %s22600_s10  ;;  %4612 = vrot.lane.b32.xlu0 %v4609_v38, %s22490_s0  ;;  %v1239_v38 = vld [vmem:[%s19120_s21] sm:$0x3] }
 0x13f   : > { %4732 = vrot.lane.b32.xlu1 %v4727_v41, %s22488_s23  ;;  %4759 = vrot.lane.b32.xlu0 %v4756_v42, %s22600_s10 }
 0x143   : > { %5507 = vrot.lane.b32.xlu1 %v5502_v46, %s22602_s7  ;;  %4734 = vrot.lane.b32.xlu0 %v4731_v47, %s22488_s23  ;;  %s22680_s23 = smov 125  }
 0x147   : > { %5622 = vrot.lane.b32.xlu1 %v5617_v50, %s22604_s18  ;;  %5509 = vrot.lane.b32.xlu0 %v5506_v51, %s22602_s7  ;;  %v18215_v50 = vld [vmem:[%s19120_s21 + $0x8] sm:$0x3] }
 0x14b   : > { %3995 = vrot.lane.b32.xlu1 %v3989_v53, %s22497_s11  ;;  %5624 = vrot.lane.b32.xlu0 %v5621_v54, %s22604_s18 }
 0x14f   : > { %4200 = vrot.lane.b32.xlu1 %v4194_v58, %s22492_s1  ;;  %4085 = vrot.lane.b32.xlu0 %v3964_v57, %s22490_s0  ;;  %v18219_v58 = vld [vmem:[%s19120_s21 + $0xa] sm:$0x3] }
 0x153   : > { %4398 = vrot.lane.b32.xlu1 %v4390_v60, %s22494_s16  ;;  %v18223_v60 = vld [vmem:[%s19120_s21 + $0xc] sm:$0x3] }
 0x157   : > { %5770 = vrot.lane.b32.xlu1 %v5767_v62, %s22534_s28 }
 0x15b   : > { %3997 = vrot.lane.b32.xlu1 %v3990_v0, %s22497_s11 }
 0x15f   : > { %4202 = vrot.lane.b32.xlu1 %v4195_v3, %s22492_s1 }
 0x189   : > { %v1337_v8 = vpop.permute.xlu1 %1336  ;;  %v1248_v9 = vpop.permute.xlu0 %1247 }
 0x18a   : > { %v19491_v27 = vsel %vm1251_vm5, %v19376_v29, %v1248_v9  ;;  %v19526_v41 = vsel %vm1340_vm9, %v19386_v30, %v1337_v8 }
 0x18d   : > { %v19465_v10 = vpop.permute.xlu1 %1596  ;;  %v1426_v11 = vpop.permute.xlu0 %1425 }
 0x18e   : > { %v19504_v33 = vsel %vm22514_vm7, %v19389_v32, %v1426_v11 }
 0x191   : > { %v19467_v12 = vpop.permute.xlu1 %1778  ;;  %v19469_v13 = vpop.permute.xlu0 %1687 }
 0x192   : > { %v19589_v62 = vsel %vm22499_vm11, %v19461_v6, %v19467_v12 }
 0x195   : > { %v19471_v14 = vpop.permute.xlu1 %4495  ;;  %v19473_v15 = vpop.permute.xlu0 %1880 }
 0x196   : > { %22675 = vst [vmem:[#allocation38_spill] sm:$0xff] %v19471_v14  ;;  %v4503_v18 = vmul.f32 %v19471_v14, %v19351_v23 }
 0x198   : > { %4509 = vrot.lane.b32.xlu1 %v4503_v18, %s22676_s15 }
 0x199   : > { %v19478_v21 = vpop.permute.xlu1 %1427  ;;  %v19480_v22 = vpop.permute.xlu0 %1249 }
 0x19a   : > { %v19484_v24 = vsel %vm1251_vm5, %v1248_v9, %v19480_v22  ;;  %v19500_v31 = vsel %vm22514_vm7, %v1426_v11, %v19478_v21  ;;  %v18227_v11 = vld [vmem:[%s19160_s30 + $0x2] sm:$0x3] }
 0x19b   : > { %18201 = vmatprep.subr.msk.mxu0 %vm22608_vm6, %v19484_v24 }
 0x19c   : > { %18202 = vmatpush1.msk.msra.mxu0 %vm22608_vm6, %v19491_v27  ;;  %4089 = vrot.lane.b32.xlu1 %v3966_v25, %s22490_s0  ;;  %v5763_v25 = vrot.slane %v19441_v61, %v19296_v5  ;;  %v19640_v61 = vsel %vm3959_vm14, %v19409_v43, %v19412_v45 }
 0x19d   : > { %v1599_v34 = vpop.permute.xlu1 %1598  ;;  %18203 = vmatmul.mubr.msk.f32.vlgmr.msra.gmra.mxu0 %vm1254_vm8, %v18200_v26  ;;  %18208 = vmatprep.subr.msk.mxu0 %vm22608_vm6, %v19500_v31  ;;  %v19509_v35 = vpop.permute.xlu0 %1338  ;;  %v18234_v26 = vld [vmem:[%s19160_s30 + $0x4] sm:$0x3]  ;;  %22678 = vst [vmem:[#allocation40_spill] sm:$0xff] %v19640_v61 }
 0x19e   : > { %v19513_v36 = vsel %vm1340_vm9, %v1337_v8, %v19509_v35  ;;  %18209 = vmatpush1.msk.msra.mxu0 %vm22608_vm6, %v19504_v33  ;;  %v19519_v37 = vsel %vm22501_vm10, %v1599_v34, %v19425_v52  ;;  %1503 = vmatprep.mubr.f32.mxu0 %v22502_v1  ;;  %v19536_v42 = vsel %vm22501_vm10, %v19465_v10, %v1599_v34  ;;  %v18238_v34 = vld [vmem:[%s19160_s30 + $0x6] sm:$0x3] }
 0x19f   : > { %18204 = vmatprep.subr.msk.mxu1 %vm22608_vm6, %v19513_v36  ;;  %18216 = vmatprep.subr.msk.mxu0 %vm22608_vm6, %v19519_v37 }
 0x1a0   : > { %18205 = vmatpush1.msk.msra.mxu1 %vm22608_vm6, %v19526_v41 }
 0x1a1   : > { %v1781_v44 = vpop.permute.xlu1 %1780  ;;  %18206 = vmatmul.mubr.msk.f32.vlgmr.msra.gmra.mxu1 %vm1254_vm8, %v1239_v38  ;;  %18210 = vmatmul.mubr.msk.f32.vlgmr.msra.gmra.mxu0 %vm1254_vm8, %v18207_v40  ;;  %v19540_v46 = vpop.permute.xlu0 %1878  ;;  %v3965_v40 = vmul.f32 %v19640_v61, %v19351_v23 }
 0x1a2   : > { %22677 = vst [vmem:[#allocation39_spill] sm:$0xff] %v19540_v46  ;;  %18212 = vmatprep.subr.msk.mxu1 %vm22608_vm6, %v19370_v28  ;;  %18217 = vmatpush1.msk.msra.mxu0 %vm22608_vm6, %v19536_v42  ;;  %v19548_v47 = vsel %vm22499_vm11, %v1781_v44, %v19461_v6  ;;  %v19560_v51 = vsel %vm22499_vm11, %v19467_v12, %v1781_v44  ;;  %v1875_v12 = vld [vmem:[%s19160_s30] sm:$0x3]  ;;  %vm22519_vm11 = vcmask 39936  }
 0x1a3   : > { %18213 = vmatpush1.msk.msra.mxu1 %vm22608_vm6, %v19351_v23  ;;  %18224 = vmatprep.subr.msk.mxu0 %vm22608_vm6, %v19548_v47  ;;  %v19605_v9 = vsel %vm22496_vm13, %v19540_v46, %v19473_v15 }
 0x1a4   : > { %1585 = vmatprep.mubr.f32.mxu1 %v22502_v1  ;;  %1676 = vmatprep.mubr.f32.mxu0 %v22502_v1 }
 0x1a5   : > { %18214 = vmatmul.mubr.msk.f32.vlgmr.msra.gmra.mxu1 %vm1254_vm8, %v18211_v48  ;;  %18218 = vmatmul.mubr.msk.f32.vlgmr.msra.gmra.mxu0 %vm1254_vm8, %v18215_v50  ;;  %v1690_v53 = vpop.permute.xlu0 %1689  ;;  %v19564_v54 = vpop.permute.xlu1 %1882  ;;  %v18242_v48 = vld [vmem:[%s19160_s30 + $0x8] sm:$0x3]  ;;  %v18246_v50 = vld [vmem:[%s19160_s30 + $0xa] sm:$0x3] }
 0x1a6   : > { %18225 = vmatpush1.msk.msra.mxu0 %vm22608_vm6, %v19560_v51  ;;  %v19570_v56 = vsel %vm22500_vm12, %v19469_v13, %v1690_v53  ;;  %v19574_v57 = vsel %vm22500_vm12, %v1690_v53, %v19430_v55  ;;  %1767 = vmatprep.mubr.f32.mxu1 %v22502_v1  ;;  %v19596_v0 = vsel %vm22496_vm13, %v19473_v15, %v19564_v54  ;;  %v19667_v53 = vld [vmem:[%s22659_s9] sm:$0x3] }
 0x1a7   : > { %18231 = vmatprep.subr.msk.mxu0 %vm22608_vm6, %v19560_v51  ;;  %18220 = vmatprep.subr.msk.mxu1 %vm22608_vm6, %v19574_v57 }
 0x1a8   : > { %18221 = vmatpush1.msk.msra.mxu1 %vm22608_vm6, %v19570_v56  ;;  %1858 = vmatprep.mubr.f32.mxu0 %v22502_v1 }
 0x1a9   : > { %18222 = vmatmul.mubr.msk.f32.vlgmr.msra.gmra.mxu1 %vm1254_vm8, %v18219_v58  ;;  %18226 = vmatmul.mubr.msk.f32.vlgmr.msra.gmra.mxu0 %vm1254_vm8, %v18223_v60  ;;  %v4498_v3 = vpop.permute.xlu0 %4497  ;;  %v19654_v43 = vpop.permute.xlu1 %4610  ;;  %v5738_v58 = vrot.slane %v19667_v53, %v19296_v5 }
 0x1aa   : > { %18228 = vmatprep.subr.msk.mxu1 %vm22608_vm6, %v19596_v0  ;;  %18232 = vmatpush1.msk.msra.mxu0 %vm22608_vm6, %v19589_v62  ;;  %v4505_v8 = vmul.f32 0.0, %v4498_v3  ;;  %v19644_v38 = vsel %vm4001_vm15, %v19471_v14, %v4498_v3  ;;  %22681 = vst [vmem:[#allocation42_spill] sm:$0xff] %v19654_v43  ;;  %v19686_v3 = vsel %vm22496_vm13, %v19564_v54, %v19540_v46  ;;  %vm4736_vm13 = vcmask 1006592   ;;  %v18363_v46 = vld [vmem:[%s19180_s27 + $0x2] sm:$0x3] }
 0x1ab   : > { %18229 = vmatpush1.msk.msra.mxu1 %vm22608_vm6, %v19605_v9  ;;  %18239 = vmatprep.subr.msk.mxu0 %vm22608_vm6, %v19484_v24  ;;  %22679 = vst [vmem:[#allocation41_spill] sm:$0xff] %v19644_v38  ;;  %v4504_v44 = vmul.f32 %v19644_v38, %v19370_v28 }
 0x1ac   : > { %18235 = vmatprep.subr.msk.mxu1 %vm22608_vm6, %v19513_v36  ;;  %1958 = vmatprep.mubr.f32.mxu1 %v22502_v1 }
 0x1ad   : > { %2035 = vmatprep.mubr.f32.mxu0 %v22502_v1  ;;  %4513 = vrot.lane.b32.xlu0 %v4505_v8, %s22676_s15  ;;  %v19618_v15 = vpop.permute.xlu0 %4612  ;;  %v4388_v8 = vmul.f32 %v19463_v7, %v19351_v23 }
 0x1ae   : > { %18230 = vmatmul.mubr.msk.f32.vlgmr.msra.gmra.mxu1 %vm1254_vm8, %v18227_v11  ;;  %18233 = vmatmul.mubr.msk.f32.vlgmr.msra.gmra.mxu0 %vm1254_vm8, %v1875_v12  ;;  %v4620_v18 = vmul.f32 0.0, %v19618_v15  ;;  %v18250_v11 = vld [vmem:[%s19160_s30 + $0xc] sm:$0x3]  ;;  %v18254_v12 = vld [vmem:[%s19160_s30 + $0xe] sm:$0x3] }
 0x1af   : > { %18236 = vmatpush1.msk.msra.mxu1 %vm22608_vm6, %v19526_v41  ;;  %18240 = vmatpush1.msk.msra.mxu0 %vm22608_vm6, %v19491_v27 }
 0x1b0   : > { %18243 = vmatprep.subr.msk.mxu1 %vm22608_vm6, %v19500_v31  ;;  %18247 = vmatprep.subr.msk.mxu0 %vm22608_vm6, %v19370_v28 }
 0x1b1   : > { %2111 = vmatprep.mubr.f32.mxu1 %v22502_v1  ;;  %2189 = vmatprep.mubr.f32.mxu0 %v22502_v1  ;;  %v19677_v60 = vpop.permute.xlu0 %4759 }
 0x1b2   : > { %5768 = vrot.lane.b32.xlu0 %v5763_v25, %s22534_s28  ;;  %4628 = vrot.lane.b32.xlu1 %v4620_v18, %s22680_s23  ;;  %22682 = vst [vmem:[#allocation43_spill] sm:$0xff] %v19677_v60  ;;  %v4758_v18 = vpop.permute.xlu1 %4757  ;;  %v19713_v25 = vsel %vm1340_vm9, %v19509_v35, %v19386_v30  ;;  %v2761_v35 = vsel %vm22500_vm12, %v19430_v55, %v19469_v13  ;;  %v18266_v13 = vld [vmem:[%s19160_s30 + $0x14] sm:$0x3]  ;;  %vm22615_vm12 = vcmask 998400   ;;  %v18383_v55 = vld [vmem:[%s19180_s27 + $0xa] sm:$0x3] }
 0x1b3   : > { %18237 = vmatmul.mubr.msk.f32.vlgmr.msra.gmra.mxu1 %vm1254_vm8, %v18234_v26  ;;  %18241 = vmatmul.mubr.msk.f32.vlgmr.msra.gmra.mxu0 %vm1254_vm8, %v18238_v34  ;;  %v19702_v54 = vsel %vm4761_vm0, %v4758_v18, %v19677_v60  ;;  %v3991_v26 = vmul.f32 %v19402_v39, %v19370_v28  ;;  %v1867_v30 = vld [vmem:[%s19125_s25] sm:$0x3] }
 0x1b4   : > { %18244 = vmatpush1.msk.msra.mxu1 %vm22608_vm6, %v19504_v33  ;;  %18248 = vmatpush1.msk.msra.mxu0 %vm22608_vm6, %v19351_v23  ;;  %22683 = vst [vmem:[#allocation44_spill] sm:$0xff] %v19702_v54  ;;  %v4767_v34 = vmul.f32 %v19702_v54, %v19351_v23 }
 0x1b5   : > { %18251 = vmatprep.subr.msk.mxu1 %vm22608_vm6, %v19519_v37  ;;  %18255 = vmatprep.subr.msk.mxu0 %vm22608_vm6, %v19574_v57 }
 0x1b6   : > { %2267 = vmatprep.mubr.f32.mxu1 %v22502_v1  ;;  %2345 = vmatprep.mubr.f32.mxu0 %v22502_v1 }
 0x1b7   : > { %4087 = vrot.lane.b32.xlu0 %v3965_v40, %s22490_s0  ;;  %4511 = vrot.lane.b32.xlu1 %v4504_v44, %s22676_s15  ;;  %s22594_s0 = smov 121   ;;  %v18258_v40 = vld [vmem:[%s19160_s30 + $0x10] sm:$0x3]  ;;  %v18262_v44 = vld [vmem:[%s19160_s30 + $0x12] sm:$0x3] }
 0x1b8   : > { %18245 = vmatmul.mubr.msk.f32.vlgmr.msra.gmra.mxu1 %vm1254_vm8, %v18242_v48  ;;  %18249 = vmatmul.mubr.msk.f32.vlgmr.msra.gmra.mxu0 %vm1254_vm8, %v18246_v50  ;;  %v4766_v48 = vmul.f32 0.0, %v4758_v18  ;;  %v4618_v50 = vmul.f32 %v19654_v43, %v19351_v23  ;;  %v2758_v18 = vld [vmem:[%s19200_s12] sm:$0x3] }
 0x1b9   : > { %18252 = vmatpush1.msk.msra.mxu1 %vm22608_vm6, %v19536_v42  ;;  %18256 = vmatpush1.msk.msra.mxu0 %vm22608_vm6, %v19570_v56 }
 0x1ba   : > { %18259 = vmatprep.subr.msk.mxu1 %vm22608_vm6, %v19548_v47  ;;  %18263 = vmatprep.subr.msk.mxu0 %vm22608_vm6, %v19686_v3 }
 0x1bb   : > { %2423 = vmatprep.mubr.f32.mxu1 %v22502_v1  ;;  %2501 = vmatprep.mubr.f32.mxu0 %v22502_v1 }
 0x1bc   : > { %4394 = vrot.lane.b32.xlu0 %v4388_v8, %s22494_s16  ;;  %5743 = vrot.lane.b32.xlu1 %v5738_v58, %s22594_s0  ;;  %v18270_v58 = vld [vmem:[%s19200_s12 + $0x2] sm:$0x3]  ;;  %v19747_v8 = vpop.permute.xlu0 %4734 }
 0x1bd   : > { %18253 = vmatmul.mubr.msk.f32.vlgmr.msra.gmra.mxu1 %vm1254_vm8, %v18250_v11  ;;  %18257 = vmatmul.mubr.msk.f32.vlgmr.msra.gmra.mxu0 %vm1254_vm8, %v18254_v12  ;;  %22684 = vst [vmem:[#allocation45_spill] sm:$0xff] %v19747_v8  ;;  %v2838_v11 = vsel %vm22501_vm10, %v19425_v52, %v19465_v10  ;;  %v4196_v12 = vmul.f32 %v19419_v49, %v19370_v28  ;;  %vm22614_vm10 = vcmask 990208  }
 0x1be   : > { %18260 = vmatpush1.msk.msra.mxu1 %vm22608_vm6, %v19560_v51  ;;  %18264 = vmatpush1.msk.msra.mxu0 %vm22608_vm6, %v19596_v0  ;;  %v4743_v10 = vmul.f32 %v19747_v8, %v19370_v28 }
 0x1bf   : > { %18267 = vmatprep.subr.msk.mxu1 %vm22608_vm6, %v19713_v25  ;;  %18271 = vmatprep.subr.msk.mxu0 %vm22608_vm6, %v19570_v56 }
 0x1c0   : > { %2579 = vmatprep.mubr.f32.mxu1 %v22502_v1  ;;  %2660 = vmatprep.mubr.f32.mxu0 %v22502_v1 }
 0x1c1   : > { %3999 = vrot.lane.b32.xlu0 %v3991_v26, %s22497_s11  ;;  %4774 = vrot.lane.b32.xlu1 %v4767_v34, %s22602_s7  ;;  %v18277_v26 = vld [vmem:[%s19200_s12 + $0x4] sm:$0x3]  ;;  %v19770_v34 = vld [vmem:[%s22659_s9 + $0x18] sm:$0x3]  ;;  %s22690_s11 = smov 123  }
 0x1c2   : > { %18261 = vmatmul.mubr.msk.f32.vlgmr.msra.gmra.mxu1 %vm1254_vm8, %v18258_v40  ;;  %18265 = vmatmul.mubr.msk.f32.vlgmr.msra.gmra.mxu0 %vm1254_vm8, %v18262_v44  ;;  %v6826_v40 = vrot.slane %v19770_v34, %v19296_v5  ;;  %v18281_v44 = vld [vmem:[%s19200_s12 + $0x6] sm:$0x3] }
 0x1c3   : > { %18268 = vmatpush1.msk.msra.mxu1 %vm22608_vm6, %v19513_v36  ;;  %18272 = vmatpush1.msk.msra.mxu0 %vm22608_vm6, %v2761_v35  ;;  %v18285_v35 = vld [vmem:[%s19200_s12 + $0x8] sm:$0x3] }
 0x1c4   : > { %18274 = vmatprep.subr.msk.mxu1 %vm22608_vm6, %v19536_v42  ;;  %18278 = vmatprep.subr.msk.mxu0 %vm22608_vm6, %v19560_v51 }
 0x1c5   : > { %2741 = vmatprep.mubr.f32.mxu1 %v22502_v1  ;;  %2831 = vmatprep.mubr.f32.mxu0 %v22502_v1 }
 0x1c6   : > { %4624 = vrot.lane.b32.xlu0 %v4618_v50, %s22680_s23  ;;  %4772 = vrot.lane.b32.xlu1 %v4766_v48, %s22602_s7  ;;  %v19798_v48 = vld [vmem:[%s22659_s9 + $0x1a] sm:$0x3]  ;;  %v19800_v50 = vpop.permute.xlu1 %4732  ;;  %s22755_s9 = smov 16  }
 0x1c7   : > { %18269 = vmatmul.mubr.msk.f32.vlgmr.msra.gmra.mxu1 %vm1254_vm8, %v18266_v13  ;;  %18273 = vmatmul.mubr.msk.f32.vlgmr.msra.gmra.mxu0 %vm1254_vm8, %v18270_v58  ;;  %v18289_v13 = vld [vmem:[%s19200_s12 + $0xa] sm:$0x3]  ;;  %v18293_v58 = vld [vmem:[%s19200_s12 + $0xc] sm:$0x3] }
 0x1c8   : > { %18275 = vmatpush1.msk.msra.mxu1 %vm22608_vm6, %v2838_v11  ;;  %18279 = vmatpush1.msk.msra.mxu0 %vm22608_vm6, %v19589_v62  ;;  %v19777_v62 = vsel %vm4206_vm1, %v19463_v7, %v19435_v59  ;;  %v18297_v11 = vld [vmem:[%s19200_s12 + $0xe] sm:$0x3] }
 0x1c9   : > { %18282 = vmatprep.subr.msk.mxu1 %vm22608_vm6, %v19596_v0  ;;  %18286 = vmatprep.subr.msk.mxu0 %vm22608_vm6, %v19513_v36  ;;  %22685 = vst [vmem:[#allocation46_spill] sm:$0xff] %v19777_v62  ;;  %v4389_v59 = vmul.f32 %v19777_v62, %v19370_v28 }
 0x1ca   : > { %2908 = vmatprep.mubr.f32.mxu1 %v22502_v1  ;;  %2984 = vmatprep.mubr.f32.mxu0 %v22502_v1 }
 0x1cb   : > { %4204 = vrot.lane.b32.xlu0 %v4196_v12, %s22492_s1  ;;  %4865 = vrot.lane.b32.xlu1 %v4743_v10, %s22604_s18  ;;  %s22598_s1 = smov 6   ;;  %v18305_v10 = vld [vmem:[%s19200_s12 + $0x12] sm:$0x3] }
 0x1cc   : > { %18276 = vmatmul.mubr.msk.f32.vlgmr.msra.gmra.mxu1 %vm1254_vm8, %v2758_v18  ;;  %18280 = vmatmul.mubr.msk.f32.vlgmr.msra.gmra.mxu0 %vm1254_vm8, %v18277_v26  ;;  %v18309_v18 = vld [vmem:[%s19200_s12 + $0x14] sm:$0x3] }
 0x1cd   : > { %18283 = vmatpush1.msk.msra.mxu1 %vm22608_vm6, %v19605_v9  ;;  %18287 = vmatpush1.msk.msra.mxu0 %vm22608_vm6, %v19526_v41  ;;  %v19807_v41 = vsel %vm4091_vm2, %v19654_v43, %v19618_v15  ;;  %v6941_v9 = vrot.slane %v19798_v48, %v19296_v5  ;;  %v19829_v5 = vpop.permute.xlu1 %5507 }
 0x1ce   : > { %18290 = vmatprep.subr.msk.mxu1 %vm22608_vm6, %v19484_v24  ;;  %18294 = vmatprep.subr.msk.mxu0 %vm22608_vm6, %v19500_v31  ;;  %22686 = vst [vmem:[#allocation47_spill] sm:$0xff] %v19807_v41  ;;  %v4619_v15 = vmul.f32 %v19807_v41, %v19370_v28  ;;  %22687 = vst [vmem:[#allocation48_spill] sm:$0xff] %v19829_v5 }
 0x1cf   : > { %3062 = vmatprep.mubr.f32.mxu1 %v22502_v1  ;;  %3140 = vmatprep.mubr.f32.mxu0 %v22502_v1 }
 0x1d0   : > { %4396 = vrot.lane.b32.xlu0 %v4389_v59, %s22494_s16  ;;  %6831 = vrot.lane.b32.xlu1 %v6826_v40, %s22598_s1  ;;  %s22596_s16 = smov 7   ;;  %v18325_v40 = vld [vmem:[%s19200_s12 + $0x1c] sm:$0x3]  ;;  %v6830_v59 = vrot.slane %v19770_v34, %v19294_v4 }
 0x1d1   : > { %18284 = vmatmul.mubr.msk.f32.vlgmr.msra.gmra.mxu1 %vm1254_vm8, %v18281_v44  ;;  %18288 = vmatmul.mubr.msk.f32.vlgmr.msra.gmra.mxu0 %vm1254_vm8, %v18285_v35  ;;  %v19930_v34 = vpop.permute.xlu1 %5622 }
 0x1d2   : > { %18291 = vmatpush1.msk.msra.mxu1 %vm22608_vm6, %v19491_v27  ;;  %18295 = vmatpush1.msk.msra.mxu0 %vm22608_vm6, %v19504_v33  ;;  %v5742_v27 = vrot.slane %v19667_v53, %v19294_v4  ;;  %v19837_v33 = vpop.permute.xlu0 %5509  ;;  %v18301_v53 = vld [vmem:[%s19200_s12 + $0x10] sm:$0x3]  ;;  %22691 = vst [vmem:[#allocation51_spill] sm:$0xff] %v19930_v34 }
 0x1d3   : > { %18298 = vmatprep.subr.msk.mxu1 %vm22608_vm6, %v19370_v28  ;;  %18302 = vmatprep.subr.msk.mxu0 %vm22608_vm6, %v19519_v37  ;;  %v5515_v37 = vmul.f32 %v19829_v5, %v19351_v23  ;;  %v5517_v44 = vmul.f32 0.0, %v19837_v33 }
 0x1d4   : > { %3218 = vmatprep.mubr.f32.mxu1 %v22502_v1  ;;  %3296 = vmatprep.mubr.f32.mxu0 %v22502_v1 }
 0x1d5   : > { %4626 = vrot.lane.b32.xlu0 %v4619_v15, %s22680_s23  ;;  %6946 = vrot.lane.b32.xlu1 %v6941_v9, %s22596_s16  ;;  %v19940_v9 = vpop.permute.xlu1 %3995 }
 0x1d6   : > { %18292 = vmatmul.mubr.msk.f32.vlgmr.msra.gmra.mxu1 %vm1254_vm8, %v18289_v13  ;;  %18296 = vmatmul.mubr.msk.f32.vlgmr.msra.gmra.mxu0 %vm1254_vm8, %v18293_v58  ;;  %22693 = vst [vmem:[#allocation53_spill] sm:$0xff] %v19940_v9 }
 0x1d7   : > { %18299 = vmatpush1.msk.msra.mxu1 %vm22608_vm6, %v19351_v23  ;;  %18303 = vmatpush1.msk.msra.mxu0 %vm22608_vm6, %v19536_v42  ;;  %v19856_v42 = vsel %vm1254_vm8, %v19829_v5, %v19837_v33 }
 0x1d8   : > { %18306 = vmatprep.subr.msk.mxu1 %vm22608_vm6, %v19574_v57  ;;  %18310 = vmatprep.subr.msk.mxu0 %vm22608_vm6, %v19548_v47  ;;  %22688 = vst [vmem:[#allocation49_spill] sm:$0xff] %v19856_v42  ;;  %v19863_v47 = vsel %vm4736_vm13, %v19800_v50, %v19747_v8  ;;  %v5516_v12 = vmul.f32 %v19856_v42, %v19370_v28 }
 0x1d9   : > { %3374 = vmatprep.mubr.f32.mxu1 %v22502_v1  ;;  %3452 = vmatprep.mubr.f32.mxu0 %v22502_v1  ;;  %22689 = vst [vmem:[#allocation50_spill] sm:$0xff] %v19863_v47  ;;  %v4742_v57 = vmul.f32 %v19863_v47, %v19351_v23 }
 0x1da   : > { %5745 = vrot.lane.b32.xlu0 %v5742_v27, %s22594_s0  ;;  %5521 = vrot.lane.b32.xlu1 %v5515_v37, %s22600_s10 }
 0x1db   : > { %18300 = vmatmul.mubr.msk.f32.vlgmr.msra.gmra.mxu1 %vm1254_vm8, %v18297_v11  ;;  %18304 = vmatmul.mubr.msk.f32.vlgmr.msra.gmra.mxu0 %vm1254_vm8, %v18301_v53 }
 0x1dc   : > { %18307 = vmatpush1.msk.msra.mxu1 %vm22608_vm6, %v19570_v56  ;;  %18311 = vmatpush1.msk.msra.mxu0 %vm22608_vm6, %v19560_v51  ;;  %v5625_v51 = vpop.permute.xlu0 %5624  ;;  %v3775_v56 = vsel %vm1251_vm5, %v19480_v22, %v19376_v29  ;;  %v4741_v22 = vmul.f32 0.0, %v19800_v50 }
 0x1dd   : > { %18314 = vmatprep.subr.msk.mxu1 %vm22608_vm6, %v19686_v3  ;;  %18318 = vmatprep.subr.msk.mxu0 %vm22608_vm6, %v19713_v25  ;;  %v3856_v3 = vsel %vm22514_vm7, %v19478_v21, %v19389_v32  ;;  %v18313_v25 = vld [vmem:[%s19200_s12 + $0x16] sm:$0x3]  ;;  %v5632_v26 = vmul.f32 0.0, %v5625_v51  ;;  %v18321_v21 = vld [vmem:[%s19200_s12 + $0x1a] sm:$0x3]  ;;  %v19934_v35 = vsel %vm22519_vm11, %v19930_v34, %v5625_v51  ;;  %vm22617_vm7 = vcmask 48128  }
 0x1de   : > { %3530 = vmatprep.mubr.f32.mxu1 %v22502_v1  ;;  %3608 = vmatprep.mubr.f32.mxu0 %v22502_v1  ;;  %22692 = vst [vmem:[#allocation52_spill] sm:$0xff] %v19934_v35  ;;  %v5631_v50 = vmul.f32 %v19934_v35, %v19370_v28  ;;  %v18387_v32 = vld [vmem:[%s19180_s27 + $0xc] sm:$0x3] }
 0x1df   : > { %4863 = vrot.lane.b32.xlu0 %v4742_v57, %s22604_s18  ;;  %5523 = vrot.lane.b32.xlu1 %v5516_v12, %s22600_s10 }
 0x1e0   : > { %18308 = vmatmul.mubr.msk.f32.vlgmr.msra.gmra.mxu1 %vm1254_vm8, %v18305_v10  ;;  %18312 = vmatmul.mubr.msk.f32.vlgmr.msra.gmra.mxu0 %vm1254_vm8, %v18309_v18  ;;  %v19951_v33 = vpop.permute.xlu0 %4085 }
 0x1e1   : > { %18315 = vmatpush1.msk.msra.mxu1 %vm22608_vm6, %v19596_v0  ;;  %18319 = vmatpush1.msk.msra.mxu0 %vm22608_vm6, %v19513_v36  ;;  %v4768_v0 = vmul.f32 %v19677_v60, %v19370_v28  ;;  %v18317_v36 = vld [vmem:[%s19200_s12 + $0x18] sm:$0x3]  ;;  %22697 = vst [vmem:[#allocation57_spill] sm:$0xff] %v19951_v33 }
 0x1e2   : > { %18322 = vmatprep.subr.msk.mxu1 %vm22608_vm6, %v3775_v56  ;;  %18326 = vmatprep.subr.msk.mxu0 %vm22608_vm6, %v3856_v3 }
 0x1e3   : > { %3686 = vmatprep.mubr.f32.mxu1 %v22502_v1  ;;  %3764 = vmatprep.mubr.f32.mxu0 %v22502_v1 }
 0x1e4   : > { %4776 = vrot.lane.b32.xlu0 %v4768_v0, %s22602_s7  ;;  %18316 = vmatmul.mubr.msk.f32.vlgmr.msra.gmra.mxu1 %vm1254_vm8, %v18313_v25 }
 0x1e5   : > { %18320 = vmatmul.mubr.msk.f32.vlgmr.msra.gmra.mxu0 %vm1254_vm8, %v18317_v36  ;;  %18323 = vmatpush1.msk.msra.mxu1 %vm22608_vm6, %v19484_v24  ;;  %v19087_v24 = vmov 0  }
 0x1e6   : > { %18327 = vmatpush1.msk.msra.mxu0 %vm22608_vm6, %v19500_v31  ;;  %5640 = vrot.lane.b32.xlu1 %v5632_v26, %s22690_s11  ;;  %v6945_v31 = vrot.slane %v19798_v48, %v19294_v4  ;;  %v5630_v4 = vmul.f32 %v19930_v34, %v19351_v23  ;;  %v19945_v48 = vpop.permute.xlu1 %4200  ;;  %v3943_v26 = vld [vmem:[%s22660_s8] sm:$0x3] }
 0x1e7   : > { %3845 = vmatprep.mubr.f32.mxu1 %v22502_v1  ;;  %3926 = vmatprep.mubr.f32.mxu0 %v22502_v1  ;;  %22694 = vst [vmem:[#allocation54_spill] sm:$0xff] %v19945_v48 }
 0x1e8   : > { %4861 = vrot.lane.b32.xlu0 %v4741_v22, %s22604_s18  ;;  %18324 = vmatmul.mubr.msk.f32.vlgmr.msra.gmra.mxu1 %vm1254_vm8, %v18321_v21  ;;  %v18343_v21 = vld [vmem:[%s22660_s8 + $0x6] sm:$0x3] }
 0x1e9   : > { %18328 = vmatmul.mubr.msk.f32.vlgmr.msra.gmra.mxu0 %vm1254_vm8, %v18325_v40  ;;  %4075 = vmatprep.mubr.f32.mxu1 %v22502_v1 }
 0x1ea   : > { %4165 = vmatprep.mubr.f32.mxu0 %v22502_v1  ;;  %19004 = vset.pattern.permute.xlu1 %v19087_v24  ;;  %v19947_v15 = vpop.permute.xlu1 %4398 }
 0x1eb   : > { %19005 = vset.pattern.permute.xlu0 %v19087_v24  ;;  %22695 = vst [vmem:[#allocation55_spill] sm:$0xff] %v19947_v15 }
 0x1ec   : > { %6833 = vrot.lane.b32.xlu0 %v6830_v59, %s22598_s1  ;;  %v18352_v59 = vld [vmem:[%s22660_s8 + $0xa] sm:$0x3] }
 0x1ee   : > { %v19949_v13 = vpop.permute.xlu1 %5770 }
 0x1ef   : > { %22696 = vst [vmem:[#allocation56_spill] sm:$0xff] %v19949_v13  ;;  %v5779_v20 = vmul.f32 %v19949_v13, %v19370_v28 }
 0x1f0   : > { %6948 = vrot.lane.b32.xlu0 %v6945_v31, %s22596_s16 }
 0x1f2   : > { %v3998_v58 = vpop.permute.xlu1 %3997 }
 0x1f4   : > { %5525 = vrot.lane.b32.xlu0 %v5517_v44, %s22600_s10  ;;  %v18330_v44 = vld [vmem:[%s22660_s8 + $0x2] sm:$0x3]  ;;  %s22728_s10 = smov 127  }
 0x1f6   : > { %v4203_v27 = vpop.permute.xlu1 %4202 }
 0x1f8   : > { %5638 = vrot.lane.b32.xlu0 %v5631_v50, %s22690_s11  ;;  %v20004_v50 = vsel %vm4001_vm15, %v19940_v9, %v3998_v58 }
 0x1fc   : > { %5636 = vrot.lane.b32.xlu0 %v5630_v4, %s22690_s11 }
 0x20a   : > { %v4510_v37 = vpop.permute.xlu1 %4509 }
 0x20e   : > { %v4090_v53 = vpop.permute.xlu1 %4089 }
 0x21f   : > { %v19953_v11 = vpop.permute.xlu0 %4513 }
 0x220   : > { %22698 = vst [vmem:[#allocation58_spill] sm:$0xff] %v19953_v11 }
 0x224   : > { %v5769_v57 = vpop.permute.xlu0 %5768  ;;  %v19959_v10 = vpop.permute.xlu1 %4628 }
 0x225   : > { %v19957_v12 = vsel %vm22615_vm12, %v5769_v57, %v19949_v13  ;;  %22700 = vst [vmem:[#allocation60_spill] sm:$0xff] %v19959_v10  ;;  %v5777_v56 = vmul.f32 0.0, %v5769_v57 }
 0x226   : > { %22699 = vst [vmem:[#allocation59_spill] sm:$0xff] %v19957_v12  ;;  %v5778_v18 = vmul.f32 %v19957_v12, %v19351_v23 }
 0x228   : > { %5785 = vrot.lane.b32.xlu1 %v5778_v18, %s22598_s1  ;;  %v18338_v18 = vld [vmem:[%s22660_s8 + $0x4] sm:$0x3] }
 0x229   : > { %v4088_v51 = vpop.permute.xlu0 %4087  ;;  %v4512_v0 = vpop.permute.xlu1 %4511 }
 0x22a   : > { %v19966_v3 = vsel %vm4091_vm2, %v19951_v33, %v4088_v51  ;;  %v19969_v25 = vsel %vm4091_vm2, %v4088_v51, %v4090_v53  ;;  %v19984_v22 = vsel %vm3984_vm3, %v4512_v0, %v19953_v11  ;;  %v19991_v40 = vsel %vm3984_vm3, %v4510_v37, %v4512_v0 }
 0x22b   : > { %18335 = vmatprep.subr.msk.mxu0 %vm22608_vm6, %v19969_v25  ;;  %v20020_v51 = vsel %vm4206_vm1, %v19945_v48, %v4203_v27 }
 0x22c   : > { %18336 = vmatpush1.msk.msra.mxu0 %vm22608_vm6, %v19966_v3  ;;  %5783 = vrot.lane.b32.xlu1 %v5777_v56, %s22598_s1 }
 0x22d   : > { %18337 = vmatmul.mubr.msk.f32.vlgmr.msra.gmra.mxu0 %vm1254_vm8, %v3943_v26  ;;  %18344 = vmatprep.subr.msk.mxu0 %vm22608_vm6, %v19370_v28 }
 0x22e   : > { %v4395_v36 = vpop.permute.xlu0 %4394  ;;  %18345 = vmatpush1.msk.msra.mxu0 %vm22608_vm6, %v19351_v23  ;;  %4358 = vmatprep.mubr.f32.mxu0 %v22502_v1  ;;  %v5744_v4 = vpop.permute.xlu1 %5743 }
 0x22f   : > { %18354 = vmatprep.subr.msk.mxu0 %vm22608_vm6, %v19984_v22 }
 0x231   : > { %18346 = vmatmul.mubr.msk.f32.vlgmr.msra.gmra.mxu0 %vm1254_vm8, %v18343_v21  ;;  %v18347_v21 = vld [vmem:[%s22660_s8 + $0x8] sm:$0x3] }
 0x232   : > { %18355 = vmatpush1.msk.msra.mxu0 %vm22608_vm6, %v19991_v40  ;;  %4588 = vmatprep.mubr.f32.mxu0 %v22502_v1 }
 0x233   : > { %v4000_v24 = vpop.permute.xlu0 %3999  ;;  %v4775_v53 = vpop.permute.xlu1 %4774 }
 0x234   : > { %v19999_v31 = vsel %vm4001_vm15, %v3998_v58, %v4000_v24 }
 0x235   : > { %18332 = vmatprep.subr.msk.mxu1 %vm22608_vm6, %v19999_v31  ;;  %18356 = vmatmul.mubr.msk.f32.vlgmr.msra.gmra.mxu0 %vm1254_vm8, %v18352_v59 }
 0x236   : > { %18333 = vmatpush1.msk.msra.mxu1 %vm22608_vm6, %v20004_v50  ;;  %4851 = vmatprep.mubr.f32.mxu0 %v22502_v1 }
 0x237   : > { %18334 = vmatmul.mubr.msk.f32.vlgmr.msra.gmra.mxu1 %vm1254_vm8, %v18330_v44 }
 0x238   : > { %v4625_v37 = vpop.permute.xlu0 %4624  ;;  %4280 = vmatprep.mubr.f32.mxu1 %v22502_v1  ;;  %v20027_v56 = vpop.permute.xlu1 %4772 }
 0x239   : > { %22701 = vst [vmem:[#allocation61_spill] sm:$0xff] %v20027_v56  ;;  %v20093_v17 = vsel %vm1254_vm8, %v20027_v56, %v4775_v53 }
 0x23d   : > { %v4205_v58 = vpop.permute.xlu0 %4204  ;;  %v4866_v24 = vpop.permute.xlu1 %4865 }
 0x23e   : > { %v20015_v57 = vsel %vm4206_vm1, %v4203_v27, %v4205_v58  ;;  %v18357_v58 = vld [vmem:[%s22660_s8 + $0xc] sm:$0x3]  ;;  %s22753_s8 = smov 48  }
 0x23f   : > { %18340 = vmatprep.subr.msk.mxu1 %vm22608_vm6, %v20015_v57 }
 0x240   : > { %18341 = vmatpush1.msk.msra.mxu1 %vm22608_vm6, %v20020_v51 }
 0x241   : > { %18342 = vmatmul.mubr.msk.f32.vlgmr.msra.gmra.mxu1 %vm1254_vm8, %v18338_v18 }
 0x242   : > { %v4397_v26 = vpop.permute.xlu0 %4396  ;;  %4473 = vmatprep.mubr.f32.mxu1 %v22502_v1 }
 0x243   : > { %v20031_v0 = vsel %vm4189_vm4, %v4395_v36, %v4397_v26  ;;  %v20035_v27 = vsel %vm4189_vm4, %v4397_v26, %v19947_v15 }
 0x244   : > { %18349 = vmatprep.subr.msk.mxu1 %vm22608_vm6, %v20035_v27 }
 0x245   : > { %18350 = vmatpush1.msk.msra.mxu1 %vm22608_vm6, %v20031_v0 }
 0x246   : > { %18351 = vmatmul.mubr.msk.f32.vlgmr.msra.gmra.mxu1 %vm1254_vm8, %v18347_v21  ;;  %v20066_v21 = vpop.permute.xlu1 %6831 }
 0x247   : > { %v4627_v59 = vpop.permute.xlu0 %4626  ;;  %4703 = vmatprep.mubr.f32.mxu1 %v22502_v1  ;;  %22704 = vst [vmem:[#allocation64_spill] sm:$0xff] %v20066_v21 }
 0x248   : > { %v20045_v36 = vsel %vm3959_vm14, %v4625_v37, %v4627_v59  ;;  %v20049_v44 = vsel %vm3959_vm14, %v4627_v59, %v19959_v10 }
 0x249   : > { %18359 = vmatprep.subr.msk.mxu1 %vm22608_vm6, %v20049_v44 }
 0x24a   : > { %18360 = vmatpush1.msk.msra.mxu1 %vm22608_vm6, %v20045_v36 }
 0x24b   : > { %18361 = vmatmul.mubr.msk.f32.vlgmr.msra.gmra.mxu1 %vm1254_vm8, %v18357_v58 }
 0x24c   : > { %v20057_v18 = vpop.permute.xlu0 %5745  ;;  %4941 = vmatprep.mubr.f32.mxu1 %v22502_v1  ;;  %v6839_v1 = vmul.f32 %v20066_v21, %v19351_v23 }
 0x24d   : > { %22702 = vst [vmem:[#allocation62_spill] sm:$0xff] %v20057_v18  ;;  %v5754_v37 = vmul.f32 %v20057_v18, %v19370_v28  ;;  %v20064_v26 = vsel %vm22614_vm10, %v5744_v4, %v20057_v18 }
 0x24e   : > { %22703 = vst [vmem:[#allocation63_spill] sm:$0xff] %v20064_v26  ;;  %v5753_v59 = vmul.f32 %v20064_v26, %v19351_v23 }
 0x24f   : > { %5877 = vrot.lane.b32.xlu1 %v5754_v37, %s22596_s16  ;;  %v5752_v37 = vmul.f32 0.0, %v5744_v4 }
 0x250   : > { %5875 = vrot.lane.b32.xlu0 %v5753_v59, %s22596_s16 }
 0x251   : > { %v4864_v58 = vpop.permute.xlu0 %4863 }
 0x252   : > { %v20075_v19 = vsel %vm22519_vm11, %v4864_v58, %v4866_v24  ;;  %v20087_v24 = vpop.permute.xlu1 %6946 }
 0x253   : > { %18368 = vmatprep.subr.msk.mxu1 %vm22608_vm6, %v20075_v19  ;;  %6845 = vrot.lane.b32.xlu1 %v6839_v1, %s22534_s28  ;;  %22705 = vst [vmem:[#allocation65_spill] sm:$0xff] %v20087_v24 }
 0x254   : > { %5787 = vrot.lane.b32.xlu0 %v5779_v20, %s22598_s1  ;;  %v4720_v20 = vld [vmem:[%s19180_s27] sm:$0x3]  ;;  %s22725_s1 = smov 1  }
 0x256   : > { %v4777_v59 = vpop.permute.xlu0 %4776 }
 0x257   : > { %v20084_v16 = vsel %vm1254_vm8, %v4775_v53, %v4777_v59  ;;  %v22707_v53 = vmov 0.0  }
 0x258   : > { %18365 = vmatprep.subr.msk.mxu0 %vm22608_vm6, %v20084_v16  ;;  %5873 = vrot.lane.b32.xlu0 %v5752_v37, %s22596_s16  ;;  %v18371_v37 = vld [vmem:[%s19180_s27 + $0x4] sm:$0x3]  ;;  %s22722_s16 = smov 3  }
 0x259   : > { %18366 = vmatpush1.msk.msra.mxu0 %vm22608_vm6, %v20093_v17 }
 0x25a   : > { %v20098_v1 = vpop.permute.xlu0 %4861  ;;  %18367 = vmatmul.mubr.msk.f32.vlgmr.msra.gmra.mxu0 %vm1254_vm8, %v18363_v46  ;;  %18372 = vmatprep.subr.msk.mxu0 %vm22608_vm6, %v19969_v25  ;;  %v5522_v46 = vpop.permute.xlu1 %5521 }
 0x25b   : > { %22706 = vst [vmem:[#allocation66_spill] sm:$0xff] %v20098_v1  ;;  %18373 = vmatpush1.msk.msra.mxu0 %vm22608_vm6, %v19966_v3  ;;  %v20108_v4 = vsel %vm22519_vm11, %v20098_v1, %v4864_v58  ;;  %5017 = vmatprep.mubr.f32.mxu0 %v22707_v53  ;;  %v18375_v58 = vld [vmem:[%s19180_s27 + $0x6] sm:$0x3]  ;;  %vm22616_vm11 = vcmask 56320  }
 0x25c   : > { %18369 = vmatpush1.msk.msra.mxu1 %vm22608_vm6, %v20108_v4  ;;  %18380 = vmatprep.subr.msk.mxu0 %vm22608_vm6, %v20015_v57 }
 0x25d   : > { %18370 = vmatmul.mubr.msk.f32.vlgmr.msra.gmra.mxu1 %vm1254_vm8, %v4720_v20  ;;  %18376 = vmatprep.subr.msk.mxu1 %vm22608_vm6, %v19999_v31  ;;  %v18379_v20 = vld [vmem:[%s19180_s27 + $0x8] sm:$0x3] }
 0x25e   : > { %v6834_v59 = vpop.permute.xlu0 %6833  ;;  %18374 = vmatmul.mubr.msk.f32.vlgmr.msra.gmra.mxu0 %vm1254_vm8, %v18371_v37  ;;  %18377 = vmatpush1.msk.msra.mxu1 %vm22608_vm6, %v20004_v50 }
 0x25f   : > { %v20125_v1 = vsel %vm22617_vm7, %v20066_v21, %v6834_v59  ;;  %v6841_v6 = vmul.f32 0.0, %v6834_v59  ;;  %18381 = vmatpush1.msk.msra.mxu0 %vm22608_vm6, %v20020_v51  ;;  %18384 = vmatprep.subr.msk.mxu1 %vm22608_vm6, %v19370_v28 }
 0x260   : > { %22708 = vst [vmem:[#allocation67_spill] sm:$0xff] %v20125_v1  ;;  %18388 = vmatprep.subr.msk.mxu0 %vm22608_vm6, %v20035_v27  ;;  %5095 = vmatprep.mubr.f32.mxu1 %v22707_v53  ;;  %v6840_v37 = vmul.f32 %v20125_v1, %v19370_v28 }
 0x261   : > { %18378 = vmatmul.mubr.msk.f32.vlgmr.msra.gmra.mxu1 %vm1254_vm8, %v18375_v58  ;;  %5173 = vmatprep.mubr.f32.mxu0 %v22707_v53  ;;  %v5524_v58 = vpop.permute.xlu1 %5523 }
 0x262   : > { %18385 = vmatpush1.msk.msra.mxu1 %vm22608_vm6, %v19351_v23  ;;  %v6949_v59 = vpop.permute.xlu0 %6948  ;;  %6849 = vrot.lane.b32.xlu0 %v6841_v6, %s22534_s28 }
 0x263   : > { %v20144_v56 = vsel %vm22616_vm11, %v20087_v24, %v6949_v59  ;;  %18382 = vmatmul.mubr.msk.f32.vlgmr.msra.gmra.mxu0 %vm1254_vm8, %v18379_v20  ;;  %18392 = vmatprep.subr.msk.mxu1 %vm22608_vm6, %v19984_v22  ;;  %v6956_v52 = vmul.f32 0.0, %v6949_v59  ;;  %v18391_v59 = vld [vmem:[%s19180_s27 + $0xe] sm:$0x3] }
 0x264   : > { %22709 = vst [vmem:[#allocation68_spill] sm:$0xff] %v20144_v56  ;;  %18389 = vmatpush1.msk.msra.mxu0 %vm22608_vm6, %v20031_v0  ;;  %6847 = vrot.lane.b32.xlu1 %v6840_v37, %s22534_s28  ;;  %v6955_v6 = vmul.f32 %v20144_v56, %v19370_v28  ;;  %s22714_s28 = sld [smem:[#allocation18_spill]]  ;;  %v4712_v56 = vld [vmem:[%s19145_s14] sm:$0x3] }
 0x265   : > { %18396 = vmatprep.subr.msk.mxu0 %vm22608_vm6, %v20049_v44  ;;  %5251 = vmatprep.mubr.f32.mxu1 %v22707_v53 }
 0x266   : > { %18386 = vmatmul.mubr.msk.f32.vlgmr.msra.gmra.mxu1 %vm1254_vm8, %v18383_v55  ;;  %5329 = vmatprep.mubr.f32.mxu0 %v22707_v53  ;;  %v20161_v20 = vpop.permute.xlu0 %5525  ;;  %v20174_v55 = vpop.permute.xlu1 %5640 }
 0x267   : > { %22710 = vst [vmem:[#allocation69_spill] sm:$0xff] %v20161_v20  ;;  %18393 = vmatpush1.msk.msra.mxu1 %vm22608_vm6, %v19991_v40  ;;  %18390 = vmatmul.mubr.msk.f32.vlgmr.msra.gmra.mxu0 %vm1254_vm8, %v18387_v32  ;;  %v20168_v37 = vsel %vm4761_vm0, %v5524_v58, %v20161_v20  ;;  %22711 = vst [vmem:[#allocation70_spill] sm:$0xff] %v20174_v55  ;;  %v20180_v32 = vsel %vm4761_vm0, %v5522_v46, %v5524_v58  ;;  %v18399_v58 = vld [vmem:[%s19180_s27 + $0x12] sm:$0x3] }
 0x268   : > { %18397 = vmatpush1.msk.msra.mxu0 %vm22608_vm6, %v20045_v36  ;;  %6964 = vrot.lane.b32.xlu1 %v6956_v52, %s22594_s0  ;;  %v18395_v52 = vld [vmem:[%s19180_s27 + $0x10] sm:$0x3] }
 0x269   : > { %6962 = vrot.lane.b32.xlu0 %v6955_v6, %s22594_s0  ;;  %5407 = vmatprep.mubr.f32.mxu1 %v22707_v53  ;;  %v6954_v6 = vmul.f32 %v20087_v24, %v19351_v23 }
 0x26a   : > { %18401 = vmatprep.subr.msk.mxu1 %vm22608_vm6, %v20168_v37  ;;  %18394 = vmatmul.mubr.msk.f32.vlgmr.msra.gmra.mxu1 %vm1254_vm8, %v18391_v59  ;;  %v5639_v20 = vpop.permute.xlu0 %5638  ;;  %v2750_v59 = vld [vmem:[%s22712_s6] sm:$0x3]  ;;  %s22752_s6 = smov 96  }
 0x26b   : > { %18402 = vmatpush1.msk.msra.mxu1 %vm22608_vm6, %v20180_v32  ;;  %5485 = vmatprep.mubr.f32.mxu0 %v22707_v53  ;;  %v20193_v46 = vsel %vm4736_vm13, %v5639_v20, %v20174_v55  ;;  %v18404_v55 = vld [vmem:[%s19180_s27 + $0x14] sm:$0x3]  ;;  %v7048_v24 = vld [vmem:[%s22714_s28] sm:$0x3]  ;;  %s22717_s28 = sld [smem:[#allocation17_spill]] }
 0x26c   : > { %1870 = vperm.xlu1 %19004, %v1867_v30   ;;  %18406 = vmatprep.subr.msk.mxu0 %vm22608_vm6, %v20193_v46 }
 0x26d   : > { %6960 = vrot.lane.b32.xlu0 %v6954_v6, %s22594_s0  ;;  %18398 = vmatmul.mubr.msk.f32.vlgmr.msra.gmra.mxu0 %vm1254_vm8, %v18395_v52  ;;  %v5724_v52 = vld [vmem:[%s22713_s4] sm:$0x3]  ;;  %s22720_s0 = smov 2   ;;  %s22747_s4 = smov 7  }
 0x26e   : > { %v5637_v29 = vpop.permute.xlu0 %5636  ;;  %5600 = vmatprep.mubr.f32.mxu1 %v22707_v53  ;;  %5715 = vmatprep.mubr.f32.mxu0 %v22707_v53  ;;  %v3935_v6 = vld [vmem:[%s19205_s20] sm:$0x3] }
 0x26f   : > { %v20206_v30 = vsel %vm4736_vm13, %v5637_v29, %v5639_v20  ;;  %18403 = vmatmul.mubr.msk.f32.vlgmr.msra.gmra.mxu1 %vm1254_vm8, %v18399_v58  ;;  %v20217_v29 = vpop.f32.mrf.mxu0  ;;  %v20219_v20 = vpop.f32.mrf.mxu1 }
 0x270   : > { %2753 = vperm.xlu1 %19004, %v2750_v59   ;;  %18407 = vmatpush1.msk.msra.mxu0 %vm22608_vm6, %v20206_v30  ;;  %22715 = vst [vmem:[#allocation71_spill] sm:$0xff] %v20219_v20 }
 0x271   : > { %4715 = vperm.xlu0 %19005, %v4712_v56   ;;  %18408 = vmatmul.mubr.msk.f32.vlgmr.msra.gmra.mxu0 %vm1254_vm8, %v18404_v55  ;;  %v20221_v58 = vpop.f32.mrf.mxu1  ;;  %v1331_v59 = vpop.f32.mrf.mxu0  ;;  %v18409_v62 = vld [vmem:[%s22717_s28 + $0x2] sm:$0x3] }
 0x272   : > { %5863 = vmatprep.mubr.f32.mxu1 %v22707_v53  ;;  %5953 = vmatprep.mubr.f32.mxu0 %v22707_v53  ;;  %22716 = vst [vmem:[#allocation72_spill] sm:$0xff] %v20221_v58 }
 0x273   : > { %v1416_v56 = vpop.f32.mrf.mxu1  ;;  %v20223_v1 = vpop.f32.mrf.mxu0 }
 0x274   : > { %5727 = vperm.xlu1 %19004, %v5724_v52  }
 0x275   : > { %3938 = vperm.xlu0 %19005, %v3935_v6   ;;  %v1418_v55 = vpop.f32.mrf.mxu1  ;;  %v20225_v21 = vpop.f32.mrf.mxu0 }
 0x277   : > { %v20227_v10 = vpop.f32.mrf.mxu1  ;;  %v20229_v11 = vpop.f32.mrf.mxu0 }
 0x278   : > { %7051 = vperm.xlu1 %19004, %v7048_v24  }
 0x279   : > { %v20231_v52 = vpop.f32.mrf.mxu1  ;;  %v20233_v24 = vpop.f32.mrf.mxu0 }
 0x27b   : > { %v20235_v6 = vpop.f32.mrf.mxu1  ;;  %v20237_v20 = vpop.f32.mrf.mxu0 }
 0x27d   : > { %v20239_v58 = vpop.f32.mrf.mxu1  ;;  %v20241_v15 = vpop.f32.mrf.mxu0 }
 0x27f   : > { %v20243_v48 = vpop.f32.mrf.mxu1  ;;  %v20245_v33 = vpop.f32.mrf.mxu0 }
 0x281   : > { %v20247_v9 = vpop.f32.mrf.mxu1  ;;  %v20249_v18 = vpop.f32.mrf.mxu0 }
 0x283   : > { %v20251_v26 = vpop.f32.mrf.mxu1  ;;  %v20253_v12 = vpop.f32.mrf.mxu0 }
 0x285   : > { %v20255_v34 = vpop.f32.mrf.mxu1  ;;  %v20257_v35 = vpop.f32.mrf.mxu0 }
 0x287   : > { %v20261_v42 = vpop.f32.mrf.mxu1  ;;  %v20263_v47 = vpop.f32.mrf.mxu0 }
 0x289   : > { %v20265_v8 = vpop.f32.mrf.mxu1  ;;  %v20268_v41 = vpop.f32.mrf.mxu0 }
 0x28b   : > { %v20271_v14 = vpop.f32.mrf.mxu1  ;;  %v20277_v49 = vpop.f32.mrf.mxu0 }
 0x28d   : > { %v20280_v61 = vpop.f32.mrf.mxu1 }
 0x29a   : > { %v5786_v13 = vpop.permute.xlu1 %5785 }
 0x29e   : > { %v20259_v5 = vpop.permute.xlu1 %5783 }
 0x29f   : > { %v5790_v2 = vsel %vm22617_vm7, %v20259_v5, %v5786_v13 }
 0x2c1   : > { %v5878_v54 = vpop.permute.xlu1 %5877 }
 0x2c2   : > { %v5876_v60 = vpop.permute.xlu0 %5875 }
 0x2c3   : > { %v5881_v43 = vsel %vm22616_vm11, %v5876_v60, %v5878_v54 }
 0x2c4   : > { %18414 = vmatprep.subr.msk.mxu0 %vm22608_vm6, %v5881_v43 }
 0x2c6   : > { %v5788_v38 = vpop.permute.xlu0 %5787 }
 0x2c7   : > { %v5791_v7 = vsel %vm22617_vm7, %v5786_v13, %v5788_v38  ;;  %v5732_v38 = vld [vmem:[%s22717_s28] sm:$0x3]  ;;  %v1417_v13 = vadd.f32 %v1416_v56, %v20217_v29  ;;  %v18441_v56 = vld [vmem:[%s22717_s28 + $0x10] sm:$0x3] }
 0x2c8   : > { %18411 = vmatprep.subr.msk.mxu1 %vm22608_vm6, %v5791_v7  ;;  %v18417_v7 = vld [vmem:[%s22717_s28 + $0x4] sm:$0x3] }
 0x2c9   : > { %18412 = vmatpush1.msk.msra.mxu1 %vm22608_vm6, %v5790_v2  ;;  %v20295_v2 = vpop.f32.mrf.mxu0 }
 0x2ca   : > { %v20283_v54 = vpop.permute.xlu0 %5873  ;;  %18413 = vmatmul.mubr.msk.f32.vlgmr.msra.gmra.mxu1 %vm1254_vm8, %v18409_v62  ;;  %18418 = vmatprep.subr.msk.mxu1 %vm22608_vm6, %v20075_v19  ;;  %v20300_v62 = vpop.f32.mrf.mxu1  ;;  %v18421_v19 = vld [vmem:[%s22717_s28 + $0x6] sm:$0x3] }
 0x2cb   : > { %v5880_v43 = vsel %vm22616_vm11, %v20283_v54, %v5876_v60  ;;  %18419 = vmatpush1.msk.msra.mxu1 %vm22608_vm6, %v20108_v4  ;;  %6029 = vmatprep.mubr.f32.mxu1 %v22707_v53  ;;  %v18425_v60 = vld [vmem:[%s22717_s28 + $0x8] sm:$0x3]  ;;  %v20315_v4 = vpop.f32.mrf.mxu0  ;;  %vm22781_vm11 = vcmask 785408  }
 0x2cc   : > { %18415 = vmatpush1.msk.msra.mxu0 %vm22608_vm6, %v5880_v43  ;;  %18426 = vmatprep.subr.msk.mxu1 %vm22608_vm6, %v19969_v25  ;;  %v1419_v25 = vadd.f32 %v1418_v55, %v1331_v59  ;;  %vm22783_vm7 = vmmov %vm22781_vm11 }
 0x2cd   : > { %18416 = vmatmul.mubr.msk.f32.vlgmr.msra.gmra.mxu0 %vm1254_vm8, %v5732_v38  ;;  %18422 = vmatprep.subr.msk.mxu0 %vm22608_vm6, %v20084_v16  ;;  %v20320_v16 = vpop.f32.mrf.mxu1  ;;  %v20337_v59 = vpop.f32.mrf.mxu0 }
 0x2ce   : > { %18420 = vmatmul.mubr.msk.f32.vlgmr.msra.gmra.mxu1 %vm1254_vm8, %v18417_v7  ;;  %18423 = vmatpush1.msk.msra.mxu0 %vm22608_vm6, %v20093_v17  ;;  %v20324_v17 = vpop.permute.xlu1 %6845  ;;  %v1511_v29 = vadd.f32 %v20225_v21, %v1419_v25  ;;  %v2040_v21 = vadd.f32 %v20249_v18, %v20247_v9  ;;  %v18449_v18 = vld [vmem:[%s22717_s28 + $0x14] sm:$0x3] }
 0x2cf   : > { %18427 = vmatpush1.msk.msra.mxu1 %vm22608_vm6, %v19966_v3  ;;  %18430 = vmatprep.subr.msk.mxu0 %vm22608_vm6, %v19999_v31  ;;  %v18429_v3 = vld [vmem:[%s22717_s28 + $0xa] sm:$0x3]  ;;  %v18433_v31 = vld [vmem:[%s22717_s28 + $0xc] sm:$0x3] }
 0x2d0   : > { %18434 = vmatprep.subr.msk.mxu1 %vm22608_vm6, %v20015_v57  ;;  %6107 = vmatprep.mubr.f32.mxu0 %v22707_v53  ;;  %v1510_v57 = vadd.f32 %v20223_v1, %v1417_v13  ;;  %v1593_v9 = vadd.f32 %v20231_v52, %v1511_v29  ;;  %v18466_v13 = vld [vmem:[%s22717_s28 + $0x1c] sm:$0x3] }
 0x2d1   : > { %18424 = vmatmul.mubr.msk.f32.vlgmr.msra.gmra.mxu0 %vm1254_vm8, %v18421_v19  ;;  %6185 = vmatprep.mubr.f32.mxu1 %v22707_v53 }
 0x2d2   : > { %18431 = vmatpush1.msk.msra.mxu0 %vm22608_vm6, %v20004_v50  ;;  %18428 = vmatmul.mubr.msk.f32.vlgmr.msra.gmra.mxu1 %vm1254_vm8, %v18425_v60  ;;  %v20342_v50 = vpop.f32.mrf.mxu1  ;;  %v18461_v60 = vld [vmem:[%s22717_s28 + $0x1a] sm:$0x3] }
 0x2d3   : > { %18435 = vmatpush1.msk.msra.mxu1 %vm22608_vm6, %v20020_v51  ;;  %18438 = vmatprep.subr.msk.mxu0 %vm22608_vm6, %v19370_v28  ;;  %v2038_v28 = vadd.f32 %v20245_v33, %v20243_v48  ;;  %v1592_v48 = vadd.f32 %v20227_v10, %v1510_v57  ;;  %v20368_v33 = vpop.f32.mrf.mxu0  ;;  %v2119_v10 = vadd.f32 %v20255_v34, %v2040_v21 }
 0x2d4   : > { %18442 = vmatprep.subr.msk.mxu1 %vm22608_vm6, %v20035_v27  ;;  %6263 = vmatprep.mubr.f32.mxu0 %v22707_v53  ;;  %v20344_v51 = vpop.permute.xlu0 %6849  ;;  %v18437_v27 = vld [vmem:[%s22717_s28 + $0xe] sm:$0x3] }
 0x2d5   : > { %22718 = vst [vmem:[#allocation73_spill] sm:$0xff] %v20344_v51  ;;  %18432 = vmatmul.mubr.msk.f32.vlgmr.msra.gmra.mxu0 %vm1254_vm8, %v18429_v3  ;;  %6341 = vmatprep.mubr.f32.mxu1 %v22707_v53  ;;  %v1683_v55 = vadd.f32 %v20229_v11, %v1592_v48  ;;  %v2197_v11 = vadd.f32 %v20257_v35, %v2119_v10  ;;  %v18457_v35 = vld [vmem:[%s22717_s28 + $0x18] sm:$0x3] }
 0x2d6   : > { %v6848_v1 = vpop.permute.xlu1 %6847  ;;  %18439 = vmatpush1.msk.msra.mxu0 %vm22608_vm6, %v19351_v23  ;;  %18436 = vmatmul.mubr.msk.f32.vlgmr.msra.gmra.mxu1 %vm1254_vm8, %v18433_v31  ;;  %v20366_v23 = vpop.f32.mrf.mxu1  ;;  %v22721_v10 = vld [vmem:[#allocation40_spill] sm:$0xff] }
 0x2d7   : > { %18443 = vmatpush1.msk.msra.mxu1 %vm22608_vm6, %v20031_v0  ;;  %18446 = vmatprep.subr.msk.mxu0 %vm22608_vm6, %v19984_v22  ;;  %v2118_v22 = vadd.f32 %v20251_v26, %v2038_v28  ;;  %v18445_v0 = vld [vmem:[%s22717_s28 + $0x12] sm:$0x3]  ;;  %v1684_v26 = vadd.f32 %v20233_v24, %v1593_v9  ;;  %v1774_v38 = vadd.f32 %v20235_v6, %v1683_v55 }
 0x2d8   : > { %18450 = vmatprep.subr.msk.mxu1 %vm22608_vm6, %v20049_v44  ;;  %6419 = vmatprep.mubr.f32.mxu0 %v22707_v53  ;;  %v2910_v52 = vpop.f32.mrf.mxu1  ;;  %v2275_v6 = vadd.f32 %v20265_v8, %v2197_v11 }
 0x2d9   : > { %18440 = vmatmul.mubr.msk.f32.vlgmr.msra.gmra.mxu0 %vm1254_vm8, %v18437_v27  ;;  %6497 = vmatprep.mubr.f32.mxu1 %v22707_v53  ;;  %v1865_v25 = vadd.f32 %v20237_v20, %v1774_v38  ;;  %v2911_v27 = vadd.f32 %v2910_v52, %v20368_v33  ;;  %v22724_v52 = vld [vmem:[#allocation35_spill] sm:$0xff]  ;;  %v22727_v38 = vld [vmem:[#allocation37_spill] sm:$0xff] }
 0x2da   : > { %18447 = vmatpush1.msk.msra.mxu0 %vm22608_vm6, %v19991_v40  ;;  %18444 = vmatmul.mubr.msk.f32.vlgmr.msra.gmra.mxu1 %vm1254_vm8, %v18441_v56  ;;  %v20385_v34 = vpop.permute.xlu1 %6964  ;;  %v2835_v40 = vpop.f32.mrf.mxu0  ;;  %v2353_v31 = vadd.f32 %v20268_v41, %v2275_v6 }
 0x2db   : > { %v6963_v44 = vpop.permute.xlu0 %6962  ;;  %18451 = vmatpush1.msk.msra.mxu1 %vm22608_vm6, %v20045_v36  ;;  %18454 = vmatprep.subr.msk.mxu0 %vm22608_vm6, %v20168_v37  ;;  %22719 = vst [vmem:[#allocation74_spill] sm:$0xff] %v20385_v34  ;;  %v2196_v36 = vadd.f32 %v20253_v12, %v2118_v22  ;;  %v6852_v37 = vsel %vm22615_vm12, %v6848_v1, %v20344_v51  ;;  %v2912_v43 = vpop.f32.mrf.mxu1 }
 0x2dc   : > { %18458 = vmatprep.subr.msk.mxu1 %vm22608_vm6, %v20193_v46  ;;  %6575 = vmatprep.mubr.f32.mxu0 %v22707_v53  ;;  %v18453_v46 = vld [vmem:[%s22717_s28 + $0x16] sm:$0x3]  ;;  %v6967_v12 = vsel %vm22614_vm10, %v6963_v44, %v20385_v34  ;;  %v2986_v7 = vpop.f32.mrf.mxu0  ;;  %v2913_v56 = vadd.f32 %v2912_v43, %v2835_v40 }
 0x2dd   : > { %18448 = vmatmul.mubr.msk.f32.vlgmr.msra.gmra.mxu0 %vm1254_vm8, %v18445_v0  ;;  %6653 = vmatprep.mubr.f32.mxu1 %v22707_v53  ;;  %v2274_v19 = vadd.f32 %v20261_v42, %v2196_v36  ;;  %v3064_v8 = vpop.f32.mrf.mxu1 }
 0x2de   : > { %18455 = vmatpush1.msk.msra.mxu0 %vm22608_vm6, %v20180_v32  ;;  %18452 = vmatmul.mubr.msk.f32.vlgmr.msra.gmra.mxu1 %vm1254_vm8, %v18449_v18  ;;  %v1775_v32 = vadd.f32 %v20239_v58, %v1684_v26  ;;  %v2988_v42 = vpop.f32.mrf.mxu0 }
 0x2df   : > { %v6961_v24 = vpop.permute.xlu0 %6960  ;;  %18459 = vmatpush1.msk.msra.mxu1 %vm22608_vm6, %v20206_v30  ;;  %18463 = vmatprep.subr.msk.mxu0 %vm22608_vm6, %v6852_v37  ;;  %v6851_v30 = vsel %vm22615_vm12, %v20324_v17, %v6848_v1  ;;  %v2352_v3 = vadd.f32 %v20263_v47, %v2274_v19  ;;  %v3066_v29 = vpop.f32.mrf.mxu1  ;;  %v2431_v1 = vadd.f32 %v20280_v61, %v2353_v31 }
 0x2e0   : > { %18468 = vmatprep.subr.msk.mxu1 %vm22608_vm6, %v6967_v12  ;;  %6731 = vmatprep.mubr.f32.mxu0 %v22707_v53  ;;  %v6966_v58 = vsel %vm22614_vm10, %v6961_v24, %v6963_v44  ;;  %v1866_v17 = vadd.f32 %v20241_v15, %v1775_v32  ;;  %v3142_v28 = vpop.f32.mrf.mxu0  ;;  %v2991_v44 = vadd.f32 %v2986_v7, %v2911_v27  ;;  %v22733_v27 = vld [vmem:[#allocation43_spill] sm:$0xff]  ;;  %vm22774_vm10 = vcmask 130048  }
 0x2e1   : > { %18456 = vmatmul.mubr.msk.f32.vlgmr.msra.gmra.mxu0 %vm1254_vm8, %v18453_v46  ;;  %6809 = vmatprep.mubr.f32.mxu1 %v22707_v53  ;;  %v2430_v21 = vadd.f32 %v20271_v14, %v2352_v3  ;;  %v3220_v9 = vpop.f32.mrf.mxu1  ;;  %v2509_v14 = vadd.f32 %v20295_v2, %v2431_v1  ;;  %v2992_v18 = vadd.f32 %v2988_v42, %v2913_v56  ;;  %v22723_v2 = vld [vmem:[#allocation32_spill] sm:$0xff]  ;;  %vm22776_vm12 = vmmov %vm22774_vm10 }
 0x2e2   : > { %18464 = vmatpush1.msk.msra.mxu0 %vm22608_vm6, %v6851_v30  ;;  %18460 = vmatmul.mubr.msk.f32.vlgmr.msra.gmra.mxu1 %vm1254_vm8, %v18457_v35  ;;  %v3144_v48 = vpop.f32.mrf.mxu0  ;;  %v3069_v11 = vadd.f32 %v3064_v8, %v2991_v44  ;;  %v22735_v44 = vld [vmem:[#allocation45_spill] sm:$0xff] }
 0x2e3   : > { %18469 = vmatpush1.msk.msra.mxu1 %vm22608_vm6, %v6966_v58  ;;  %6924 = vmatprep.mubr.f32.mxu0 %v22707_v53  ;;  %v2508_v22 = vadd.f32 %v20277_v49, %v2430_v21  ;;  %v3222_v33 = vpop.f32.mrf.mxu1  ;;  %v2587_v49 = vadd.f32 %v20320_v16, %v2509_v14  ;;  %v3070_v37 = vadd.f32 %v3066_v29, %v2992_v18  ;;  %v22726_v16 = vld [vmem:[#allocation46_spill] sm:$0xff]  ;;  %vm7074_vm6 = vcmask 1041408  }
 0x2e4   : > { %7039 = vmatprep.mubr.f32.mxu1 %v22707_v53  ;;  %v3298_v55 = vpop.f32.mrf.mxu0  ;;  %v3147_v43 = vadd.f32 %v3142_v28, %v3069_v11  ;;  %v22732_v29 = vld [vmem:[#allocation42_spill] sm:$0xff] }
 0x2e5   : > { %18465 = vmatmul.mubr.msk.f32.vlgmr.msra.gmra.mxu0 %vm1254_vm8, %v18461_v60  ;;  %v2586_v26 = vadd.f32 %v20300_v62, %v2508_v22  ;;  %v3376_v24 = vpop.f32.mrf.mxu1  ;;  %v2668_v62 = vadd.f32 %v20337_v59, %v2587_v49  ;;  %v3148_v7 = vadd.f32 %v3144_v48, %v3070_v37  ;;  %v22729_v59 = vld [vmem:[#allocation41_spill] sm:$0xff]  ;;  %v22730_v60 = vld [vmem:[#allocation38_spill] sm:$0xff]  ;;  %v22734_v48 = vld [vmem:[#allocation44_spill] sm:$0xff] }
 0x2e6   : > { %18470 = vmatmul.mubr.msk.f32.vlgmr.msra.gmra.mxu1 %vm1254_vm8, %v18466_v13  ;;  %7143 = vmatprep.mubr.f32.mxu0 %v22707_v53  ;;  %v3300_v46 = vpop.f32.mrf.mxu0 }
 0x2e7   : > { %v1871_v57 = vpop.permute.xlu1 %1870  ;;  %7229 = vmatprep.mubr.f32.mxu1 %v22707_v53  ;;  %v2667_v12 = vadd.f32 %v20315_v4, %v2586_v26  ;;  %v3378_v30 = vpop.f32.mrf.mxu1  ;;  %v2749_v4 = vadd.f32 %v20366_v23, %v2668_v62  ;;  %v3226_v42 = vadd.f32 %v3222_v33, %v3148_v7  ;;  %v22731_v23 = vld [vmem:[#allocation47_spill] sm:$0xff]  ;;  %v22736_v33 = vld [vmem:[#allocation50_spill] sm:$0xff] }
 0x2e8   : > { %v20432_v20 = vadd.f32 %v1871_v57, %v1865_v25  ;;  %v20434_v15 = vadd.f32 %v1871_v57, %v1866_v17  ;;  %v3454_v19 = vpop.f32.mrf.mxu0  ;;  %v3225_v17 = vadd.f32 %v3220_v9, %v3147_v43 }
 0x2e9   : > { %v2748_v6 = vadd.f32 %v20342_v50, %v2667_v12  ;;  %v3532_v3 = vpop.f32.mrf.mxu1 }
 0x2ea   : > { %v7062_v41 = vmul.f32 %v19402_v39, %v20434_v15  ;;  %v7061_v47 = vmul.f32 %v19448_v63, %v20432_v20  ;;  %v7058_v61 = vmul.f32 %v19412_v45, %v20434_v15  ;;  %v7057_v0 = vmul.f32 %v22721_v10, %v20432_v20  ;;  %v3456_v8 = vpop.f32.mrf.mxu0 }
 0x2eb   : > { %v7239_v40 = vmul.f32 %v22723_v2, %v20434_v15  ;;  %v7238_v36 = vmul.f32 %v22724_v52, %v20432_v20  ;;  %v7415_v35 = vmul.f32 %v22726_v16, %v20434_v15  ;;  %v7414_v32 = vmul.f32 %v22727_v38, %v20432_v20  ;;  %v2754_v25 = vpop.permute.xlu1 %2753  ;;  %v3534_v21 = vpop.f32.mrf.mxu1 }
 0x2ec   : > { %7067 = vrot.lane.b32.xlu1 %v7062_v41, %s22720_s0  ;;  %7065 = vrot.lane.b32.xlu0 %v7061_v47, %s22720_s0  ;;  %v7507_v58 = vmul.f32 %v22729_v59, %v20434_v15  ;;  %v7506_v13 = vmul.f32 %v22730_v60, %v20432_v20  ;;  %v20477_v31 = vadd.f32 %v2754_v25, %v2748_v6  ;;  %v3610_v1 = vpop.f32.mrf.mxu0 }
 0x2ed   : > { %v20479_v50 = vadd.f32 %v2754_v25, %v2749_v4  ;;  %v7599_v57 = vmul.f32 %v22731_v23, %v20434_v15  ;;  %v7598_v28 = vmul.f32 %v22732_v29, %v20432_v20  ;;  %v3303_v41 = vadd.f32 %v3298_v55, %v3225_v17  ;;  %v3688_v14 = vpop.f32.mrf.mxu1 }
 0x2ee   : > { %v3304_v47 = vadd.f32 %v3300_v46, %v3226_v42  ;;  %v8324_v9 = vmul.f32 %v22734_v48, %v20477_v31  ;;  %v3612_v22 = vpop.f32.mrf.mxu0  ;;  %v8320_v55 = vmul.f32 %v22736_v33, %v20477_v31  ;;  %v8500_v37 = vmul.f32 %v22721_v10, %v20477_v31 }
 0x2ef   : > { %v8325_v56 = vmul.f32 %v22733_v27, %v20479_v50  ;;  %v8321_v18 = vmul.f32 %v22735_v44, %v20479_v50  ;;  %v3690_v26 = vpop.f32.mrf.mxu1  ;;  %v8501_v11 = vmul.f32 %v19412_v45, %v20479_v50  ;;  %v8685_v6 = vmul.f32 %v22723_v2, %v20479_v50 }
 0x2f0   : > { %7154 = vrot.lane.b32.xlu1 %v7058_v61, %s22722_s16  ;;  %7152 = vrot.lane.b32.xlu0 %v7057_v0, %s22722_s16  ;;  %v3381_v61 = vadd.f32 %v3376_v24, %v3303_v41  ;;  %v3382_v0 = vadd.f32 %v3378_v30, %v3304_v47  ;;  %v3766_v49 = vpop.f32.mrf.mxu0  ;;  %v8684_v4 = vmul.f32 %v22724_v52, %v20477_v31 }
 0x2f1   : > { %v3847_v24 = vpop.f32.mrf.mxu1  ;;  %v8861_v42 = vmul.f32 %v22726_v16, %v20479_v50  ;;  %v8952_v41 = vmul.f32 %v22730_v60, %v20477_v31 }
 0x2f2   : > { %v3768_v46 = vpop.f32.mrf.mxu0 }
 0x2f3   : > { %v3849_v43 = vpop.f32.mrf.mxu1 }
 0x2f4   : > { %7244 = vrot.lane.b32.xlu1 %v7239_v40, %s22725_s1  ;;  %7242 = vrot.lane.b32.xlu0 %v7238_v36, %s22725_s1  ;;  %v3459_v40 = vadd.f32 %v3454_v19, %v3381_v61  ;;  %v3460_v36 = vadd.f32 %v3456_v8, %v3382_v0  ;;  %v3928_v7 = vpop.f32.mrf.mxu0  ;;  %v8860_v8 = vmul.f32 %v22727_v38, %v20477_v31 }
 0x2f5   : > { %v9045_v61 = vmul.f32 %v22731_v23, %v20479_v50  ;;  %v9044_v0 = vmul.f32 %v22732_v29, %v20477_v31 }
 0x2f6   : > { %v3537_v12 = vadd.f32 %v3532_v3, %v3459_v40  ;;  %v3538_v62 = vadd.f32 %v3534_v21, %v3460_v36 }
 0x2f8   : > { %7420 = vrot.lane.b32.xlu1 %v7415_v35, %s22728_s10  ;;  %7418 = vrot.lane.b32.xlu0 %v7414_v32, %s22728_s10  ;;  %v8593_v35 = vmul.f32 %v19402_v39, %v20479_v50  ;;  %v8592_v32 = vmul.f32 %v19448_v63, %v20477_v31  ;;  %v3615_v30 = vadd.f32 %v3610_v1, %v3537_v12 }
 0x2f9   : > { %v3616_v19 = vadd.f32 %v3612_v22, %v3538_v62  ;;  %v8953_v1 = vmul.f32 %v22729_v59, %v20479_v50 }
 0x2fa   : > { %v3693_v25 = vadd.f32 %v3688_v14, %v3615_v30 }
 0x2fb   : > { %v3694_v17 = vadd.f32 %v3690_v26, %v3616_v19  ;;  %v22741_v19 = vld [vmem:[#allocation51_spill] sm:$0xff] }
 0x2fc   : > { %7512 = vrot.lane.b32.xlu1 %v7507_v58, %s22676_s15  ;;  %7510 = vrot.lane.b32.xlu0 %v7506_v13, %s22676_s15  ;;  %v4077_v58 = vpop.f32.mrf.mxu1  ;;  %v3930_v13 = vpop.f32.mrf.mxu0 }
 0x2fd   : > { %v3772_v21 = vadd.f32 %v3768_v46, %v3694_v17  ;;  %v22738_v46 = vld [vmem:[#allocation48_spill] sm:$0xff] }
 0x2fe   : > { %v4079_v3 = vpop.f32.mrf.mxu1 }
 0x2ff   : > { %v3853_v14 = vadd.f32 %v3849_v43, %v3772_v21 }
 0x300   : > { %7604 = vrot.lane.b32.xlu1 %v7599_v57, %s22680_s23  ;;  %7602 = vrot.lane.b32.xlu0 %v7598_v28, %s22680_s23  ;;  %v4167_v57 = vpop.f32.mrf.mxu0  ;;  %v3771_v28 = vadd.f32 %v3766_v49, %v3693_v25  ;;  %v22742_v25 = vld [vmem:[#allocation59_spill] sm:$0xff] }
 0x301   : > { %v4168_v26 = vadd.f32 %v4167_v57, %v4077_v58  ;;  %v3934_v40 = vadd.f32 %v3930_v13, %v3853_v14 }
 0x302   : > { %v4169_v47 = vpop.f32.mrf.mxu0  ;;  %v3852_v22 = vadd.f32 %v3847_v24, %v3771_v28  ;;  %v9136_v24 = vmul.f32 %v22738_v46, %v20477_v31 }
 0x304   : > { %8330 = vrot.lane.b32.xlu0 %v8325_v56, %s22602_s7  ;;  %8328 = vrot.lane.b32.xlu1 %v8324_v9, %s22602_s7  ;;  %v4282_v56 = vpop.f32.mrf.mxu1  ;;  %v20527_v9 = vpop.permute.xlu0 %4715  ;;  %v3933_v49 = vadd.f32 %v3928_v7, %v3852_v22  ;;  %s22739_s7 = smov 124   ;;  %v22740_v7 = vld [vmem:[#allocation52_spill] sm:$0xff]  ;;  %v22746_v22 = vld [vmem:[#allocation62_spill] sm:$0xff] }
 0x305   : > { %v9229_v30 = vmul.f32 %v22740_v7, %v20479_v50 }
 0x308   : > { %8416 = vrot.lane.b32.xlu0 %v8321_v18, %s22604_s18  ;;  %8414 = vrot.lane.b32.xlu1 %v8320_v55, %s22604_s18  ;;  %v4284_v18 = vpop.f32.mrf.mxu1  ;;  %v4360_v55 = vpop.f32.mrf.mxu0  ;;  %s22744_s18 = smov 6  }
 0x309   : > { %v3939_v36 = vpop.permute.xlu0 %3938 }
 0x30a   : > { %v4362_v12 = vpop.f32.mrf.mxu0  ;;  %v4475_v62 = vpop.f32.mrf.mxu1  ;;  %v20545_v43 = vadd.f32 %v3939_v36, %v3934_v40 }
 0x30c   : > { %8506 = vrot.lane.b32.xlu0 %v8501_v11, %s22722_s16  ;;  %8504 = vrot.lane.b32.xlu1 %v8500_v37, %s22722_s16  ;;  %v22737_v11 = vld [vmem:[#allocation49_spill] sm:$0xff]  ;;  %v4590_v58 = vpop.f32.mrf.mxu0  ;;  %v10282_v14 = vmul.f32 %v22746_v22, %v20545_v43 }
 0x30d   : > { %v9137_v37 = vmul.f32 %v22737_v11, %v20479_v50 }
 0x30e   : > { %v4592_v57 = vpop.f32.mrf.mxu0 }
 0x310   : > { %8598 = vrot.lane.b32.xlu0 %v8593_v35, %s22720_s0  ;;  %8596 = vrot.lane.b32.xlu1 %v8592_v32, %s22720_s0  ;;  %v4287_v35 = vadd.f32 %v4282_v56, %v4168_v26  ;;  %v20543_v32 = vadd.f32 %v3939_v36, %v3933_v49 }
 0x312   : > { %v4365_v13 = vadd.f32 %v4360_v55, %v4287_v35  ;;  %v10285_v17 = vmul.f32 %v22742_v25, %v20543_v32  ;;  %v10461_v49 = vmul.f32 %v22736_v33, %v20543_v32 }
 0x314   : > { %8690 = vrot.lane.b32.xlu0 %v8685_v6, %s22725_s1  ;;  %8688 = vrot.lane.b32.xlu1 %v8684_v4, %s22725_s1  ;;  %v9228_v6 = vmul.f32 %v22741_v19, %v20477_v31  ;;  %v4477_v4 = vpop.f32.mrf.mxu1  ;;  %v4480_v21 = vadd.f32 %v4475_v62, %v4365_v13  ;;  %v10553_v62 = vmul.f32 %v22734_v48, %v20543_v32 }
 0x316   : > { %v4705_v28 = vpop.f32.mrf.mxu1  ;;  %v4595_v55 = vadd.f32 %v4590_v58, %v4480_v21 }
 0x318   : > { %8866 = vrot.lane.b32.xlu0 %v8861_v42, %s22728_s10  ;;  %8864 = vrot.lane.b32.xlu1 %v8860_v8, %s22728_s10  ;;  %v22743_v42 = vld [vmem:[#allocation56_spill] sm:$0xff]  ;;  %v4710_v36 = vadd.f32 %v4705_v28, %v4595_v55  ;;  %v10738_v55 = vmul.f32 %v19402_v39, %v20545_v43  ;;  %v10645_v39 = vmul.f32 %v22721_v10, %v20543_v32 }
 0x319   : > { %v10286_v8 = vmul.f32 %v22743_v42, %v20545_v43 }
 0x31c   : > { %8958 = vrot.lane.b32.xlu0 %v8953_v1, %s22676_s15  ;;  %8956 = vrot.lane.b32.xlu1 %v8952_v41, %s22676_s15  ;;  %v4170_v1 = vadd.f32 %v4169_v47, %v4079_v3  ;;  %v22745_v41 = vld [vmem:[#allocation63_spill] sm:$0xff]  ;;  %v10462_v3 = vmul.f32 %v22735_v44, %v20545_v43 }
 0x31d   : > { %v10281_v56 = vmul.f32 %v22745_v41, %v20543_v32 }
 0x31e   : > { %v4288_v26 = vadd.f32 %v4284_v18, %v4170_v1  ;;  %v10554_v18 = vmul.f32 %v22733_v27, %v20545_v43 }
 0x320   : > { %9050 = vrot.lane.b32.xlu0 %v9045_v61, %s22680_s23  ;;  %9048 = vrot.lane.b32.xlu1 %v9044_v0, %s22680_s23  ;;  %v4707_v61 = vpop.f32.mrf.mxu1  ;;  %v4853_v0 = vpop.f32.mrf.mxu0 }
 0x322   : > { %v4855_v47 = vpop.f32.mrf.mxu0  ;;  %v4943_v40 = vpop.f32.mrf.mxu1 }
 0x324   : > { %9142 = vrot.lane.b32.xlu0 %v9137_v37, %s22739_s7  ;;  %9140 = vrot.lane.b32.xlu1 %v9136_v24, %s22739_s7  ;;  %v4366_v37 = vadd.f32 %v4362_v12, %v4288_v26  ;;  %v4944_v24 = vadd.f32 %v4943_v40, %v4853_v0  ;;  %v4945_v35 = vpop.f32.mrf.mxu1  ;;  %v5019_v33 = vpop.f32.mrf.mxu0 }
 0x325   : > { %v4946_v48 = vadd.f32 %v4945_v35, %v4855_v47 }
 0x326   : > { %v4481_v44 = vadd.f32 %v4477_v4, %v4366_v37  ;;  %v5021_v58 = vpop.f32.mrf.mxu0  ;;  %v5097_v12 = vpop.f32.mrf.mxu1 }
 0x327   : > { %v5025_v42 = vadd.f32 %v5021_v58, %v4946_v48 }
 0x328   : > { %9234 = vrot.lane.b32.xlu0 %v9229_v30, %s22690_s11  ;;  %9232 = vrot.lane.b32.xlu1 %v9228_v6, %s22690_s11  ;;  %v20576_v30 = vadd.f32 %v20527_v9, %v4710_v36  ;;  %v5024_v6 = vadd.f32 %v5019_v33, %v4944_v24  ;;  %v4596_v27 = vadd.f32 %v4592_v57, %v4481_v44  ;;  %v5099_v25 = vpop.f32.mrf.mxu1 }
 0x329   : > { %v5103_v1 = vadd.f32 %v5099_v25, %v5025_v42  ;;  %v10737_v33 = vmul.f32 %v19448_v63, %v20543_v32 }
 0x32a   : > { %v5102_v13 = vadd.f32 %v5097_v12, %v5024_v6  ;;  %v4711_v4 = vadd.f32 %v4707_v61, %v4596_v27  ;;  %v5253_v21 = vpop.f32.mrf.mxu1  ;;  %v10829_v12 = vmul.f32 %v22724_v52, %v20543_v32  ;;  %v10830_v27 = vmul.f32 %v22723_v2, %v20545_v43 }
 0x32c   : > { %10289 = vrot.lane.b32.xlu0 %v10285_v17, %s22744_s18  ;;  %10291 = vrot.lane.b32.xlu1 %v10286_v8, %s22744_s18  ;;  %s22748_s18 = smov 5   ;;  %v5175_v17 = vpop.f32.mrf.mxu0  ;;  %v20593_v57 = vadd.f32 %v20527_v9, %v4711_v4  ;;  %v5255_v22 = vpop.f32.mrf.mxu1  ;;  %v11006_v4 = vmul.f32 %v22726_v16, %v20545_v43 }
 0x32d   : > { %v5180_v8 = vadd.f32 %v5175_v17, %v5102_v13 }
 0x32e   : > { %v5177_v28 = vpop.f32.mrf.mxu0  ;;  %v5409_v9 = vpop.f32.mrf.mxu1 }
 0x32f   : > { %v5258_v41 = vadd.f32 %v5253_v21, %v5180_v8  ;;  %v5181_v61 = vadd.f32 %v5177_v28, %v5103_v1  ;;  %v22757_v8 = vld [vmem:[#allocation53_spill] sm:$0xff] }
 0x330   : > { %10375 = vrot.lane.b32.xlu0 %v10281_v56, %s22747_s4  ;;  %10377 = vrot.lane.b32.xlu1 %v10282_v14, %s22747_s4  ;;  %s22749_s4 = smov 4   ;;  %v10646_v56 = vmul.f32 %v19412_v45, %v20545_v43  ;;  %v5331_v14 = vpop.f32.mrf.mxu0 }
 0x331   : > { %v5336_v0 = vadd.f32 %v5331_v14, %v5258_v41  ;;  %v5259_v45 = vadd.f32 %v5255_v22, %v5181_v61  ;;  %v22758_v14 = vld [vmem:[#allocation57_spill] sm:$0xff] }
 0x332   : > { %v5333_v26 = vpop.f32.mrf.mxu0 }
 0x333   : > { %v5337_v40 = vadd.f32 %v5333_v26, %v5259_v45 }
 0x334   : > { %10465 = vrot.lane.b32.xlu0 %v10461_v49, %s22748_s18  ;;  %10467 = vrot.lane.b32.xlu1 %v10462_v3, %s22748_s18  ;;  %s22750_s18 = smov 112   ;;  %v5414_v49 = vadd.f32 %v5409_v9, %v5336_v0  ;;  %v5411_v3 = vpop.f32.mrf.mxu1  ;;  %v5487_v47 = vpop.f32.mrf.mxu0 }
 0x336   : > { %v5492_v36 = vadd.f32 %v5487_v47, %v5414_v49  ;;  %v5489_v37 = vpop.f32.mrf.mxu0  ;;  %v5602_v24 = vpop.f32.mrf.mxu1  ;;  %v22760_v49 = vld [vmem:[#allocation54_spill] sm:$0xff] }
 0x338   : > { %10557 = vrot.lane.b32.xlu0 %v10553_v62, %s22749_s4  ;;  %10559 = vrot.lane.b32.xlu1 %v10554_v18, %s22749_s4  ;;  %s22754_s4 = smov 80   ;;  %v5728_v62 = vpop.permute.xlu1 %5727  ;;  %v5415_v18 = vadd.f32 %v5411_v3, %v5337_v40  ;;  %v5607_v35 = vadd.f32 %v5602_v24, %v5492_v36  ;;  %v5717_v44 = vpop.f32.mrf.mxu0 }
 0x339   : > { %v5604_v48 = vpop.f32.mrf.mxu1 }
 0x33a   : > { %v5493_v6 = vadd.f32 %v5489_v37, %v5415_v18  ;;  %v5722_v58 = vadd.f32 %v5717_v44, %v5607_v35  ;;  %v5719_v42 = vpop.f32.mrf.mxu0  ;;  %v22762_v44 = vld [vmem:[#allocation58_spill] sm:$0xff] }
 0x33c   : > { %8041 = vrot.lane.b32.xlu0 %v20576_v30, %s22750_s18  ;;  %7701 = vrot.lane.b32.xlu1 %v20576_v30, %s22751_s5  ;;  %v20619_v10 = vpop.permute.xlu1 %7051  ;;  %v5608_v63 = vadd.f32 %v5604_v48, %v5493_v6  ;;  %v20627_v13 = vadd.f32 %v5728_v62, %v5722_v58 }
 0x33e   : > { %v5723_v41 = vadd.f32 %v5719_v42, %v5608_v63  ;;  %v22763_v63 = vld [vmem:[#allocation60_spill] sm:$0xff] }
 0x340   : > { %8129 = vrot.lane.b32.xlu0 %v20576_v30, %s22752_s6  ;;  %7785 = vrot.lane.b32.xlu1 %v20576_v30, %s22753_s8  ;;  %v20651_v26 = vadd.f32 %v5728_v62, %v5723_v41 }
 0x344   : > { %8217 = vrot.lane.b32.xlu0 %v20576_v30, %s22754_s4  ;;  %7871 = vrot.lane.b32.xlu1 %v20576_v30, %s22755_s9 }
 0x348   : > { %7703 = vrot.lane.b32.xlu0 %v20593_v57, %s22751_s5  ;;  %10651 = vrot.lane.b32.xlu1 %v10646_v56, %s22722_s16 }
 0x34c   : > { %7787 = vrot.lane.b32.xlu0 %v20593_v57, %s22753_s8  ;;  %10743 = vrot.lane.b32.xlu1 %v10738_v55, %s22720_s0 }
 0x350   : > { %7873 = vrot.lane.b32.xlu0 %v20593_v57, %s22755_s9  ;;  %8043 = vrot.lane.b32.xlu1 %v20593_v57, %s22750_s18 }
 0x354   : > { %10649 = vrot.lane.b32.xlu0 %v10645_v39, %s22722_s16  ;;  %8131 = vrot.lane.b32.xlu1 %v20593_v57, %s22752_s6  ;;  %s22756_s16 = sld [smem:[#allocation4_spill]] }
 0x358   : > { %10741 = vrot.lane.b32.xlu0 %v10737_v33, %s22720_s0  ;;  %8219 = vrot.lane.b32.xlu1 %v20593_v57, %s22754_s4  ;;  %s22759_s0 = smov 64  }
 0x35a   : > { %v18471_v1 = vld [vmem:[%s22756_s16 + $0x2] sm:$0x3]  ;;  %v7056_v55 = vld [vmem:[%s22756_s16] sm:$0x3]  ;;  %v18478_v40 = vld [vmem:[%s22756_s16 + $0x4] sm:$0x3] }
 0x35b   : > { %v18482_v36 = vld [vmem:[%s22756_s16 + $0x6] sm:$0x3]  ;;  %v18486_v62 = vld [vmem:[%s22756_s16 + $0x8] sm:$0x3]  ;;  %v18490_v58 = vld [vmem:[%s22756_s16 + $0xa] sm:$0x3] }
 0x35c   : > { %10833 = vrot.lane.b32.xlu0 %v10829_v12, %s22725_s1  ;;  %10835 = vrot.lane.b32.xlu1 %v10830_v27, %s22725_s1 }
 0x35e   : > { %v7066_v25 = vpop.permute.xlu0 %7065  ;;  %v7068_v17 = vpop.permute.xlu1 %7067 }
 0x35f   : > { %v7069_v28 = vsel %vm4001_vm15, %v22757_v8, %v7066_v25  ;;  %v7070_v21 = vsel %vm4001_vm15, %v7066_v25, %v7068_v17  ;;  %v18494_v17 = vld [vmem:[%s22756_s16 + $0xc] sm:$0x3] }
 0x360   : > { %11011 = vrot.lane.b32.xlu0 %v11006_v4, %s22728_s10  ;;  %9847 = vrot.lane.b32.xlu1 %v20627_v13, %s22750_s18 }
 0x361   : > { %18472 = vmatprep.subr.msk.mxu0 %vm7074_vm6, %v7070_v21 }
 0x362   : > { %18473 = vmatpush1.msk.msra.mxu0 %vm7074_vm6, %v7069_v28  ;;  %v7153_v56 = vpop.permute.xlu0 %7152  ;;  %v7155_v22 = vpop.permute.xlu1 %7154 }
 0x363   : > { %v7156_v61 = vsel %vm4091_vm2, %v22758_v14, %v7153_v56  ;;  %v7157_v0 = vsel %vm4091_vm2, %v7153_v56, %v7155_v22  ;;  %18474 = vmatmul.mubr.msk.f32.vlgmr.msra.gmra.mxu0 %vm4001_vm15, %v18471_v1  ;;  %v11005_v1 = vmul.f32 %v22727_v38, %v20543_v32  ;;  %v11097_v22 = vmul.f32 %v22730_v60, %v20543_v32 }
 0x364   : > { %9935 = vrot.lane.b32.xlu1 %v20627_v13, %s22752_s6  ;;  %9331 = vrot.lane.b32.xlu0 %v20627_v13, %s22759_s0 }
 0x365   : > { %18475 = vmatprep.subr.msk.mxu1 %vm7074_vm6, %v7157_v0  ;;  %7319 = vmatprep.mubr.f32.mxu0 %v22707_v53 }
 0x366   : > { %18476 = vmatpush1.msk.msra.mxu1 %vm7074_vm6, %v7156_v61  ;;  %v7243_v9 = vpop.permute.xlu0 %7242  ;;  %v7245_v45 = vpop.permute.xlu1 %7244  ;;  %v11098_v61 = vmul.f32 %v22729_v59, %v20545_v43 }
 0x367   : > { %v7246_v3 = vsel %vm4206_vm1, %v22760_v49, %v7243_v9  ;;  %18483 = vmatprep.subr.msk.mxu1 %vm7074_vm6, %v20434_v15  ;;  %v7247_v47 = vsel %vm4206_vm1, %v7243_v9, %v7245_v45  ;;  %18477 = vmatmul.mubr.msk.f32.vlgmr.msra.gmra.mxu1 %vm4001_vm15, %v7056_v55  ;;  %v11189_v9 = vmul.f32 %v22732_v29, %v20543_v32 }
 0x368   : > { %18484 = vmatpush1.msk.msra.mxu1 %vm7074_vm6, %v20432_v20  ;;  %9333 = vrot.lane.b32.xlu1 %v20651_v26, %s22759_s0  ;;  %v22761_v20 = vld [vmem:[#allocation55_spill] sm:$0xff]  ;;  %v11190_v45 = vmul.f32 %v22731_v23, %v20545_v43 }
 0x369   : > { %9415 = vrot.lane.b32.xlu0 %v20627_v13, %s22754_s4  ;;  %18479 = vmatprep.subr.msk.mxu0 %vm7074_vm6, %v7247_v47  ;;  %v11282_v47 = vmul.f32 %v22737_v11, %v20545_v43 }
 0x36a   : > { %18480 = vmatpush1.msk.msra.mxu0 %vm7074_vm6, %v7246_v3  ;;  %v7419_v15 = vpop.permute.xlu0 %7418  ;;  %v7421_v39 = vpop.permute.xlu1 %7420  ;;  %7403 = vmatprep.mubr.f32.mxu1 %v22707_v53  ;;  %v11281_v3 = vmul.f32 %v22738_v46, %v20543_v32 }
 0x36b   : > { %v7422_v37 = vsel %vm4189_vm4, %v7419_v15, %v7421_v39  ;;  %v7423_v24 = vsel %vm4189_vm4, %v7421_v39, %v22761_v20  ;;  %18481 = vmatmul.mubr.msk.f32.vlgmr.msra.gmra.mxu0 %vm4001_vm15, %v18478_v40  ;;  %18485 = vmatmul.mubr.msk.f32.vlgmr.msra.gmra.mxu1 %vm4001_vm15, %v18482_v36  ;;  %v11373_v40 = vmul.f32 %v22741_v19, %v20543_v32  ;;  %v22765_v19 = vld [vmem:[#allocation67_spill] sm:$0xff] }
 0x36c   : > { %9417 = vrot.lane.b32.xlu1 %v20651_v26, %s22754_s4  ;;  %18487 = vmatprep.subr.msk.mxu0 %vm7074_vm6, %v7423_v24  ;;  %v11374_v36 = vmul.f32 %v22740_v7, %v20545_v43  ;;  %v22764_v24 = vld [vmem:[#allocation64_spill] sm:$0xff] }
 0x36d   : > { %9501 = vrot.lane.b32.xlu0 %v20627_v13, %s22753_s8  ;;  %18488 = vmatpush1.msk.msra.mxu0 %vm7074_vm6, %v7422_v37 }
 0x36e   : > { %v7511_v18 = vpop.permute.xlu0 %7510  ;;  %v7513_v35 = vpop.permute.xlu1 %7512  ;;  %7495 = vmatprep.mubr.f32.mxu0 %v22707_v53  ;;  %7587 = vmatprep.mubr.f32.mxu1 %v22707_v53 }
 0x36f   : > { %v7514_v33 = vsel %vm3984_vm3, %v7511_v18, %v7513_v35  ;;  %v7515_v6 = vsel %vm3984_vm3, %v7513_v35, %v22762_v44  ;;  %18489 = vmatmul.mubr.msk.f32.vlgmr.msra.gmra.mxu0 %vm4001_vm15, %v18486_v62  ;;  %v11465_v62 = vmul.f32 %v22764_v24, %v20543_v32  ;;  %v11466_v35 = vmul.f32 %v22765_v19, %v20545_v43 }
 0x370   : > { %9503 = vrot.lane.b32.xlu1 %v20651_v26, %s22753_s8  ;;  %18491 = vmatprep.subr.msk.mxu1 %vm7074_vm6, %v7515_v6 }
 0x371   : > { %9589 = vrot.lane.b32.xlu0 %v20627_v13, %s22751_s5  ;;  %18492 = vmatpush1.msk.msra.mxu1 %vm7074_vm6, %v7514_v33 }
 0x372   : > { %v7603_v12 = vpop.permute.xlu0 %7602  ;;  %v7605_v27 = vpop.permute.xlu1 %7604  ;;  %18493 = vmatmul.mubr.msk.f32.vlgmr.msra.gmra.mxu1 %vm4001_vm15, %v18490_v58  ;;  %7679 = vmatprep.mubr.f32.mxu0 %v22707_v53 }
 0x373   : > { %v7606_v48 = vsel %vm3959_vm14, %v7603_v12, %v7605_v27  ;;  %v7607_v25 = vsel %vm3959_vm14, %v7605_v27, %v22763_v63  ;;  %7778 = vmatprep.mubr.f32.mxu1 %v22707_v53 }
 0x374   : > { %9591 = vrot.lane.b32.xlu1 %v20651_v26, %s22751_s5  ;;  %18495 = vmatprep.subr.msk.mxu0 %vm7074_vm6, %v7607_v25 }
 0x375   : > { %9677 = vrot.lane.b32.xlu0 %v20627_v13, %s22755_s9  ;;  %18496 = vmatpush1.msk.msra.mxu0 %vm7074_vm6, %v7606_v48 }
 0x376   : > { %v20709_v4 = vpop.permute.xlu0 %8330  ;;  %v20711_v42 = vpop.permute.xlu1 %8328  ;;  %18497 = vmatmul.mubr.msk.f32.vlgmr.msra.gmra.mxu0 %vm4001_vm15, %v18494_v17 }
 0x377   : > { %7862 = vmatprep.mubr.f32.mxu0 %v22707_v53 }
 0x378   : > { %9679 = vrot.lane.b32.xlu1 %v20651_v26, %s22755_s9 }
 0x379   : > { %9849 = vrot.lane.b32.xlu0 %v20651_v26, %s22750_s18 }
 0x37a   : > { %v20719_v28 = vpop.permute.xlu0 %8416  ;;  %v20721_v21 = vpop.permute.xlu1 %8414 }
 0x37c   : > { %11009 = vrot.lane.b32.xlu1 %v11005_v1, %s22728_s10  ;;  %v22767_v1 = vld [vmem:[#allocation65_spill] sm:$0xff] }
 0x37d   : > { %9937 = vrot.lane.b32.xlu0 %v20651_v26, %s22752_s6 }
 0x37e   : > { %v20728_v41 = vpop.permute.xlu0 %8506  ;;  %v20730_v56 = vpop.permute.xlu1 %8504 }
 0x380   : > { %11101 = vrot.lane.b32.xlu1 %v11097_v22, %s22676_s15  ;;  %v11557_v22 = vmul.f32 %v22767_v1, %v20543_v32 }
 0x381   : > { %11103 = vrot.lane.b32.xlu0 %v11098_v61, %s22676_s15 }
 0x382   : > { %v20738_v0 = vpop.permute.xlu0 %8598  ;;  %v20740_v55 = vpop.permute.xlu1 %8596 }
 0x384   : > { %11193 = vrot.lane.b32.xlu1 %v11189_v9, %s22680_s23  ;;  %v22768_v9 = vld [vmem:[#allocation68_spill] sm:$0xff] }
 0x385   : > { %11195 = vrot.lane.b32.xlu0 %v11190_v45, %s22680_s23  ;;  %s22766_s23 = smov 122   ;;  %v11558_v45 = vmul.f32 %v22768_v9, %v20545_v43 }
 0x386   : > { %v20748_v60 = vpop.permute.xlu0 %8690  ;;  %v20750_v59 = vpop.permute.xlu1 %8688 }
 0x388   : > { %11285 = vrot.lane.b32.xlu1 %v11281_v3, %s22739_s7 }
 0x389   : > { %11287 = vrot.lane.b32.xlu0 %v11282_v47, %s22739_s7 }
 0x38a   : > { %v20758_v29 = vpop.permute.xlu0 %8866  ;;  %v20760_v23 = vpop.permute.xlu1 %8864 }
 0x38b   : > { %v5865_v15 = vpop.f32.mrf.mxu1 }
 0x38c   : > { %11377 = vrot.lane.b32.xlu1 %v11373_v40, %s22690_s11 }
 0x38d   : > { %11379 = vrot.lane.b32.xlu0 %v11374_v36, %s22690_s11  ;;  %v5867_v11 = vpop.f32.mrf.mxu1  ;;  %v5955_v46 = vpop.f32.mrf.mxu0  ;;  %s22769_s11 = smov 121  }
 0x38e   : > { %v20768_v39 = vpop.permute.xlu0 %8958  ;;  %v20770_v37 = vpop.permute.xlu1 %8956  ;;  %v5956_v18 = vadd.f32 %v5955_v46, %v5865_v15 }
 0x38f   : > { %v6031_v33 = vpop.f32.mrf.mxu1  ;;  %v5957_v7 = vpop.f32.mrf.mxu0 }
 0x390   : > { %11469 = vrot.lane.b32.xlu1 %v11465_v62, %s22766_s23  ;;  %v6036_v6 = vadd.f32 %v6031_v33, %v5956_v18  ;;  %v5958_v58 = vadd.f32 %v5957_v7, %v5867_v11 }
 0x391   : > { %11471 = vrot.lane.b32.xlu0 %v11466_v35, %s22766_s23  ;;  %v6033_v12 = vpop.f32.mrf.mxu1  ;;  %v6109_v27 = vpop.f32.mrf.mxu0  ;;  %s22771_s23 = sld [smem:[#allocation7_spill]] }
 0x392   : > { %v20778_v48 = vpop.permute.xlu0 %9050  ;;  %v20780_v25 = vpop.permute.xlu1 %9048  ;;  %v6037_v17 = vadd.f32 %v6033_v12, %v5958_v58  ;;  %v6114_v61 = vadd.f32 %v6109_v27, %v6036_v6 }
 0x393   : > { %v6187_v3 = vpop.f32.mrf.mxu1  ;;  %v6111_v47 = vpop.f32.mrf.mxu0 }
 0x394   : > { %11561 = vrot.lane.b32.xlu1 %v11557_v22, %s22769_s11  ;;  %v6192_v40 = vadd.f32 %v6187_v3, %v6114_v61  ;;  %v6115_v36 = vadd.f32 %v6111_v47, %v6037_v17 }
 0x395   : > { %11563 = vrot.lane.b32.xlu0 %v11558_v45, %s22769_s11  ;;  %v6189_v15 = vpop.f32.mrf.mxu1  ;;  %v6265_v11 = vpop.f32.mrf.mxu0  ;;  %s22795_s11 = sld [smem:[#allocation16_spill]] }
 0x396   : > { %v20788_v46 = vpop.permute.xlu0 %9142  ;;  %v20790_v24 = vpop.permute.xlu1 %9140  ;;  %v6193_v62 = vadd.f32 %v6189_v15, %v6115_v36  ;;  %v6270_v18 = vadd.f32 %v6265_v11, %v6192_v40 }
 0x397   : > { %v6343_v19 = vpop.f32.mrf.mxu1  ;;  %v6267_v35 = vpop.f32.mrf.mxu0  ;;  %v18513_v51 = vld [vmem:[%s22771_s23 + $0x8] sm:$0x3] }
 0x398   : > { %v6348_v33 = vadd.f32 %v6343_v19, %v6270_v18  ;;  %v6271_v7 = vadd.f32 %v6267_v35, %v6193_v62 }
 0x399   : > { %v6345_v6 = vpop.f32.mrf.mxu1  ;;  %v6421_v58 = vpop.f32.mrf.mxu0 }
 0x39a   : > { %v20792_v12 = vpop.permute.xlu0 %9234  ;;  %v20794_v27 = vpop.permute.xlu1 %9232  ;;  %v6349_v17 = vadd.f32 %v6345_v6, %v6271_v7  ;;  %v6426_v1 = vadd.f32 %v6421_v58, %v6348_v33 }
 0x39b   : > { %v6499_v22 = vpop.f32.mrf.mxu1  ;;  %v6423_v61 = vpop.f32.mrf.mxu0 }
 0x39c   : > { %v6504_v9 = vadd.f32 %v6499_v22, %v6426_v1  ;;  %v6427_v45 = vadd.f32 %v6423_v61, %v6349_v17 }
 0x39d   : > { %v6501_v3 = vpop.f32.mrf.mxu1  ;;  %v6577_v47 = vpop.f32.mrf.mxu0 }
 0x39e   : > { %v20796_v36 = vpop.permute.xlu0 %10289  ;;  %v20798_v40 = vpop.permute.xlu1 %10291  ;;  %v6505_v15 = vadd.f32 %v6501_v3, %v6427_v45  ;;  %v6582_v11 = vadd.f32 %v6577_v47, %v6504_v9 }
 0x39f   : > { %v6655_v62 = vpop.f32.mrf.mxu1  ;;  %v6579_v18 = vpop.f32.mrf.mxu0 }
 0x3a0   : > { %v6660_v19 = vadd.f32 %v6655_v62, %v6582_v11  ;;  %v6583_v35 = vadd.f32 %v6579_v18, %v6505_v15 }
 0x3a1   : > { %v6657_v16 = vpop.f32.mrf.mxu1  ;;  %v6733_v2 = vpop.f32.mrf.mxu0 }
 0x3a2   : > { %v20800_v7 = vpop.permute.xlu0 %10375  ;;  %v20802_v33 = vpop.permute.xlu1 %10377  ;;  %v6661_v6 = vadd.f32 %v6657_v16, %v6583_v35  ;;  %v6738_v58 = vadd.f32 %v6733_v2, %v6660_v19 }
 0x3a3   : > { %v6811_v17 = vpop.f32.mrf.mxu1  ;;  %v6735_v1 = vpop.f32.mrf.mxu0 }
 0x3a4   : > { %v6816_v22 = vadd.f32 %v6811_v17, %v6738_v58  ;;  %v6739_v61 = vadd.f32 %v6735_v1, %v6661_v6 }
 0x3a5   : > { %v6813_v38 = vpop.f32.mrf.mxu1  ;;  %v6926_v52 = vpop.f32.mrf.mxu0 }
 0x3a6   : > { %v20804_v45 = vpop.permute.xlu0 %10465  ;;  %v20806_v9 = vpop.permute.xlu1 %10467  ;;  %v6817_v3 = vadd.f32 %v6813_v38, %v6739_v61  ;;  %v6931_v47 = vadd.f32 %v6926_v52, %v6816_v22 }
 0x3a7   : > { %v7041_v15 = vpop.f32.mrf.mxu1  ;;  %v6928_v11 = vpop.f32.mrf.mxu0 }
 0x3a8   : > { %v7046_v62 = vadd.f32 %v7041_v15, %v6931_v47  ;;  %v6932_v18 = vadd.f32 %v6928_v11, %v6817_v3  ;;  %v18498_v3 = vld [vmem:[%s22771_s23 + $0x2] sm:$0x3] }
 0x3a9   : > { %v7043_v34 = vpop.f32.mrf.mxu1  ;;  %v22772_v47 = vld [vmem:[#allocation29_spill] sm:$0xff] }
 0x3aa   : > { %v20809_v16 = vadd.f32 %v20619_v10, %v7046_v62  ;;  %v20811_v2 = vpop.permute.xlu0 %10557  ;;  %v20813_v19 = vpop.permute.xlu1 %10559  ;;  %v7047_v35 = vadd.f32 %v7043_v34, %v6932_v18 }
 0x3ac   : > { %22770 = vst [vmem:[#allocation40_spill] sm:$0xff] %v20809_v16  ;;  %v20816_v6 = vadd.f32 %v20619_v10, %v7047_v35  ;;  %11660 = vrot.lane.b32.xlu0 %v20809_v16, %s22752_s6  ;;  %v7696_v35 = vld [vmem:[%s22771_s23] sm:$0x3] }
 0x3ae   : > { %v8042_v52 = vpop.permute.xlu0 %8041  ;;  %v7702_v38 = vpop.permute.xlu1 %7701  ;;  %11662 = vrot.lane.b32.xlu1 %v20816_v6, %s22752_s6  ;;  %s22785_s6 = sld [smem:[#allocation10_spill]] }
 0x3af   : > { %v7705_v15 = vsel %vm1251_vm5, %v22772_v47, %v7702_v38 }
 0x3b0   : > { %11744 = vrot.lane.b32.xlu0 %v20809_v16, %s22750_s18 }
 0x3b2   : > { %v8130_v58 = vpop.permute.xlu0 %8129  ;;  %v7786_v17 = vpop.permute.xlu1 %7785  ;;  %11746 = vrot.lane.b32.xlu1 %v20816_v6, %s22750_s18 }
 0x3b4   : > { %11830 = vrot.lane.b32.xlu0 %v20809_v16, %s22754_s4 }
 0x3b6   : > { %v20828_v34 = vpop.permute.xlu0 %8217  ;;  %v7872_v10 = vpop.permute.xlu1 %7871  ;;  %11832 = vrot.lane.b32.xlu1 %v20816_v6, %s22754_s4  ;;  %s22790_s4 = sld [smem:[#allocation5_spill]] }
 0x3b8   : > { %11918 = vrot.lane.b32.xlu0 %v20809_v16, %s22759_s0 }
 0x3ba   : > { %v7704_v1 = vpop.permute.xlu0 %7703  ;;  %v20834_v22 = vpop.permute.xlu1 %10651  ;;  %11920 = vrot.lane.b32.xlu1 %v20816_v6, %s22759_s0  ;;  %s22791_s0 = sld [smem:[#allocation8_spill]] }
 0x3bb   : > { %v7706_v61 = vsel %vm1251_vm5, %v7702_v38, %v7704_v1  ;;  %v22773_v38 = vld [vmem:[#allocation30_spill] sm:$0xff] }
 0x3bc   : > { %18499 = vmatprep.subr.msk.mxu1 %vm7074_vm6, %v7706_v61  ;;  %12006 = vrot.lane.b32.xlu0 %v20809_v16, %s22753_s8  ;;  %v7789_v1 = vsel %vm1340_vm9, %v22773_v38, %v7786_v17 }
 0x3bd   : > { %18500 = vmatpush1.msk.msra.mxu1 %vm7074_vm6, %v7705_v15 }
 0x3be   : > { %v7788_v11 = vpop.permute.xlu0 %7787  ;;  %v20846_v62 = vpop.permute.xlu1 %10743  ;;  %12008 = vrot.lane.b32.xlu1 %v20816_v6, %s22753_s8  ;;  %18501 = vmatmul.mubr.msk.f32.vlgmr.msra.gmra.mxu1 %vm4001_vm15, %v18498_v3  ;;  %s22777_s8 = sld [smem:[#allocation11_spill]] }
 0x3bf   : > { %v7790_v18 = vsel %vm1340_vm9, %v7786_v17, %v7788_v11  ;;  %7948 = vmatprep.mubr.f32.mxu1 %v22707_v53  ;;  %v18505_v17 = vld [vmem:[%s22771_s23 + $0x4] sm:$0x3]  ;;  %v18509_v11 = vld [vmem:[%s22771_s23 + $0x6] sm:$0x3] }
 0x3c0   : > { %18502 = vmatprep.subr.msk.mxu0 %vm7074_vm6, %v7790_v18  ;;  %12094 = vrot.lane.b32.xlu0 %v20809_v16, %s22751_s5  ;;  %v22775_v18 = vld [vmem:[#allocation31_spill] sm:$0xff] }
 0x3c1   : > { %18503 = vmatpush1.msk.msra.mxu0 %vm7074_vm6, %v7789_v1  ;;  %v7875_v1 = vsel %vm22776_vm12, %v22775_v18, %v7872_v10 }
 0x3c2   : > { %v7874_v61 = vpop.permute.xlu0 %7873  ;;  %18504 = vmatmul.mubr.msk.f32.vlgmr.msra.gmra.mxu0 %vm4001_vm15, %v7696_v35  ;;  %18510 = vmatprep.subr.msk.mxu0 %vm7074_vm6, %v20593_v57  ;;  %v8044_v3 = vpop.permute.xlu1 %8043  ;;  %v22778_v57 = vld [vmem:[#allocation33_spill] sm:$0xff] }
 0x3c3   : > { %v7876_v15 = vsel %vm22774_vm10, %v7872_v10, %v7874_v61  ;;  %18511 = vmatpush1.msk.msra.mxu0 %vm7074_vm6, %v20576_v30  ;;  %8030 = vmatprep.mubr.f32.mxu0 %v22707_v53  ;;  %vm22779_vm10 = vcmask 916480  }
 0x3c4   : > { %18506 = vmatprep.subr.msk.mxu1 %vm7074_vm6, %v7876_v15  ;;  %12096 = vrot.lane.b32.xlu1 %v20816_v6, %s22751_s5  ;;  %v8046_v10 = vsel %vm22779_vm10, %v8044_v3, %v22778_v57  ;;  %vm22780_vm12 = vmmov %vm22779_vm10  ;;  %s22784_s5 = sld [smem:[#allocation14_spill]]  ;;  %vm22792_vm10 = vcmask 39936  }
 0x3c5   : > { %18507 = vmatpush1.msk.msra.mxu1 %vm7074_vm6, %v7875_v1  ;;  %12182 = vrot.lane.b32.xlu0 %v20809_v16, %s22755_s9  ;;  %v8045_v61 = vsel %vm22780_vm12, %v8042_v52, %v8044_v3  ;;  %v22782_v1 = vld [vmem:[#allocation34_spill] sm:$0xff]  ;;  %v9318_v52 = vld [vmem:[%s22777_s8] sm:$0x3]  ;;  %vm22794_vm12 = vmmov %vm22792_vm10  ;;  %s22796_s8 = sld [smem:[#allocation20_spill]] }
 0x3c6   : > { %v20877_v30 = vpop.permute.xlu0 %10649  ;;  %18508 = vmatmul.mubr.msk.f32.vlgmr.msra.gmra.mxu1 %vm4001_vm15, %v18505_v17  ;;  %18512 = vmatmul.mubr.msk.f32.vlgmr.msra.gmra.mxu0 %vm4001_vm15, %v18509_v11  ;;  %v8132_v35 = vpop.permute.xlu1 %8131  ;;  %v18517_v17 = vld [vmem:[%s22771_s23 + $0xa] sm:$0x3]  ;;  %v22786_v11 = vld [vmem:[#allocation61_spill] sm:$0xff] }
 0x3c7   : > { %18514 = vmatprep.subr.msk.mxu1 %vm7074_vm6, %v8046_v10  ;;  %v8133_v15 = vsel %vm22781_vm11, %v8130_v58, %v8132_v35  ;;  %v8134_v16 = vsel %vm22783_vm7, %v8132_v35, %v22782_v1  ;;  %8118 = vmatprep.mubr.f32.mxu1 %v22707_v53  ;;  %v8332_v10 = vsel %vm1254_vm8, %v22786_v11, %v20711_v42  ;;  %vm22787_vm7 = vcmask 654336  }
 0x3c8   : > { %18515 = vmatpush1.msk.msra.mxu1 %vm7074_vm6, %v8045_v61  ;;  %18518 = vmatprep.subr.msk.mxu0 %vm7074_vm6, %v8134_v16  ;;  %v8333_v16 = vsel %vm1254_vm8, %v20711_v42, %v20709_v4  ;;  %v22788_v61 = vld [vmem:[#allocation36_spill] sm:$0xff]  ;;  %vm22789_vm11 = vmmov %vm22787_vm7  ;;  %v18521_v42 = vld [vmem:[%s22771_s23 + $0xc] sm:$0x3] }
 0x3c9   : > { %18519 = vmatpush1.msk.msra.mxu0 %vm7074_vm6, %v8133_v15  ;;  %8206 = vmatprep.mubr.f32.mxu0 %v22707_v53 }
 0x3ca   : > { %v20896_v3 = vpop.permute.xlu0 %10741  ;;  %12184 = vrot.lane.b32.xlu1 %v20816_v6, %s22755_s9  ;;  %18516 = vmatmul.mubr.msk.f32.vlgmr.msra.gmra.mxu1 %vm4001_vm15, %v18513_v51  ;;  %v8220_v58 = vpop.permute.xlu1 %8219  ;;  %v8509_v51 = vsel %vm4091_vm2, %v20730_v56, %v20728_v41  ;;  %v10264_v4 = vld [vmem:[%s22784_s5] sm:$0x3]  ;;  %v8508_v41 = vsel %vm4091_vm2, %v22758_v14, %v20730_v56  ;;  %v8693_v56 = vsel %vm4206_vm1, %v20750_v59, %v20748_v60  ;;  %v18532_v60 = vld [vmem:[%s22785_s6 + $0x4] sm:$0x3]  ;;  %s22800_s5 = sld [smem:[#allocation13_spill]] }
 0x3cb   : > { %18520 = vmatmul.mubr.msk.f32.vlgmr.msra.gmra.mxu0 %vm4001_vm15, %v18517_v17  ;;  %18526 = vmatprep.subr.msk.mxu0 %vm7074_vm6, %v8333_v16  ;;  %v8221_v35 = vsel %vm22787_vm7, %v20828_v34, %v8220_v58  ;;  %v8222_v15 = vsel %vm22789_vm11, %v8220_v58, %v22788_v61  ;;  %v18525_v17 = vld [vmem:[%s22785_s6 + $0x2] sm:$0x3]  ;;  %v7688_v58 = vld [vmem:[%s22790_s4] sm:$0x3]  ;;  %vm22799_vm11 = vcmask 523264   ;;  %s22620_s4 = smov 111  }
 0x3cc   : > { %18527 = vmatpush1.msk.msra.mxu0 %vm7074_vm6, %v8332_v10  ;;  %9321 = vperm.xlu0 %19005, %v9318_v52   ;;  %v8419_v52 = vsel %vm22792_vm10, %v20721_v21, %v20719_v28  ;;  %v22793_v10 = vld [vmem:[#allocation66_spill] sm:$0xff]  ;;  %v8601_v28 = vsel %vm4001_vm15, %v20740_v55, %v20738_v0  ;;  %v8600_v0 = vsel %vm4001_vm15, %v22757_v8, %v20740_v55  ;;  %vm22803_vm10 = vmmov %vm22799_vm11 }
 0x3cd   : > { %18522 = vmatprep.subr.msk.mxu1 %vm7074_vm6, %v8222_v15  ;;  %18533 = vmatprep.subr.msk.mxu0 %vm7074_vm6, %v8509_v51  ;;  %v8319_v51 = vld [vmem:[%s22785_s6] sm:$0x3]  ;;  %v8869_v55 = vsel %vm4189_vm4, %v20758_v29, %v22761_v20 }
 0x3ce   : > { %18523 = vmatpush1.msk.msra.mxu1 %vm7074_vm6, %v8221_v35  ;;  %8294 = vmatprep.mubr.f32.mxu1 %v22707_v53  ;;  %v20924_v34 = vpop.permute.xlu0 %10833  ;;  %v20926_v16 = vpop.permute.xlu1 %10835  ;;  %v8418_v35 = vsel %vm22794_vm12, %v22793_v10, %v20721_v21  ;;  %v8303_v21 = vld [vmem:[%s22791_s0] sm:$0x3]  ;;  %vm22804_vm12 = vmmov %vm22787_vm7  ;;  %s22622_s0 = smov 113  }
 0x3cf   : > { %8405 = vmatprep.mubr.f32.mxu0 %v22707_v53  ;;  %10267 = vperm.xlu1 %19004, %v10264_v4  }
 0x3d0   : > { %18524 = vmatmul.mubr.msk.f32.vlgmr.msra.gmra.mxu1 %vm4001_vm15, %v18521_v42  ;;  %18528 = vmatmul.mubr.msk.f32.vlgmr.msra.gmra.mxu0 %vm4001_vm15, %v18525_v17  ;;  %v11647_v42 = vld [vmem:[%s22795_s11] sm:$0x3]  ;;  %v8692_v17 = vsel %vm4206_vm1, %v22760_v49, %v20750_v59  ;;  %v18536_v59 = vld [vmem:[%s22785_s6 + $0x6] sm:$0x3]  ;;  %s22624_s11 = smov 15  }
 0x3d1   : > { %18529 = vmatprep.subr.msk.mxu1 %vm7074_vm6, %v8419_v52  ;;  %18534 = vmatpush1.msk.msra.mxu0 %vm7074_vm6, %v8508_v41 }
 0x3d2   : > { %18530 = vmatpush1.msk.msra.mxu1 %vm7074_vm6, %v8418_v35  ;;  %18541 = vmatprep.subr.msk.mxu0 %vm7074_vm6, %v8693_v56  ;;  %v20951_v15 = vpop.permute.xlu0 %11011  ;;  %v20955_v4 = vpop.permute.xlu1 %9847  ;;  %v18540_v35 = vld [vmem:[%s22785_s6 + $0x8] sm:$0x3]  ;;  %v8868_v56 = vsel %vm4189_vm4, %v20760_v23, %v20758_v29  ;;  %v9053_v29 = vsel %vm3959_vm14, %v20778_v48, %v22763_v63  ;;  %v18548_v23 = vld [vmem:[%s22785_s6 + $0xc] sm:$0x3] }
 0x3d3   : > { %7691 = vperm.xlu0 %19005, %v7688_v58   ;;  %18537 = vmatprep.subr.msk.mxu1 %vm7074_vm6, %v8601_v28  ;;  %v12917_v58 = vld [vmem:[%s22796_s8] sm:$0x3]  ;;  %v8961_v28 = vsel %vm3984_vm3, %v20768_v39, %v22762_v44  ;;  %s22627_s8 = smov 17  }
 0x3d4   : > { %8491 = vmatprep.mubr.f32.mxu1 %v22707_v53  ;;  %8581 = vmatprep.mubr.f32.mxu0 %v22707_v53 }
 0x3d5   : > { %8306 = vperm.xlu1 %19004, %v8303_v21   ;;  %18531 = vmatmul.mubr.msk.f32.vlgmr.msra.gmra.mxu1 %vm4001_vm15, %v8319_v51  ;;  %v18544_v51 = vld [vmem:[%s22785_s6 + $0xa] sm:$0x3] }
 0x3d6   : > { %18535 = vmatmul.mubr.msk.f32.vlgmr.msra.gmra.mxu0 %vm4001_vm15, %v18532_v60  ;;  %18538 = vmatpush1.msk.msra.mxu1 %vm7074_vm6, %v8600_v0  ;;  %v20971_v41 = vpop.permute.xlu0 %9331  ;;  %v20973_v52 = vpop.permute.xlu1 %9935  ;;  %v9052_v0 = vsel %vm3959_vm14, %v20780_v25, %v20778_v48  ;;  %v18556_v48 = vld [vmem:[%s22785_s6 + $0x10] sm:$0x3]  ;;  %v9144_v25 = vsel %vm4761_vm0, %v20790_v24, %v20788_v46 }
 0x3d7   : > { %18542 = vmatpush1.msk.msra.mxu0 %vm7074_vm6, %v8692_v17  ;;  %18545 = vmatprep.subr.msk.mxu1 %vm7074_vm6, %v20479_v50 }
 0x3d8   : > { %18549 = vmatprep.subr.msk.mxu0 %vm7074_vm6, %v8869_v55  ;;  %11650 = vperm.xlu0 %19005, %v11647_v42   ;;  %v22797_v42 = vld [vmem:[#allocation69_spill] sm:$0xff] }
 0x3d9   : > { %8673 = vmatprep.mubr.f32.mxu1 %v22707_v53  ;;  %8765 = vmatprep.mubr.f32.mxu0 %v22707_v53  ;;  %v9145_v17 = vsel %vm4761_vm0, %v20788_v46, %v22797_v42 }
 0x3da   : > { %12920 = vperm.xlu1 %19004, %v12917_v58   ;;  %18539 = vmatmul.mubr.msk.f32.vlgmr.msra.gmra.mxu1 %vm4001_vm15, %v18536_v59  ;;  %v20988_v50 = vpop.permute.xlu1 %9333 }
 0x3db   : > { %18543 = vmatmul.mubr.msk.f32.vlgmr.msra.gmra.mxu0 %vm4001_vm15, %v18540_v35  ;;  %18546 = vmatpush1.msk.msra.mxu1 %vm7074_vm6, %v20477_v31  ;;  %v9416_v21 = vpop.permute.xlu0 %9415  ;;  %v8960_v31 = vsel %vm3984_vm3, %v20770_v37, %v20768_v39  ;;  %v18552_v39 = vld [vmem:[%s22785_s6 + $0xe] sm:$0x3]  ;;  %v21051_v46 = vsel %vm22799_vm11, %v20971_v41, %v20988_v50 }
 0x3dc   : > { %18550 = vmatpush1.msk.msra.mxu0 %vm7074_vm6, %v8868_v56  ;;  %18553 = vmatprep.subr.msk.mxu1 %vm7074_vm6, %v8961_v28  ;;  %v22798_v37 = vld [vmem:[#allocation70_spill] sm:$0xff]  ;;  %v9236_v56 = vsel %vm4736_vm13, %v20794_v27, %v20792_v12  ;;  %v18560_v28 = vld [vmem:[%s22785_s6 + $0x12] sm:$0x3] }
 0x3dd   : > { %18557 = vmatprep.subr.msk.mxu0 %vm7074_vm6, %v9053_v29  ;;  %8849 = vmatprep.mubr.f32.mxu1 %v22707_v53  ;;  %v9237_v58 = vsel %vm4736_vm13, %v20792_v12, %v22798_v37  ;;  %v22801_v12 = vld [vmem:[#allocation26_spill] sm:$0xff] }
 0x3de   : > { %8941 = vmatprep.mubr.f32.mxu0 %v22707_v53  ;;  %18547 = vmatmul.mubr.msk.f32.vlgmr.msra.gmra.mxu1 %vm4001_vm15, %v18544_v51  ;;  %v21013_v60 = vpop.permute.xlu1 %9417  ;;  %v18564_v51 = vld [vmem:[%s22785_s6 + $0x14] sm:$0x3]  ;;  %s22860_s6 = smov 111  }
 0x3df   : > { %18551 = vmatmul.mubr.msk.f32.vlgmr.msra.gmra.mxu0 %vm4001_vm15, %v18548_v23  ;;  %18554 = vmatpush1.msk.msra.mxu1 %vm7074_vm6, %v8960_v31  ;;  %v9502_v55 = vpop.permute.xlu0 %9501  ;;  %v21039_v59 = vsel %vm22787_vm7, %v9416_v21, %v21013_v60  ;;  %v22802_v23 = vld [vmem:[#allocation39_spill] sm:$0xff]  ;;  %vm22808_vm7 = vcmask 130048  }
 0x3e0   : > { %18558 = vmatpush1.msk.msra.mxu0 %vm7074_vm6, %v9052_v0  ;;  %18561 = vmatprep.subr.msk.mxu1 %vm7074_vm6, %v9145_v17  ;;  %v9335_v31 = vsel %vm22803_vm10, %v22802_v23, %v20971_v41  ;;  %v9419_v0 = vsel %vm22804_vm12, %v22788_v61, %v9416_v21  ;;  %v9326_v41 = vld [vmem:[%s22800_s5] sm:$0x3]  ;;  %v22806_v21 = vld [vmem:[#allocation28_spill] sm:$0xff]  ;;  %vm22809_vm11 = vmmov %vm22808_vm7  ;;  %vm22810_vm10 = vcmask 785408   ;;  %vm22811_vm12 = vcmask 916480  }
 0x3e1   : > { %18565 = vmatprep.subr.msk.mxu0 %vm7074_vm6, %v9237_v58  ;;  %9033 = vmatprep.mubr.f32.mxu1 %v22707_v53  ;;  %v22805_v58 = vld [vmem:[#allocation25_spill] sm:$0xff] }
 0x3e2   : > { %9125 = vmatprep.mubr.f32.mxu0 %v22707_v53  ;;  %18555 = vmatmul.mubr.msk.f32.vlgmr.msra.gmra.mxu1 %vm4001_vm15, %v18552_v39  ;;  %v21041_v35 = vpop.permute.xlu1 %9503  ;;  %v18568_v39 = vld [vmem:[%s22800_s5 + $0x2] sm:$0x3] }
 0x3e3   : > { %18559 = vmatmul.mubr.msk.f32.vlgmr.msra.gmra.mxu0 %vm4001_vm15, %v18556_v48  ;;  %18562 = vmatpush1.msk.msra.mxu1 %vm7074_vm6, %v9144_v25  ;;  %v9590_v24 = vpop.permute.xlu0 %9589  ;;  %v21066_v27 = vsel %vm1340_vm9, %v9502_v55, %v21041_v35  ;;  %v9505_v25 = vsel %vm1340_vm9, %v22773_v38, %v9502_v55 }
 0x3e4   : > { %18566 = vmatpush1.msk.msra.mxu0 %vm7074_vm6, %v9236_v56  ;;  %18569 = vmatprep.subr.msk.mxu1 %vm7074_vm6, %v21051_v46  ;;  %v9593_v55 = vsel %vm1251_vm5, %v22772_v47, %v9590_v24 }
 0x3e5   : > { %18572 = vmatprep.subr.msk.mxu0 %vm7074_vm6, %v21039_v59  ;;  %12934 = vrot.lane.b32.xlu0 %v22801_v12, %s22620_s4 }
 0x3e6   : > { %9217 = vmatprep.mubr.f32.mxu1 %v22707_v53  ;;  %9309 = vmatprep.mubr.f32.mxu0 %v22707_v53  ;;  %v9592_v29 = vpop.permute.xlu1 %9591 }
 0x3e7   : > { %18563 = vmatmul.mubr.msk.f32.vlgmr.msra.gmra.mxu1 %vm4001_vm15, %v18560_v28  ;;  %18567 = vmatmul.mubr.msk.f32.vlgmr.msra.gmra.mxu0 %vm4001_vm15, %v18564_v51  ;;  %v9678_v17 = vpop.permute.xlu0 %9677  ;;  %v9594_v48 = vsel %vm1251_vm5, %v9590_v24, %v9592_v29  ;;  %v22807_v51 = vld [vmem:[#allocation27_spill] sm:$0xff]  ;;  %v18579_v29 = vld [vmem:[%s22800_s5 + $0x6] sm:$0x3] }
 0x3e8   : > { %18570 = vmatpush1.msk.msra.mxu1 %vm7074_vm6, %v9335_v31  ;;  %18573 = vmatpush1.msk.msra.mxu0 %vm7074_vm6, %v9419_v0  ;;  %v18575_v31 = vld [vmem:[%s22800_s5 + $0x4] sm:$0x3] }
 0x3e9   : > { %12936 = vrot.lane.b32.xlu1 %v22805_v58, %s22620_s4  ;;  %18576 = vmatprep.subr.msk.mxu1 %vm7074_vm6, %v21066_v27  ;;  %s22817_s4 = sld [smem:[#allocation15_spill]] }
 0x3ea   : > { %13486 = vrot.lane.b32.xlu0 %v22806_v21, %s22622_s0  ;;  %9408 = vmatprep.mubr.f32.mxu1 %v22707_v53  ;;  %v9680_v28 = vpop.permute.xlu1 %9679 }
 0x3eb   : > { %9492 = vmatprep.mubr.f32.mxu0 %v22707_v53  ;;  %18571 = vmatmul.mubr.msk.f32.vlgmr.msra.gmra.mxu1 %vm4001_vm15, %v18568_v39  ;;  %v9850_v56 = vpop.permute.xlu0 %9849  ;;  %v9682_v0 = vsel %vm22808_vm7, %v9678_v17, %v9680_v28  ;;  %v18583_v39 = vld [vmem:[%s22800_s5 + $0x8] sm:$0x3]  ;;  %vm22812_vm7 = vmmov %vm22811_vm12  ;;  %v10185_v28 = vsel %vm1340_vm9, %v21041_v35, %v22773_v38 }
 0x3ec   : > { %18574 = vmatmul.mubr.msk.f32.vlgmr.msra.gmra.mxu0 %vm4001_vm15, %v9326_v41  ;;  %18577 = vmatpush1.msk.msra.mxu1 %vm7074_vm6, %v9505_v25  ;;  %v18587_v41 = vld [vmem:[%s22800_s5 + $0xa] sm:$0x3] }
 0x3ed   : > { %13488 = vrot.lane.b32.xlu1 %v22807_v51, %s22622_s0  ;;  %18580 = vmatprep.subr.msk.mxu0 %vm7074_vm6, %v9594_v48  ;;  %s22825_s0 = sld [smem:[#allocation21_spill]] }
 0x3ee   : > { %14566 = vrot.lane.b32.xlu0 %v22801_v12, %s22624_s11  ;;  %9578 = vmatprep.mubr.f32.mxu1 %v22707_v53  ;;  %v9681_v12 = vsel %vm22809_vm11, %v22775_v18, %v9678_v17  ;;  %v9852_v17 = vsel %vm22811_vm12, %v9850_v56, %v22778_v57  ;;  %vm22813_vm11 = vmmov %vm22810_vm10  ;;  %vm22815_vm12 = vcmask 523264  }
 0x3ef   : > { %18581 = vmatpush1.msk.msra.mxu0 %vm7074_vm6, %v9593_v55  ;;  %9666 = vmatprep.mubr.f32.mxu0 %v22707_v53  ;;  %v9938_v24 = vpop.permute.xlu0 %9937 }
 0x3f0   : > { %18578 = vmatmul.mubr.msk.f32.vlgmr.msra.gmra.mxu1 %vm4001_vm15, %v18575_v31  ;;  %18582 = vmatmul.mubr.msk.f32.vlgmr.msra.gmra.mxu0 %vm4001_vm15, %v18579_v29 }
 0x3f1   : > { %18588 = vmatprep.subr.msk.mxu0 %vm7074_vm6, %v20651_v26  ;;  %14568 = vrot.lane.b32.xlu1 %v22805_v58, %s22624_s11  ;;  %v21124_v26 = vpop.permute.xlu1 %11009  ;;  %v9851_v58 = vsel %vm22812_vm7, %v20955_v4, %v9850_v56  ;;  %v18591_v4 = vld [vmem:[%s22800_s5 + $0xc] sm:$0x3]  ;;  %v18595_v56 = vld [vmem:[%s22800_s5 + $0xe] sm:$0x3]  ;;  %vm22816_vm7 = vcmask 48128   ;;  %s22830_s11 = sld [smem:[#allocation19_spill]] }
 0x3f2   : > { %18589 = vmatpush1.msk.msra.mxu0 %vm7074_vm6, %v20627_v13  ;;  %18584 = vmatprep.subr.msk.mxu1 %vm7074_vm6, %v9682_v0  ;;  %v9940_v13 = vsel %vm22810_vm10, %v9938_v24, %v22782_v1  ;;  %vm22814_vm10 = vcmask 654336   ;;  %v10294_v31 = vsel %vm22816_vm7, %v20796_v36, %v20798_v40  ;;  %v10653_v0 = vsel %vm4091_vm2, %v22758_v14, %v20877_v30  ;;  %v18626_v14 = vld [vmem:[%s22817_s4 + $0x8] sm:$0x3] }
 0x3f3   : > { %15114 = vrot.lane.b32.xlu0 %v22806_v21, %s22627_s8  ;;  %18585 = vmatpush1.msk.msra.mxu1 %vm7074_vm6, %v9681_v12  ;;  %v9939_v21 = vsel %vm22813_vm11, %v20973_v52, %v9938_v24  ;;  %v10023_v48 = vsel %vm22814_vm10, %v21013_v60, %v22788_v61  ;;  %v21144_v25 = vpop.permute.xlu0 %11103  ;;  %v10104_v52 = vsel %vm22815_vm12, %v20988_v50, %v22802_v23  ;;  %v18603_v50 = vld [vmem:[%s22800_s5 + $0x12] sm:$0x3]  ;;  %vm22818_vm11 = vmmov %vm22816_vm7  ;;  %vm22819_vm10 = vcmask 56320   ;;  %v18622_v24 = vld [vmem:[%s22817_s4 + $0x6] sm:$0x3] }
 0x3f4   : > { %9754 = vmatprep.mubr.f32.mxu1 %v22707_v53  ;;  %9836 = vmatprep.mubr.f32.mxu0 %v22707_v53  ;;  %v10293_v40 = vsel %vm22818_vm11, %v20259_v5, %v20796_v36  ;;  %v10380_v35 = vsel %vm22819_vm10, %v20800_v7, %v20802_v33  ;;  %vm22820_vm12 = vcmask 39936   ;;  %v18611_v5 = vld [vmem:[%s22817_s4 + $0x2] sm:$0x3]  ;;  %vm22821_vm7 = vmmov %vm22819_vm10 }
 0x3f5   : > { %18586 = vmatmul.mubr.msk.f32.vlgmr.msra.gmra.mxu1 %vm4001_vm15, %v18583_v39  ;;  %18590 = vmatmul.mubr.msk.f32.vlgmr.msra.gmra.mxu0 %vm4001_vm15, %v18587_v41  ;;  %v21157_v60 = vpop.permute.xlu1 %11101  ;;  %v10470_v29 = vsel %vm22820_vm12, %v20804_v45, %v20806_v9  ;;  %v10379_v36 = vsel %vm22821_vm7, %v20283_v54, %v20800_v7  ;;  %vm22822_vm11 = vmmov %vm22820_vm12  ;;  %v10562_v9 = vsel %vm1254_vm8, %v20811_v2, %v20813_v19  ;;  %v10280_v54 = vld [vmem:[%s22817_s4] sm:$0x3]  ;;  %v18638_v41 = vld [vmem:[%s22817_s4 + $0xe] sm:$0x3]  ;;  %vm22833_vm12 = vcmask 916480  }
 0x3f6   : > { %18592 = vmatprep.subr.msk.mxu1 %vm7074_vm6, %v9852_v17  ;;  %15116 = vrot.lane.b32.xlu1 %v22807_v51, %s22627_s8  ;;  %v18599_v51 = vld [vmem:[%s22800_s5 + $0x10] sm:$0x3]  ;;  %v10469_v33 = vsel %vm22822_vm11, %v22793_v10, %v20804_v45  ;;  %v10654_v7 = vsel %vm4091_vm2, %v20877_v30, %v20834_v22  ;;  %v18618_v45 = vld [vmem:[%s22817_s4 + $0x4] sm:$0x3]  ;;  %v10561_v19 = vsel %vm1254_vm8, %v22786_v11, %v20811_v2  ;;  %v18646_v17 = vld [vmem:[%s22817_s4 + $0x12] sm:$0x3] }
 0x3f7   : > { %18593 = vmatpush1.msk.msra.mxu1 %vm7074_vm6, %v9851_v58  ;;  %18596 = vmatprep.subr.msk.mxu0 %vm7074_vm6, %v9940_v13  ;;  %v10746_v22 = vsel %vm4001_vm15, %v20896_v3, %v20846_v62  ;;  %v10838_v2 = vsel %vm4206_vm1, %v20924_v34, %v20926_v16  ;;  %v10745_v62 = vsel %vm4001_vm15, %v22757_v8, %v20896_v3  ;;  %v18630_v16 = vld [vmem:[%s22817_s4 + $0xa] sm:$0x3]  ;;  %v18634_v3 = vld [vmem:[%s22817_s4 + $0xc] sm:$0x3]  ;;  %vm22831_vm2 = vcmask 785408   ;;  %vm22834_vm7 = vmmov %vm22833_vm12 }
 0x3f8   : > { %18600 = vmatprep.subr.msk.mxu1 %vm7074_vm6, %v10023_v48  ;;  %9924 = vmatprep.mubr.f32.mxu1 %v22707_v53  ;;  %v10837_v11 = vsel %vm4206_vm1, %v22760_v49, %v20924_v34  ;;  %v11014_v8 = vsel %vm4189_vm4, %v20951_v15, %v22761_v20  ;;  %v11013_v34 = vsel %vm4189_vm4, %v21124_v26, %v20951_v15  ;;  %v18642_v26 = vld [vmem:[%s22817_s4 + $0x10] sm:$0x3]  ;;  %vm22832_vm10 = vmmov %vm22831_vm2  ;;  %vm22835_vm11 = vcmask 654336  }
 0x3f9   : > { %18597 = vmatpush1.msk.msra.mxu0 %vm7074_vm6, %v9939_v21  ;;  %10012 = vmatprep.mubr.f32.mxu0 %v22707_v53  ;;  %v21193_v55 = vpop.permute.xlu1 %11193  ;;  %v18650_v21 = vld [vmem:[%s22817_s4 + $0x14] sm:$0x3] }
 0x3fa   : > { %18594 = vmatmul.mubr.msk.f32.vlgmr.msra.gmra.mxu1 %vm4001_vm15, %v18591_v4  ;;  %18598 = vmatmul.mubr.msk.f32.vlgmr.msra.gmra.mxu0 %vm4001_vm15, %v18595_v56  ;;  %v18654_v56 = vld [vmem:[%s22817_s4 + $0x16] sm:$0x3] }
 0x3fb   : > { %18601 = vmatpush1.msk.msra.mxu1 %vm7074_vm6, %v21039_v59  ;;  %18604 = vmatprep.subr.msk.mxu0 %vm7074_vm6, %v10104_v52  ;;  %v21175_v59 = vpop.permute.xlu0 %11195 }
 0x3fc   : > { %18605 = vmatpush1.msk.msra.mxu0 %vm7074_vm6, %v21051_v46  ;;  %18608 = vmatprep.subr.msk.mxu1 %vm7074_vm6, %v10185_v28  ;;  %v18607_v46 = vld [vmem:[%s22800_s5 + $0x14] sm:$0x3]  ;;  %v11198_v15 = vsel %vm3959_vm14, %v21175_v59, %v22763_v63  ;;  %v11197_v13 = vsel %vm3959_vm14, %v21193_v55, %v21175_v59  ;;  %vm22827_vm14 = vcmask 990208   ;;  %v18662_v59 = vld [vmem:[%s22817_s4 + $0x1a] sm:$0x3]  ;;  %s22850_s5 = smov 17  }
 0x3fd   : > { %18612 = vmatprep.subr.msk.mxu0 %vm7074_vm6, %v10294_v31  ;;  %10093 = vmatprep.mubr.f32.mxu1 %v22707_v53  ;;  %v11286_v10 = vpop.permute.xlu1 %11285  ;;  %v21344_v55 = vld [vmem:[%s22825_s0 + $0x4] sm:$0xf] }
 0x3fe   : > { %10174 = vmatprep.mubr.f32.mxu0 %v22707_v53  ;;  %18602 = vmatmul.mubr.msk.f32.vlgmr.msra.gmra.mxu1 %vm4001_vm15, %v18599_v51  ;;  %v18658_v51 = vld [vmem:[%s22817_s4 + $0x18] sm:$0x3] }
 0x3ff   : > { %18606 = vmatmul.mubr.msk.f32.vlgmr.msra.gmra.mxu0 %vm4001_vm15, %v18603_v50  ;;  %18609 = vmatpush1.msk.msra.mxu1 %vm7074_vm6, %v21066_v27  ;;  %v21210_v27 = vpop.permute.xlu0 %11287 }
 0x400   : > { %18613 = vmatpush1.msk.msra.mxu0 %vm7074_vm6, %v10293_v40  ;;  %18615 = vmatprep.subr.msk.mxu1 %vm7074_vm6, %v10380_v35  ;;  %v11290_v63 = vsel %vm4761_vm0, %v21210_v27, %v22797_v42  ;;  %v18666_v40 = vld [vmem:[%s22817_s4 + $0x1c] sm:$0x3]  ;;  %v21334_v35 = vld [vmem:[%s22825_s0] sm:$0xf]  ;;  %s22847_s4 = smov 15  }
 0x401   : > { %18619 = vmatprep.subr.msk.mxu0 %vm7074_vm6, %v10470_v29  ;;  %10255 = vmatprep.mubr.f32.mxu1 %v22707_v53  ;;  %v11378_v12 = vpop.permute.xlu1 %11377 }
 0x402   : > { %10366 = vmatprep.mubr.f32.mxu0 %v22707_v53  ;;  %18610 = vmatmul.mubr.msk.f32.vlgmr.msra.gmra.mxu1 %vm4001_vm15, %v18607_v46 }
 0x403   : > { %18614 = vmatmul.mubr.msk.f32.vlgmr.msra.gmra.mxu0 %vm4001_vm15, %v18611_v5  ;;  %18616 = vmatpush1.msk.msra.mxu1 %vm7074_vm6, %v10379_v36  ;;  %v11380_v30 = vpop.permute.xlu0 %11379  ;;  %v18670_v36 = vld [vmem:[%s22830_s11 + $0x2] sm:$0x3] }
 0x404   : > { %18620 = vmatpush1.msk.msra.mxu0 %vm7074_vm6, %v10469_v33  ;;  %18623 = vmatprep.subr.msk.mxu1 %vm7074_vm6, %v10562_v9  ;;  %v11382_v58 = vsel %vm4736_vm13, %v11380_v30, %v22798_v37  ;;  %v11381_v42 = vsel %vm4736_vm13, %v11378_v12, %v11380_v30  ;;  %v22823_v37 = vld [vmem:[#allocation73_spill] sm:$0xff] }
 0x405   : > { %18627 = vmatprep.subr.msk.mxu0 %vm7074_vm6, %v10654_v7  ;;  %10452 = vmatprep.mubr.f32.mxu1 %v22707_v53  ;;  %v11655_v7 = vld [vmem:[%s22830_s11] sm:$0x3] }
 0x406   : > { %10542 = vmatprep.mubr.f32.mxu0 %v22707_v53  ;;  %18617 = vmatmul.mubr.msk.f32.vlgmr.msra.gmra.mxu1 %vm4001_vm15, %v10280_v54 }
 0x407   : > { %18621 = vmatmul.mubr.msk.f32.vlgmr.msra.gmra.mxu0 %vm4001_vm15, %v18618_v45  ;;  %18624 = vmatpush1.msk.msra.mxu1 %vm7074_vm6, %v10561_v19  ;;  %v11472_v39 = vpop.permute.xlu0 %11471 }
 0x408   : > { %18628 = vmatpush1.msk.msra.mxu0 %vm7074_vm6, %v10653_v0  ;;  %18631 = vmatprep.subr.msk.mxu1 %vm7074_vm6, %v10746_v22  ;;  %v18677_v22 = vld [vmem:[%s22830_s11 + $0x4] sm:$0x3] }
 0x409   : > { %18635 = vmatprep.subr.msk.mxu0 %vm7074_vm6, %v10838_v2  ;;  %10634 = vmatprep.mubr.f32.mxu1 %v22707_v53 }
 0x40a   : > { %10726 = vmatprep.mubr.f32.mxu0 %v22707_v53  ;;  %18625 = vmatmul.mubr.msk.f32.vlgmr.msra.gmra.mxu1 %vm4001_vm15, %v18622_v24 }
 0x40b   : > { %18629 = vmatmul.mubr.msk.f32.vlgmr.msra.gmra.mxu0 %vm4001_vm15, %v18626_v14  ;;  %18632 = vmatpush1.msk.msra.mxu1 %vm7074_vm6, %v10745_v62  ;;  %v11564_v48 = vpop.permute.xlu0 %11563  ;;  %v18681_v62 = vld [vmem:[%s22830_s11 + $0x6] sm:$0x3] }
 0x40c   : > { %18636 = vmatpush1.msk.msra.mxu0 %vm7074_vm6, %v10837_v11  ;;  %18639 = vmatprep.subr.msk.mxu1 %vm7074_vm6, %v20545_v43  ;;  %v11106_v43 = vsel %vm3984_vm3, %v21144_v25, %v22762_v44  ;;  %v11470_v44 = vpop.permute.xlu1 %11469 }
 0x40d   : > { %18643 = vmatprep.subr.msk.mxu0 %vm7074_vm6, %v11014_v8  ;;  %10818 = vmatprep.mubr.f32.mxu1 %v22707_v53 }
 0x40e   : > { %10910 = vmatprep.mubr.f32.mxu0 %v22707_v53  ;;  %18633 = vmatmul.mubr.msk.f32.vlgmr.msra.gmra.mxu1 %vm4001_vm15, %v18630_v16 }
 0x40f   : > { %18637 = vmatmul.mubr.msk.f32.vlgmr.msra.gmra.mxu0 %vm4001_vm15, %v18634_v3  ;;  %18640 = vmatpush1.msk.msra.mxu1 %vm7074_vm6, %v20543_v32  ;;  %v11105_v32 = vsel %vm3984_vm3, %v21157_v60, %v21144_v25  ;;  %v11289_v25 = vsel %vm4761_vm0, %v11286_v10, %v21210_v27  ;;  %vm22824_vm3 = vcmask 998400   ;;  %v22826_v60 = vld [vmem:[#allocation74_spill] sm:$0xff]  ;;  %vm22829_vm0 = vmmov %vm22827_vm14 }
 0x410   : > { %18644 = vmatpush1.msk.msra.mxu0 %vm7074_vm6, %v11013_v34  ;;  %18647 = vmatprep.subr.msk.mxu1 %vm7074_vm6, %v11106_v43  ;;  %v11474_v4 = vsel %vm22824_vm3, %v11472_v39, %v22823_v37  ;;  %v11562_v52 = vpop.permute.xlu1 %11561  ;;  %v11566_v28 = vsel %vm22827_vm14, %v11564_v48, %v22826_v60  ;;  %vm22828_vm13 = vmmov %vm22824_vm3  ;;  %vm22837_vm14 = vcmask 523264   ;;  %v18685_v3 = vld [vmem:[%s22830_s11 + $0x8] sm:$0x3]  ;;  %v18705_v37 = vld [vmem:[%s22830_s11 + $0x12] sm:$0x3] }
 0x411   : > { %18651 = vmatprep.subr.msk.mxu0 %vm7074_vm6, %v11198_v15  ;;  %10994 = vmatprep.mubr.f32.mxu1 %v22707_v53  ;;  %v11473_v31 = vsel %vm22828_vm13, %v11470_v44, %v11472_v39  ;;  %v11565_v50 = vsel %vm22829_vm0, %v11562_v52, %v11564_v48  ;;  %vm22836_vm3 = vmmov %vm22835_vm11  ;;  %v18689_v15 = vld [vmem:[%s22830_s11 + $0xa] sm:$0x3]  ;;  %v22839_v44 = vld [vmem:[#allocation40_spill] sm:$0xff] }
 0x412   : > { %11086 = vmatprep.mubr.f32.mxu0 %v22707_v53  ;;  %18641 = vmatmul.mubr.msk.f32.vlgmr.msra.gmra.mxu1 %vm4001_vm15, %v18638_v41  ;;  %vm22838_vm13 = vmmov %vm22837_vm14  ;;  %v18721_v60 = vld [vmem:[%s22830_s11 + $0x1a] sm:$0x3] }
 0x413   : > { %18645 = vmatmul.mubr.msk.f32.vlgmr.msra.gmra.mxu0 %vm4001_vm15, %v18642_v26  ;;  %18648 = vmatpush1.msk.msra.mxu1 %vm7074_vm6, %v11105_v32  ;;  %vm22840_vm0 = vmmov %vm22831_vm2 }
 0x414   : > { %18652 = vmatpush1.msk.msra.mxu0 %vm7074_vm6, %v11197_v13  ;;  %18655 = vmatprep.subr.msk.mxu1 %vm7074_vm6, %v11290_v63  ;;  %v18697_v63 = vld [vmem:[%s22830_s11 + $0xe] sm:$0x3] }
 0x415   : > { %18659 = vmatprep.subr.msk.mxu0 %vm7074_vm6, %v11382_v58  ;;  %11178 = vmatprep.mubr.f32.mxu1 %v22707_v53 }
 0x416   : > { %11270 = vmatprep.mubr.f32.mxu0 %v22707_v53  ;;  %18649 = vmatmul.mubr.msk.f32.vlgmr.msra.gmra.mxu1 %vm4001_vm15, %v18646_v17 }
 0x417   : > { %18653 = vmatmul.mubr.msk.f32.vlgmr.msra.gmra.mxu0 %vm4001_vm15, %v18650_v21  ;;  %18656 = vmatpush1.msk.msra.mxu1 %vm7074_vm6, %v11289_v25  ;;  %v18693_v21 = vld [vmem:[%s22830_s11 + $0xc] sm:$0x3] }
 0x418   : > { %18660 = vmatpush1.msk.msra.mxu0 %vm7074_vm6, %v11381_v42  ;;  %18663 = vmatprep.subr.msk.mxu1 %vm7074_vm6, %v11474_v4  ;;  %v18701_v42 = vld [vmem:[%s22830_s11 + $0x10] sm:$0x3]  ;;  %v18709_v4 = vld [vmem:[%s22830_s11 + $0x14] sm:$0x3] }
 0x419   : > { %18667 = vmatprep.subr.msk.mxu0 %vm7074_vm6, %v11566_v28  ;;  %11362 = vmatprep.mubr.f32.mxu1 %v22707_v53  ;;  %v18725_v28 = vld [vmem:[%s22830_s11 + $0x1c] sm:$0x3] }
 0x41a   : > { %11454 = vmatprep.mubr.f32.mxu0 %v22707_v53  ;;  %18657 = vmatmul.mubr.msk.f32.vlgmr.msra.gmra.mxu1 %vm4001_vm15, %v18654_v56  ;;  %v18713_v56 = vld [vmem:[%s22830_s11 + $0x16] sm:$0x3] }
 0x41b   : > { %18661 = vmatmul.mubr.msk.f32.vlgmr.msra.gmra.mxu0 %vm4001_vm15, %v18658_v51  ;;  %18664 = vmatpush1.msk.msra.mxu1 %vm7074_vm6, %v11473_v31 }
 0x41c   : > { %18668 = vmatpush1.msk.msra.mxu0 %vm7074_vm6, %v11565_v50  ;;  %11546 = vmatprep.mubr.f32.mxu1 %v22707_v53 }
 0x41d   : > { %11638 = vmatprep.mubr.f32.mxu0 %v22707_v53  ;;  %12949 = vrot.lane.b32.xlu1 %v21334_v35, %s22676_s15 }
 0x41e   : > { %18665 = vmatmul.mubr.msk.f32.vlgmr.msra.gmra.mxu1 %vm4001_vm15, %v18662_v59  ;;  %v11661_v46 = vpop.permute.xlu0 %11660 }
 0x41f   : > { %18669 = vmatmul.mubr.msk.f32.vlgmr.msra.gmra.mxu0 %vm4001_vm15, %v18666_v40  ;;  %11737 = vmatprep.mubr.f32.mxu1 %v22707_v53  ;;  %v11664_v33 = vsel %vm22832_vm10, %v22782_v1, %v11661_v46 }
 0x420   : > { %v11663_v29 = vpop.permute.xlu1 %11662  ;;  %11821 = vmatprep.mubr.f32.mxu0 %v22707_v53 }
 0x421   : > { %v21347_v5 = vsel %vm22831_vm2, %v11661_v46, %v11663_v29  ;;  %13306 = vrot.lane.b32.xlu1 %v21344_v55, %s22676_s15  ;;  %v12433_v13 = vsel %vm22840_vm0, %v11663_v29, %v22782_v1  ;;  %vm22841_vm2 = vcmask 130048   ;;  %vm13507_vm0 = vcmask 121856  }
 0x422   : > { %v11745_v9 = vpop.permute.xlu0 %11744  ;;  %18671 = vmatprep.subr.msk.mxu1 %vm7074_vm6, %v21347_v5  ;;  %vm22842_vm10 = vmmov %vm22841_vm2 }
 0x423   : > { %18672 = vmatpush1.msk.msra.mxu1 %vm7074_vm6, %v11664_v33  ;;  %v11748_v45 = vsel %vm22834_vm7, %v22778_v57, %v11745_v9  ;;  %v21497_v33 = vld [vmem:[%s22825_s0 + $0x8] sm:$0xf] }
 0x424   : > { %v11747_v27 = vpop.permute.xlu1 %11746  ;;  %18673 = vmatmul.mubr.msk.f32.vlgmr.msra.gmra.mxu1 %vm4001_vm15, %v18670_v36  ;;  %22848 = vst [vmem:[#allocation41_spill] sm:$0xff] %v21497_v33 }
 0x425   : > { %v21359_v54 = vsel %vm22833_vm12, %v11745_v9, %v11747_v27  ;;  %11907 = vmatprep.mubr.f32.mxu1 %v22707_v53  ;;  %vm22843_vm12 = vmmov %vm22834_vm7  ;;  %v7145_v9 = vpop.f32.mrf.mxu0 }
 0x426   : > { %v11831_v19 = vpop.permute.xlu0 %11830  ;;  %18674 = vmatprep.subr.msk.mxu0 %vm7074_vm6, %v21359_v54  ;;  %v12352_v1 = vsel %vm22843_vm12, %v11747_v27, %v22778_v57  ;;  %vm22844_vm7 = vmmov %vm22838_vm13 }
 0x427   : > { %18675 = vmatpush1.msk.msra.mxu0 %vm7074_vm6, %v11748_v45  ;;  %v11834_v24 = vsel %vm22836_vm3, %v22788_v61, %v11831_v19  ;;  %v18778_v45 = vld [vmem:[%s22825_s0 + $0x14] sm:$0xf] }
 0x428   : > { %v11833_v10 = vpop.permute.xlu1 %11832  ;;  %18676 = vmatmul.mubr.msk.f32.vlgmr.msra.gmra.mxu0 %vm4001_vm15, %v11655_v7  ;;  %v7231_v7 = vpop.f32.mrf.mxu1 }
 0x429   : > { %v21370_v0 = vsel %vm22835_vm11, %v11831_v19, %v11833_v10  ;;  %11995 = vmatprep.mubr.f32.mxu0 %v22707_v53  ;;  %vm22845_vm11 = vmmov %vm22836_vm3  ;;  %v18768_v19 = vld [vmem:[%s22825_s0 + $0x10] sm:$0xf] }
 0x42a   : > { %v11919_v2 = vpop.permute.xlu0 %11918  ;;  %18678 = vmatprep.subr.msk.mxu1 %vm7074_vm6, %v21370_v0  ;;  %v12514_v25 = vsel %vm22845_vm11, %v11833_v10, %v22788_v61  ;;  %v7233_v10 = vpop.f32.mrf.mxu1 }
 0x42b   : > { %18679 = vmatpush1.msk.msra.mxu1 %vm7074_vm6, %v11834_v24  ;;  %v11922_v11 = vsel %vm22838_vm13, %v22802_v23, %v11919_v2 }
 0x42c   : > { %v11921_v14 = vpop.permute.xlu1 %11920  ;;  %18680 = vmatmul.mubr.msk.f32.vlgmr.msra.gmra.mxu1 %vm4001_vm15, %v18677_v22  ;;  %v7405_v24 = vpop.f32.mrf.mxu1 }
 0x42d   : > { %v11923_v30 = vsel %vm22837_vm14, %v11919_v2, %v11921_v14  ;;  %12083 = vmatprep.mubr.f32.mxu1 %v22707_v53  ;;  %v12595_v48 = vsel %vm22844_vm7, %v11921_v14, %v22802_v23  ;;  %vm13490_vm14 = vcmask 924672   ;;  %vm12960_vm7 = vcmask 138240  }
 0x42e   : > { %18682 = vmatprep.subr.msk.mxu0 %vm7074_vm6, %v11923_v30  ;;  %v12007_v16 = vpop.permute.xlu0 %12006 }
 0x42f   : > { %18683 = vmatpush1.msk.msra.mxu0 %vm7074_vm6, %v11922_v11  ;;  %v12010_v34 = vsel %vm1340_vm9, %v22773_v38, %v12007_v16  ;;  %v21521_v11 = vld [vmem:[%s22825_s0 + $0x18] sm:$0xf] }
 0x430   : > { %v12009_v12 = vpop.permute.xlu1 %12008  ;;  %18684 = vmatmul.mubr.msk.f32.vlgmr.msra.gmra.mxu0 %vm4001_vm15, %v18681_v62 }
 0x431   : > { %v12011_v8 = vsel %vm1340_vm9, %v12007_v16, %v12009_v12  ;;  %12171 = vmatprep.mubr.f32.mxu0 %v22707_v53  ;;  %v12676_v61 = vsel %vm1340_vm9, %v12009_v12, %v22773_v38  ;;  %v18717_v38 = vld [vmem:[%s22830_s11 + $0x18] sm:$0x3]  ;;  %vm12938_vm9 = vcmask 908288  }
 0x432   : > { %18686 = vmatprep.subr.msk.mxu1 %vm7074_vm6, %v12011_v8  ;;  %v12095_v39 = vpop.permute.xlu0 %12094 }
 0x433   : > { %18687 = vmatpush1.msk.msra.mxu1 %vm7074_vm6, %v12010_v34  ;;  %v12098_v26 = vsel %vm1251_vm5, %v22772_v47, %v12095_v39 }
 0x434   : > { %18688 = vmatmul.mubr.msk.f32.vlgmr.msra.gmra.mxu1 %vm4001_vm15, %v18685_v3 }
 0x435   : > { %12259 = vmatprep.mubr.f32.mxu1 %v22707_v53 }
 0x436   : > { %v12097_v43 = vpop.permute.xlu1 %12096 }
 0x437   : > { %v12099_v41 = vsel %vm1251_vm5, %v12095_v39, %v12097_v43  ;;  %v12183_v32 = vpop.permute.xlu0 %12182  ;;  %v12757_v23 = vsel %vm1251_vm5, %v12097_v43, %v22772_v47  ;;  %vm22846_vm5 = vmmov %vm22841_vm2 }
 0x438   : > { %18690 = vmatprep.subr.msk.mxu0 %vm7074_vm6, %v12099_v41 }
 0x439   : > { %18691 = vmatpush1.msk.msra.mxu0 %vm7074_vm6, %v12098_v26 }
 0x43a   : > { %18692 = vmatmul.mubr.msk.f32.vlgmr.msra.gmra.mxu0 %vm4001_vm15, %v18689_v15  ;;  %18698 = vmatprep.subr.msk.mxu0 %vm7074_vm6, %v20816_v6  ;;  %v12186_v6 = vsel %vm22842_vm10, %v22775_v18, %v12183_v32 }
 0x43b   : > { %18699 = vmatpush1.msk.msra.mxu0 %vm7074_vm6, %v22839_v44  ;;  %12341 = vmatprep.mubr.f32.mxu0 %v22707_v53 }
 0x43c   : > { %v12185_v17 = vpop.permute.xlu1 %12184  ;;  %18706 = vmatprep.subr.msk.mxu0 %vm7074_vm6, %v12433_v13 }
 0x43d   : > { %v12187_v58 = vsel %vm22841_vm2, %v12183_v32, %v12185_v17  ;;  %v12838_v47 = vsel %vm22846_vm5, %v12185_v17, %v22775_v18 }
 0x43e   : > { %18694 = vmatprep.subr.msk.mxu1 %vm7074_vm6, %v12187_v58  ;;  %18700 = vmatmul.mubr.msk.f32.vlgmr.msra.gmra.mxu0 %vm4001_vm15, %v18697_v63 }
 0x43f   : > { %18695 = vmatpush1.msk.msra.mxu1 %vm7074_vm6, %v12186_v6  ;;  %18707 = vmatpush1.msk.msra.mxu0 %vm7074_vm6, %v21347_v5 }
 0x440   : > { %18696 = vmatmul.mubr.msk.f32.vlgmr.msra.gmra.mxu1 %vm4001_vm15, %v18693_v21  ;;  %18702 = vmatprep.subr.msk.mxu1 %vm7074_vm6, %v12352_v1 }
 0x441   : > { %18703 = vmatpush1.msk.msra.mxu1 %vm7074_vm6, %v21359_v54  ;;  %18714 = vmatprep.subr.msk.mxu0 %vm7074_vm6, %v12595_v48  ;;  %v7147_v54 = vpop.f32.mrf.mxu0 }
 0x442   : > { %18710 = vmatprep.subr.msk.mxu1 %vm7074_vm6, %v12514_v25  ;;  %12422 = vmatprep.mubr.f32.mxu1 %v22707_v53  ;;  %v7234_v39 = vadd.f32 %v7233_v10, %v7147_v54 }
 0x443   : > { %12503 = vmatprep.mubr.f32.mxu0 %v22707_v53 }
 0x444   : > { %18704 = vmatmul.mubr.msk.f32.vlgmr.msra.gmra.mxu1 %vm4001_vm15, %v18701_v42  ;;  %18708 = vmatmul.mubr.msk.f32.vlgmr.msra.gmra.mxu0 %vm4001_vm15, %v18705_v37 }
 0x445   : > { %18711 = vmatpush1.msk.msra.mxu1 %vm7074_vm6, %v21370_v0  ;;  %18715 = vmatpush1.msk.msra.mxu0 %vm7074_vm6, %v11923_v30  ;;  %v7321_v0 = vpop.f32.mrf.mxu0  ;;  %v7407_v30 = vpop.f32.mrf.mxu1 }
 0x446   : > { %18718 = vmatprep.subr.msk.mxu1 %vm7074_vm6, %v12676_v61  ;;  %18722 = vmatprep.subr.msk.mxu0 %vm7074_vm6, %v12757_v23 }
 0x447   : > { %12584 = vmatprep.mubr.f32.mxu1 %v22707_v53  ;;  %12665 = vmatprep.mubr.f32.mxu0 %v22707_v53  ;;  %v21453_v52 = vpop.permute.xlu0 %9321  ;;  %v7323_v22 = vpop.f32.mrf.mxu0 }
 0x448   : > { %18712 = vmatmul.mubr.msk.f32.vlgmr.msra.gmra.mxu1 %vm4001_vm15, %v18709_v4  ;;  %18716 = vmatmul.mubr.msk.f32.vlgmr.msra.gmra.mxu0 %vm4001_vm15, %v18713_v56  ;;  %v7589_v12 = vpop.f32.mrf.mxu1  ;;  %v7327_v26 = vadd.f32 %v7323_v22, %v7234_v39 }
 0x449   : > { %18719 = vmatpush1.msk.msra.mxu1 %vm7074_vm6, %v12011_v8  ;;  %18723 = vmatpush1.msk.msra.mxu0 %vm7074_vm6, %v12099_v41  ;;  %v7497_v62 = vpop.f32.mrf.mxu0  ;;  %v7232_v8 = vadd.f32 %v7231_v7, %v7145_v9 }
 0x44a   : > { %18726 = vmatprep.subr.msk.mxu1 %vm7074_vm6, %v12838_v47  ;;  %12746 = vmatprep.mubr.f32.mxu1 %v22707_v53  ;;  %v21476_v31 = vpop.permute.xlu1 %10267  ;;  %v7591_v3 = vpop.f32.mrf.mxu1 }
 0x44b   : > { %12827 = vmatprep.mubr.f32.mxu0 %v22707_v53  ;;  %v7499_v16 = vpop.f32.mrf.mxu0  ;;  %v7326_v41 = vadd.f32 %v7321_v0, %v7232_v8 }
 0x44c   : > { %18720 = vmatmul.mubr.msk.f32.vlgmr.msra.gmra.mxu1 %vm4001_vm15, %v18717_v38  ;;  %18724 = vmatmul.mubr.msk.f32.vlgmr.msra.gmra.mxu0 %vm4001_vm15, %v18721_v60 }
 0x44d   : > { %18727 = vmatpush1.msk.msra.mxu1 %vm7074_vm6, %v12187_v58  ;;  %12908 = vmatprep.mubr.f32.mxu1 %v22707_v53  ;;  %v7681_v34 = vpop.f32.mrf.mxu0  ;;  %v7410_v13 = vadd.f32 %v7405_v24, %v7326_v41  ;;  %v7411_v58 = vadd.f32 %v7407_v30, %v7327_v26 }
 0x44e   : > { %v21471_v51 = vpop.permute.xlu0 %7691  ;;  %13033 = vmatprep.mubr.f32.mxu0 %v22707_v53 }
 0x44f   : > { %v7683_v15 = vpop.f32.mrf.mxu0  ;;  %v7502_v48 = vadd.f32 %v7497_v62, %v7410_v13  ;;  %v7503_v61 = vadd.f32 %v7499_v16, %v7411_v58 }
 0x450   : > { %18728 = vmatmul.mubr.msk.f32.vlgmr.msra.gmra.mxu1 %vm4001_vm15, %v18725_v28  ;;  %v21483_v46 = vpop.permute.xlu1 %8306 }
 0x451   : > { %13118 = vmatprep.mubr.f32.mxu1 %v22707_v53  ;;  %v7594_v47 = vadd.f32 %v7589_v12, %v7502_v48 }
 0x453   : > { %v21478_v50 = vpop.permute.xlu0 %11650  ;;  %v7686_v7 = vadd.f32 %v7681_v34, %v7594_v47  ;;  %v22851_v47 = vld [vmem:[#allocation35_spill] sm:$0xff] }
 0x455   : > { %v21491_v36 = vpop.permute.xlu1 %12920  ;;  %v7694_v30 = vadd.f32 %v21471_v51, %v7686_v7 }
 0x457   : > { %v21480_v59 = vpop.permute.xlu0 %12934 }
 0x458   : > { %v12943_v40 = vmul.f32 0.0, %v21480_v59 }
 0x45a   : > { %12954 = vrot.lane.b32.xlu0 %v12943_v40, %s22627_s8  ;;  %s22849_s8 = smov 113  }
 0x45b   : > { %v21501_v27 = vpop.permute.xlu1 %12936 }
 0x45c   : > { %v21486_v29 = vpop.permute.xlu0 %13486 }
 0x45d   : > { %v13495_v5 = vmul.f32 0.0, %v21486_v29 }
 0x45e   : > { %13127 = vrot.lane.b32.xlu0 %v21334_v35, %s22739_s7  ;;  %v18758_v35 = vld [vmem:[%s22825_s0 + $0xc] sm:$0xf] }
 0x45f   : > { %13501 = vrot.lane.b32.xlu1 %v13495_v5, %s22847_s4  ;;  %v7595_v5 = vadd.f32 %v7591_v3, %v7503_v61 }
 0x460   : > { %v21549_v48 = vpop.permute.xlu0 %14566 }
 0x461   : > { %v7687_v0 = vadd.f32 %v7683_v15, %v7595_v5 }
 0x462   : > { %13395 = vrot.lane.b32.xlu0 %v21344_v55, %s22739_s7  ;;  %v21509_v55 = vpop.permute.xlu1 %13488 }
 0x463   : > { %13683 = vrot.lane.b32.xlu1 %v21497_v33, %s22739_s7  ;;  %v7695_v12 = vadd.f32 %v21471_v51, %v7687_v0  ;;  %v22853_v0 = vld [vmem:[#allocation32_spill] sm:$0xff] }
 0x466   : > { %13592 = vrot.lane.b32.xlu0 %v21497_v33, %s22676_s15  ;;  %v21515_v2 = vpop.permute.xlu1 %14568 }
 0x467   : > { %13957 = vrot.lane.b32.xlu1 %v18758_v35, %s22739_s7  ;;  %v14576_v14 = vmul.f32 0.0, %v21515_v2 }
 0x46a   : > { %13866 = vrot.lane.b32.xlu0 %v18758_v35, %s22676_s15 }
 0x46b   : > { %14384 = vrot.lane.b32.xlu1 %v18778_v45, %s22676_s15 }
 0x46e   : > { %14128 = vrot.lane.b32.xlu0 %v18768_v19, %s22676_s15 }
 0x46f   : > { %14475 = vrot.lane.b32.xlu1 %v18778_v45, %s22739_s7 }
 0x472   : > { %14209 = vrot.lane.b32.xlu0 %v18768_v19, %s22739_s7 }
 0x476   : > { %14584 = vrot.lane.b32.xlu0 %v14576_v14, %s22849_s8 }
 0x47a   : > { %14670 = vrot.lane.b32.xlu0 %v21521_v11, %s22676_s15 }
 0x47e   : > { %v7780_v43 = vpop.f32.mrf.mxu1 }
 0x480   : > { %v7782_v32 = vpop.f32.mrf.mxu1 }
 0x482   : > { %v7864_v44 = vpop.f32.mrf.mxu0 }
 0x483   : > { %v7865_v63 = vadd.f32 %v7864_v44, %v7780_v43  ;;  %v21534_v44 = vsel %vm12938_vm9, %v21480_v59, %v21501_v27 }
 0x484   : > { %v7866_v17 = vpop.f32.mrf.mxu0 }
 0x485   : > { %v7867_v21 = vadd.f32 %v7866_v17, %v7782_v32  ;;  %v21543_v17 = vsel %vm13490_vm14, %v21486_v29, %v21509_v55 }
 0x486   : > { %v7950_v6 = vpop.f32.mrf.mxu1  ;;  %v8032_v1 = vpop.f32.mrf.mxu0 }
 0x487   : > { %v7955_v25 = vadd.f32 %v7950_v6, %v7865_v63 }
 0x488   : > { %v7952_v42 = vpop.f32.mrf.mxu1  ;;  %v8034_v37 = vpop.f32.mrf.mxu0 }
 0x489   : > { %v7956_v23 = vadd.f32 %v7952_v42, %v7867_v21  ;;  %v8037_v4 = vadd.f32 %v8032_v1, %v7955_v25 }
 0x48a   : > { %v8120_v56 = vpop.f32.mrf.mxu1 }
 0x48b   : > { %v8038_v38 = vadd.f32 %v8034_v37, %v7956_v23  ;;  %v8125_v60 = vadd.f32 %v8120_v56, %v8037_v4  ;;  %v8208_v28 = vpop.f32.mrf.mxu0 }
 0x48c   : > { %v8122_v40 = vpop.f32.mrf.mxu1 }
 0x48d   : > { %v8126_v9 = vadd.f32 %v8122_v40, %v8038_v38  ;;  %v8213_v35 = vadd.f32 %v8208_v28, %v8125_v60  ;;  %v8210_v54 = vpop.f32.mrf.mxu0 }
 0x48f   : > { %v8214_v45 = vadd.f32 %v8210_v54, %v8126_v9  ;;  %v22852_v54 = vld [vmem:[#allocation37_spill] sm:$0xff] }
 0x490   : > { %v8296_v19 = vpop.f32.mrf.mxu1  ;;  %v8407_v10 = vpop.f32.mrf.mxu0 }
 0x491   : > { %v8301_v22 = vadd.f32 %v8296_v19, %v8213_v35 }
 0x492   : > { %v8298_v24 = vpop.f32.mrf.mxu1  ;;  %v8409_v14 = vpop.f32.mrf.mxu0 }
 0x493   : > { %v8309_v62 = vadd.f32 %v21483_v46, %v8301_v22  ;;  %v8302_v16 = vadd.f32 %v8298_v24, %v8214_v45 }
 0x495   : > { %v8311_v8 = vadd.f32 %v8309_v62, %v7694_v30  ;;  %v8310_v3 = vadd.f32 %v21483_v46, %v8302_v16  ;;  %v8493_v39 = vpop.f32.mrf.mxu1 }
 0x496   : > { %v8583_v43 = vpop.f32.mrf.mxu0  ;;  %v8494_v21 = vadd.f32 %v8493_v39, %v8407_v10 }
 0x497   : > { %vm8313_vm3 = vcmp.ge.f32.partialorder %v8311_v8, 0.0  ;;  %v8315_v34 = vmul.f32 0.1, %v8311_v8  ;;  %v8312_v41 = vadd.f32 %v8310_v3, %v7695_v12  ;;  %v8495_v15 = vpop.f32.mrf.mxu1 }
 0x498   : > { %v8585_v26 = vpop.f32.mrf.mxu0  ;;  %v8496_v42 = vadd.f32 %v8495_v15, %v8409_v14  ;;  %v8588_v23 = vadd.f32 %v8583_v43, %v8494_v21 }
 0x499   : > { %v21529_v32 = vsel %vm8313_vm3, %v8311_v8, %v8315_v34  ;;  %v8316_v13 = vmul.f32 0.1, %v8312_v41  ;;  %vm8314_vm13 = vcmp.ge.f32.partialorder %v8312_v41, 0.0  ;;  %vm22859_vm3 = vmmov %vm22846_vm5 }
 0x49a   : > { %v8675_v51 = vpop.f32.mrf.mxu1  ;;  %13220 = vrot.lane.b32.xlu0 %v21529_v32, %s22755_s9  ;;  %v12944_v46 = vmul.f32 %v21534_v44, %v21529_v32  ;;  %v13496_v59 = vmul.f32 %v21543_v17, %v21529_v32  ;;  %v14574_v61 = vmul.f32 %v21549_v48, %v21529_v32  ;;  %v13774_v38 = vmul.f32 %v21529_v32, %v22851_v47 }
 0x49b   : > { %v8767_v63 = vpop.f32.mrf.mxu0  ;;  %v21551_v25 = vsel %vm8314_vm13, %v8312_v41, %v8316_v13  ;;  %v8589_v60 = vadd.f32 %v8585_v26, %v8496_v42  ;;  %v8680_v9 = vadd.f32 %v8675_v51, %v8588_v23  ;;  %v14292_v7 = vmul.f32 %v21529_v32, %v22852_v54  ;;  %v22854_v41 = vld [vmem:[#allocation46_spill] sm:$0xff]  ;;  %vm22861_vm13 = vmmov %vm22859_vm3 }
 0x49c   : > { %v8677_v58 = vpop.f32.mrf.mxu1  ;;  %13042 = vrot.lane.b32.xlu1 %v12944_v46, %s22850_s5  ;;  %v12945_v5 = vmul.f32 %v21501_v27, %v21551_v25  ;;  %v13775_v22 = vmul.f32 %v21551_v25, %v22853_v0  ;;  %v13497_v62 = vmul.f32 %v21509_v55, %v21551_v25  ;;  %v14293_v15 = vmul.f32 %v21551_v25, %v22854_v41 }
 0x49d   : > { %v8769_v6 = vpop.f32.mrf.mxu0  ;;  %v8681_v45 = vadd.f32 %v8677_v58, %v8589_v60  ;;  %v8772_v24 = vadd.f32 %v8767_v63, %v8680_v9  ;;  %v21579_v63 = vsel %vm13507_vm0, %v21549_v48, %v21515_v2 }
 0x49e   : > { %v8851_v1 = vpop.f32.mrf.mxu1  ;;  %13503 = vrot.lane.b32.xlu0 %v13496_v59, %s22847_s4 }
 0x49f   : > { %v8943_v37 = vpop.f32.mrf.mxu0  ;;  %v8773_v16 = vadd.f32 %v8769_v6, %v8681_v45  ;;  %v8856_v3 = vadd.f32 %v8851_v1, %v8772_v24  ;;  %v14575_v1 = vmul.f32 %v21579_v63, %v21551_v25 }
 0x4a0   : > { %v8853_v29 = vpop.f32.mrf.mxu1  ;;  %13222 = vrot.lane.b32.xlu1 %v21551_v25, %s22755_s9 }
 0x4a1   : > { %v8945_v4 = vpop.f32.mrf.mxu0  ;;  %v8857_v26 = vadd.f32 %v8853_v29, %v8773_v16  ;;  %v8948_v58 = vadd.f32 %v8943_v37, %v8856_v3 }
 0x4a2   : > { %v9035_v56 = vpop.f32.mrf.mxu1  ;;  %14580 = vrot.lane.b32.xlu0 %v14574_v61, %s22849_s8 }
 0x4a3   : > { %v9127_v28 = vpop.f32.mrf.mxu0  ;;  %v8949_v42 = vadd.f32 %v8945_v4, %v8857_v26  ;;  %v9040_v23 = vadd.f32 %v9035_v56, %v8948_v58 }
 0x4a4   : > { %v9037_v40 = vpop.f32.mrf.mxu1  ;;  %13778 = vrot.lane.b32.xlu1 %v13774_v38, %s22725_s1 }
 0x4a5   : > { %v9129_v35 = vpop.f32.mrf.mxu0  ;;  %v9132_v24 = vadd.f32 %v9127_v28, %v9040_v23 }
 0x4a6   : > { %13044 = vrot.lane.b32.xlu0 %v12945_v5, %s22850_s5 }
 0x4a7   : > { %v9219_v19 = vpop.f32.mrf.mxu1  ;;  %v9311_v10 = vpop.f32.mrf.mxu0 }
 0x4a8   : > { %14296 = vrot.lane.b32.xlu1 %v14292_v7, %s22728_s10  ;;  %v9041_v7 = vadd.f32 %v9037_v40, %v8949_v42 }
 0x4a9   : > { %v9221_v14 = vpop.f32.mrf.mxu1  ;;  %v9313_v30 = vpop.f32.mrf.mxu0 }
 0x4aa   : > { %13780 = vrot.lane.b32.xlu0 %v13775_v22, %s22725_s1 }
 0x4ab   : > { %v9410_v12 = vpop.f32.mrf.mxu1 }
 0x4ac   : > { %v9494_v8 = vpop.f32.mrf.mxu0  ;;  %13505 = vrot.lane.b32.xlu1 %v13497_v62, %s22847_s4 }
 0x4ad   : > { %v9412_v39 = vpop.f32.mrf.mxu1  ;;  %v9495_v43 = vadd.f32 %v9494_v8, %v9410_v12  ;;  %v9133_v8 = vadd.f32 %v9129_v35, %v9041_v7 }
 0x4ae   : > { %v9496_v34 = vpop.f32.mrf.mxu0 }
 0x4af   : > { %v9497_v51 = vadd.f32 %v9496_v34, %v9412_v39  ;;  %v9225_v26 = vadd.f32 %v9221_v14, %v9133_v8 }
 0x4b0   : > { %v9580_v46 = vpop.f32.mrf.mxu1  ;;  %v9668_v13 = vpop.f32.mrf.mxu0  ;;  %14298 = vrot.lane.b32.xlu1 %v14293_v15, %s22728_s10 }
 0x4b1   : > { %v9585_v59 = vadd.f32 %v9580_v46, %v9495_v43  ;;  %v9224_v43 = vadd.f32 %v9219_v19, %v9132_v24 }
 0x4b2   : > { %v9582_v21 = vpop.f32.mrf.mxu1  ;;  %v9670_v6 = vpop.f32.mrf.mxu0 }
 0x4b3   : > { %v9586_v61 = vadd.f32 %v9582_v21, %v9497_v51  ;;  %v9673_v29 = vadd.f32 %v9668_v13, %v9585_v59  ;;  %v9316_v58 = vadd.f32 %v9311_v10, %v9224_v43 }
 0x4b4   : > { %14582 = vrot.lane.b32.xlu1 %v14575_v1, %s22849_s8  ;;  %v9317_v1 = vadd.f32 %v9313_v30, %v9225_v26 }
 0x4b5   : > { %v9674_v38 = vadd.f32 %v9670_v6, %v9586_v61  ;;  %v9756_v60 = vpop.f32.mrf.mxu1  ;;  %v9838_v5 = vpop.f32.mrf.mxu0  ;;  %v9324_v19 = vadd.f32 %v21453_v52, %v9316_v58 }
 0x4b6   : > { %v9761_v9 = vadd.f32 %v9756_v60, %v9673_v29 }
 0x4b7   : > { %v9758_v2 = vpop.f32.mrf.mxu1  ;;  %v9840_v45 = vpop.f32.mrf.mxu0 }
 0x4b8   : > { %v9762_v37 = vadd.f32 %v9758_v2, %v9674_v38  ;;  %v9843_v22 = vadd.f32 %v9838_v5, %v9761_v9  ;;  %v9325_v5 = vadd.f32 %v21453_v52, %v9317_v1 }
 0x4ba   : > { %v9844_v62 = vadd.f32 %v9840_v45, %v9762_v37  ;;  %v9926_v16 = vpop.f32.mrf.mxu1  ;;  %v10014_v12 = vpop.f32.mrf.mxu0 }
 0x4bb   : > { %v9931_v4 = vadd.f32 %v9926_v16, %v9843_v22 }
 0x4bc   : > { %v9928_v3 = vpop.f32.mrf.mxu1  ;;  %v10016_v39 = vpop.f32.mrf.mxu0 }
 0x4bd   : > { %v9932_v34 = vadd.f32 %v9928_v3, %v9844_v62  ;;  %v10019_v56 = vadd.f32 %v10014_v12, %v9931_v4 }
 0x4be   : > { %v10095_v15 = vpop.f32.mrf.mxu1 }
 0x4bf   : > { %v10020_v51 = vadd.f32 %v10016_v39, %v9932_v34  ;;  %v10100_v46 = vadd.f32 %v10095_v15, %v10019_v56  ;;  %v10176_v40 = vpop.f32.mrf.mxu0  ;;  %v21600_v34 = vpop.permute.xlu0 %15114 }
 0x4c0   : > { %v10097_v13 = vpop.f32.mrf.mxu1 }
 0x4c1   : > { %v10101_v59 = vadd.f32 %v10097_v13, %v10020_v51  ;;  %v10181_v21 = vadd.f32 %v10176_v40, %v10100_v46  ;;  %v10178_v28 = vpop.f32.mrf.mxu0 }
 0x4c2   : > { %v10257_v6 = vpop.f32.mrf.mxu1 }
 0x4c3   : > { %v10182_v42 = vadd.f32 %v10178_v28, %v10101_v59  ;;  %v10262_v35 = vadd.f32 %v10257_v6, %v10181_v21  ;;  %v10368_v61 = vpop.f32.mrf.mxu0 }
 0x4c4   : > { %v10259_v29 = vpop.f32.mrf.mxu1 }
 0x4c5   : > { %v10270_v23 = vadd.f32 %v21476_v31, %v10262_v35  ;;  %v10263_v38 = vadd.f32 %v10259_v29, %v10182_v42  ;;  %v10370_v14 = vpop.f32.mrf.mxu0 }
 0x4c6   : > { %v10454_v60 = vpop.f32.mrf.mxu1 }
 0x4c7   : > { %v10272_v9 = vadd.f32 %v10270_v23, %v9324_v19  ;;  %v10271_v10 = vadd.f32 %v21476_v31, %v10263_v38  ;;  %v10544_v7 = vpop.f32.mrf.mxu0  ;;  %v10455_v19 = vadd.f32 %v10454_v60, %v10368_v61 }
 0x4c8   : > { %v10456_v2 = vpop.f32.mrf.mxu1 }
 0x4c9   : > { %vm10274_vm2 = vcmp.ge.f32.partialorder %v10272_v9, 0.0  ;;  %v10276_v30 = vmul.f32 0.1, %v10272_v9  ;;  %v10273_v45 = vadd.f32 %v10271_v10, %v9325_v5  ;;  %v10546_v37 = vpop.f32.mrf.mxu0  ;;  %v10457_v5 = vadd.f32 %v10456_v2, %v10370_v14 }
 0x4ca   : > { %v10636_v22 = vpop.f32.mrf.mxu1  ;;  %v10549_v61 = vadd.f32 %v10544_v7, %v10455_v19 }
 0x4cb   : > { %v21588_v24 = vsel %vm10274_vm2, %v10272_v9, %v10276_v30  ;;  %v10277_v62 = vmul.f32 0.1, %v10273_v45  ;;  %v10728_v16 = vpop.f32.mrf.mxu0  ;;  %vm10275_vm10 = vcmp.ge.f32.partialorder %v10273_v45, 0.0  ;;  %vm22862_vm2 = vmmov %vm22859_vm3 }
 0x4cc   : > { %v10638_v12 = vpop.f32.mrf.mxu1  ;;  %13310 = vrot.lane.b32.xlu1 %v21588_v24, %s22755_s9  ;;  %v12946_v52 = vmul.f32 %v21534_v44, %v21588_v24  ;;  %v14382_v4 = vmul.f32 %v21588_v24, %v22852_v54  ;;  %v13590_v40 = vmul.f32 %v21543_v17, %v21588_v24  ;;  %v21613_v58 = vpop.permute.xlu0 %12954  ;;  %v13864_v1 = vmul.f32 %v21588_v24, %v22851_v47 }
 0x4cd   : > { %v10730_v31 = vpop.f32.mrf.mxu0  ;;  %v21597_v3 = vsel %vm10275_vm10, %v10273_v45, %v10277_v62  ;;  %v14668_v38 = vmul.f32 %v21549_v48, %v21588_v24  ;;  %v21646_v45 = vpop.permute.xlu1 %15116  ;;  %v10550_v62 = vadd.f32 %v10546_v37, %v10457_v5  ;;  %vm22863_vm10 = vmmov %vm22862_vm2 }
 0x4ce   : > { %v10820_v8 = vpop.f32.mrf.mxu1  ;;  %12956 = vrot.lane.b32.xlu0 %v12946_v52, %s22850_s5  ;;  %v12947_v26 = vmul.f32 %v21501_v27, %v21597_v3  ;;  %v13591_v21 = vmul.f32 %v21509_v55, %v21597_v3  ;;  %v13865_v29 = vmul.f32 %v21597_v3, %v22853_v0  ;;  %v14669_v30 = vmul.f32 %v21579_v63, %v21597_v3 }
 0x4cf   : > { %v10912_v39 = vpop.f32.mrf.mxu0  ;;  %v14383_v60 = vmul.f32 %v21597_v3, %v22854_v41 }
 0x4d0   : > { %v10822_v43 = vpop.f32.mrf.mxu1  ;;  %14388 = vrot.lane.b32.xlu1 %v14382_v4, %s22728_s10  ;;  %v21634_v23 = vpop.permute.xlu0 %13127  ;;  %v10641_v4 = vadd.f32 %v10636_v22, %v10549_v61 }
 0x4d1   : > { %v10914_v56 = vpop.f32.mrf.mxu0 }
 0x4d2   : > { %v10996_v15 = vpop.f32.mrf.mxu1  ;;  %13312 = vrot.lane.b32.xlu0 %v21597_v3, %s22755_s9 }
 0x4d3   : > { %v21606_v51 = vpop.f32.mrf.mxu0 }
 0x4d4   : > { %v10998_v46 = vpop.f32.mrf.mxu1  ;;  %12958 = vrot.lane.b32.xlu1 %v12947_v26, %s22850_s5  ;;  %v21651_v52 = vpop.permute.xlu0 %13395 }
 0x4d5   : > { %v21611_v13 = vpop.f32.mrf.mxu0  ;;  %22855 = vst [vmem:[#allocation38_spill] sm:$0xff] %v21651_v52  ;;  %v21658_v26 = vpop.permute.xlu1 %12949 }
 0x4d6   : > { %v21615_v59 = vpop.f32.mrf.mxu1  ;;  %13596 = vrot.lane.b32.xlu0 %v13590_v40, %s22847_s4  ;;  %v10642_v40 = vadd.f32 %v10638_v12, %v10550_v62 }
 0x4d7   : > { %v21620_v28 = vpop.f32.mrf.mxu0 }
 0x4d8   : > { %v21622_v6 = vpop.f32.mrf.mxu1  ;;  %13598 = vrot.lane.b32.xlu1 %v13591_v21, %s22847_s4  ;;  %v10734_v19 = vadd.f32 %v10730_v31, %v10642_v40 }
 0x4d9   : > { %v21627_v42 = vpop.f32.mrf.mxu0 }
 0x4da   : > { %v21629_v35 = vpop.f32.mrf.mxu1  ;;  %13870 = vrot.lane.b32.xlu0 %v13864_v1, %s22725_s1  ;;  %v10733_v1 = vadd.f32 %v10728_v16, %v10641_v4  ;;  %v10826_v22 = vadd.f32 %v10822_v43, %v10734_v19 }
 0x4db   : > { %v21641_v10 = vpop.f32.mrf.mxu0 }
 0x4dc   : > { %13872 = vrot.lane.b32.xlu1 %v13865_v29, %s22725_s1  ;;  %v21639_v9 = vpop.f32.mrf.mxu1  ;;  %v21664_v29 = vpop.permute.xlu0 %13592  ;;  %v10918_v4 = vadd.f32 %v10914_v56, %v10826_v22 }
 0x4dd   : > { %v21653_v14 = vpop.f32.mrf.mxu0  ;;  %22856 = vst [vmem:[#allocation47_spill] sm:$0xff] %v21664_v29 }
 0x4de   : > { %14674 = vrot.lane.b32.xlu0 %v14668_v38, %s22849_s8  ;;  %v21655_v2 = vpop.f32.mrf.mxu1  ;;  %v21666_v38 = vpop.permute.xlu1 %13306 }
 0x4df   : > { %v21662_v7 = vpop.f32.mrf.mxu0  ;;  %22857 = vst [vmem:[#allocation42_spill] sm:$0xff] %v21666_v38 }
 0x4e0   : > { %14676 = vrot.lane.b32.xlu1 %v14669_v30, %s22849_s8  ;;  %v21660_v21 = vpop.f32.mrf.mxu1  ;;  %v10825_v30 = vadd.f32 %v10820_v8, %v10733_v1  ;;  %v21670_v61 = vpop.permute.xlu0 %13866  ;;  %v11002_v8 = vadd.f32 %v10998_v46, %v10918_v4 }
 0x4e1   : > { %v21668_v5 = vpop.f32.mrf.mxu0  ;;  %22858 = vst [vmem:[#allocation43_spill] sm:$0xff] %v21670_v61 }
 0x4e2   : > { %14390 = vrot.lane.b32.xlu0 %v14383_v60, %s22728_s10  ;;  %v10917_v12 = vadd.f32 %v10912_v39, %v10825_v30  ;;  %v21672_v20 = vpop.permute.xlu1 %13501 }
 0x4e4   : > { %v11739_v37 = vpop.f32.mrf.mxu1  ;;  %v11001_v29 = vadd.f32 %v10996_v15, %v10917_v12  ;;  %v21674_v40 = vpop.permute.xlu0 %14128 }
 0x4e6   : > { %v11741_v57 = vpop.f32.mrf.mxu1  ;;  %v21676_v1 = vpop.permute.xlu1 %13683  ;;  %v11093_v43 = vadd.f32 %v21606_v51, %v11001_v29 }
 0x4e8   : > { %v11823_v60 = vpop.f32.mrf.mxu0  ;;  %v21680_v61 = vpop.permute.xlu0 %14209 }
 0x4e9   : > { %v11824_v62 = vadd.f32 %v11823_v60, %v11739_v37  ;;  %v11094_v60 = vadd.f32 %v21611_v13, %v11002_v8 }
 0x4ea   : > { %v11825_v33 = vpop.f32.mrf.mxu0  ;;  %v21683_v22 = vpop.permute.xlu1 %13957 }
 0x4eb   : > { %v11826_v49 = vadd.f32 %v11825_v33, %v11741_v57  ;;  %v11185_v57 = vadd.f32 %v21615_v59, %v11093_v43 }
 0x4ec   : > { %v11909_v16 = vpop.f32.mrf.mxu1 }
 0x4ed   : > { %v11914_v31 = vadd.f32 %v11909_v16, %v11824_v62  ;;  %v11186_v62 = vadd.f32 %v21622_v6, %v11094_v60 }
 0x4ee   : > { %v11911_v38 = vpop.f32.mrf.mxu1  ;;  %v21690_v8 = vpop.permute.xlu1 %14384 }
 0x4ef   : > { %v11915_v19 = vadd.f32 %v11911_v38, %v11826_v49  ;;  %v11277_v49 = vadd.f32 %v21620_v28, %v11185_v57  ;;  %v21687_v38 = vpop.permute.xlu0 %14584  ;;  %v11278_v4 = vadd.f32 %v21627_v42, %v11186_v62 }
 0x4f0   : > { %v11997_v52 = vpop.f32.mrf.mxu0 }
 0x4f1   : > { %v12002_v39 = vadd.f32 %v11997_v52, %v11914_v31  ;;  %v11370_v28 = vadd.f32 %v21639_v9, %v11278_v4 }
 0x4f2   : > { %v11999_v37 = vpop.f32.mrf.mxu0  ;;  %v21697_v62 = vpop.permute.xlu1 %14475 }
 0x4f3   : > { %v12003_v33 = vadd.f32 %v11999_v37, %v11915_v19  ;;  %v11369_v19 = vadd.f32 %v21629_v35, %v11277_v49  ;;  %v21694_v57 = vpop.permute.xlu0 %14670 }
 0x4f4   : > { %v12085_v30 = vpop.f32.mrf.mxu1 }
 0x4f5   : > { %v12090_v15 = vadd.f32 %v12085_v30, %v12002_v39  ;;  %v11461_v42 = vadd.f32 %v21641_v10, %v11369_v19 }
 0x4f6   : > { %v12087_v46 = vpop.f32.mrf.mxu1 }
 0x4f7   : > { %v12091_v52 = vadd.f32 %v12087_v46, %v12003_v33 }
 0x4fa   : > { %v12173_v56 = vpop.f32.mrf.mxu0 }
 0x4fb   : > { %v12178_v29 = vadd.f32 %v12173_v56, %v12090_v15 }
 0x4fc   : > { %v12175_v12 = vpop.f32.mrf.mxu0 }
 0x4fd   : > { %v12179_v59 = vadd.f32 %v12175_v12, %v12091_v52 }
 0x4fe   : > { %v12343_v51 = vpop.f32.mrf.mxu0 }
 0x500   : > { %v12261_v13 = vpop.f32.mrf.mxu1  ;;  %v12345_v16 = vpop.f32.mrf.mxu0 }
 0x501   : > { %v12266_v31 = vadd.f32 %v12261_v13, %v12178_v29 }
 0x502   : > { %v12263_v43 = vpop.f32.mrf.mxu1 }
 0x503   : > { %v12348_v39 = vadd.f32 %v12343_v51, %v12266_v31  ;;  %v12267_v6 = vadd.f32 %v12263_v43, %v12179_v59  ;;  %v11462_v51 = vadd.f32 %v21653_v14, %v11370_v28 }
 0x504   : > { %v12424_v37 = vpop.f32.mrf.mxu1  ;;  %v12505_v30 = vpop.f32.mrf.mxu0 }
 0x505   : > { %v12349_v60 = vadd.f32 %v12345_v16, %v12267_v6  ;;  %v12429_v56 = vadd.f32 %v12424_v37, %v12348_v39  ;;  %v11553_v16 = vadd.f32 %v21655_v2, %v11461_v42  ;;  %v11554_v10 = vadd.f32 %v21660_v21, %v11462_v51 }
 0x506   : > { %v12426_v33 = vpop.f32.mrf.mxu1  ;;  %v12507_v15 = vpop.f32.mrf.mxu0 }
 0x507   : > { %v12510_v46 = vadd.f32 %v12505_v30, %v12429_v56  ;;  %v12430_v12 = vadd.f32 %v12426_v33, %v12349_v60  ;;  %v11645_v60 = vadd.f32 %v21662_v7, %v11553_v16  ;;  %v11646_v2 = vadd.f32 %v21668_v5, %v11554_v10 }
 0x508   : > { %v12586_v52 = vpop.f32.mrf.mxu1  ;;  %v12667_v35 = vpop.f32.mrf.mxu0 }
 0x509   : > { %v12511_v49 = vadd.f32 %v12507_v15, %v12430_v12  ;;  %v12591_v29 = vadd.f32 %v12586_v52, %v12510_v46  ;;  %v11653_v21 = vadd.f32 %v21478_v50, %v11645_v60  ;;  %v11654_v7 = vadd.f32 %v21478_v50, %v11646_v2 }
 0x50a   : > { %v12588_v13 = vpop.f32.mrf.mxu1  ;;  %v12669_v9 = vpop.f32.mrf.mxu0 }
 0x50b   : > { %v12672_v4 = vadd.f32 %v12667_v35, %v12591_v29  ;;  %v12592_v59 = vadd.f32 %v12588_v13, %v12511_v49 }
 0x50c   : > { %v13221_v31 = vpop.permute.xlu0 %13220  ;;  %v12748_v43 = vpop.f32.mrf.mxu1 }
 0x50d   : > { %v12673_v19 = vadd.f32 %v12669_v9, %v12592_v59  ;;  %v12753_v39 = vadd.f32 %v12748_v43, %v12672_v4  ;;  %v12829_v6 = vpop.f32.mrf.mxu0 }
 0x50e   : > { %v13043_v37 = vpop.permute.xlu1 %13042  ;;  %v12750_v30 = vpop.f32.mrf.mxu1 }
 0x50f   : > { %v12834_v14 = vadd.f32 %v12829_v6, %v12753_v39  ;;  %v12754_v28 = vadd.f32 %v12750_v30, %v12673_v19  ;;  %v12831_v56 = vpop.f32.mrf.mxu0  ;;  %v13046_v50 = vsel %vm12960_vm7, %v21613_v58, %v13043_v37  ;;  %v19014_v30 = vld [vmem:[%s22825_s0] sm:$0xf] }
 0x510   : > { %v21703_v33 = vpop.permute.xlu0 %13503  ;;  %v12910_v15 = vpop.f32.mrf.mxu1 }
 0x511   : > { %v12835_v42 = vadd.f32 %v12831_v56, %v12754_v28  ;;  %v12915_v46 = vadd.f32 %v12910_v15, %v12834_v14  ;;  %v19015_v28 = vld [vmem:[%s22825_s0 + $0x4] sm:$0xf] }
 0x512   : > { %v13223_v12 = vpop.permute.xlu1 %13222  ;;  %v12912_v52 = vpop.f32.mrf.mxu1 }
 0x513   : > { %v12923_v35 = vadd.f32 %v21491_v36, %v12915_v46  ;;  %v12916_v51 = vadd.f32 %v12912_v52, %v12835_v42  ;;  %v13225_v39 = vsel %vm22846_vm5, %v13221_v31, %v13223_v12 }
 0x514   : > { %v14581_v49 = vpop.permute.xlu0 %14580 }
 0x515   : > { %v12925_v29 = vadd.f32 %v12923_v35, %v11653_v21  ;;  %v12924_v13 = vadd.f32 %v21491_v36, %v12916_v51  ;;  %v15124_v21 = vmul.f32 0.0, %v21646_v45  ;;  %v21788_v35 = vld [vmem:[%s22825_s0 + $0x1c] sm:$0xf] }
 0x516   : > { %v21710_v9 = vpop.permute.xlu1 %13778 }
 0x517   : > { %vm12927_vm12 = vcmp.ge.f32.partialorder %v12925_v29, 0.0  ;;  %v12929_v16 = vmul.f32 0.1, %v12925_v29  ;;  %v12926_v5 = vadd.f32 %v12924_v13, %v11654_v7  ;;  %v21803_v13 = vsel %vm12960_vm7, %v21600_v34, %v21646_v45 }
 0x518   : > { %v13045_v4 = vpop.permute.xlu0 %13044 }
 0x519   : > { %v21712_v59 = vsel %vm12927_vm12, %v12925_v29, %v12929_v16  ;;  %vm12928_vm11 = vcmp.ge.f32.partialorder %v12926_v5, 0.0  ;;  %v12930_v43 = vmul.f32 0.1, %v12926_v5  ;;  %v13047_v10 = vsel %vm12960_vm7, %v13043_v37, %v13045_v4  ;;  %vm22864_vm12 = vmmov %vm22862_vm2 }
 0x51a   : > { %18732 = vmatprep.subr.msk.mxu1 %vm7074_vm6, %v13047_v10  ;;  %v21718_v36 = vpop.permute.xlu1 %14296  ;;  %13399 = vrot.lane.b32.xlu1 %v21712_v59, %s22755_s9  ;;  %v13125_v19 = vmul.f32 %v21534_v44, %v21712_v59  ;;  %v13224_v37 = vsel %vm22859_vm3, %v22775_v18, %v13221_v31  ;;  %v14759_v31 = vmul.f32 %v21549_v48, %v21712_v59 }
 0x51b   : > { %v21725_v6 = vsel %vm12928_vm11, %v12926_v5, %v12930_v43  ;;  %18733 = vmatpush1.msk.msra.mxu1 %vm7074_vm6, %v13046_v50  ;;  %v13681_v15 = vmul.f32 %v21543_v17, %v21712_v59  ;;  %v13955_v46 = vmul.f32 %v21712_v59, %v22851_v47  ;;  %v14473_v52 = vmul.f32 %v21712_v59, %v22852_v54 }
 0x51c   : > { %18739 = vmatprep.subr.msk.mxu1 %vm7074_vm6, %v13225_v39  ;;  %18734 = vmatmul.mubr.msk.f32.vlgmr.msra.gmra.mxu1 %vm4001_vm15, %v19014_v30  ;;  %v13126_v60 = vmul.f32 %v21501_v27, %v21725_v6  ;;  %v13682_v12 = vmul.f32 %v21509_v55, %v21725_v6  ;;  %v14760_v7 = vmul.f32 %v21579_v63, %v21725_v6  ;;  %v21797_v29 = vpop.permute.xlu0 %13780  ;;  %vm22873_vm11 = vcmask 916480  }
 0x51d   : > { %18740 = vmatpush1.msk.msra.mxu1 %vm7074_vm6, %v13224_v37  ;;  %13131 = vrot.lane.b32.xlu0 %v13125_v19, %s22850_s5  ;;  %v15123_v5 = vmul.f32 %v21803_v13, %v21551_v25  ;;  %v15122_v4 = vmul.f32 %v21600_v34, %v21529_v32  ;;  %v15216_v19 = vmul.f32 %v21600_v34, %v21588_v24  ;;  %v21829_v37 = vld [vmem:[%s22825_s0 + $0x20] sm:$0xf]  ;;  %vm22874_vm5 = vmmov %vm22873_vm11 }
 0x51e   : > { %v21737_v14 = vpop.permute.xlu1 %13505  ;;  %13133 = vrot.lane.b32.xlu1 %v13126_v60, %s22850_s5  ;;  %13297 = vmatprep.mubr.f32.mxu1 %v22707_v53  ;;  %v15217_v39 = vmul.f32 %v21803_v13, %v21597_v3  ;;  %v15308_v30 = vmul.f32 %v21803_v13, %v21725_v6  ;;  %vm22875_vm3 = vmmov %vm22874_vm5 }
 0x520   : > { %18741 = vmatmul.mubr.msk.f32.vlgmr.msra.gmra.mxu1 %vm4001_vm15, %v19015_v28 }
 0x521   : > { %13401 = vrot.lane.b32.xlu0 %v21725_v6, %s22755_s9  ;;  %13475 = vmatprep.mubr.f32.mxu1 %v22707_v53 }
 0x522   : > { %v21748_v56 = vpop.permute.xlu1 %14298  ;;  %14765 = vrot.lane.b32.xlu1 %v14759_v31, %s22849_s8 }
 0x525   : > { %13687 = vrot.lane.b32.xlu0 %v13681_v15, %s22847_s4 }
 0x526   : > { %v21754_v2 = vpop.permute.xlu1 %14582  ;;  %14761 = vrot.lane.b32.xlu1 %v21521_v11, %s22739_s7  ;;  %v13956_v11 = vmul.f32 %v21725_v6, %v22853_v0 }
 0x527   : > { %v21760_v42 = vsel %vm13490_vm14, %v14581_v49, %v21754_v2  ;;  %v14474_v49 = vmul.f32 %v21725_v6, %v22854_v41 }
 0x529   : > { %13961 = vrot.lane.b32.xlu0 %v13955_v46, %s22725_s1 }
 0x52a   : > { %13689 = vrot.lane.b32.xlu1 %v13682_v12, %s22847_s4 }
 0x52d   : > { %14479 = vrot.lane.b32.xlu0 %v14473_v52, %s22728_s10 }
 0x52e   : > { %13963 = vrot.lane.b32.xlu1 %v13956_v11, %s22725_s1 }
 0x531   : > { %14854 = vrot.lane.b32.xlu0 %v21551_v25, %s22750_s18 }
 0x532   : > { %14942 = vrot.lane.b32.xlu1 %v21597_v3, %s22750_s18 }
 0x535   : > { %14852 = vrot.lane.b32.xlu0 %v21529_v32, %s22750_s18 }
 0x536   : > { %15029 = vrot.lane.b32.xlu1 %v21725_v6, %s22750_s18 }
 0x539   : > { %14940 = vrot.lane.b32.xlu0 %v21588_v24, %s22750_s18 }
 0x53a   : > { %15027 = vrot.lane.b32.xlu1 %v21712_v59, %s22750_s18 }
 0x53d   : > { %14938 = vrot.lane.b32.xlu0 %v21788_v35, %s22676_s15 }
 0x53e   : > { %v13311_v51 = vpop.permute.xlu1 %13310  ;;  %15132 = vrot.lane.b32.xlu1 %v15124_v21, %s22860_s6 }
 0x540   : > { %v12957_v43 = vpop.permute.xlu0 %12956 }
 0x541   : > { %14481 = vrot.lane.b32.xlu0 %v14474_v49, %s22728_s10  ;;  %v12961_v50 = vsel %vm12960_vm7, %v21613_v58, %v12957_v43 }
 0x542   : > { %v21805_v16 = vpop.permute.xlu1 %14388  ;;  %14767 = vrot.lane.b32.xlu1 %v14760_v7, %s22849_s8 }
 0x544   : > { %v13313_v60 = vpop.permute.xlu0 %13312 }
 0x545   : > { %15130 = vrot.lane.b32.xlu0 %v15123_v5, %s22860_s6 }
 0x546   : > { %v12959_v10 = vpop.permute.xlu1 %12958  ;;  %15128 = vrot.lane.b32.xlu1 %v15122_v4, %s22860_s6 }
 0x547   : > { %v12962_v45 = vsel %vm12960_vm7, %v12957_v43, %v12959_v10  ;;  %v13315_v43 = vsel %vm22861_vm13, %v13311_v51, %v13313_v60  ;;  %v22865_v60 = vld [vmem:[#allocation38_spill] sm:$0xff]  ;;  %vm22876_vm13 = vmmov %vm22875_vm3 }
 0x548   : > { %18729 = vmatprep.subr.msk.mxu0 %vm7074_vm6, %v12962_v45  ;;  %v13597_v31 = vpop.permute.xlu0 %13596  ;;  %v13314_v45 = vsel %vm22862_vm2, %v22775_v18, %v13311_v51  ;;  %vm22877_vm2 = vmmov %vm22875_vm3 }
 0x549   : > { %18730 = vmatpush1.msk.msra.mxu0 %vm7074_vm6, %v12961_v50  ;;  %15025 = vrot.lane.b32.xlu0 %v21788_v35, %s22739_s7 }
 0x54a   : > { %18731 = vmatmul.mubr.msk.f32.vlgmr.msra.gmra.mxu0 %vm4001_vm15, %v21658_v26  ;;  %15222 = vrot.lane.b32.xlu1 %v15216_v19, %s22860_s6  ;;  %v15307_v26 = vmul.f32 %v21600_v34, %v21712_v59  ;;  %v13599_v28 = vpop.permute.xlu1 %13598 }
 0x54b   : > { %13207 = vmatprep.mubr.f32.mxu0 %v22707_v53  ;;  %v13601_v51 = vsel %vm13507_vm0, %v13597_v31, %v13599_v28 }
 0x54c   : > { %v13871_v15 = vpop.permute.xlu0 %13870 }
 0x54d   : > { %15224 = vrot.lane.b32.xlu0 %v15217_v39, %s22860_s6  ;;  %v13509_v39 = vsel %vm13507_vm0, %v21703_v33, %v21737_v14  ;;  %v13783_v14 = vsel %vm4206_vm1, %v21710_v9, %v21797_v29  ;;  %v22867_v29 = vld [vmem:[#allocation54_spill] sm:$0xff] }
 0x54e   : > { %15218 = vrot.lane.b32.xlu1 %v21829_v37, %s22676_s15  ;;  %v13873_v46 = vpop.permute.xlu1 %13872  ;;  %s22881_s15 = sld [smem:[#allocation24_spill]] }
 0x550   : > { %v21843_v12 = vpop.permute.xlu0 %14674 }
 0x551   : > { %15315 = vrot.lane.b32.xlu0 %v15308_v30, %s22860_s6 }
 0x552   : > { %15309 = vrot.lane.b32.xlu1 %v21829_v37, %s22739_s7  ;;  %v21845_v52 = vpop.permute.xlu1 %14676 }
 0x554   : > { %v21847_v11 = vpop.permute.xlu0 %14390 }
 0x555   : > { %15313 = vrot.lane.b32.xlu0 %v15307_v26, %s22860_s6 }
 0x58c   : > { %v13400_v21 = vpop.permute.xlu1 %13399 }
 0x58d   : > { %v13403_v30 = vsel %vm22864_vm12, %v22775_v18, %v13400_v21 }
 0x58f   : > { %v13132_v49 = vpop.permute.xlu0 %13131 }
 0x590   : > { %v13134_v7 = vpop.permute.xlu1 %13133  ;;  %v13135_v4 = vsel %vm12960_vm7, %v21613_v58, %v13132_v49 }
 0x591   : > { %v13136_v5 = vsel %vm12960_vm7, %v13132_v49, %v13134_v7  ;;  %v13782_v49 = vsel %vm4206_vm1, %v22867_v29, %v21710_v9  ;;  %v13875_v9 = vsel %vm4206_vm1, %v13871_v15, %v13873_v46 }
 0x592   : > { %18735 = vmatprep.subr.msk.mxu0 %vm7074_vm6, %v13136_v5  ;;  %v22868_v5 = vld [vmem:[#allocation47_spill] sm:$0xff] }
 0x593   : > { %v13402_v10 = vpop.permute.xlu0 %13401  ;;  %18736 = vmatpush1.msk.msra.mxu0 %vm7074_vm6, %v13135_v4  ;;  %v22869_v4 = vld [vmem:[#allocation41_spill] sm:$0xff] }
 0x594   : > { %v13404_v50 = vsel %vm22863_vm10, %v13400_v21, %v13402_v10  ;;  %18737 = vmatmul.mubr.msk.f32.vlgmr.msra.gmra.mxu0 %vm4001_vm15, %v21634_v23  ;;  %18742 = vmatprep.subr.msk.mxu0 %vm7074_vm6, %v13315_v43  ;;  %v21861_v19 = vpop.permute.xlu1 %14765  ;;  %v13600_v23 = vsel %vm13507_vm0, %v21672_v20, %v13597_v31  ;;  %v13508_v31 = vsel %vm13507_vm0, %v21672_v20, %v21703_v33  ;;  %v22866_v21 = vld [vmem:[#allocation42_spill] sm:$0xff]  ;;  %vm22878_vm10 = vmmov %vm22877_vm2 }
 0x595   : > { %18745 = vmatprep.subr.msk.mxu1 %vm7074_vm6, %v13404_v50  ;;  %18743 = vmatpush1.msk.msra.mxu0 %vm7074_vm6, %v13314_v45  ;;  %v19016_v50 = vld [vmem:[%s22825_s0 + $0xc] sm:$0xf] }
 0x596   : > { %18746 = vmatpush1.msk.msra.mxu1 %vm7074_vm6, %v13403_v30  ;;  %18749 = vmatprep.subr.msk.mxu0 %vm7074_vm6, %v13509_v39  ;;  %v13874_v30 = vsel %vm4206_vm1, %v22867_v29, %v13871_v15  ;;  %v22870_v15 = vld [vmem:[#allocation43_spill] sm:$0xff] }
 0x597   : > { %v13688_v26 = vpop.permute.xlu0 %13687  ;;  %18747 = vmatmul.mubr.msk.f32.vlgmr.msra.gmra.mxu1 %vm4001_vm15, %v22865_v60  ;;  %18752 = vmatprep.subr.msk.mxu1 %vm7074_vm6, %v13601_v51 }
 0x598   : > { %13386 = vmatprep.mubr.f32.mxu0 %v22707_v53  ;;  %18753 = vmatpush1.msk.msra.mxu1 %vm7074_vm6, %v13600_v23  ;;  %v21883_v28 = vpop.permute.xlu1 %14761  ;;  %v13691_v10 = vsel %vm13507_vm0, %v21672_v20, %v13688_v26 }
 0x599   : > { %18744 = vmatmul.mubr.msk.f32.vlgmr.msra.gmra.mxu0 %vm4001_vm15, %v22866_v21  ;;  %18759 = vmatprep.subr.msk.mxu1 %vm7074_vm6, %v13783_v14  ;;  %v19019_v21 = vld [vmem:[%s22825_s0 + $0x18] sm:$0xf] }
 0x59a   : > { %18750 = vmatpush1.msk.msra.mxu0 %vm7074_vm6, %v13508_v31  ;;  %13672 = vmatprep.mubr.f32.mxu1 %v22707_v53 }
 0x59b   : > { %v13962_v7 = vpop.permute.xlu0 %13961  ;;  %18754 = vmatmul.mubr.msk.f32.vlgmr.msra.gmra.mxu1 %vm4001_vm15, %v22868_v5  ;;  %13581 = vmatprep.mubr.f32.mxu0 %v22707_v53 }
 0x59c   : > { %18760 = vmatpush1.msk.msra.mxu1 %vm7074_vm6, %v13782_v49  ;;  %v13690_v33 = vpop.permute.xlu1 %13689  ;;  %13855 = vmatprep.mubr.f32.mxu1 %v22707_v53  ;;  %v13965_v46 = vsel %vm4206_vm1, %v22867_v29, %v13962_v7  ;;  %v14679_v49 = vsel %vm13490_vm14, %v21845_v52, %v21687_v38 }
 0x59d   : > { %18751 = vmatmul.mubr.msk.f32.vlgmr.msra.gmra.mxu0 %vm4001_vm15, %v22869_v4  ;;  %v13692_v43 = vsel %vm13507_vm0, %v13688_v26, %v13690_v33 }
 0x59e   : > { %18755 = vmatprep.subr.msk.mxu0 %vm7074_vm6, %v13692_v43  ;;  %13763 = vmatprep.mubr.f32.mxu0 %v22707_v53 }
 0x59f   : > { %v14480_v45 = vpop.permute.xlu0 %14479  ;;  %18756 = vmatpush1.msk.msra.mxu0 %vm7074_vm6, %v13691_v10  ;;  %18761 = vmatmul.mubr.msk.f32.vlgmr.msra.gmra.mxu1 %vm4001_vm15, %v19016_v50 }
 0x5a0   : > { %18762 = vmatprep.subr.msk.mxu0 %vm7074_vm6, %v13875_v9  ;;  %v13964_v39 = vpop.permute.xlu1 %13963  ;;  %14037 = vmatprep.mubr.f32.mxu1 %v22707_v53 }
 0x5a1   : > { %18757 = vmatmul.mubr.msk.f32.vlgmr.msra.gmra.mxu0 %vm4001_vm15, %v21676_v1  ;;  %v13966_v51 = vsel %vm4206_vm1, %v13962_v7, %v13964_v39  ;;  %v14678_v7 = vsel %vm13490_vm14, %v21843_v12, %v21845_v52 }
 0x5a2   : > { %18763 = vmatpush1.msk.msra.mxu0 %vm7074_vm6, %v13874_v30  ;;  %18765 = vmatprep.subr.msk.mxu1 %vm7074_vm6, %v13966_v51 }
 0x5a3   : > { %v21923_v23 = vpop.permute.xlu0 %14854  ;;  %18769 = vmatprep.subr.msk.mxu0 %vm7074_vm6, %v21551_v25  ;;  %13946 = vmatprep.mubr.f32.mxu0 %v22707_v53  ;;  %v22871_v25 = vld [vmem:[#allocation55_spill] sm:$0xff] }
 0x5a4   : > { %18766 = vmatpush1.msk.msra.mxu1 %vm7074_vm6, %v13965_v46  ;;  %v21929_v1 = vpop.permute.xlu1 %14942  ;;  %v14301_v26 = vsel %vm4189_vm4, %v21748_v56, %v22871_v25 }
 0x5a5   : > { %18764 = vmatmul.mubr.msk.f32.vlgmr.msra.gmra.mxu0 %vm4001_vm15, %v22870_v15  ;;  %18767 = vmatmul.mubr.msk.f32.vlgmr.msra.gmra.mxu1 %vm4001_vm15, %v21683_v22 }
 0x5a6   : > { %18770 = vmatpush1.msk.msra.mxu0 %vm7074_vm6, %v21529_v32  ;;  %18772 = vmatprep.subr.msk.mxu1 %vm7074_vm6, %v21597_v3  ;;  %v19017_v32 = vld [vmem:[%s22825_s0 + $0x10] sm:$0xf]  ;;  %v14393_v3 = vsel %vm4189_vm4, %v21847_v11, %v22871_v25 }
 0x5a7   : > { %18773 = vmatpush1.msk.msra.mxu1 %vm7074_vm6, %v21588_v24  ;;  %18775 = vmatprep.subr.msk.mxu0 %vm7074_vm6, %v21725_v6  ;;  %v14853_v60 = vpop.permute.xlu0 %14852  ;;  %v14300_v24 = vsel %vm4189_vm4, %v21718_v36, %v21748_v56  ;;  %v14392_v36 = vsel %vm4189_vm4, %v21805_v16, %v21847_v11 }
 0x5a8   : > { %18779 = vmatprep.subr.msk.mxu1 %vm7074_vm6, %v14301_v26  ;;  %14119 = vmatprep.mubr.f32.mxu0 %v22707_v53  ;;  %v21948_v22 = vpop.permute.xlu1 %15029  ;;  %v14856_v10 = vsel %vm22876_vm13, %v14853_v60, %v21923_v23 }
 0x5a9   : > { %14200 = vmatprep.mubr.f32.mxu1 %v22707_v53  ;;  %18771 = vmatmul.mubr.msk.f32.vlgmr.msra.gmra.mxu0 %vm4001_vm15, %v19017_v32 }
 0x5aa   : > { %18774 = vmatmul.mubr.msk.f32.vlgmr.msra.gmra.mxu1 %vm4001_vm15, %v21674_v40  ;;  %18776 = vmatpush1.msk.msra.mxu0 %vm7074_vm6, %v21712_v59  ;;  %v14587_v40 = vsel %vm13490_vm14, %v21754_v2, %v21687_v38  ;;  %v19018_v59 = vld [vmem:[%s22825_s0 + $0x14] sm:$0xf]  ;;  %s22882_s0 = sld [smem:[#allocation22_spill]] }
 0x5ab   : > { %18780 = vmatpush1.msk.msra.mxu1 %vm7074_vm6, %v14300_v24  ;;  %18782 = vmatprep.subr.msk.mxu0 %vm7074_vm6, %v14393_v3  ;;  %v14941_v6 = vpop.permute.xlu0 %14940 }
 0x5ac   : > { %14281 = vmatprep.mubr.f32.mxu0 %v22707_v53  ;;  %v15028_v14 = vpop.permute.xlu1 %15027  ;;  %14373 = vmatprep.mubr.f32.mxu1 %v22707_v53 }
 0x5ad   : > { %18777 = vmatmul.mubr.msk.f32.vlgmr.msra.gmra.mxu0 %vm4001_vm15, %v21680_v61  ;;  %v15031_v50 = vsel %vm22878_vm10, %v15028_v14, %v21948_v22  ;;  %vm22887_vm10 = vcmask 130048  }
 0x5ae   : > { %18783 = vmatpush1.msk.msra.mxu0 %vm7074_vm6, %v14392_v36  ;;  %18781 = vmatmul.mubr.msk.f32.vlgmr.msra.gmra.mxu1 %vm4001_vm15, %v19018_v59 }
 0x5af   : > { %18789 = vmatprep.subr.msk.mxu0 %vm7074_vm6, %v14587_v40  ;;  %v14939_v56 = vpop.permute.xlu0 %14938  ;;  %14464 = vmatprep.mubr.f32.mxu0 %v22707_v53 }
 0x5b0   : > { %v21980_v31 = vpop.permute.xlu1 %15132  ;;  %14555 = vmatprep.mubr.f32.mxu1 %v22707_v53 }
 0x5b1   : > { %18784 = vmatmul.mubr.msk.f32.vlgmr.msra.gmra.mxu0 %vm4001_vm15, %v21690_v8 }
 0x5b2   : > { %18790 = vmatpush1.msk.msra.mxu0 %vm7074_vm6, %v21760_v42  ;;  %14659 = vmatprep.mubr.f32.mxu0 %v22707_v53 }
 0x5b3   : > { %v14482_v61 = vpop.permute.xlu0 %14481 }
 0x5b4   : > { %v14483_v2 = vsel %vm4189_vm4, %v14480_v45, %v14482_v61  ;;  %v14484_v16 = vsel %vm4189_vm4, %v14482_v61, %v22871_v25  ;;  %v14768_v11 = vpop.permute.xlu1 %14767 }
 0x5b5   : > { %18785 = vmatprep.subr.msk.mxu1 %vm7074_vm6, %v14484_v16  ;;  %18791 = vmatmul.mubr.msk.f32.vlgmr.msra.gmra.mxu0 %vm4001_vm15, %v19019_v21  ;;  %v14769_v8 = vsel %vm13490_vm14, %v21861_v19, %v14768_v11  ;;  %v14770_v42 = vsel %vm13490_vm14, %v14768_v11, %v21687_v38  ;;  %v22872_v19 = vld [vmem:[#allocation33_spill] sm:$0xff] }
 0x5b6   : > { %18786 = vmatpush1.msk.msra.mxu1 %vm7074_vm6, %v14483_v2  ;;  %18795 = vmatprep.subr.msk.mxu0 %vm7074_vm6, %v14770_v42  ;;  %v14857_v33 = vsel %vm22873_vm11, %v21923_v23, %v22872_v19  ;;  %v14945_v43 = vsel %vm22874_vm5, %v21929_v1, %v22872_v19  ;;  %vm22883_vm5 = vcmask 1043456  }
 0x5b7   : > { %v15131_v5 = vpop.permute.xlu0 %15130  ;;  %18787 = vmatmul.mubr.msk.f32.vlgmr.msra.gmra.mxu1 %vm4001_vm15, %v21697_v62  ;;  %18792 = vmatprep.subr.msk.mxu1 %vm7074_vm6, %v14679_v49  ;;  %v14944_v62 = vsel %vm22875_vm3, %v14941_v6, %v21929_v1  ;;  %vm22884_vm3 = vmmov %vm22883_vm5 }
 0x5b8   : > { %18793 = vmatpush1.msk.msra.mxu1 %vm7074_vm6, %v14678_v7  ;;  %18796 = vmatpush1.msk.msra.mxu0 %vm7074_vm6, %v14769_v8  ;;  %v15129_v4 = vpop.permute.xlu1 %15128  ;;  %v15135_v12 = vsel %vm12938_vm9, %v15131_v5, %v21980_v31  ;;  %vm22885_vm13 = vmmov %vm22884_vm3 }
 0x5b9   : > { %14841 = vmatprep.mubr.f32.mxu0 %v22707_v53  ;;  %18799 = vmatprep.subr.msk.mxu1 %vm7074_vm6, %v14857_v33  ;;  %v15134_v45 = vsel %vm12938_vm9, %v15129_v4, %v15131_v5 }
 0x5ba   : > { %18797 = vmatmul.mubr.msk.f32.vlgmr.msra.gmra.mxu0 %vm4001_vm15, %v21883_v28  ;;  %18802 = vmatprep.subr.msk.mxu0 %vm7074_vm6, %v14945_v43  ;;  %v15032_v28 = vsel %vm22877_vm2, %v21948_v22, %v22872_v19  ;;  %vm22886_vm2 = vmmov %vm22884_vm3 }
 0x5bb   : > { %14750 = vmatprep.mubr.f32.mxu1 %v22707_v53  ;;  %18803 = vmatpush1.msk.msra.mxu0 %vm7074_vm6, %v14944_v62  ;;  %v15026_v52 = vpop.permute.xlu0 %15025 }
 0x5bc   : > { %18794 = vmatmul.mubr.msk.f32.vlgmr.msra.gmra.mxu1 %vm4001_vm15, %v21694_v57  ;;  %18809 = vmatprep.subr.msk.mxu0 %vm7074_vm6, %v15135_v12  ;;  %v15223_v9 = vpop.permute.xlu1 %15222 }
 0x5bd   : > { %18800 = vmatpush1.msk.msra.mxu1 %vm7074_vm6, %v14856_v10  ;;  %15016 = vmatprep.mubr.f32.mxu0 %v22707_v53 }
 0x5be   : > { %18805 = vmatprep.subr.msk.mxu1 %vm7074_vm6, %v15032_v28  ;;  %18804 = vmatmul.mubr.msk.f32.vlgmr.msra.gmra.mxu0 %vm4001_vm15, %v14939_v56 }
 0x5bf   : > { %18810 = vmatpush1.msk.msra.mxu0 %vm7074_vm6, %v15134_v45  ;;  %14929 = vmatprep.mubr.f32.mxu1 %v22707_v53  ;;  %v15225_v57 = vpop.permute.xlu0 %15224 }
 0x5c0   : > { %v15227_v39 = vsel %vm12938_vm9, %v15225_v57, %v21980_v31  ;;  %18801 = vmatmul.mubr.msk.f32.vlgmr.msra.gmra.mxu1 %vm4001_vm15, %v21788_v35  ;;  %15207 = vmatprep.mubr.f32.mxu0 %v22707_v53  ;;  %v15219_v30 = vpop.permute.xlu1 %15218  ;;  %v15226_v46 = vsel %vm12938_vm9, %v15223_v9, %v15225_v57 }
 0x5c1   : > { %18806 = vmatpush1.msk.msra.mxu1 %vm7074_vm6, %v15031_v50  ;;  %15103 = vmatprep.mubr.f32.mxu1 %v22707_v53 }
 0x5c2   : > { %18812 = vmatprep.subr.msk.mxu1 %vm7074_vm6, %v15227_v39  ;;  %18811 = vmatmul.mubr.msk.f32.vlgmr.msra.gmra.mxu0 %vm4001_vm15, %v21829_v37 }
 0x5c3   : > { %v15316_v51 = vpop.permute.xlu0 %15315  ;;  %15389 = vmatprep.mubr.f32.mxu0 %v22707_v53 }
 0x5c4   : > { %v15318_v35 = vsel %vm12938_vm9, %v15316_v51, %v21980_v31  ;;  %18807 = vmatmul.mubr.msk.f32.vlgmr.msra.gmra.mxu1 %vm4001_vm15, %v15026_v52  ;;  %v15310_v1 = vpop.permute.xlu1 %15309 }
 0x5c5   : > { %18813 = vmatpush1.msk.msra.mxu1 %vm7074_vm6, %v15226_v46  ;;  %18815 = vmatprep.subr.msk.mxu0 %vm7074_vm6, %v15318_v35 }
 0x5c6   : > { %15298 = vmatprep.mubr.f32.mxu1 %v22707_v53 }
 0x5c7   : > { %v15314_v23 = vpop.permute.xlu0 %15313 }
 0x5c8   : > { %v15317_v37 = vsel %vm12938_vm9, %v15314_v23, %v15316_v51  ;;  %18814 = vmatmul.mubr.msk.f32.vlgmr.msra.gmra.mxu1 %vm4001_vm15, %v15219_v30 }
 0x5c9   : > { %18816 = vmatpush1.msk.msra.mxu0 %vm7074_vm6, %v15317_v37  ;;  %15488 = vmatprep.mubr.f32.mxu1 %v22707_v53 }
 0x5ca   : > { %18817 = vmatmul.mubr.msk.f32.vlgmr.msra.gmra.mxu0 %vm4001_vm15, %v15310_v1 }
 0x5cb   : > { %15574 = vmatprep.mubr.f32.mxu0 %v22707_v53 }
 0x5dc   : > { %v13120_v15 = vpop.f32.mrf.mxu1 }
 0x5de   : > { %v13122_v26 = vpop.f32.mrf.mxu1 }
 0x5e0   : > { %v13299_v22 = vpop.f32.mrf.mxu1 }
 0x5e2   : > { %v13301_v3 = vpop.f32.mrf.mxu1 }
 0x60a   : > { %v13035_v60 = vpop.f32.mrf.mxu0 }
 0x60b   : > { %v13121_v24 = vadd.f32 %v13120_v15, %v13035_v60 }
 0x60c   : > { %v13037_v32 = vpop.f32.mrf.mxu0 }
 0x60d   : > { %v13123_v14 = vadd.f32 %v13122_v26, %v13037_v32 }
 0x654   : > { %v13209_v6 = vpop.f32.mrf.mxu0 }
 0x655   : > { %v13214_v36 = vadd.f32 %v13209_v6, %v13121_v24 }
 0x656   : > { %v13211_v40 = vpop.f32.mrf.mxu0 }
 0x657   : > { %v13215_v59 = vadd.f32 %v13211_v40, %v13123_v14  ;;  %v13477_v56 = vpop.f32.mrf.mxu1  ;;  %v13304_v61 = vadd.f32 %v13299_v22, %v13214_v36 }
 0x659   : > { %v13388_v2 = vpop.f32.mrf.mxu0  ;;  %v13479_v16 = vpop.f32.mrf.mxu1  ;;  %v13305_v11 = vadd.f32 %v13301_v3, %v13215_v59 }
 0x65a   : > { %v13393_v21 = vadd.f32 %v13388_v2, %v13304_v61 }
 0x65b   : > { %v13390_v8 = vpop.f32.mrf.mxu0  ;;  %v13674_v42 = vpop.f32.mrf.mxu1 }
 0x65c   : > { %v13394_v49 = vadd.f32 %v13390_v8, %v13305_v11  ;;  %v13482_v7 = vadd.f32 %v13477_v56, %v13393_v21 }
 0x65d   : > { %v13583_v5 = vpop.f32.mrf.mxu0  ;;  %v13676_v33 = vpop.f32.mrf.mxu1 }
 0x65e   : > { %v13588_v4 = vadd.f32 %v13583_v5, %v13482_v7  ;;  %v13483_v43 = vadd.f32 %v13479_v16, %v13394_v49 }
 0x65f   : > { %v13585_v62 = vpop.f32.mrf.mxu0  ;;  %v13857_v12 = vpop.f32.mrf.mxu1 }
 0x660   : > { %v13589_v52 = vadd.f32 %v13585_v62, %v13483_v43  ;;  %v13679_v10 = vadd.f32 %v13674_v42, %v13588_v4 }
 0x661   : > { %v13765_v28 = vpop.f32.mrf.mxu0  ;;  %v13859_v9 = vpop.f32.mrf.mxu1 }
 0x662   : > { %v13770_v45 = vadd.f32 %v13765_v28, %v13679_v10  ;;  %v13680_v57 = vadd.f32 %v13676_v33, %v13589_v52 }
 0x663   : > { %v13767_v50 = vpop.f32.mrf.mxu0 }
 0x664   : > { %v13862_v39 = vadd.f32 %v13857_v12, %v13770_v45  ;;  %v13771_v30 = vadd.f32 %v13767_v50, %v13680_v57 }
 0x665   : > { %v13948_v51 = vpop.f32.mrf.mxu0  ;;  %v14039_v46 = vpop.f32.mrf.mxu1 }
 0x666   : > { %v13863_v35 = vadd.f32 %v13859_v9, %v13771_v30  ;;  %v13953_v23 = vadd.f32 %v13948_v51, %v13862_v39 }
 0x667   : > { %v13950_v1 = vpop.f32.mrf.mxu0  ;;  %v14041_v37 = vpop.f32.mrf.mxu1 }
 0x668   : > { %v14044_v15 = vadd.f32 %v14039_v46, %v13953_v23  ;;  %v13954_v26 = vadd.f32 %v13950_v1, %v13863_v35 }
 0x669   : > { %v14121_v60 = vpop.f32.mrf.mxu0 }
 0x66a   : > { %v14045_v22 = vadd.f32 %v14041_v37, %v13954_v26  ;;  %v14126_v32 = vadd.f32 %v14121_v60, %v14044_v15  ;;  %v14202_v24 = vpop.f32.mrf.mxu1 }
 0x66b   : > { %v14123_v3 = vpop.f32.mrf.mxu0 }
 0x66c   : > { %v14207_v6 = vadd.f32 %v14202_v24, %v14126_v32  ;;  %v14127_v14 = vadd.f32 %v14123_v3, %v14045_v22  ;;  %v14204_v36 = vpop.f32.mrf.mxu1 }
 0x66d   : > { %v14283_v40 = vpop.f32.mrf.mxu0 }
 0x66e   : > { %v14208_v59 = vadd.f32 %v14204_v36, %v14127_v14  ;;  %v14288_v56 = vadd.f32 %v14283_v40, %v14207_v6  ;;  %v14375_v61 = vpop.f32.mrf.mxu1 }
 0x66f   : > { %v14285_v2 = vpop.f32.mrf.mxu0 }
 0x670   : > { %v14289_v16 = vadd.f32 %v14285_v2, %v14208_v59  ;;  %v14377_v11 = vpop.f32.mrf.mxu1  ;;  %v14380_v8 = vadd.f32 %v14375_v61, %v14288_v56 }
 0x671   : > { %v14466_v21 = vpop.f32.mrf.mxu0 }
 0x672   : > { %v14381_v49 = vadd.f32 %v14377_v11, %v14289_v16  ;;  %v14471_v5 = vadd.f32 %v14466_v21, %v14380_v8 }
 0x673   : > { %v14468_v42 = vpop.f32.mrf.mxu0 }
 0x674   : > { %v14472_v43 = vadd.f32 %v14468_v42, %v14381_v49 }
 0x675   : > { %v14661_v7 = vpop.f32.mrf.mxu0 }
 0x677   : > { %v14557_v33 = vpop.f32.mrf.mxu1  ;;  %v14663_v4 = vpop.f32.mrf.mxu0 }
 0x678   : > { %v14562_v62 = vadd.f32 %v14557_v33, %v14471_v5 }
 0x679   : > { %v14559_v12 = vpop.f32.mrf.mxu1 }
 0x67a   : > { %v14563_v52 = vadd.f32 %v14559_v12, %v14472_v43  ;;  %v14843_v10 = vpop.f32.mrf.mxu0  ;;  %v14666_v28 = vadd.f32 %v14661_v7, %v14562_v62 }
 0x67c   : > { %v14752_v9 = vpop.f32.mrf.mxu1  ;;  %v14845_v45 = vpop.f32.mrf.mxu0  ;;  %v14667_v57 = vadd.f32 %v14663_v4, %v14563_v52 }
 0x67d   : > { %v14757_v50 = vadd.f32 %v14752_v9, %v14666_v28 }
 0x67e   : > { %v14754_v39 = vpop.f32.mrf.mxu1  ;;  %v15018_v30 = vpop.f32.mrf.mxu0 }
 0x67f   : > { %v14758_v51 = vadd.f32 %v14754_v39, %v14667_v57  ;;  %v14848_v46 = vadd.f32 %v14843_v10, %v14757_v50 }
 0x680   : > { %v14931_v35 = vpop.f32.mrf.mxu1  ;;  %v15020_v23 = vpop.f32.mrf.mxu0 }
 0x681   : > { %v14936_v1 = vadd.f32 %v14931_v35, %v14848_v46  ;;  %v14849_v37 = vadd.f32 %v14845_v45, %v14758_v51  ;;  %v22879_v45 = vld [vmem:[#allocation71_spill] sm:$0xff]  ;;  %v22880_v46 = vld [vmem:[#allocation72_spill] sm:$0xff] }
 0x682   : > { %v14933_v15 = vpop.f32.mrf.mxu1  ;;  %v15209_v26 = vpop.f32.mrf.mxu0  ;;  %v1235_v57 = vmul.f32 0.1, %v22879_v45  ;;  %vm1233_vm12 = vcmp.ge.f32.partialorder %v22879_v45, 0.0  ;;  %v1236_v35 = vmul.f32 0.1, %v22880_v46  ;;  %vm1234_vm11 = vcmp.ge.f32.partialorder %v22880_v46, 0.0 }
 0x683   : > { %v14937_v60 = vadd.f32 %v14933_v15, %v14849_v37  ;;  %v15023_v22 = vadd.f32 %v15018_v30, %v14936_v1 }
 0x684   : > { %v15105_v32 = vpop.f32.mrf.mxu1  ;;  %v15211_v14 = vpop.f32.mrf.mxu0  ;;  %v22110_v39 = vsel %vm1233_vm12, %v22879_v45, %v1235_v57  ;;  %v22126_v1 = vsel %vm1234_vm11, %v22880_v46, %v1236_v35  ;;  %v18818_v57 = vld [vmem:[%s22882_s0 + $0x4] sm:$0xf]  ;;  %vm22890_vm12 = vmmov %vm22886_vm2 }
 0x685   : > { %v15110_v24 = vadd.f32 %v15105_v32, %v15023_v22  ;;  %v15024_v3 = vadd.f32 %v15020_v23, %v14937_v60  ;;  %v16317_v30 = vmul.f32 %v21534_v44, %v22110_v39  ;;  %v16493_v23 = vmul.f32 %v21543_v17, %v22110_v39  ;;  %vm22891_vm11 = vmmov %vm22886_vm2 }
 0x686   : > { %v15107_v6 = vpop.f32.mrf.mxu1  ;;  %v16318_v15 = vmul.f32 %v21501_v27, %v22126_v1  ;;  %v16494_v60 = vmul.f32 %v21509_v55, %v22126_v1  ;;  %v16585_v22 = vmul.f32 %v22851_v47, %v22110_v39  ;;  %v16586_v32 = vmul.f32 %v22853_v0, %v22126_v1 }
 0x687   : > { %v15214_v36 = vadd.f32 %v15209_v26, %v15110_v24  ;;  %v15111_v40 = vadd.f32 %v15107_v6, %v15024_v3  ;;  %v16756_v24 = vmul.f32 %v22854_v41, %v22126_v1  ;;  %v16755_v3 = vmul.f32 %v22852_v54, %v22110_v39 }
 0x688   : > { %v15300_v59 = vpop.f32.mrf.mxu1  ;;  %v16848_v6 = vmul.f32 %v21579_v63, %v22126_v1 }
 0x689   : > { %v15215_v56 = vadd.f32 %v15211_v14, %v15111_v40  ;;  %v15305_v61 = vadd.f32 %v15300_v59, %v15214_v36  ;;  %v16847_v14 = vmul.f32 %v21549_v48, %v22110_v39  ;;  %v17028_v36 = vmul.f32 %v21803_v13, %v22126_v1  ;;  %v16218_v59 = vld [vmem:[%s22881_s15] sm:$0xf]  ;;  %s22895_s15 = sld [smem:[#allocation23_spill]] }
 0x68a   : > { %v15302_v2 = vpop.f32.mrf.mxu1  ;;  %v15391_v16 = vpop.f32.mrf.mxu0  ;;  %v17027_v40 = vmul.f32 %v21600_v34, %v22110_v39 }
 0x68b   : > { %v15306_v11 = vadd.f32 %v15302_v2, %v15215_v56  ;;  %v15396_v21 = vadd.f32 %v15391_v16, %v15305_v61 }
 0x68c   : > { %v15393_v8 = vpop.f32.mrf.mxu0 }
 0x68d   : > { %vm15398_vm6 = vcmp.ge.f32.partialorder %v15396_v21, 0.0  ;;  %v15400_v42 = vmul.f32 0.1, %v15396_v21  ;;  %v15397_v49 = vadd.f32 %v15393_v8, %v15306_v11 }
 0x68f   : > { %v22069_v7 = vsel %vm15398_vm6, %v15396_v21, %v15400_v42  ;;  %v15401_v5 = vmul.f32 0.1, %v15397_v49  ;;  %vm15399_vm15 = vcmp.ge.f32.partialorder %v15397_v49, 0.0  ;;  %v15404_v42 = vld [vmem:[%s22882_s0] sm:$0xf]  ;;  %vm22888_vm6 = vmmov %vm22887_vm10 }
 0x690   : > { %15411 = vrot.lane.b32.xlu0 %v22069_v7, %s22755_s9  ;;  %16033 = vrot.lane.b32.xlu1 %v22069_v7, %s22750_s18  ;;  %v15849_v33 = vmul.f32 %v22069_v7, %v22852_v54  ;;  %v15405_v4 = vmul.f32 %v22069_v7, %v21534_v44  ;;  %v15675_v62 = vmul.f32 %v22069_v7, %v22851_v47 }
 0x691   : > { %v22079_v43 = vsel %vm15399_vm15, %v15397_v49, %v15401_v5  ;;  %v15583_v28 = vmul.f32 %v22069_v7, %v21543_v17  ;;  %v15941_v9 = vmul.f32 %v22069_v7, %v21549_v48  ;;  %v16121_v51 = vmul.f32 %v22069_v7, %v21600_v34  ;;  %vm22889_vm15 = vmmov %vm22886_vm2 }
 0x692   : > { %v15406_v12 = vmul.f32 %v22079_v43, %v21501_v27  ;;  %v15676_v52 = vmul.f32 %v22079_v43, %v22853_v0  ;;  %v15850_v10 = vmul.f32 %v22079_v43, %v22854_v41  ;;  %v15584_v50 = vmul.f32 %v22079_v43, %v21509_v55 }
 0x693   : > { %v15942_v37 = vmul.f32 %v22079_v43, %v21579_v63  ;;  %v16122_v26 = vmul.f32 %v22079_v43, %v21803_v13 }
 0x694   : > { %15853 = vrot.lane.b32.xlu1 %v15849_v33, %s22728_s10  ;;  %15497 = vrot.lane.b32.xlu0 %v15405_v4, %s22850_s5 }
 0x698   : > { %15679 = vrot.lane.b32.xlu0 %v15675_v62, %s22725_s1  ;;  %15499 = vrot.lane.b32.xlu1 %v15406_v12, %s22850_s5  ;;  %v18829_v62 = vld [vmem:[%s22882_s0 + $0xc] sm:$0xf] }
 0x69c   : > { %16035 = vrot.lane.b32.xlu0 %v22079_v43, %s22750_s18  ;;  %15681 = vrot.lane.b32.xlu1 %v15676_v52, %s22725_s1 }
 0x6a0   : > { %15855 = vrot.lane.b32.xlu0 %v15850_v10, %s22728_s10  ;;  %15413 = vrot.lane.b32.xlu1 %v22079_v43, %s22755_s9 }
 0x6a4   : > { %15587 = vrot.lane.b32.xlu0 %v15583_v28, %s22847_s4  ;;  %15945 = vrot.lane.b32.xlu1 %v15941_v9, %s22849_s8 }
 0x6a8   : > { %16321 = vrot.lane.b32.xlu0 %v22110_v39, %s22755_s9  ;;  %15589 = vrot.lane.b32.xlu1 %v15584_v50, %s22847_s4  ;;  %v18837_v50 = vld [vmem:[%s22882_s0 + $0x14] sm:$0xf] }
 0x6ac   : > { %16407 = vrot.lane.b32.xlu0 %v16317_v30, %s22850_s5  ;;  %16125 = vrot.lane.b32.xlu1 %v16121_v51, %s22860_s6 }
 0x6b0   : > { %16497 = vrot.lane.b32.xlu0 %v16493_v23, %s22847_s4  ;;  %16323 = vrot.lane.b32.xlu1 %v22126_v1, %s22755_s9 }
 0x6b4   : > { %15947 = vrot.lane.b32.xlu0 %v15942_v37, %s22849_s8  ;;  %16409 = vrot.lane.b32.xlu1 %v16318_v15, %s22850_s5  ;;  %v18845_v37 = vld [vmem:[%s22882_s0 + $0x1c] sm:$0xf] }
 0x6b8   : > { %16127 = vrot.lane.b32.xlu0 %v16122_v26, %s22860_s6  ;;  %16499 = vrot.lane.b32.xlu1 %v16494_v60, %s22847_s4 }
 0x6bc   : > { %16589 = vrot.lane.b32.xlu0 %v16585_v22, %s22725_s1  ;;  %16591 = vrot.lane.b32.xlu1 %v16586_v32, %s22725_s1  ;;  %v18825_v22 = vld [vmem:[%s22882_s0 + $0x8] sm:$0xf] }
 0x6c0   : > { %16761 = vrot.lane.b32.xlu0 %v16756_v24, %s22728_s10  ;;  %16759 = vrot.lane.b32.xlu1 %v16755_v3, %s22728_s10  ;;  %v16217_v24 = vld [vmem:[%s22895_s15] sm:$0xf] }
 0x6c4   : > { %16853 = vrot.lane.b32.xlu0 %v16848_v6, %s22849_s8  ;;  %16851 = vrot.lane.b32.xlu1 %v16847_v14, %s22849_s8  ;;  %v18833_v14 = vld [vmem:[%s22882_s0 + $0x10] sm:$0xf] }
 0x6c8   : > { %16941 = vrot.lane.b32.xlu0 %v22126_v1, %s22750_s18  ;;  %16939 = vrot.lane.b32.xlu1 %v22110_v39, %s22750_s18 }
 0x6cc   : > { %17033 = vrot.lane.b32.xlu0 %v17028_v36, %s22860_s6  ;;  %17031 = vrot.lane.b32.xlu1 %v17027_v40, %s22860_s6 }
 0x6d0   : > { %16221 = vperm.xlu0 %19005, %v16218_v59  }
 0x702   : > { %v15412_v56 = vpop.permute.xlu0 %15411  ;;  %v16034_v61 = vpop.permute.xlu1 %16033 }
 0x703   : > { %v15415_v30 = vsel %vm22888_vm6, %v22775_v18, %v15412_v56  ;;  %vm22897_vm6 = vmmov %vm22886_vm2 }
 0x706   : > { %v15854_v2 = vpop.permute.xlu1 %15853  ;;  %v15498_v16 = vpop.permute.xlu0 %15497 }
 0x707   : > { %v15501_v49 = vsel %vm12960_vm7, %v21613_v58, %v15498_v16 }
 0x70a   : > { %v15680_v11 = vpop.permute.xlu0 %15679  ;;  %v15500_v21 = vpop.permute.xlu1 %15499 }
 0x70b   : > { %v15502_v8 = vsel %vm12960_vm7, %v15498_v16, %v15500_v21  ;;  %v15683_v12 = vsel %vm4206_vm1, %v22867_v29, %v15680_v11  ;;  %v16316_v16 = vld [vmem:[%s19260_s19] sm:$0xf] }
 0x70c   : > { %18822 = vmatprep.subr.msk.mxu0 %vm22883_vm5, %v15502_v8  ;;  %vm22892_vm5 = vmmov %vm22886_vm2 }
 0x70d   : > { %18823 = vmatpush1.msk.msra.mxu0 %vm22884_vm3, %v15501_v49  ;;  %vm22893_vm3 = vcmask 916480  }
 0x70e   : > { %v16036_v5 = vpop.permute.xlu0 %16035  ;;  %18824 = vmatmul.mubr.msk.f32.vlgmr.msra.gmra.mxu0 %vm1254_vm8, %v15404_v42  ;;  %v15682_v33 = vpop.permute.xlu1 %15681 }
 0x70f   : > { %v15684_v4 = vsel %vm4206_vm1, %v15680_v11, %v15682_v33  ;;  %15756 = vmatprep.mubr.f32.mxu0 %v22707_v53  ;;  %v16038_v51 = vsel %vm22893_vm3, %v16036_v5, %v22872_v19 }
 0x710   : > { %18830 = vmatprep.subr.msk.mxu0 %vm22885_vm13, %v15684_v4  ;;  %vm22894_vm13 = vmmov %vm22893_vm3 }
 0x711   : > { %18831 = vmatpush1.msk.msra.mxu0 %vm22886_vm2, %v15683_v12  ;;  %v16037_v23 = vsel %vm22894_vm13, %v16034_v61, %v16036_v5  ;;  %vm22902_vm3 = vmmov %vm22886_vm2  ;;  %v18849_v5 = vld [vmem:[%s22882_s0 + $0x20] sm:$0xf] }
 0x712   : > { %v15856_v52 = vpop.permute.xlu0 %15855  ;;  %18832 = vmatmul.mubr.msk.f32.vlgmr.msra.gmra.mxu0 %vm1254_vm8, %v18829_v62  ;;  %v15414_v10 = vpop.permute.xlu1 %15413  ;;  %vm22903_vm13 = vmmov %vm22886_vm2 }
 0x713   : > { %v15857_v28 = vsel %vm4189_vm4, %v15854_v2, %v15856_v52  ;;  %v15858_v9 = vsel %vm4189_vm4, %v15856_v52, %v22871_v25  ;;  %v15416_v45 = vsel %vm22887_vm10, %v15412_v56, %v15414_v10  ;;  %15930 = vmatprep.mubr.f32.mxu0 %v22707_v53  ;;  %vm22896_vm10 = vmmov %vm22886_vm2  ;;  %v18841_v2 = vld [vmem:[%s22882_s0 + $0x18] sm:$0xf] }
 0x714   : > { %18819 = vmatprep.subr.msk.mxu1 %vm22889_vm15, %v15416_v45  ;;  %18838 = vmatprep.subr.msk.mxu0 %vm22890_vm12, %v15858_v9  ;;  %vm22898_vm15 = vmmov %vm22886_vm2  ;;  %v18856_v9 = vld [vmem:[%s19260_s19 + $0x4] sm:$0xf]  ;;  %v18867_v45 = vld [vmem:[%s19260_s19 + $0xc] sm:$0xf] }
 0x715   : > { %18820 = vmatpush1.msk.msra.mxu1 %vm22891_vm11, %v15415_v30  ;;  %18839 = vmatpush1.msk.msra.mxu0 %vm22892_vm5, %v15857_v28  ;;  %vm22899_vm12 = vmmov %vm22886_vm2 }
 0x716   : > { %v15588_v46 = vpop.permute.xlu0 %15587  ;;  %18821 = vmatmul.mubr.msk.f32.vlgmr.msra.gmra.mxu1 %vm1254_vm8, %v18818_v57  ;;  %18840 = vmatmul.mubr.msk.f32.vlgmr.msra.gmra.mxu0 %vm1254_vm8, %v18837_v50  ;;  %v15946_v35 = vpop.permute.xlu1 %15945  ;;  %vm22900_vm11 = vmmov %vm22886_vm2 }
 0x717   : > { %18846 = vmatprep.subr.msk.mxu0 %vm22886_vm2, %v16038_v51  ;;  %16110 = vmatprep.mubr.f32.mxu0 %v22707_v53  ;;  %v15591_v32 = vsel %vm13507_vm0, %v21672_v20, %v15588_v46  ;;  %vm22901_vm5 = vmmov %vm22886_vm2 }
 0x718   : > { %18847 = vmatpush1.msk.msra.mxu0 %vm22896_vm10, %v16037_v23  ;;  %15664 = vmatprep.mubr.f32.mxu1 %v22707_v53  ;;  %vm22904_vm10 = vmmov %vm22886_vm2  ;;  %v18875_v23 = vld [vmem:[%s19260_s19 + $0x14] sm:$0xf] }
 0x719   : > { %18853 = vmatprep.subr.msk.mxu0 %vm22897_vm6, %v22126_v1  ;;  %vm22905_vm6 = vmmov %vm22886_vm2 }
 0x71a   : > { %v16322_v15 = vpop.permute.xlu0 %16321  ;;  %18848 = vmatmul.mubr.msk.f32.vlgmr.msra.gmra.mxu0 %vm1254_vm8, %v18845_v37  ;;  %v15590_v26 = vpop.permute.xlu1 %15589 }
 0x71b   : > { %18854 = vmatpush1.msk.msra.mxu0 %vm22898_vm15, %v22110_v39  ;;  %v15592_v60 = vsel %vm13507_vm0, %v15588_v46, %v15590_v26  ;;  %16297 = vmatprep.mubr.f32.mxu0 %v22707_v53  ;;  %vm22906_vm15 = vmmov %vm22886_vm2 }
 0x71c   : > { %18826 = vmatprep.subr.msk.mxu1 %vm22899_vm12, %v15592_v60  ;;  %vm22907_vm12 = vcmask 130048  }
 0x71d   : > { %18827 = vmatpush1.msk.msra.mxu1 %vm22900_vm11, %v15591_v32  ;;  %vm22908_vm11 = vmmov %vm22886_vm2 }
 0x71e   : > { %v16408_v3 = vpop.permute.xlu0 %16407  ;;  %18828 = vmatmul.mubr.msk.f32.vlgmr.msra.gmra.mxu1 %vm1254_vm8, %v18825_v22  ;;  %18834 = vmatprep.subr.msk.mxu1 %vm22901_vm5, %v22079_v43  ;;  %v16126_v6 = vpop.permute.xlu1 %16125  ;;  %vm22909_vm5 = vmmov %vm22907_vm12 }
 0x71f   : > { %18855 = vmatmul.mubr.msk.f32.vlgmr.msra.gmra.mxu0 %vm1254_vm8, %v16217_v24  ;;  %18835 = vmatpush1.msk.msra.mxu1 %vm22902_vm3, %v22069_v7  ;;  %v16411_v11 = vsel %vm12960_vm7, %v21613_v58, %v16408_v3  ;;  %v16325_v4 = vsel %vm22909_vm5, %v22775_v18, %v16322_v15  ;;  %vm22910_vm3 = vmmov %vm22886_vm2 }
 0x720   : > { %15838 = vmatprep.mubr.f32.mxu1 %v22707_v53  ;;  %16484 = vmatprep.mubr.f32.mxu0 %v22707_v53  ;;  %vm22917_vm5 = vmmov %vm22886_vm2 }
 0x722   : > { %v16498_v36 = vpop.permute.xlu0 %16497  ;;  %18836 = vmatmul.mubr.msk.f32.vlgmr.msra.gmra.mxu1 %vm1254_vm8, %v18833_v14  ;;  %v16324_v40 = vpop.permute.xlu1 %16323 }
 0x723   : > { %16022 = vmatprep.mubr.f32.mxu1 %v22707_v53  ;;  %v16326_v33 = vsel %vm22907_vm12, %v16322_v15, %v16324_v40  ;;  %v16501_v57 = vsel %vm13507_vm0, %v21672_v20, %v16498_v36  ;;  %vm22915_vm12 = vmmov %vm22886_vm2 }
 0x726   : > { %v15948_v43 = vpop.permute.xlu0 %15947  ;;  %v16410_v59 = vpop.permute.xlu1 %16409 }
 0x727   : > { %v15949_v56 = vsel %vm13490_vm14, %v15946_v35, %v15948_v43  ;;  %v15950_v61 = vsel %vm13490_vm14, %v15948_v43, %v21687_v38  ;;  %v16412_v7 = vsel %vm12960_vm7, %v16408_v3, %v16410_v59  ;;  %v18863_v35 = vld [vmem:[%s19260_s19 + $0x8] sm:$0xf]  ;;  %v18879_v3 = vld [vmem:[%s19260_s19 + $0x18] sm:$0xf]  ;;  %v18887_v59 = vld [vmem:[%s19260_s19 + $0x20] sm:$0xf] }
 0x728   : > { %18842 = vmatprep.subr.msk.mxu1 %vm22903_vm13, %v15950_v61  ;;  %18860 = vmatprep.subr.msk.mxu0 %vm22886_vm2, %v16412_v7  ;;  %vm22911_vm13 = vmmov %vm22886_vm2 }
 0x729   : > { %18843 = vmatpush1.msk.msra.mxu1 %vm22904_vm10, %v15949_v56  ;;  %18861 = vmatpush1.msk.msra.mxu0 %vm22905_vm6, %v16411_v11  ;;  %vm22912_vm10 = vmmov %vm22886_vm2 }
 0x72a   : > { %v16128_v21 = vpop.permute.xlu0 %16127  ;;  %18844 = vmatmul.mubr.msk.f32.vlgmr.msra.gmra.mxu1 %vm1254_vm8, %v18841_v2  ;;  %v16500_v8 = vpop.permute.xlu1 %16499  ;;  %18862 = vmatmul.mubr.msk.f32.vlgmr.msra.gmra.mxu0 %vm1254_vm8, %v16316_v16  ;;  %vm22913_vm6 = vmmov %vm22886_vm2 }
 0x72b   : > { %v16129_v42 = vsel %vm12938_vm9, %v16126_v6, %v16128_v21  ;;  %v16130_v49 = vsel %vm12938_vm9, %v16128_v21, %v21980_v31  ;;  %16202 = vmatprep.mubr.f32.mxu1 %v22707_v53  ;;  %16666 = vmatprep.mubr.f32.mxu0 %v22707_v53  ;;  %v16502_v52 = vsel %vm13507_vm0, %v16498_v36, %v16500_v8  ;;  %v18883_v6 = vld [vmem:[%s19260_s19 + $0x1c] sm:$0xf] }
 0x72c   : > { %18850 = vmatprep.subr.msk.mxu1 %vm22906_vm15, %v16130_v49  ;;  %vm22914_vm15 = vmmov %vm22886_vm2 }
 0x72d   : > { %18851 = vmatpush1.msk.msra.mxu1 %vm22908_vm11, %v16129_v42  ;;  %vm22916_vm11 = vmmov %vm22886_vm2 }
 0x72e   : > { %v16590_v62 = vpop.permute.xlu0 %16589  ;;  %18852 = vmatmul.mubr.msk.f32.vlgmr.msra.gmra.mxu1 %vm1254_vm8, %v18849_v5  ;;  %18857 = vmatprep.subr.msk.mxu1 %vm22910_vm3, %v16326_v33  ;;  %v16592_v12 = vpop.permute.xlu1 %16591  ;;  %vm22918_vm3 = vmmov %vm22886_vm2 }
 0x72f   : > { %v16593_v10 = vsel %vm4206_vm1, %v22867_v29, %v16590_v62  ;;  %v16594_v28 = vsel %vm4206_vm1, %v16590_v62, %v16592_v12  ;;  %18858 = vmatpush1.msk.msra.mxu1 %vm22911_vm13, %v16325_v4  ;;  %16398 = vmatprep.mubr.f32.mxu1 %v22707_v53  ;;  %vm22919_vm13 = vmmov %vm22886_vm2 }
 0x730   : > { %18864 = vmatprep.subr.msk.mxu1 %vm22886_vm2, %v16502_v52  ;;  %18868 = vmatprep.subr.msk.mxu0 %vm22912_vm10, %v16594_v28  ;;  %vm22920_vm2 = vcmask 916480   ;;  %vm22921_vm10 = vmmov %vm22918_vm3 }
 0x731   : > { %18869 = vmatpush1.msk.msra.mxu0 %vm22913_vm6, %v16593_v10  ;;  %vm22922_vm6 = vmmov %vm22920_vm2 }
 0x732   : > { %v16762_v50 = vpop.permute.xlu0 %16761  ;;  %18859 = vmatmul.mubr.msk.f32.vlgmr.msra.gmra.mxu1 %vm1254_vm8, %v18856_v9  ;;  %v16760_v30 = vpop.permute.xlu1 %16759  ;;  %18870 = vmatmul.mubr.msk.f32.vlgmr.msra.gmra.mxu0 %vm1254_vm8, %v18867_v45 }
 0x733   : > { %v16764_v51 = vsel %vm4189_vm4, %v16762_v50, %v22871_v25  ;;  %18865 = vmatpush1.msk.msra.mxu1 %vm22914_vm15, %v16501_v57  ;;  %v16763_v46 = vsel %vm4189_vm4, %v16760_v30, %v16762_v50  ;;  %16574 = vmatprep.mubr.f32.mxu1 %v22707_v53  ;;  %vm22923_vm15 = vmmov %vm22918_vm3 }
 0x734   : > { %18872 = vmatprep.subr.msk.mxu1 %vm22915_vm12, %v22126_v1  ;;  %18876 = vmatprep.subr.msk.mxu0 %vm22916_vm11, %v16764_v51  ;;  %v18871_v1 = vld [vmem:[%s19260_s19 + $0x10] sm:$0xf]  ;;  %vm22924_vm12 = vmmov %vm22918_vm3 }
 0x735   : > { %18877 = vmatpush1.msk.msra.mxu0 %vm22917_vm5, %v16763_v46  ;;  %16836 = vmatprep.mubr.f32.mxu0 %v22707_v53  ;;  %vm22925_vm11 = vmmov %vm22918_vm3 }
 0x736   : > { %v16854_v37 = vpop.permute.xlu0 %16853  ;;  %18866 = vmatmul.mubr.msk.f32.vlgmr.msra.gmra.mxu1 %vm1254_vm8, %v18863_v35  ;;  %v16852_v15 = vpop.permute.xlu1 %16851  ;;  %18878 = vmatmul.mubr.msk.f32.vlgmr.msra.gmra.mxu0 %vm1254_vm8, %v18875_v23  ;;  %vm22926_vm5 = vmmov %vm22918_vm3 }
 0x737   : > { %v16856_v26 = vsel %vm13490_vm14, %v16854_v37, %v21687_v38  ;;  %18873 = vmatpush1.msk.msra.mxu1 %vm22918_vm3, %v22110_v39  ;;  %16744 = vmatprep.mubr.f32.mxu1 %v22707_v53  ;;  %v16855_v60 = vsel %vm13490_vm14, %v16852_v15, %v16854_v37  ;;  %vm22927_vm3 = vcmask 130048  }
 0x738   : > { %18880 = vmatprep.subr.msk.mxu1 %vm22919_vm13, %v16856_v26  ;;  %17016 = vmatprep.mubr.f32.mxu0 %v22707_v53  ;;  %vm22928_vm13 = vmmov %vm22927_vm3 }
 0x73a   : > { %v16942_v22 = vpop.permute.xlu0 %16941  ;;  %18874 = vmatmul.mubr.msk.f32.vlgmr.msra.gmra.mxu1 %vm1254_vm8, %v18871_v1  ;;  %v16940_v32 = vpop.permute.xlu1 %16939 }
 0x73b   : > { %v16944_v24 = vsel %vm22920_vm2, %v16942_v22, %v22872_v19  ;;  %18881 = vmatpush1.msk.msra.mxu1 %vm22921_vm10, %v16855_v60  ;;  %v16943_v39 = vsel %vm22922_vm6, %v16940_v32, %v16942_v22  ;;  %16928 = vmatprep.mubr.f32.mxu1 %v22707_v53  ;;  %vm22929_vm2 = vmmov %vm22926_vm5 }
 0x73c   : > { %18884 = vmatprep.subr.msk.mxu0 %vm22923_vm15, %v16944_v24  ;;  %vm22930_vm10 = vmmov %vm22929_vm2 }
 0x73d   : > { %18885 = vmatpush1.msk.msra.mxu0 %vm22924_vm12, %v16943_v39  ;;  %vm22931_vm6 = vmmov %vm22929_vm2 }
 0x73e   : > { %v17034_v14 = vpop.permute.xlu0 %17033  ;;  %18882 = vmatmul.mubr.msk.f32.vlgmr.msra.gmra.mxu1 %vm1254_vm8, %v18879_v3  ;;  %18886 = vmatmul.mubr.msk.f32.vlgmr.msra.gmra.mxu0 %vm1254_vm8, %v18883_v6  ;;  %v17032_v36 = vpop.permute.xlu1 %17031  ;;  %vm22932_vm15 = vmmov %vm22929_vm2 }
 0x73f   : > { %v17036_v40 = vsel %vm12938_vm9, %v17034_v14, %v21980_v31  ;;  %v17035_v43 = vsel %vm12938_vm9, %v17032_v36, %v17034_v14  ;;  %17108 = vmatprep.mubr.f32.mxu1 %v22707_v53  ;;  %17203 = vmatprep.mubr.f32.mxu0 %v22707_v53  ;;  %vm22934_vm12 = vmmov %vm22929_vm2 }
 0x740   : > { %18888 = vmatprep.subr.msk.mxu1 %vm22925_vm11, %v17036_v40  ;;  %vm22935_vm11 = vmmov %vm22929_vm2 }
 0x741   : > { %18889 = vmatpush1.msk.msra.mxu1 %vm22926_vm5, %v17035_v43  ;;  %vm22936_vm5 = vmmov %vm22929_vm2 }
 0x742   : > { %18890 = vmatmul.mubr.msk.f32.vlgmr.msra.gmra.mxu1 %vm1254_vm8, %v18887_v59 }
 0x743   : > { %17289 = vmatprep.mubr.f32.mxu1 %v22707_v53 }
 0x74b   : > { %v16222_v62 = vpop.permute.xlu0 %16221 }
 0x7ce   : > { %v15576_v56 = vpop.f32.mrf.mxu0 }
 0x7d0   : > { %v15578_v61 = vpop.f32.mrf.mxu0 }
 0x7d2   : > { %v15758_v7 = vpop.f32.mrf.mxu0 }
 0x7d4   : > { %v15760_v2 = vpop.f32.mrf.mxu0 }
 0x7d6   : > { %v15490_v16 = vpop.f32.mrf.mxu1  ;;  %v15932_v11 = vpop.f32.mrf.mxu0 }
 0x7d7   : > { %v15577_v21 = vadd.f32 %v15576_v56, %v15490_v16 }
 0x7d8   : > { %v15492_v8 = vpop.f32.mrf.mxu1  ;;  %v15934_v42 = vpop.f32.mrf.mxu0 }
 0x7d9   : > { %v15579_v49 = vadd.f32 %v15578_v61, %v15492_v8 }
 0x7da   : > { %v16112_v5 = vpop.f32.mrf.mxu0 }
 0x7dc   : > { %v16114_v33 = vpop.f32.mrf.mxu0 }
 0x7de   : > { %v15666_v4 = vpop.f32.mrf.mxu1 }
 0x7df   : > { %v15671_v12 = vadd.f32 %v15666_v4, %v15577_v21  ;;  %v16299_v52 = vpop.f32.mrf.mxu0 }
 0x7e0   : > { %v16300_v10 = vadd.f32 %v16299_v52, %v16222_v62  ;;  %v15668_v28 = vpop.f32.mrf.mxu1 }
 0x7e1   : > { %v15672_v9 = vadd.f32 %v15668_v28, %v15579_v49  ;;  %v16301_v45 = vpop.f32.mrf.mxu0  ;;  %v15763_v57 = vadd.f32 %v15758_v7, %v15671_v12 }
 0x7e2   : > { %v16304_v50 = vsub.f32 0.0, %v16300_v10  ;;  %v16302_v30 = vadd.f32 %v16301_v45, %v16222_v62  ;;  %v15840_v51 = vpop.f32.mrf.mxu1 }
 0x7e3   : > { %v15845_v46 = vadd.f32 %v15840_v51, %v15763_v57  ;;  %v15764_v35 = vadd.f32 %v15760_v2, %v15672_v9 }
 0x7e4   : > { %v16306_v23 = vmul.f32 1.442695, %v16304_v50  ;;  %v16305_v37 = vsub.f32 0.0, %v16302_v30  ;;  %v15842_v15 = vpop.f32.mrf.mxu1 }
 0x7e5   : > { %v15846_v26 = vadd.f32 %v15842_v15, %v15764_v35  ;;  %v15937_v1 = vadd.f32 %v15932_v11, %v15845_v46 }
 0x7e6   : > { %19006 = vpow2.f32 %v16306_v23  ;;  %v16308_v60 = vmul.f32 1.442695, %v16305_v37 }
 0x7e7   : > { %v15938_v22 = vadd.f32 %v15934_v42, %v15846_v26 }
 0x7e8   : > { %19008 = vpow2.f32 %v16308_v60 }
 0x7ea   : > { %v16024_v32 = vpop.f32.mrf.mxu1  ;;  %v16486_v24 = vpop.f32.mrf.mxu0 }
 0x7eb   : > { %v16029_v39 = vadd.f32 %v16024_v32, %v15937_v1 }
 0x7ec   : > { %v16026_v3 = vpop.f32.mrf.mxu1  ;;  %v16488_v40 = vpop.f32.mrf.mxu0 }
 0x7ed   : > { %v16030_v6 = vadd.f32 %v16026_v3, %v15938_v22  ;;  %v16117_v14 = vadd.f32 %v16112_v5, %v16029_v39 }
 0x7ee   : > { %v16204_v36 = vpop.f32.mrf.mxu1 }
 0x7ef   : > { %v22321_v43 = vadd.f32 %v16204_v36, %v16117_v14  ;;  %v16118_v59 = vadd.f32 %v16114_v33, %v16030_v6 }
 0x7f0   : > { %v16206_v56 = vpop.f32.mrf.mxu1 }
 0x7f1   : > { %v22323_v61 = vadd.f32 %v16206_v56, %v16118_v59 }
 0x7f2   : > { %v16400_v7 = vpop.f32.mrf.mxu1  ;;  %v16668_v2 = vpop.f32.mrf.mxu0 }
 0x7f3   : > { %v19007_v16 = vpop.eup %19006  ;;  %v16487_v49 = vadd.f32 %v16486_v24, %v16400_v7 }
 0x7f4   : > { %v16310_v11 = vadd.f32 1.0, %v19007_v16  ;;  %v16402_v21 = vpop.f32.mrf.mxu1  ;;  %v16670_v8 = vpop.f32.mrf.mxu0 }
 0x7f5   : > { %v19009_v42 = vpop.eup %19008  ;;  %v16489_v5 = vadd.f32 %v16488_v40, %v16402_v21 }
 0x7f6   : > { %v16311_v4 = vadd.f32 1.0, %v19009_v42  ;;  %v16576_v62 = vpop.f32.mrf.mxu1  ;;  %v16838_v12 = vpop.f32.mrf.mxu0  ;;  %19010 = vrcp.f32 %v16310_v11 }
 0x7f7   : > { %v16581_v52 = vadd.f32 %v16576_v62, %v16487_v49 }
 0x7f8   : > { %v16578_v10 = vpop.f32.mrf.mxu1  ;;  %19012 = vrcp.f32 %v16311_v4  ;;  %v16840_v45 = vpop.f32.mrf.mxu0 }
 0x7f9   : > { %v16673_v33 = vadd.f32 %v16668_v2, %v16581_v52  ;;  %v16582_v28 = vadd.f32 %v16578_v10, %v16489_v5 }
 0x7fa   : > { %v16746_v9 = vpop.f32.mrf.mxu1 }
 0x7fb   : > { %v16674_v57 = vadd.f32 %v16670_v8, %v16582_v28  ;;  %v16751_v50 = vadd.f32 %v16746_v9, %v16673_v33  ;;  %v18891_v8 = vld [vmem:[%s19265_s29 + $0x4] sm:$0xf]  ;;  %v18898_v33 = vld [vmem:[%s19265_s29 + $0x8] sm:$0xf] }
 0x7fc   : > { %v16748_v30 = vpop.f32.mrf.mxu1 }
 0x7fd   : > { %v16843_v51 = vadd.f32 %v16838_v12, %v16751_v50  ;;  %v16752_v46 = vadd.f32 %v16748_v30, %v16674_v57  ;;  %v17119_v12 = vld [vmem:[%s19265_s29] sm:$0xf]  ;;  %v18902_v57 = vld [vmem:[%s19265_s29 + $0xc] sm:$0xf]  ;;  %v18906_v30 = vld [vmem:[%s19265_s29 + $0x10] sm:$0xf] }
 0x7fe   : > { %v16930_v35 = vpop.f32.mrf.mxu1  ;;  %v17018_v23 = vpop.f32.mrf.mxu0 }
 0x7ff   : > { %v16844_v37 = vadd.f32 %v16840_v45, %v16752_v46  ;;  %v16935_v15 = vadd.f32 %v16930_v35, %v16843_v51 }
 0x800   : > { %v16932_v26 = vpop.f32.mrf.mxu1  ;;  %v17020_v22 = vpop.f32.mrf.mxu0 }
 0x801   : > { %v17023_v1 = vadd.f32 %v17018_v23, %v16935_v15  ;;  %v16936_v60 = vadd.f32 %v16932_v26, %v16844_v37  ;;  %v18910_v23 = vld [vmem:[%s19265_s29 + $0x14] sm:$0xf]  ;;  %v18914_v26 = vld [vmem:[%s19265_s29 + $0x18] sm:$0xf] }
 0x802   : > { %v17110_v32 = vpop.f32.mrf.mxu1 }
 0x803   : > { %v17024_v24 = vadd.f32 %v17020_v22, %v16936_v60  ;;  %v17115_v39 = vadd.f32 %v17110_v32, %v17023_v1  ;;  %v19011_v3 = vpop.eup %19010  ;;  %v18918_v60 = vld [vmem:[%s19265_s29 + $0x1c] sm:$0xf]  ;;  %v16214_v22 = vmul.f32 0.1, %v22323_v61 }
 0x804   : > { %v17112_v6 = vpop.f32.mrf.mxu1 }
 0x805   : > { %v22325_v14 = vmul.f32 %v19011_v3, %v17115_v39  ;;  %v17116_v36 = vadd.f32 %v17112_v6, %v17024_v24  ;;  %v19013_v40 = vpop.eup %19012  ;;  %v18922_v3 = vld [vmem:[%s19265_s29 + $0x20] sm:$0xf] }
 0x807   : > { %v17118_v59 = vmul.f32 %v19013_v40, %v17116_v36  ;;  %17126 = vrot.lane.b32.xlu1 %v22325_v14, %s22755_s9  ;;  %v17120_v56 = vmul.f32 %v22325_v14, %v21534_v44  ;;  %v17564_v7 = vmul.f32 %v22325_v14, %v22852_v54  ;;  %v17298_v2 = vmul.f32 %v22325_v14, %v21543_v17 }
 0x808   : > { %v17390_v11 = vmul.f32 %v22325_v14, %v22851_v47  ;;  %v17656_v47 = vmul.f32 %v22325_v14, %v21549_v48 }
 0x809   : > { %17128 = vrot.lane.b32.xlu0 %v17118_v59, %s22755_s9  ;;  %v17121_v16 = vmul.f32 %v17118_v59, %v21501_v27  ;;  %v17299_v44 = vmul.f32 %v17118_v59, %v21509_v55  ;;  %v17391_v17 = vmul.f32 %v17118_v59, %v22853_v0  ;;  %v17565_v27 = vmul.f32 %v17118_v59, %v22854_v41  ;;  %v22363_v41 = vld [vmem:[%s19270_s24] sm:$0xff]  ;;  %s22952_s9 = sshll.u32 %s22954_s26, 3 }
 0x80a   : > { %v17657_v55 = vmul.f32 %v17118_v59, %v21579_v63  ;;  %v17837_v54 = vmul.f32 %v17118_v59, %v21803_v13  ;;  %v17836_v0 = vmul.f32 %v22325_v14, %v21600_v34 }
 0x80b   : > { %17212 = vrot.lane.b32.xlu1 %v17120_v56, %s22850_s5 }
 0x80d   : > { %17568 = vrot.lane.b32.xlu0 %v17564_v7, %s22728_s10 }
 0x80f   : > { %17302 = vrot.lane.b32.xlu1 %v17298_v2, %s22847_s4 }
 0x811   : > { %17214 = vrot.lane.b32.xlu0 %v17121_v16, %s22850_s5 }
 0x813   : > { %17394 = vrot.lane.b32.xlu1 %v17390_v11, %s22725_s1 }
 0x815   : > { %17304 = vrot.lane.b32.xlu0 %v17299_v44, %s22847_s4 }
 0x817   : > { %17750 = vrot.lane.b32.xlu1 %v17118_v59, %s22750_s18 }
 0x819   : > { %17396 = vrot.lane.b32.xlu0 %v17391_v17, %s22725_s1  ;;  %s1072_s1 = scalar_lea.vmem %s19275_s3, %s22952_s9 }
 0x81b   : > { %17570 = vrot.lane.b32.xlu1 %v17565_v27, %s22728_s10 }
 0x81d   : > { %17660 = vrot.lane.b32.xlu0 %v17656_v47, %s22849_s8 }
 0x81f   : > { %17662 = vrot.lane.b32.xlu1 %v17657_v55, %s22849_s8 }
 0x821   : > { %17748 = vrot.lane.b32.xlu0 %v22325_v14, %s22750_s18 }
 0x823   : > { %17842 = vrot.lane.b32.xlu1 %v17837_v54, %s22860_s6 }
 0x825   : > { %17840 = vrot.lane.b32.xlu0 %v17836_v0, %s22860_s6 }
 0x827   : > { %17934 = vrot.lane.b32.xlu1 %v22363_v41, %s22739_s7 }
 0x879   : > { %v17127_v48 = vpop.permute.xlu1 %17126 }
 0x87a   : > { %v17130_v13 = vsel %vm22928_vm13, %v22775_v18, %v17127_v48 }
 0x87b   : > { %v17129_v63 = vpop.permute.xlu0 %17128 }
 0x87c   : > { %v17131_v21 = vsel %vm22927_vm3, %v17127_v48, %v17129_v63 }
 0x87d   : > { %v17213_v42 = vpop.permute.xlu1 %17212  ;;  %18892 = vmatprep.subr.msk.mxu0 %vm22929_vm2, %v17131_v21 }
 0x87e   : > { %18893 = vmatpush1.msk.msra.mxu0 %vm22930_vm10, %v17130_v13  ;;  %v17216_v5 = vsel %vm12960_vm7, %v21613_v58, %v17213_v42 }
 0x87f   : > { %v17569_v34 = vpop.permute.xlu0 %17568  ;;  %18894 = vmatmul.mubr.msk.f32.vlgmr.msra.gmra.mxu0 %vm1254_vm8, %v18891_v8 }
 0x880   : > { %17379 = vmatprep.mubr.f32.mxu0 %v22707_v53 }
 0x881   : > { %v17303_v49 = vpop.permute.xlu1 %17302 }
 0x882   : > { %v17306_v28 = vsel %vm13507_vm0, %v21672_v20, %v17303_v49 }
 0x883   : > { %v17215_v4 = vpop.permute.xlu0 %17214 }
 0x884   : > { %v17217_v62 = vsel %vm12960_vm7, %v17213_v42, %v17215_v4  ;;  %vm22933_vm7 = vmmov %vm22929_vm2 }
 0x885   : > { %v17395_v18 = vpop.permute.xlu1 %17394  ;;  %18895 = vmatprep.subr.msk.mxu1 %vm22931_vm6, %v17217_v62 }
 0x886   : > { %18896 = vmatpush1.msk.msra.mxu1 %vm22932_vm15, %v17216_v5  ;;  %v17398_v20 = vsel %vm4206_vm1, %v22867_v29, %v17395_v18 }
 0x887   : > { %v17305_v52 = vpop.permute.xlu0 %17304  ;;  %18897 = vmatmul.mubr.msk.f32.vlgmr.msra.gmra.mxu1 %vm1254_vm8, %v17119_v12 }
 0x888   : > { %v17307_v10 = vsel %vm13507_vm0, %v17303_v49, %v17305_v52  ;;  %17471 = vmatprep.mubr.f32.mxu1 %v22707_v53  ;;  %vm22937_vm0 = vmmov %vm22929_vm2  ;;  %vm22940_vm2 = vcmask 916480  }
 0x889   : > { %v17751_v9 = vpop.permute.xlu1 %17750  ;;  %18899 = vmatprep.subr.msk.mxu0 %vm22933_vm7, %v17307_v10  ;;  %vm22938_vm3 = vmmov %vm22937_vm0  ;;  %vm16212_vm7 = vcmp.ge.f32.partialorder %v22323_v61, 0.0 }
 0x88a   : > { %18900 = vmatpush1.msk.msra.mxu0 %vm22934_vm12, %v17306_v28  ;;  %vm22939_vm13 = vmmov %vm22937_vm0  ;;  %v17753_v29 = vsel %vm22940_vm2, %v17751_v9, %v22872_v19  ;;  %vm16211_vm12 = vcmp.ge.f32.partialorder %v22321_v43, 0.0 }
 0x88b   : > { %18901 = vmatmul.mubr.msk.f32.vlgmr.msra.gmra.mxu0 %vm1254_vm8, %v18898_v33  ;;  %18907 = vmatprep.subr.msk.mxu0 %vm22935_vm11, %v17118_v59  ;;  %v17397_v58 = vpop.permute.xlu0 %17396  ;;  %vm22942_vm10 = vmmov %vm22937_vm0 }
 0x88c   : > { %v17399_v45 = vsel %vm4206_vm1, %v17395_v18, %v17397_v58  ;;  %18908 = vmatpush1.msk.msra.mxu0 %vm22936_vm5, %v22325_v14  ;;  %17553 = vmatprep.mubr.f32.mxu0 %v22707_v53  ;;  %vm22941_vm1 = vmmov %vm22937_vm0  ;;  %v16216_v14 = vsel %vm16212_vm7, %v22323_v61, %v16214_v22 }
 0x88d   : > { %v17571_v50 = vpop.permute.xlu1 %17570  ;;  %18903 = vmatprep.subr.msk.mxu1 %vm22937_vm0, %v17399_v45  ;;  %vm22944_vm6 = vmmov %vm22940_vm2 }
 0x88e   : > { %v17572_v51 = vsel %vm4189_vm4, %v17569_v34, %v17571_v50  ;;  %v17573_v46 = vsel %vm4189_vm4, %v17571_v50, %v22871_v25  ;;  %18904 = vmatpush1.msk.msra.mxu1 %vm22938_vm3, %v17398_v20  ;;  %vm22943_vm4 = vmmov %vm22937_vm0 }
 0x88f   : > { %18905 = vmatmul.mubr.msk.f32.vlgmr.msra.gmra.mxu1 %vm1254_vm8, %v18902_v57  ;;  %18911 = vmatprep.subr.msk.mxu1 %vm22939_vm13, %v17573_v46  ;;  %v17661_v35 = vpop.permute.xlu0 %17660  ;;  %vm22945_vm15 = vmmov %vm22937_vm0  ;;  %v19020_v46 = vld [vmem:[%s19303_s2] sm:$0xff] }
 0x890   : > { %18909 = vmatmul.mubr.msk.f32.vlgmr.msra.gmra.mxu0 %vm1254_vm8, %v18906_v30  ;;  %18912 = vmatpush1.msk.msra.mxu1 %vm22941_vm1, %v17572_v51  ;;  %vm22947_vm11 = vmmov %vm22937_vm0 }
 0x891   : > { %v17663_v37 = vpop.permute.xlu1 %17662  ;;  %18919 = vmatprep.subr.msk.mxu1 %vm22942_vm10, %v17753_v29  ;;  %17645 = vmatprep.mubr.f32.mxu1 %v22707_v53  ;;  %vm22948_vm5 = vmmov %vm22937_vm0 }
 0x892   : > { %v17664_v25 = vsel %vm13490_vm14, %v17661_v35, %v17663_v37  ;;  %v17665_v15 = vsel %vm13490_vm14, %v17663_v37, %v21687_v38  ;;  %17737 = vmatprep.mubr.f32.mxu0 %v22707_v53  ;;  %vm22946_vm14 = vmmov %vm22937_vm0  ;;  %v16213_v38 = vmul.f32 0.1, %v22321_v43 }
 0x893   : > { %18913 = vmatmul.mubr.msk.f32.vlgmr.msra.gmra.mxu1 %vm1254_vm8, %v18910_v23  ;;  %18915 = vmatprep.subr.msk.mxu0 %vm22943_vm4, %v17665_v15  ;;  %v17749_v19 = vpop.permute.xlu0 %17748  ;;  %vm22949_vm3 = vmmov %vm22937_vm0  ;;  %v19021_v23 = vld [vmem:[%s19303_s2 + $0x8] sm:$0xff] }
 0x894   : > { %v17752_v1 = vsel %vm22944_vm6, %v17749_v19, %v17751_v9  ;;  %18916 = vmatpush1.msk.msra.mxu0 %vm22945_vm15, %v17664_v25  ;;  %17825 = vmatprep.mubr.f32.mxu1 %v22707_v53  ;;  %vm22950_vm2 = vmmov %vm22937_vm0 }
 0x895   : > { %v17843_v32 = vpop.permute.xlu1 %17842  ;;  %18917 = vmatmul.mubr.msk.f32.vlgmr.msra.gmra.mxu0 %vm1254_vm8, %v18914_v26  ;;  %18920 = vmatpush1.msk.msra.mxu1 %vm22946_vm14, %v17752_v1  ;;  %vm22951_vm1 = vmmov %vm22937_vm0 }
 0x896   : > { %v17845_v24 = vsel %vm12938_vm9, %v17843_v32, %v21980_v31  ;;  %17917 = vmatprep.mubr.f32.mxu0 %v22707_v53  ;;  %v16215_v31 = vsel %vm16211_vm12, %v22321_v43, %v16213_v38 }
 0x897   : > { %18921 = vmatmul.mubr.msk.f32.vlgmr.msra.gmra.mxu1 %vm1254_vm8, %v18918_v60  ;;  %18923 = vmatprep.subr.msk.mxu0 %vm22947_vm11, %v17845_v24  ;;  %v17841_v39 = vpop.permute.xlu0 %17840 }
 0x898   : > { %v17844_v6 = vsel %vm12938_vm9, %v17841_v39, %v17843_v32  ;;  %18008 = vmatprep.mubr.f32.mxu1 %v22707_v53 }
 0x899   : > { %18924 = vmatpush1.msk.msra.mxu0 %vm22948_vm5, %v17844_v6  ;;  %v17935_v58 = vpop.permute.xlu1 %17934 }
 0x89a   : > { %18925 = vmatmul.mubr.msk.f32.vlgmr.msra.gmra.mxu0 %vm1254_vm8, %v18922_v3  ;;  %18929 = vmatprep.subr.msk.mxu0 %vm22937_vm0, %v16216_v14 }
 0x89b   : > { %18930 = vmatpush1.msk.msra.mxu0 %vm22949_vm3, %v16215_v31  ;;  %18087 = vmatprep.mubr.f32.mxu0 %v22707_v53 }
 0x89e   : > { %18931 = vmatmul.mubr.msk.f32.vlgmr.msra.gmra.mxu0 %vm1254_vm8, %v22363_v41 }
 0x93f   : > { %v17205_v36 = vpop.f32.mrf.mxu0 }
 0x941   : > { %v17207_v59 = vpop.f32.mrf.mxu0 }
 0x947   : > { %v17291_v40 = vpop.f32.mrf.mxu1 }
 0x948   : > { %v17292_v56 = vadd.f32 %v17291_v40, %v17205_v36 }
 0x949   : > { %v17293_v7 = vpop.f32.mrf.mxu1 }
 0x94a   : > { %v17294_v61 = vadd.f32 %v17293_v7, %v17207_v59 }
 0x94b   : > { %v17381_v2 = vpop.f32.mrf.mxu0 }
 0x94c   : > { %v17386_v16 = vadd.f32 %v17381_v2, %v17292_v56 }
 0x94d   : > { %v17383_v43 = vpop.f32.mrf.mxu0 }
 0x94e   : > { %v17387_v44 = vadd.f32 %v17383_v43, %v17294_v61 }
 0x94f   : > { %v17473_v11 = vpop.f32.mrf.mxu1 }
 0x950   : > { %v17478_v17 = vadd.f32 %v17473_v11, %v17386_v16  ;;  %v17555_v27 = vpop.f32.mrf.mxu0 }
 0x951   : > { %v17475_v47 = vpop.f32.mrf.mxu1 }
 0x952   : > { %v17560_v55 = vadd.f32 %v17555_v27, %v17478_v17  ;;  %v17479_v54 = vadd.f32 %v17475_v47, %v17387_v44  ;;  %v17557_v53 = vpop.f32.mrf.mxu0 }
 0x953   : > { %v17647_v0 = vpop.f32.mrf.mxu1 }
 0x954   : > { %v17561_v48 = vadd.f32 %v17557_v53, %v17479_v54  ;;  %v17652_v41 = vadd.f32 %v17647_v0, %v17560_v55 }
 0x955   : > { %v17649_v63 = vpop.f32.mrf.mxu1  ;;  %v17739_v21 = vpop.f32.mrf.mxu0 }
 0x956   : > { %v17653_v8 = vadd.f32 %v17649_v63, %v17561_v48  ;;  %v17744_v13 = vadd.f32 %v17739_v21, %v17652_v41 }
 0x957   : > { %v17741_v42 = vpop.f32.mrf.mxu0  ;;  %v17827_v34 = vpop.f32.mrf.mxu1 }
 0x958   : > { %v17745_v49 = vadd.f32 %v17741_v42, %v17653_v8  ;;  %v17832_v4 = vadd.f32 %v17827_v34, %v17744_v13 }
 0x959   : > { %v17829_v62 = vpop.f32.mrf.mxu1 }
 0x95a   : > { %v17833_v12 = vadd.f32 %v17829_v62, %v17745_v49  ;;  %v17919_v5 = vpop.f32.mrf.mxu0 }
 0x95b   : > { %v17924_v18 = vadd.f32 %v17919_v5, %v17832_v4 }
 0x95c   : > { %v17921_v52 = vpop.f32.mrf.mxu0 }
 0x95d   : > { %v17925_v10 = vadd.f32 %v17921_v52, %v17833_v12  ;;  %v17928_v33 = vmul.f32 0.1, %v17924_v18  ;;  %vm17926_vm9 = vcmp.ge.f32.partialorder %v17924_v18, 0.0 }
 0x95e   : > { %v18089_v57 = vpop.f32.mrf.mxu0 }
 0x95f   : > { %vm17927_vm13 = vcmp.ge.f32.partialorder %v17925_v10, 0.0  ;;  %v17929_v28 = vmul.f32 0.1, %v17925_v10  ;;  %v17930_v45 = vsel %vm17926_vm9, %v17924_v18, %v17928_v33 }
 0x960   : > { %v18091_v51 = vpop.f32.mrf.mxu0 }
 0x961   : > { %v17931_v9 = vsel %vm17927_vm13, %v17925_v10, %v17929_v28 }
 0x962   : > { %18926 = vmatprep.subr.msk.mxu1 %vm22950_vm2, %v17931_v9 }
 0x963   : > { %18927 = vmatpush1.msk.msra.mxu1 %vm22951_vm1, %v17930_v45 }
 0x964   : > { %18928 = vmatmul.mubr.msk.f32.vlgmr.msra.gmra.mxu1 %vm1254_vm8, %v17935_v58 }
 0xa24   : > { %v18010_v20 = vpop.f32.mrf.mxu1 }
 0xa25   : > { %v18090_v50 = vadd.f32 %v18089_v57, %v18010_v20 }
 0xa26   : > { %v18012_v30 = vpop.f32.mrf.mxu1 }
 0xa27   : > { %v18094_v35 = vadd.f32 %v19020_v46, %v18090_v50  ;;  %v18092_v29 = vadd.f32 %v18091_v51, %v18012_v30 }
 0xa29   : > { %18096 = vst [vmem:[%s1072_s1] sm:$0xff] %v18094_v35  ;;  %v18095_v37 = vadd.f32 %v19021_v23, %v18092_v29 }
 0xa2b   : > { %18097 = vst [vmem:[%s1072_s1 + $0x8] sm:$0xff] %v18095_v37 }
 0xa2c PF: > { %s81_s22 = sadd.s32 1, %s19028_s22  }
 0xa2d   : > { %p78_p4 = scmp.ge.s32.totalorder %s81_s22, 4  }
 0xa2f   :  { %80 = sbr.rel (!%p78_p4) target bundleno = 62 (0x3e), region = 390 }

</bundles_post_ra>
